<compile_context>
chip_gen: v6e
topology: v6e:2x2x1
jax: 0.10.0
libtpu: 0.0.40
codegen_flags: <defaults>
</compile_context>

<pallas_src>
import functools

import jax
import jax.numpy as jnp
from jax import lax
from jax.experimental import pallas as pl
from jax.experimental.pallas import tpu as pltpu


# ---------------- fused conv1 -> conv2 -> conv3 -> gram (per image) ----------
def cnn2_convs_gram_kernel(x_ref, w1_ref, b1_ref, w2_ref, b2_ref, w3_ref,
                           b3_ref, g_ref, h1_ref, h2_ref, *, H, W):
    """x_ref: (1, H+2, W+2, C0) bf16 padded input.
       w*_ref: (3, 3*Cin, Cout) bf16 (dx folded into K), b*_ref: (1, Cout) f32.
       g_ref: (1, C3, C3) f32 gram output.
       h1_ref/h2_ref: padded (H+2, W+2, C) f32 VMEM scratch intermediates."""

    def conv3x3(load, w_ref, b_ref, relu):
        # load(dx) -> (H+2, W, Cin) bf16: input window shifted by dx along W.
        # dx is folded into the contraction dim -> K = 3*Cin per matmul.
        xs = jnp.concatenate([load(0), load(1), load(2)], axis=-1)
        k3 = w_ref.shape[1]
        cout = w_ref.shape[2]
        acc = jnp.zeros((H * W, cout), jnp.float32)
        for dy in range(3):                     # 3 MXU matmuls, chained f32 acc
            patch = xs[dy:dy + H].reshape(H * W, k3)
            acc = acc + jnp.dot(patch, w_ref[dy],
                                preferred_element_type=jnp.float32)
        acc = acc + b_ref[...]                  # (1, Cout) broadcast
        if relu:
            acc = jnp.maximum(acc, 0.0)
        return acc                              # (H*W, Cout) f32

    C1 = h1_ref.shape[-1]
    C2 = h2_ref.shape[-1]

    # conv1 + ReLU: padded bf16 input block -> padded f32 VMEM scratch.
    a1 = conv3x3(lambda dx: x_ref[0, :, dx:dx + W, :], w1_ref, b1_ref, True)
    h1_ref[...] = jnp.zeros_like(h1_ref)        # zero border == SAME padding
    h1_ref[1:H + 1, 1:W + 1, :] = a1.reshape(H, W, C1)

    # conv2 + ReLU (reads the VMEM-resident padded intermediate).
    a2 = conv3x3(lambda dx: h1_ref[:, dx:dx + W, :].astype(jnp.bfloat16),
                 w2_ref, b2_ref, True)
    h2_ref[...] = jnp.zeros_like(h2_ref)
    h2_ref[1:H + 1, 1:W + 1, :] = a2.reshape(H, W, C2)

    # conv3 (no ReLU): keep the (H*W, C3) features on-chip and go straight
    # into the gram matmul (no HBM round trip, no NCHW transpose).
    f = conv3x3(lambda dx: h2_ref[:, dx:dx + W, :].astype(jnp.bfloat16),
                w3_ref, b3_ref, False)

    # gram[i, j] = (1/(h*w)) * sum_p f[p, i] * f[p, j]  ==  bmm(out, out^T)/(h*w)
    g = lax.dot_general(f, f, dimension_numbers=(((0,), (0,)), ((), ())),
                        preferred_element_type=jnp.float32)
    g_ref[0] = g * (1.0 / (H * W))


def convs_gram(x_pad_bf16, w1, b1, w2, b2, w3, b3):
    B, Hp, Wp, C0 = x_pad_bf16.shape
    H, W = Hp - 2, Wp - 2
    C1, C2, C3 = w1.shape[-1], w2.shape[-1], w3.shape[-1]
    kernel = functools.partial(cnn2_convs_gram_kernel, H=H, W=W)
    return pl.pallas_call(
        kernel,
        out_shape=jax.ShapeDtypeStruct((B, C3, C3), jnp.float32),
        grid_spec=pltpu.PrefetchScalarGridSpec(
            num_scalar_prefetch=0,
            grid=(B,),
            in_specs=[
                pl.BlockSpec((1, Hp, Wp, C0), lambda b: (b, 0, 0, 0)),
                pl.BlockSpec((3, 3 * C0, C1), lambda b: (0, 0, 0)),
                pl.BlockSpec((1, C1), lambda b: (0, 0)),
                pl.BlockSpec((3, 3 * C1, C2), lambda b: (0, 0, 0)),
                pl.BlockSpec((1, C2), lambda b: (0, 0)),
                pl.BlockSpec((3, 3 * C2, C3), lambda b: (0, 0, 0)),
                pl.BlockSpec((1, C3), lambda b: (0, 0)),
            ],
            out_specs=pl.BlockSpec((1, C3, C3), lambda b: (b, 0, 0)),
            scratch_shapes=[
                pltpu.VMEM((Hp, Wp, C1), jnp.float32),   # padded conv1 output
                pltpu.VMEM((Hp, Wp, C2), jnp.float32),   # padded conv2 output
            ],
        ),
        compiler_params=pltpu.CompilerParams(
            dimension_semantics=("parallel",),           # B=2 -> both v7x cores
            vmem_limit_bytes=32 * 1024 * 1024),
    )(x_pad_bf16, w1, b1, w2, b2, w3, b3)


# --------------------------------- linear -----------------------------------
def fc_kernel(x_ref, w_ref, b_ref, o_ref):
    o_ref[...] = (jnp.dot(x_ref[...].astype(jnp.bfloat16), w_ref[...],
                          preferred_element_type=jnp.float32) + b_ref[...])


def fc(x, w_bf16, bias):
    B, _ = x.shape
    Dout = w_bf16.shape[1]
    # Whole problem fits in VMEM -> single-block pallas_call (no grid).
    return pl.pallas_call(
        fc_kernel,
        out_shape=jax.ShapeDtypeStruct((B, Dout), jnp.float32),
    )(x, w_bf16, bias)


# ------------------------------ CNN2 module ----------------------------------
def init_params(key, layer="r31", matrix_size=32):
    if layer == "r31":
        chans = [256, 128, 64, matrix_size]
    elif layer == "r41":
        chans = [512, 256, 128, matrix_size]
    else:
        raise ValueError(layer)
    keys = jax.random.split(key, 8)
    params = {"convs": []}
    for i in range(3):
        cin, cout = chans[i], chans[i + 1]
        w = jax.random.normal(keys[2 * i], (3, 3, cin, cout),
                              jnp.float32) / jnp.sqrt(9.0 * cin)   # HWIO
        b = jax.random.normal(keys[2 * i + 1], (cout,), jnp.float32) * 0.01
        params["convs"].append((w, b))
    d = matrix_size * matrix_size                     # nn.Linear(32*32, 32*32)
    params["fc_w"] = jax.random.normal(keys[6], (d, d), jnp.float32) / jnp.sqrt(float(d))
    params["fc_b"] = jax.random.normal(keys[7], (d,), jnp.float32) * 0.01
    return params


def prepare_params(params):
    """One-time conversion to the kernel layout: conv weights HWIO ->
    (3, 3*Cin, Cout) bf16 (dx folded into K, matching the in-kernel concat
    order dx-major / Cin-minor), biases -> (1, Cout) f32, fc weight -> bf16."""
    prepped = {"convs": []}
    for w, b in params["convs"]:
        kh, kw, cin, cout = w.shape
        wk = w.reshape(kh, kw * cin, cout).astype(jnp.bfloat16)
        prepped["convs"].append((wk, b.reshape(1, cout)))
    prepped["fc_w"] = params["fc_w"].astype(jnp.bfloat16)
    prepped["fc_b"] = params["fc_b"].reshape(1, -1)
    return prepped


@jax.jit
def cnn2_forward(prepped_params, x_nchw):
    # x_nchw: (B, 256, H, W) float32 — same convention as the PyTorch module.
    (w1, b1), (w2, b2), (w3, b3) = prepped_params["convs"]
    x = jnp.transpose(x_nchw, (0, 2, 3, 1))                      # glue: -> NHWC
    x = jnp.pad(x, ((0, 0), (1, 1), (1, 1), (0, 0))).astype(jnp.bfloat16)
    g = convs_gram(x, w1, b1, w2, b2, w3, b3)                    # (B, C3, C3)
    B, C3, _ = g.shape
    g_flat = g.reshape(B, C3 * C3)                               # == out.view(b, -1)
    return fc(g_flat, prepped_params["fc_w"], prepped_params["fc_b"])


if __name__ == "__main__":
    key = jax.random.PRNGKey(0)
    pkey, xkey = jax.random.split(key)
    params = prepare_params(init_params(pkey, layer="r31", matrix_size=32))
    # r31 implies 256 input channels; keep spatial small for the test.
    x = jax.random.normal(xkey, (2, 256, 16, 16), jnp.float32)
    out = cnn2_forward(params, x)
    jax.block_until_ready(out)
    assert out.shape == (2, 32 * 32)
    print("KERNEL_OK")
</pallas_src>

<mosaic_0001>
module attributes {stable_mosaic.version = 11 : i64} {
  func.func @fc_kernel(%arg0: memref<2x1024xf32, #tpu.memory_space<vmem>>, %arg1: memref<1024x1024xbf16, #tpu.memory_space<vmem>>, %arg2: memref<1x1024xf32, #tpu.memory_space<vmem>>, %arg3: memref<2x1024xf32, #tpu.memory_space<vmem>>) attributes {dimension_semantics = [], scalar_prefetch = 0 : i64, scratch_operands = 0 : i64, tpu.core_type = #tpu.core_type<tc>} {
    %c0 = arith.constant 0 : index
    %c0_0 = arith.constant 0 : index
    %0 = vector.load %arg0[%c0, %c0_0] : memref<2x1024xf32, #tpu.memory_space<vmem>>, vector<2x1024xf32>
    %1 = arith.truncf %0 : vector<2x1024xf32> to vector<2x1024xbf16>
    %c0_1 = arith.constant 0 : index
    %c0_2 = arith.constant 0 : index
    %2 = vector.load %arg1[%c0_1, %c0_2] : memref<1024x1024xbf16, #tpu.memory_space<vmem>>, vector<1024x1024xbf16>
    %cst = arith.constant dense<0.000000e+00> : vector<2x1024xf32>
    %3 = tpu.matmul %1, %2, %cst {dimension_numbers = #tpu.dot_dimension_numbers<[1], [0], [0], [1], [0, 0, 1, 1], [], []>} : vector<2x1024xbf16>, vector<1024x1024xbf16>, vector<2x1024xf32> -> vector<2x1024xf32>
    %c0_3 = arith.constant 0 : index
    %c0_4 = arith.constant 0 : index
    %4 = vector.load %arg2[%c0_3, %c0_4] : memref<1x1024xf32, #tpu.memory_space<vmem>>, vector<1x1024xf32>
    %5 = vector.broadcast %4 : vector<1x1024xf32> to vector<2x1024xf32>
    %6 = arith.addf %3, %5 : vector<2x1024xf32>
    %c0_5 = arith.constant 0 : index
    %c0_6 = arith.constant 0 : index
    %7 = vector.load %arg3[%c0_5, %c0_6] : memref<2x1024xf32, #tpu.memory_space<vmem>>, vector<2x1024xf32>
    tpu.vector_store %arg3[%c0_5, %c0_6], %6 {strides = array<i32>} : memref<2x1024xf32, #tpu.memory_space<vmem>>, vector<2x1024xf32>,
    return
  }
}

module attributes {stable_mosaic.version = 11 : i64} {
  func.func @cnn2_convs_gram_kernel(%arg0: i32, %arg1: memref<1x18x18x256xbf16, #tpu.memory_space<vmem>>, %arg2: memref<3x768x128xbf16, #tpu.memory_space<vmem>>, %arg3: memref<1x128xf32, #tpu.memory_space<vmem>>, %arg4: memref<3x384x64xbf16, #tpu.memory_space<vmem>>, %arg5: memref<1x64xf32, #tpu.memory_space<vmem>>, %arg6: memref<3x192x32xbf16, #tpu.memory_space<vmem>>, %arg7: memref<1x32xf32, #tpu.memory_space<vmem>>, %arg8: memref<1x32x32xf32, #tpu.memory_space<vmem>>, %arg9: memref<18x18x128xf32, #tpu.memory_space<vmem>>, %arg10: memref<18x18x64xf32, #tpu.memory_space<vmem>>) attributes {dimension_semantics = [#tpu.dimension_semantics<parallel>], iteration_bounds = array<i64: 2>, scalar_prefetch = 0 : i64, scratch_operands = 2 : i64, tpu.core_type = #tpu.core_type<tc>, window_params = [{transform_indices = @transform_0, window_bounds = array<i64: 1, 18, 18, 256>}, {pipeline_mode = #tpu.pipeline_mode<synchronous>, transform_indices = @transform_1, window_bounds = array<i64: 3, 768, 128>}, {pipeline_mode = #tpu.pipeline_mode<synchronous>, transform_indices = @transform_2, window_bounds = array<i64: 1, 128>}, {pipeline_mode = #tpu.pipeline_mode<synchronous>, transform_indices = @transform_3, window_bounds = array<i64: 3, 384, 64>}, {pipeline_mode = #tpu.pipeline_mode<synchronous>, transform_indices = @transform_4, window_bounds = array<i64: 1, 64>}, {pipeline_mode = #tpu.pipeline_mode<synchronous>, transform_indices = @transform_5, window_bounds = array<i64: 3, 192, 32>}, {pipeline_mode = #tpu.pipeline_mode<synchronous>, transform_indices = @transform_6, window_bounds = array<i64: 1, 32>}, {transform_indices = @transform_7, window_bounds = array<i64: 1, 32, 32>}]} {
    %c0 = arith.constant 0 : index
    %c0_0 = arith.constant 0 : index
    %c0_1 = arith.constant 0 : index
    %c0_2 = arith.constant 0 : index
    %0 = vector.load %arg1[%c0, %c0_0, %c0_1, %c0_2] : memref<1x18x18x256xbf16, #tpu.memory_space<vmem>>, vector<1x18x16x256xbf16>
    %1 = vector.shape_cast %0 : vector<1x18x16x256xbf16> to vector<18x16x256xbf16>
    %c0_3 = arith.constant 0 : index
    %c0_4 = arith.constant 0 : index
    %c1 = arith.constant 1 : index
    %c0_5 = arith.constant 0 : index
    %2 = vector.load %arg1[%c0_3, %c0_4, %c1, %c0_5] : memref<1x18x18x256xbf16, #tpu.memory_space<vmem>>, vector<1x18x16x256xbf16>
    %3 = vector.shape_cast %2 : vector<1x18x16x256xbf16> to vector<18x16x256xbf16>
    %c0_6 = arith.constant 0 : index
    %c0_7 = arith.constant 0 : index
    %c2 = arith.constant 2 : index
    %c0_8 = arith.constant 0 : index
    %4 = vector.load %arg1[%c0_6, %c0_7, %c2, %c0_8] : memref<1x18x18x256xbf16, #tpu.memory_space<vmem>>, vector<1x18x16x256xbf16>
    %5 = vector.shape_cast %4 : vector<1x18x16x256xbf16> to vector<18x16x256xbf16>
    %6 = tpu.concatenate %1, %3, %5 in 2 : vector<18x16x256xbf16>, vector<18x16x256xbf16>, vector<18x16x256xbf16> -> vector<18x16x768xbf16>
    %cst = arith.constant 0.000000e+00 : f32
    %7 = vector.broadcast %cst : f32 to vector<256x128xf32>
    %8 = vector.extract_strided_slice %6 {offsets = [0, 0, 0], sizes = [16, 16, 768], strides = [1, 1, 1]} : vector<18x16x768xbf16> to vector<16x16x768xbf16>
    %9 = vector.shape_cast %8 : vector<16x16x768xbf16> to vector<256x768xbf16>
    %c0_9 = arith.constant 0 : index
    %c0_10 = arith.constant 0 : index
    %c0_11 = arith.constant 0 : index
    %10 = vector.load %arg2[%c0_9, %c0_10, %c0_11] : memref<3x768x128xbf16, #tpu.memory_space<vmem>>, vector<1x768x128xbf16>
    %11 = vector.shape_cast %10 : vector<1x768x128xbf16> to vector<768x128xbf16>
    %cst_12 = arith.constant dense<0.000000e+00> : vector<256x128xf32>
    %12 = tpu.matmul %9, %11, %cst_12 {dimension_numbers = #tpu.dot_dimension_numbers<[1], [0], [0], [1], [0, 0, 1, 1], [], []>} : vector<256x768xbf16>, vector<768x128xbf16>, vector<256x128xf32> -> vector<256x128xf32>
    %13 = arith.addf %7, %12 : vector<256x128xf32>
    %14 = vector.extract_strided_slice %6 {offsets = [1, 0, 0], sizes = [16, 16, 768], strides = [1, 1, 1]} : vector<18x16x768xbf16> to vector<16x16x768xbf16>
    %15 = vector.shape_cast %14 : vector<16x16x768xbf16> to vector<256x768xbf16>
    %c1_13 = arith.constant 1 : index
    %c0_14 = arith.constant 0 : index
    %c0_15 = arith.constant 0 : index
    %16 = vector.load %arg2[%c1_13, %c0_14, %c0_15] : memref<3x768x128xbf16, #tpu.memory_space<vmem>>, vector<1x768x128xbf16>
    %17 = vector.shape_cast %16 : vector<1x768x128xbf16> to vector<768x128xbf16>
    %cst_16 = arith.constant dense<0.000000e+00> : vector<256x128xf32>
    %18 = tpu.matmul %15, %17, %cst_16 {dimension_numbers = #tpu.dot_dimension_numbers<[1], [0], [0], [1], [0, 0, 1, 1], [], []>} : vector<256x768xbf16>, vector<768x128xbf16>, vector<256x128xf32> -> vector<256x128xf32>
    %19 = arith.addf %13, %18 : vector<256x128xf32>
    %20 = vector.extract_strided_slice %6 {offsets = [2, 0, 0], sizes = [16, 16, 768], strides = [1, 1, 1]} : vector<18x16x768xbf16> to vector<16x16x768xbf16>
    %21 = vector.shape_cast %20 : vector<16x16x768xbf16> to vector<256x768xbf16>
    %c2_17 = arith.constant 2 : index
    %c0_18 = arith.constant 0 : index
    %c0_19 = arith.constant 0 : index
    %22 = vector.load %arg2[%c2_17, %c0_18, %c0_19] : memref<3x768x128xbf16, #tpu.memory_space<vmem>>, vector<1x768x128xbf16>
    %23 = vector.shape_cast %22 : vector<1x768x128xbf16> to vector<768x128xbf16>
    %cst_20 = arith.constant dense<0.000000e+00> : vector<256x128xf32>
    %24 = tpu.matmul %21, %23, %cst_20 {dimension_numbers = #tpu.dot_dimension_numbers<[1], [0], [0], [1], [0, 0, 1, 1], [], []>} : vector<256x768xbf16>, vector<768x128xbf16>, vector<256x128xf32> -> vector<256x128xf32>
    %25 = arith.addf %19, %24 : vector<256x128xf32>
    %c0_21 = arith.constant 0 : index
    %c0_22 = arith.constant 0 : index
    %26 = vector.load %arg3[%c0_21, %c0_22] : memref<1x128xf32, #tpu.memory_space<vmem>>, vector<1x128xf32>
    %27 = vector.broadcast %26 : vector<1x128xf32> to vector<256x128xf32>
    %28 = arith.addf %25, %27 : vector<256x128xf32>
    %cst_23 = arith.constant 0.000000e+00 : f32
    %29 = vector.broadcast %cst_23 : f32 to vector<256x128xf32>
    %30 = arith.maximumf %28, %29 : vector<256x128xf32>
    %cst_24 = arith.constant 0.000000e+00 : f32
    %31 = vector.broadcast %cst_24 : f32 to vector<18x18x128xf32>
    %c0_25 = arith.constant 0 : index
    %c0_26 = arith.constant 0 : index
    %c0_27 = arith.constant 0 : index
    %32 = vector.load %arg9[%c0_25, %c0_26, %c0_27] : memref<18x18x128xf32, #tpu.memory_space<vmem>>, vector<18x18x128xf32>
    tpu.vector_store %arg9[%c0_25, %c0_26, %c0_27], %31 {strides = array<i32>} : memref<18x18x128xf32, #tpu.memory_space<vmem>>, vector<18x18x128xf32>,
    %33 = vector.shape_cast %30 : vector<256x128xf32> to vector<16x16x128xf32>
    %c1_28 = arith.constant 1 : index
    %c1_29 = arith.constant 1 : index
    %c0_30 = arith.constant 0 : index
    %34 = vector.load %arg9[%c1_28, %c1_29, %c0_30] : memref<18x18x128xf32, #tpu.memory_space<vmem>>, vector<16x16x128xf32>
    tpu.vector_store %arg9[%c1_28, %c1_29, %c0_30], %33 {strides = array<i32>} : memref<18x18x128xf32, #tpu.memory_space<vmem>>, vector<16x16x128xf32>,
    %c0_31 = arith.constant 0 : index
    %c0_32 = arith.constant 0 : index
    %c0_33 = arith.constant 0 : index
    %35 = vector.load %arg9[%c0_31, %c0_32, %c0_33] : memref<18x18x128xf32, #tpu.memory_space<vmem>>, vector<18x16x128xf32>
    %36 = arith.truncf %35 : vector<18x16x128xf32> to vector<18x16x128xbf16>
    %c0_34 = arith.constant 0 : index
    %c1_35 = arith.constant 1 : index
    %c0_36 = arith.constant 0 : index
    %37 = vector.load %arg9[%c0_34, %c1_35, %c0_36] : memref<18x18x128xf32, #tpu.memory_space<vmem>>, vector<18x16x128xf32>
    %38 = arith.truncf %37 : vector<18x16x128xf32> to vector<18x16x128xbf16>
    %c0_37 = arith.constant 0 : index
    %c2_38 = arith.constant 2 : index
    %c0_39 = arith.constant 0 : index
    %39 = vector.load %arg9[%c0_37, %c2_38, %c0_39] : memref<18x18x128xf32, #tpu.memory_space<vmem>>, vector<18x16x128xf32>
    %40 = arith.truncf %39 : vector<18x16x128xf32> to vector<18x16x128xbf16>
    %41 = tpu.concatenate %36, %38, %40 in 2 : vector<18x16x128xbf16>, vector<18x16x128xbf16>, vector<18x16x128xbf16> -> vector<18x16x384xbf16>
    %cst_40 = arith.constant 0.000000e+00 : f32
    %42 = vector.broadcast %cst_40 : f32 to vector<256x64xf32>
    %43 = vector.extract_strided_slice %41 {offsets = [0, 0, 0], sizes = [16, 16, 384], strides = [1, 1, 1]} : vector<18x16x384xbf16> to vector<16x16x384xbf16>
    %44 = vector.shape_cast %43 : vector<16x16x384xbf16> to vector<256x384xbf16>
    %c0_41 = arith.constant 0 : index
    %c0_42 = arith.constant 0 : index
    %c0_43 = arith.constant 0 : index
    %45 = vector.load %arg4[%c0_41, %c0_42, %c0_43] : memref<3x384x64xbf16, #tpu.memory_space<vmem>>, vector<1x384x64xbf16>
    %46 = vector.shape_cast %45 : vector<1x384x64xbf16> to vector<384x64xbf16>
    %cst_44 = arith.constant dense<0.000000e+00> : vector<256x64xf32>
    %47 = tpu.matmul %44, %46, %cst_44 {dimension_numbers = #tpu.dot_dimension_numbers<[1], [0], [0], [1], [0, 0, 1, 1], [], []>} : vector<256x384xbf16>, vector<384x64xbf16>, vector<256x64xf32> -> vector<256x64xf32>
    %48 = arith.addf %42, %47 : vector<256x64xf32>
    %49 = vector.extract_strided_slice %41 {offsets = [1, 0, 0], sizes = [16, 16, 384], strides = [1, 1, 1]} : vector<18x16x384xbf16> to vector<16x16x384xbf16>
    %50 = vector.shape_cast %49 : vector<16x16x384xbf16> to vector<256x384xbf16>
    %c1_45 = arith.constant 1 : index
    %c0_46 = arith.constant 0 : index
    %c0_47 = arith.constant 0 : index
    %51 = vector.load %arg4[%c1_45, %c0_46, %c0_47] : memref<3x384x64xbf16, #tpu.memory_space<vmem>>, vector<1x384x64xbf16>
    %52 = vector.shape_cast %51 : vector<1x384x64xbf16> to vector<384x64xbf16>
    %cst_48 = arith.constant dense<0.000000e+00> : vector<256x64xf32>
    %53 = tpu.matmul %50, %52, %cst_48 {dimension_numbers = #tpu.dot_dimension_numbers<[1], [0], [0], [1], [0, 0, 1, 1], [], []>} : vector<256x384xbf16>, vector<384x64xbf16>, vector<256x64xf32> -> vector<256x64xf32>
    %54 = arith.addf %48, %53 : vector<256x64xf32>
    %55 = vector.extract_strided_slice %41 {offsets = [2, 0, 0], sizes = [16, 16, 384], strides = [1, 1, 1]} : vector<18x16x384xbf16> to vector<16x16x384xbf16>
    %56 = vector.shape_cast %55 : vector<16x16x384xbf16> to vector<256x384xbf16>
    %c2_49 = arith.constant 2 : index
    %c0_50 = arith.constant 0 : index
    %c0_51 = arith.constant 0 : index
    %57 = vector.load %arg4[%c2_49, %c0_50, %c0_51] : memref<3x384x64xbf16, #tpu.memory_space<vmem>>, vector<1x384x64xbf16>
    %58 = vector.shape_cast %57 : vector<1x384x64xbf16> to vector<384x64xbf16>
    %cst_52 = arith.constant dense<0.000000e+00> : vector<256x64xf32>
    %59 = tpu.matmul %56, %58, %cst_52 {dimension_numbers = #tpu.dot_dimension_numbers<[1], [0], [0], [1], [0, 0, 1, 1], [], []>} : vector<256x384xbf16>, vector<384x64xbf16>, vector<256x64xf32> -> vector<256x64xf32>
    %60 = arith.addf %54, %59 : vector<256x64xf32>
    %c0_53 = arith.constant 0 : index
    %c0_54 = arith.constant 0 : index
    %61 = vector.load %arg5[%c0_53, %c0_54] : memref<1x64xf32, #tpu.memory_space<vmem>>, vector<1x64xf32>
    %62 = vector.broadcast %61 : vector<1x64xf32> to vector<256x64xf32>
    %63 = arith.addf %60, %62 : vector<256x64xf32>
    %cst_55 = arith.constant 0.000000e+00 : f32
    %64 = vector.broadcast %cst_55 : f32 to vector<256x64xf32>
    %65 = arith.maximumf %63, %64 : vector<256x64xf32>
    %cst_56 = arith.constant 0.000000e+00 : f32
    %66 = vector.broadcast %cst_56 : f32 to vector<18x18x64xf32>
    %c0_57 = arith.constant 0 : index
    %c0_58 = arith.constant 0 : index
    %c0_59 = arith.constant 0 : index
    %67 = vector.load %arg10[%c0_57, %c0_58, %c0_59] : memref<18x18x64xf32, #tpu.memory_space<vmem>>, vector<18x18x64xf32>
    tpu.vector_store %arg10[%c0_57, %c0_58, %c0_59], %66 {strides = array<i32>} : memref<18x18x64xf32, #tpu.memory_space<vmem>>, vector<18x18x64xf32>,
    %68 = vector.shape_cast %65 : vector<256x64xf32> to vector<16x16x64xf32>
    %c1_60 = arith.constant 1 : index
    %c1_61 = arith.constant 1 : index
    %c0_62 = arith.constant 0 : index
    %69 = vector.load %arg10[%c1_60, %c1_61, %c0_62] : memref<18x18x64xf32, #tpu.memory_space<vmem>>, vector<16x16x64xf32>
    tpu.vector_store %arg10[%c1_60, %c1_61, %c0_62], %68 {strides = array<i32>} : memref<18x18x64xf32, #tpu.memory_space<vmem>>, vector<16x16x64xf32>,
    %c0_63 = arith.constant 0 : index
    %c0_64 = arith.constant 0 : index
    %c0_65 = arith.constant 0 : index
    %70 = vector.load %arg10[%c0_63, %c0_64, %c0_65] : memref<18x18x64xf32, #tpu.memory_space<vmem>>, vector<18x16x64xf32>
    %71 = arith.truncf %70 : vector<18x16x64xf32> to vector<18x16x64xbf16>
    %c0_66 = arith.constant 0 : index
    %c1_67 = arith.constant 1 : index
    %c0_68 = arith.constant 0 : index
    %72 = vector.load %arg10[%c0_66, %c1_67, %c0_68] : memref<18x18x64xf32, #tpu.memory_space<vmem>>, vector<18x16x64xf32>
    %73 = arith.truncf %72 : vector<18x16x64xf32> to vector<18x16x64xbf16>
    %c0_69 = arith.constant 0 : index
    %c2_70 = arith.constant 2 : index
    %c0_71 = arith.constant 0 : index
    %74 = vector.load %arg10[%c0_69, %c2_70, %c0_71] : memref<18x18x64xf32, #tpu.memory_space<vmem>>, vector<18x16x64xf32>
    %75 = arith.truncf %74 : vector<18x16x64xf32> to vector<18x16x64xbf16>
    %76 = tpu.concatenate %71, %73, %75 in 2 : vector<18x16x64xbf16>, vector<18x16x64xbf16>, vector<18x16x64xbf16> -> vector<18x16x192xbf16>
    %cst_72 = arith.constant 0.000000e+00 : f32
    %77 = vector.broadcast %cst_72 : f32 to vector<256x32xf32>
    %78 = vector.extract_strided_slice %76 {offsets = [0, 0, 0], sizes = [16, 16, 192], strides = [1, 1, 1]} : vector<18x16x192xbf16> to vector<16x16x192xbf16>
    %79 = vector.shape_cast %78 : vector<16x16x192xbf16> to vector<256x192xbf16>
    %c0_73 = arith.constant 0 : index
    %c0_74 = arith.constant 0 : index
    %c0_75 = arith.constant 0 : index
    %80 = vector.load %arg6[%c0_73, %c0_74, %c0_75] : memref<3x192x32xbf16, #tpu.memory_space<vmem>>, vector<1x192x32xbf16>
    %81 = vector.shape_cast %80 : vector<1x192x32xbf16> to vector<192x32xbf16>
    %cst_76 = arith.constant dense<0.000000e+00> : vector<256x32xf32>
    %82 = tpu.matmul %79, %81, %cst_76 {dimension_numbers = #tpu.dot_dimension_numbers<[1], [0], [0], [1], [0, 0, 1, 1], [], []>} : vector<256x192xbf16>, vector<192x32xbf16>, vector<256x32xf32> -> vector<256x32xf32>
    %83 = arith.addf %77, %82 : vector<256x32xf32>
    %84 = vector.extract_strided_slice %76 {offsets = [1, 0, 0], sizes = [16, 16, 192], strides = [1, 1, 1]} : vector<18x16x192xbf16> to vector<16x16x192xbf16>
    %85 = vector.shape_cast %84 : vector<16x16x192xbf16> to vector<256x192xbf16>
    %c1_77 = arith.constant 1 : index
    %c0_78 = arith.constant 0 : index
    %c0_79 = arith.constant 0 : index
    %86 = vector.load %arg6[%c1_77, %c0_78, %c0_79] : memref<3x192x32xbf16, #tpu.memory_space<vmem>>, vector<1x192x32xbf16>
    %87 = vector.shape_cast %86 : vector<1x192x32xbf16> to vector<192x32xbf16>
    %cst_80 = arith.constant dense<0.000000e+00> : vector<256x32xf32>
    %88 = tpu.matmul %85, %87, %cst_80 {dimension_numbers = #tpu.dot_dimension_numbers<[1], [0], [0], [1], [0, 0, 1, 1], [], []>} : vector<256x192xbf16>, vector<192x32xbf16>, vector<256x32xf32> -> vector<256x32xf32>
    %89 = arith.addf %83, %88 : vector<256x32xf32>
    %90 = vector.extract_strided_slice %76 {offsets = [2, 0, 0], sizes = [16, 16, 192], strides = [1, 1, 1]} : vector<18x16x192xbf16> to vector<16x16x192xbf16>
    %91 = vector.shape_cast %90 : vector<16x16x192xbf16> to vector<256x192xbf16>
    %c2_81 = arith.constant 2 : index
    %c0_82 = arith.constant 0 : index
    %c0_83 = arith.constant 0 : index
    %92 = vector.load %arg6[%c2_81, %c0_82, %c0_83] : memref<3x192x32xbf16, #tpu.memory_space<vmem>>, vector<1x192x32xbf16>
    %93 = vector.shape_cast %92 : vector<1x192x32xbf16> to vector<192x32xbf16>
    %cst_84 = arith.constant dense<0.000000e+00> : vector<256x32xf32>
    %94 = tpu.matmul %91, %93, %cst_84 {dimension_numbers = #tpu.dot_dimension_numbers<[1], [0], [0], [1], [0, 0, 1, 1], [], []>} : vector<256x192xbf16>, vector<192x32xbf16>, vector<256x32xf32> -> vector<256x32xf32>
    %95 = arith.addf %89, %94 : vector<256x32xf32>
    %c0_85 = arith.constant 0 : index
    %c0_86 = arith.constant 0 : index
    %96 = vector.load %arg7[%c0_85, %c0_86] : memref<1x32xf32, #tpu.memory_space<vmem>>, vector<1x32xf32>
    %97 = vector.broadcast %96 : vector<1x32xf32> to vector<256x32xf32>
    %98 = arith.addf %95, %97 : vector<256x32xf32>
    %cst_87 = arith.constant dense<0.000000e+00> : vector<32x32xf32>
    %99 = tpu.matmul %98, %98, %cst_87 {dimension_numbers = #tpu.dot_dimension_numbers<[0], [0], [1], [1], [0, 1, 1, 1], [], []>} : vector<256x32xf32>, vector<256x32xf32>, vector<32x32xf32> -> vector<32x32xf32>
    %cst_88 = arith.constant 3.906250e-03 : f32
    %100 = vector.broadcast %cst_88 : f32 to vector<32x32xf32>
    %101 = arith.mulf %99, %100 : vector<32x32xf32>
    %c0_89 = arith.constant 0 : index
    %c0_90 = arith.constant 0 : index
    %c0_91 = arith.constant 0 : index
    %102 = vector.load %arg8[%c0_89, %c0_90, %c0_91] : memref<1x32x32xf32, #tpu.memory_space<vmem>>, vector<1x32x32xf32>
    %103 = vector.shape_cast %102 : vector<1x32x32xf32> to vector<32x32xf32>
    %104 = vector.shape_cast %101 : vector<32x32xf32> to vector<1x32x32xf32>
    tpu.vector_store %arg8[%c0_89, %c0_90, %c0_91], %104 {strides = array<i32>} : memref<1x32x32xf32, #tpu.memory_space<vmem>>, vector<1x32x32xf32>,
    return
  }
  func.func @transform_0(%arg0: i32) -> (i32, i32, i32, i32) {
    %c0_i32 = arith.constant 0 : i32
    %c0_i32_0 = arith.constant 0 : i32
    %c0_i32_1 = arith.constant 0 : i32
    %c0_i32_2 = arith.constant 0 : i32
    return %arg0, %c0_i32, %c0_i32_0, %c0_i32_1 : i32, i32, i32, i32
  }
  func.func @transform_1(%arg0: i32) -> (i32, i32, i32) {
    %c0_i32 = arith.constant 0 : i32
    %c0_i32_0 = arith.constant 0 : i32
    %c0_i32_1 = arith.constant 0 : i32
    %c0_i32_2 = arith.constant 0 : i32
    return %c0_i32, %c0_i32_0, %c0_i32_1 : i32, i32, i32
  }
  func.func @transform_2(%arg0: i32) -> (i32, i32) {
    %c0_i32 = arith.constant 0 : i32
    %c0_i32_0 = arith.constant 0 : i32
    %c0_i32_1 = arith.constant 0 : i32
    return %c0_i32, %c0_i32_0 : i32, i32
  }
  func.func @transform_3(%arg0: i32) -> (i32, i32, i32) {
    %c0_i32 = arith.constant 0 : i32
    %c0_i32_0 = arith.constant 0 : i32
    %c0_i32_1 = arith.constant 0 : i32
    %c0_i32_2 = arith.constant 0 : i32
    return %c0_i32, %c0_i32_0, %c0_i32_1 : i32, i32, i32
  }
  func.func @transform_4(%arg0: i32) -> (i32, i32) {
    %c0_i32 = arith.constant 0 : i32
    %c0_i32_0 = arith.constant 0 : i32
    %c0_i32_1 = arith.constant 0 : i32
    return %c0_i32, %c0_i32_0 : i32, i32
  }
  func.func @transform_5(%arg0: i32) -> (i32, i32, i32) {
    %c0_i32 = arith.constant 0 : i32
    %c0_i32_0 = arith.constant 0 : i32
    %c0_i32_1 = arith.constant 0 : i32
    %c0_i32_2 = arith.constant 0 : i32
    return %c0_i32, %c0_i32_0, %c0_i32_1 : i32, i32, i32
  }
  func.func @transform_6(%arg0: i32) -> (i32, i32) {
    %c0_i32 = arith.constant 0 : i32
    %c0_i32_0 = arith.constant 0 : i32
    %c0_i32_1 = arith.constant 0 : i32
    return %c0_i32, %c0_i32_0 : i32, i32
  }
  func.func @transform_7(%arg0: i32) -> (i32, i32, i32) {
    %c0_i32 = arith.constant 0 : i32
    %c0_i32_0 = arith.constant 0 : i32
    %c0_i32_1 = arith.constant 0 : i32
    return %arg0, %c0_i32, %c0_i32_0 : i32, i32, i32
  }
}

</mosaic_0001>

<bundles_post_ra>
// kernel: cnn2_forward.3
= control target key start
LH: loop header
LB: loop body
LE: loop exit
PB: predicated region body
PF: predicated region fallthrough
CT: control target
= control target key end

     0   :  { %v4438_v32 = vmov 1983009808   ;;  %v23_v34 = vlaneseq  ;;  %s6139_s0 = inlined_call_operand.vmem [shape: f32[2,1024], index: 0, kind: input, shape index: {}]   ;;  %s6140_s1 = inlined_call_operand.vmem [shape: bf16[1024,1024], index: 1, kind: input, shape index: {}]   ;;  %s6141_s2 = inlined_call_operand.vmem [shape: f32[1,1024], index: 2, kind: input, shape index: {}]   ;;  %s6142_s3 = inlined_call_operand.hbm [shape: f32[2,1024], index: 3, kind: output, shape index: {}]  }
   0x1   :  { %v125_v0 = vld [vmem:[%s6140_s1 + $0x1c0] sm:$0xff]  ;;  %v21_v33 = vunpack.c.l.s4 %v4438_v32 }
   0x2   :  { %v129_v1 = vld [vmem:[%s6140_s1 + $0x1e0] sm:$0xff]  ;;  %v4526_v44 = vshrl.u32 %v23_v34, 7 }
   0x3   :  { %v253_v2 = vld [vmem:[%s6140_s1 + $0x5c0] sm:$0xff]  ;;  %v3956_v3 = vcombine.high %v125_v0, %v129_v1  ;;  %v3955_v5 = vcombine.low %v125_v0, %v129_v1  ;;  %v22_v43 = vunpack.c.0.s8 %v21_v33 }
   0x4   :  { %v257_v4 = vld [vmem:[%s6140_s1 + $0x5e0] sm:$0xff] }
   0x5   :  { %v117_v6 = vld [vmem:[%s6140_s1 + $0x180] sm:$0xff]  ;;  %v4084_v8 = vcombine.high %v253_v2, %v257_v4  ;;  %v4083_v9 = vcombine.low %v253_v2, %v257_v4  ;;  %3183 = vmatprep.subr.bf16.mxu0 %v3956_v3  ;;  %v4541_v53 = vsub.s32 %v22_v43, %v4526_v44 }
   0x6   :  { %v121_v7 = vld [vmem:[%s6140_s1 + $0x1a0] sm:$0xff]  ;;  %3184 = vmatpush1.bf16.msra.mxu0 %v3955_v5 }
   0x7   :  { %v3948_v10 = vcombine.high %v117_v6, %v121_v7  ;;  %v245_v11 = vld [vmem:[%s6140_s1 + $0x580] sm:$0xff]  ;;  %3224 = vmatprep.subr.bf16.mxu1 %v4084_v8  ;;  %v3947_v18 = vcombine.low %v117_v6, %v121_v7 }
   0x8   :  { %v249_v12 = vld [vmem:[%s6140_s1 + $0x5a0] sm:$0xff]  ;;  %3225 = vmatpush1.bf16.msra.mxu1 %v4083_v9 }
   0x9   :  { %v109_v13 = vld [vmem:[%s6140_s1 + $0x140] sm:$0xff]  ;;  %v4076_v14 = vcombine.high %v245_v11, %v249_v12  ;;  %3185 = vmatprep.subr.bf16.mxu0 %v3948_v10  ;;  %v4075_v19 = vcombine.low %v245_v11, %v249_v12 }
   0xa   :  { %v113_v15 = vld [vmem:[%s6140_s1 + $0x160] sm:$0xff]  ;;  %3186 = vmatpush1.bf16.msra.mxu0 %v3947_v18 }
   0xb   :  { %v237_v16 = vld [vmem:[%s6140_s1 + $0x540] sm:$0xff]  ;;  %v3940_v20 = vcombine.high %v109_v13, %v113_v15  ;;  %3226 = vmatprep.subr.bf16.mxu1 %v4076_v14  ;;  %v3939_v26 = vcombine.low %v109_v13, %v113_v15 }
   0xc   :  { %v241_v17 = vld [vmem:[%s6140_s1 + $0x560] sm:$0xff]  ;;  %3227 = vmatpush1.bf16.msra.mxu1 %v4075_v19 }
   0xd   :  { %v4068_v21 = vcombine.high %v237_v16, %v241_v17  ;;  %v101_v22 = vld [vmem:[%s6140_s1 + $0x100] sm:$0xff]  ;;  %3187 = vmatprep.subr.bf16.mxu0 %v3940_v20  ;;  %v4067_v27 = vcombine.low %v237_v16, %v241_v17 }
   0xe   :  { %v105_v23 = vld [vmem:[%s6140_s1 + $0x120] sm:$0xff]  ;;  %3188 = vmatpush1.bf16.msra.mxu0 %v3939_v26 }
   0xf   :  { %v229_v24 = vld [vmem:[%s6140_s1 + $0x500] sm:$0xff]  ;;  %v3932_v28 = vcombine.high %v101_v22, %v105_v23  ;;  %3228 = vmatprep.subr.bf16.mxu1 %v4068_v21  ;;  %v3931_v37 = vcombine.low %v101_v22, %v105_v23 }
  0x10   :  { %v233_v25 = vld [vmem:[%s6140_s1 + $0x520] sm:$0xff]  ;;  %3229 = vmatpush1.bf16.msra.mxu1 %v4067_v27 }
  0x11   :  { %v4060_v29 = vcombine.high %v229_v24, %v233_v25  ;;  %v93_v30 = vld [vmem:[%s6140_s1 + $0xc0] sm:$0xff]  ;;  %3189 = vmatprep.subr.bf16.mxu0 %v3932_v28  ;;  %v4059_v38 = vcombine.low %v229_v24, %v233_v25 }
  0x12   :  { %v97_v31 = vld [vmem:[%s6140_s1 + $0xe0] sm:$0xff]  ;;  %3190 = vmatpush1.bf16.msra.mxu0 %v3931_v37 }
  0x13   :  { %v221_v35 = vld [vmem:[%s6140_s1 + $0x4c0] sm:$0xff]  ;;  %v3924_v39 = vcombine.high %v93_v30, %v97_v31  ;;  %3230 = vmatprep.subr.bf16.mxu1 %v4060_v29  ;;  %v3923_v47 = vcombine.low %v93_v30, %v97_v31 }
  0x14   :  { %v225_v36 = vld [vmem:[%s6140_s1 + $0x4e0] sm:$0xff]  ;;  %3231 = vmatpush1.bf16.msra.mxu1 %v4059_v38 }
  0x15   :  { %v4052_v40 = vcombine.high %v221_v35, %v225_v36  ;;  %v85_v41 = vld [vmem:[%s6140_s1 + $0x80] sm:$0xff]  ;;  %3191 = vmatprep.subr.bf16.mxu0 %v3924_v39  ;;  %v4051_v48 = vcombine.low %v221_v35, %v225_v36 }
  0x16   :  { %v89_v42 = vld [vmem:[%s6140_s1 + $0xa0] sm:$0xff]  ;;  %3192 = vmatpush1.bf16.msra.mxu0 %v3923_v47 }
  0x17   :  { %v213_v45 = vld [vmem:[%s6140_s1 + $0x480] sm:$0xff]  ;;  %v3916_v49 = vcombine.high %v85_v41, %v89_v42  ;;  %3232 = vmatprep.subr.bf16.mxu1 %v4052_v40  ;;  %v3915_v56 = vcombine.low %v85_v41, %v89_v42 }
  0x18   :  { %v217_v46 = vld [vmem:[%s6140_s1 + $0x4a0] sm:$0xff]  ;;  %3233 = vmatpush1.bf16.msra.mxu1 %v4051_v48 }
  0x19   :  { %v4044_v50 = vcombine.high %v213_v45, %v217_v46  ;;  %v77_v51 = vld [vmem:[%s6140_s1 + $0x40] sm:$0xff]  ;;  %3193 = vmatprep.subr.bf16.mxu0 %v3916_v49  ;;  %v4043_v57 = vcombine.low %v213_v45, %v217_v46 }
  0x1a   :  { %v81_v52 = vld [vmem:[%s6140_s1 + $0x60] sm:$0xff]  ;;  %3194 = vmatpush1.bf16.msra.mxu0 %v3915_v56 }
  0x1b   :  { %v205_v54 = vld [vmem:[%s6140_s1 + $0x440] sm:$0xff]  ;;  %v3908_v58 = vcombine.high %v77_v51, %v81_v52  ;;  %3234 = vmatprep.subr.bf16.mxu1 %v4044_v50  ;;  %v3907_v3 = vcombine.low %v77_v51, %v81_v52 }
  0x1c   :  { %v209_v55 = vld [vmem:[%s6140_s1 + $0x460] sm:$0xff]  ;;  %3235 = vmatpush1.bf16.msra.mxu1 %v4043_v57 }
  0x1d   :  { %v15_v59 = vld [vmem:[%s6139_s0] sm:$0xff]  ;;  %v4036_v60 = vcombine.high %v205_v54, %v209_v55  ;;  %3195 = vmatprep.subr.bf16.mxu0 %v3908_v58  ;;  %v4035_v6 = vcombine.low %v205_v54, %v209_v55 }
  0x1e   :  { %v69_v61 = vld [vmem:[%s6140_s1] sm:$0xff]  ;;  %v4559_v63 = vrot.slane %v15_v59, %v4541_v53  ;;  %v19_v0 = vcombine.high %v15_v59, %v15_v59  ;;  %3196 = vmatpush1.bf16.msra.mxu0 %v3907_v3 }
  0x1f   :  { %v73_v62 = vld [vmem:[%s6140_s1 + $0x20] sm:$0xff]  ;;  %3236 = vmatprep.subr.bf16.mxu1 %v4036_v60 }
  0x20   :  { %v197_v1 = vld [vmem:[%s6140_s1 + $0x400] sm:$0xff]  ;;  %v34_v4 = vcombine.high %v4559_v63, %v4559_v63  ;;  %v4570_v5 = vrot.slane %v19_v0, %v4541_v53  ;;  %v3900_v7 = vcombine.high %v69_v61, %v73_v62  ;;  %v3899_v15 = vcombine.low %v69_v61, %v73_v62  ;;  %3237 = vmatpush1.bf16.msra.mxu1 %v4035_v6 }
  0x21   :  { %v201_v2 = vld [vmem:[%s6140_s1 + $0x420] sm:$0xff] }
  0x22   :  { %v4028_v8 = vcombine.high %v197_v1, %v201_v2  ;;  %v189_v9 = vld [vmem:[%s6140_s1 + $0x3c0] sm:$0xff]  ;;  %v4578_v11 = vpack.c.bf16 %v34_v4, %v34_v4  ;;  %v35_v12 = vcombine.high %v4570_v5, %v4570_v5  ;;  %3197 = vmatprep.subr.bf16.mxu0 %v3900_v7  ;;  %v4027_v17 = vcombine.low %v197_v1, %v201_v2  ;;  %v16_v4 = vld [vmem:[%s6139_s0 + $0x8] sm:$0xff] }
  0x23   :  { %v193_v10 = vld [vmem:[%s6140_s1 + $0x3e0] sm:$0xff]  ;;  %3198 = vmatpush1.bf16.msra.mxu0 %v3899_v15 }
  0x24   :  { %v317_v13 = vld [vmem:[%s6140_s1 + $0x7c0] sm:$0xff]  ;;  %3215 = vmatprep.mubr.bf16.mxu0 %v4578_v11  ;;  %v4589_v16 = vpack.c.bf16 %v35_v12, %v35_v12  ;;  %v4020_v18 = vcombine.high %v189_v9, %v193_v10  ;;  %3238 = vmatprep.subr.bf16.mxu1 %v4028_v8  ;;  %v4019_v24 = vcombine.low %v189_v9, %v193_v10 }
  0x25   :  { %v321_v14 = vld [vmem:[%s6140_s1 + $0x7e0] sm:$0xff]  ;;  %3239 = vmatpush1.bf16.msra.mxu1 %v4027_v17 }
  0x26   :  { %v4148_v19 = vcombine.high %v317_v13, %v321_v14  ;;  %v181_v20 = vld [vmem:[%s6140_s1 + $0x380] sm:$0xff]  ;;  %3256 = vmatprep.mubr.bf16.mxu1 %v4589_v16  ;;  %3199 = vmatprep.subr.bf16.mxu0 %v4020_v18  ;;  %v4147_v25 = vcombine.low %v317_v13, %v321_v14  ;;  %v36_v14 = vcombine.high %v16_v4, %v16_v4 }
  0x27   :  { %v185_v21 = vld [vmem:[%s6140_s1 + $0x3a0] sm:$0xff]  ;;  %3200 = vmatpush2.bf16.msra.mxu0 %v4019_v24 }
  0x28   :  { %v309_v22 = vld [vmem:[%s6140_s1 + $0x780] sm:$0xff]  ;;  %v4012_v26 = vcombine.high %v181_v20, %v185_v21  ;;  %3240 = vmatprep.subr.bf16.mxu1 %v4148_v19  ;;  %v4011_v32 = vcombine.low %v181_v20, %v185_v21 }
  0x29   :  { %v313_v23 = vld [vmem:[%s6140_s1 + $0x7a0] sm:$0xff]  ;;  %3241 = vmatpush2.bf16.msra.mxu1 %v4147_v25  ;;  %v4695_v25 = vrot.slane %v36_v14, %v4541_v53 }
  0x2a   :  { %v4140_v27 = vcombine.high %v309_v22, %v313_v23  ;;  %v173_v28 = vld [vmem:[%s6140_s1 + $0x340] sm:$0xff]  ;;  %3201 = vmatprep.subr.bf16.mxu0 %v4012_v26  ;;  %v4139_v33 = vcombine.low %v309_v22, %v313_v23  ;;  %v4686_v22 = vrot.slane %v16_v4, %v4541_v53 }
  0x2b   :  { %v177_v29 = vld [vmem:[%s6140_s1 + $0x360] sm:$0xff]  ;;  %3202 = vmatpush2.bf16.msra.mxu0 %v4011_v32 }
  0x2c   :  { %v301_v30 = vld [vmem:[%s6140_s1 + $0x740] sm:$0xff]  ;;  %v4004_v34 = vcombine.high %v173_v28, %v177_v29  ;;  %3242 = vmatprep.subr.bf16.mxu1 %v4140_v27  ;;  %v4003_v40 = vcombine.low %v173_v28, %v177_v29  ;;  %v51_v32 = vcombine.high %v4686_v22, %v4686_v22 }
  0x2d   :  { %v305_v31 = vld [vmem:[%s6140_s1 + $0x760] sm:$0xff]  ;;  %3243 = vmatpush2.bf16.msra.mxu1 %v4139_v33  ;;  %v4707_v33 = vpack.c.bf16 %v4559_v63, %v4559_v63 }
  0x2e   :  { %v4132_v35 = vcombine.high %v301_v30, %v305_v31  ;;  %v165_v36 = vld [vmem:[%s6140_s1 + $0x300] sm:$0xff]  ;;  %3203 = vmatprep.subr.bf16.mxu0 %v4004_v34  ;;  %v4131_v41 = vcombine.low %v301_v30, %v305_v31 }
  0x2f   :  { %v169_v37 = vld [vmem:[%s6140_s1 + $0x320] sm:$0xff]  ;;  %3204 = vmatpush2.bf16.msra.mxu0 %v4003_v40 }
  0x30   :  { %v293_v38 = vld [vmem:[%s6140_s1 + $0x700] sm:$0xff]  ;;  %v3996_v42 = vcombine.high %v165_v36, %v169_v37  ;;  %3244 = vmatprep.subr.bf16.mxu1 %v4132_v35  ;;  %v3995_v49 = vcombine.low %v165_v36, %v169_v37  ;;  %v52_v36 = vcombine.high %v4695_v25, %v4695_v25  ;;  %v4719_v37 = vpack.c.bf16 %v4570_v5, %v4570_v5 }
  0x31   :  { %v297_v39 = vld [vmem:[%s6140_s1 + $0x720] sm:$0xff]  ;;  %3245 = vmatpush2.bf16.msra.mxu1 %v4131_v41 }
  0x32   :  { %v4124_v43 = vcombine.high %v293_v38, %v297_v39  ;;  %v157_v45 = vld [vmem:[%s6140_s1 + $0x2c0] sm:$0xff]  ;;  %3205 = vmatprep.subr.bf16.mxu0 %v3996_v42  ;;  %v4123_v50 = vcombine.low %v293_v38, %v297_v39 }
  0x33   :  { %v161_v46 = vld [vmem:[%s6140_s1 + $0x2e0] sm:$0xff]  ;;  %3206 = vmatpush2.bf16.msra.mxu0 %v3995_v49 }
  0x34   :  { %v285_v47 = vld [vmem:[%s6140_s1 + $0x6c0] sm:$0xff]  ;;  %v3988_v51 = vcombine.high %v157_v45, %v161_v46  ;;  %3246 = vmatprep.subr.bf16.mxu1 %v4124_v43  ;;  %v3987_v58 = vcombine.low %v157_v45, %v161_v46 }
  0x35   :  { %v289_v48 = vld [vmem:[%s6140_s1 + $0x6e0] sm:$0xff]  ;;  %3247 = vmatpush2.bf16.msra.mxu1 %v4123_v50 }
  0x36   :  { %v4116_v52 = vcombine.high %v285_v47, %v289_v48  ;;  %v149_v54 = vld [vmem:[%s6140_s1 + $0x280] sm:$0xff]  ;;  %3207 = vmatprep.subr.bf16.mxu0 %v3988_v51  ;;  %v4115_v59 = vcombine.low %v285_v47, %v289_v48 }
  0x37   :  { %v153_v55 = vld [vmem:[%s6140_s1 + $0x2a0] sm:$0xff]  ;;  %3208 = vmatpush2.bf16.msra.mxu0 %v3987_v58 }
  0x38   :  { %v277_v56 = vld [vmem:[%s6140_s1 + $0x680] sm:$0xff]  ;;  %v3980_v60 = vcombine.high %v149_v54, %v153_v55  ;;  %3248 = vmatprep.subr.bf16.mxu1 %v4116_v52  ;;  %v3979_v3 = vcombine.low %v149_v54, %v153_v55 }
  0x39   :  { %v281_v57 = vld [vmem:[%s6140_s1 + $0x6a0] sm:$0xff]  ;;  %3249 = vmatpush2.bf16.msra.mxu1 %v4115_v59 }
  0x3a   :  { %v4108_v61 = vcombine.high %v277_v56, %v281_v57  ;;  %v141_v62 = vld [vmem:[%s6140_s1 + $0x240] sm:$0xff]  ;;  %3209 = vmatprep.subr.bf16.mxu0 %v3980_v60  ;;  %v4107_v6 = vcombine.low %v277_v56, %v281_v57 }
  0x3b   :  { %v145_v0 = vld [vmem:[%s6140_s1 + $0x260] sm:$0xff]  ;;  %3210 = vmatpush2.bf16.msra.mxu0 %v3979_v3 }
  0x3c   :  { %v269_v1 = vld [vmem:[%s6140_s1 + $0x640] sm:$0xff]  ;;  %v3972_v7 = vcombine.high %v141_v62, %v145_v0  ;;  %3250 = vmatprep.subr.bf16.mxu1 %v4108_v61  ;;  %v3971_v15 = vcombine.low %v141_v62, %v145_v0 }
  0x3d   :  { %v273_v2 = vld [vmem:[%s6140_s1 + $0x660] sm:$0xff]  ;;  %3251 = vmatpush2.bf16.msra.mxu1 %v4107_v6 }
  0x3e   :  { %v4100_v8 = vcombine.high %v269_v1, %v273_v2  ;;  %v133_v9 = vld [vmem:[%s6140_s1 + $0x200] sm:$0xff]  ;;  %3211 = vmatprep.subr.bf16.mxu0 %v3972_v7  ;;  %v4099_v17 = vcombine.low %v269_v1, %v273_v2 }
  0x3f   :  { %v137_v10 = vld [vmem:[%s6140_s1 + $0x220] sm:$0xff]  ;;  %3212 = vmatpush2.bf16.msra.mxu0 %v3971_v15 }
  0x40   :  { %v261_v12 = vld [vmem:[%s6140_s1 + $0x600] sm:$0xff]  ;;  %v3964_v18 = vcombine.high %v133_v9, %v137_v10  ;;  %3252 = vmatprep.subr.bf16.mxu1 %v4100_v8  ;;  %v3963_v26 = vcombine.low %v133_v9, %v137_v10 }
  0x41   :  { %v265_v13 = vld [vmem:[%s6140_s1 + $0x620] sm:$0xff]  ;;  %3253 = vmatpush2.bf16.msra.mxu1 %v4099_v17 }
  0x42   :  { %v4092_v19 = vcombine.high %v261_v12, %v265_v13  ;;  %v381_v20 = vld [vmem:[%s6140_s1 + $0x9c0] sm:$0xff]  ;;  %3213 = vmatprep.subr.bf16.mxu0 %v3964_v18  ;;  %v4091_v27 = vcombine.low %v261_v12, %v265_v13 }
  0x43   :  { %v385_v21 = vld [vmem:[%s6140_s1 + $0x9e0] sm:$0xff]  ;;  %3214 = vmatpush2.bf16.msra.mxu0 %v3963_v26 }
  0x44   :  { %v509_v23 = vld [vmem:[%s6140_s1 + $0xdc0] sm:$0xff]  ;;  %v4212_v28 = vcombine.high %v381_v20, %v385_v21  ;;  %3254 = vmatprep.subr.bf16.mxu1 %v4092_v19  ;;  %v4211_v38 = vcombine.low %v381_v20, %v385_v21 }
  0x45   :  { %v513_v24 = vld [vmem:[%s6140_s1 + $0xde0] sm:$0xff] }
  0x46   :  { %v4340_v29 = vcombine.high %v509_v23, %v513_v24  ;;  %v373_v30 = vld [vmem:[%s6140_s1 + $0x980] sm:$0xff] }
  0x47   :  { %v377_v31 = vld [vmem:[%s6140_s1 + $0x9a0] sm:$0xff] }
  0x48   :  { %v501_v34 = vld [vmem:[%s6140_s1 + $0xd80] sm:$0xff] }
  0x49   :  { %v505_v35 = vld [vmem:[%s6140_s1 + $0xda0] sm:$0xff] }
  0x4a   :  { %8 = vsyncpa [#allocation3], 0  ;;  %3255 = vmatpush2.bf16.msra.mxu1 %v4091_v27  ;;  %3265 = vmatprep.subr.bf16.mxu0 %v4212_v28  ;;  %v4339_v63 = vcombine.low %v509_v23, %v513_v24  ;;  %v4204_v39 = vcombine.high %v373_v30, %v377_v31  ;;  %v4332_v40 = vcombine.high %v501_v34, %v505_v35  ;;  %v365_v41 = vld [vmem:[%s6140_s1 + $0x940] sm:$0xff] }
  0x4b   :  { %3306 = vmatprep.subr.bf16.mxu1 %v4340_v29  ;;  %v369_v42 = vld [vmem:[%s6140_s1 + $0x960] sm:$0xff]  ;;  %v4727_v43 = vpack.c.bf16 %v51_v32, %v51_v32  ;;  %3216 = vmatmul.mubr.bf16.vlgmr.msra.gmra.mxu0 %v4707_v33  ;;  %v4736_v46 = vpack.c.bf16 %v52_v36, %v52_v36  ;;  %v4203_v47 = vcombine.low %v373_v30, %v377_v31 }
  0x4c   :  { %v493_v5 = vld [vmem:[%s6140_s1 + $0xd40] sm:$0xff]  ;;  %3266 = vmatpush1.bf16.msra.mxu0 %v4211_v38  ;;  %v4331_v48 = vcombine.low %v501_v34, %v505_v35  ;;  %v4196_v49 = vcombine.high %v365_v41, %v369_v42  ;;  %v4195_v56 = vcombine.low %v365_v41, %v369_v42 }
  0x4d   :  { %v497_v45 = vld [vmem:[%s6140_s1 + $0xd60] sm:$0xff]  ;;  %3257 = vmatmul.mubr.bf16.vlgmr.msra.gmra.mxu1 %v4719_v37  ;;  %3267 = vmatprep.subr.bf16.mxu0 %v4204_v39 }
  0x4e   :  { %3307 = vmatpush1.bf16.msra.mxu1 %v4339_v63  ;;  %v4324_v50 = vcombine.high %v493_v5, %v497_v45  ;;  %v357_v51 = vld [vmem:[%s6140_s1 + $0x900] sm:$0xff]  ;;  %3297 = vmatprep.mubr.bf16.mxu0 %v4727_v43  ;;  %v4323_v57 = vcombine.low %v493_v5, %v497_v45 }
  0x4f   :  { %3308 = vmatprep.subr.bf16.mxu1 %v4332_v40  ;;  %v361_v52 = vld [vmem:[%s6140_s1 + $0x920] sm:$0xff]  ;;  %3338 = vmatprep.mubr.bf16.mxu1 %v4736_v46 }
  0x50   :  { %v485_v54 = vld [vmem:[%s6140_s1 + $0xd00] sm:$0xff]  ;;  %3268 = vmatpush1.bf16.msra.mxu0 %v4203_v47  ;;  %v4188_v58 = vcombine.high %v357_v51, %v361_v52  ;;  %v4187_v1 = vcombine.low %v357_v51, %v361_v52 }
  0x51   :  { %v489_v55 = vld [vmem:[%s6140_s1 + $0xd20] sm:$0xff]  ;;  %3269 = vmatprep.subr.bf16.mxu0 %v4196_v49 }
  0x52   :  { %3309 = vmatpush1.bf16.msra.mxu1 %v4331_v48  ;;  %v4316_v59 = vcombine.high %v485_v54, %v489_v55  ;;  %v349_v60 = vld [vmem:[%s6140_s1 + $0x8c0] sm:$0xff]  ;;  %v4315_v2 = vcombine.low %v485_v54, %v489_v55 }
  0x53   :  { %3310 = vmatprep.subr.bf16.mxu1 %v4324_v50  ;;  %v353_v61 = vld [vmem:[%s6140_s1 + $0x8e0] sm:$0xff] }
  0x54   :  { %v477_v62 = vld [vmem:[%s6140_s1 + $0xcc0] sm:$0xff]  ;;  %3270 = vmatpush1.bf16.msra.mxu0 %v4195_v56  ;;  %v4180_v3 = vcombine.high %v349_v60, %v353_v61  ;;  %v4179_v10 = vcombine.low %v349_v60, %v353_v61 }
  0x55   :  { %v481_v0 = vld [vmem:[%s6140_s1 + $0xce0] sm:$0xff]  ;;  %3271 = vmatprep.subr.bf16.mxu0 %v4188_v58 }
  0x56   :  { %3311 = vmatpush1.bf16.msra.mxu1 %v4323_v57  ;;  %v4308_v4 = vcombine.high %v477_v62, %v481_v0  ;;  %v341_v6 = vld [vmem:[%s6140_s1 + $0x880] sm:$0xff]  ;;  %v4307_v12 = vcombine.low %v477_v62, %v481_v0 }
  0x57   :  { %3312 = vmatprep.subr.bf16.mxu1 %v4316_v59  ;;  %v345_v7 = vld [vmem:[%s6140_s1 + $0x8a0] sm:$0xff] }
  0x58   :  { %v469_v8 = vld [vmem:[%s6140_s1 + $0xc80] sm:$0xff]  ;;  %3272 = vmatpush1.bf16.msra.mxu0 %v4187_v1  ;;  %v4172_v13 = vcombine.high %v341_v6, %v345_v7  ;;  %v4171_v20 = vcombine.low %v341_v6, %v345_v7 }
  0x59   :  { %v473_v9 = vld [vmem:[%s6140_s1 + $0xca0] sm:$0xff]  ;;  %3273 = vmatprep.subr.bf16.mxu0 %v4180_v3 }
  0x5a   :  { %3313 = vmatpush1.bf16.msra.mxu1 %v4315_v2  ;;  %v4300_v14 = vcombine.high %v469_v8, %v473_v9  ;;  %v333_v15 = vld [vmem:[%s6140_s1 + $0x840] sm:$0xff]  ;;  %v4299_v21 = vcombine.low %v469_v8, %v473_v9 }
  0x5b   :  { %3314 = vmatprep.subr.bf16.mxu1 %v4308_v4  ;;  %v337_v17 = vld [vmem:[%s6140_s1 + $0x860] sm:$0xff] }
  0x5c   :  { %v461_v18 = vld [vmem:[%s6140_s1 + $0xc40] sm:$0xff]  ;;  %3274 = vmatpush1.bf16.msra.mxu0 %v4179_v10  ;;  %v4164_v23 = vcombine.high %v333_v15, %v337_v17  ;;  %v4163_v30 = vcombine.low %v333_v15, %v337_v17 }
  0x5d   :  { %v465_v19 = vld [vmem:[%s6140_s1 + $0xc60] sm:$0xff]  ;;  %3275 = vmatprep.subr.bf16.mxu0 %v4172_v13 }
  0x5e   :  { %3315 = vmatpush1.bf16.msra.mxu1 %v4307_v12  ;;  %v4292_v24 = vcombine.high %v461_v18, %v465_v19  ;;  %v325_v26 = vld [vmem:[%s6140_s1 + $0x800] sm:$0xff]  ;;  %v4291_v31 = vcombine.low %v461_v18, %v465_v19 }
  0x5f   :  { %3316 = vmatprep.subr.bf16.mxu1 %v4300_v14  ;;  %v329_v27 = vld [vmem:[%s6140_s1 + $0x820] sm:$0xff] }
  0x60   :  { %v453_v28 = vld [vmem:[%s6140_s1 + $0xc00] sm:$0xff]  ;;  %3276 = vmatpush1.bf16.msra.mxu0 %v4171_v20  ;;  %v4156_v32 = vcombine.high %v325_v26, %v329_v27  ;;  %v4155_v39 = vcombine.low %v325_v26, %v329_v27 }
  0x61   :  { %v457_v29 = vld [vmem:[%s6140_s1 + $0xc20] sm:$0xff]  ;;  %3277 = vmatprep.subr.bf16.mxu0 %v4164_v23 }
  0x62   :  { %3317 = vmatpush1.bf16.msra.mxu1 %v4299_v21  ;;  %v4284_v34 = vcombine.high %v453_v28, %v457_v29  ;;  %v445_v35 = vld [vmem:[%s6140_s1 + $0xbc0] sm:$0xff]  ;;  %v4283_v40 = vcombine.low %v453_v28, %v457_v29 }
  0x63   :  { %3318 = vmatprep.subr.bf16.mxu1 %v4292_v24  ;;  %v449_v36 = vld [vmem:[%s6140_s1 + $0xbe0] sm:$0xff] }
  0x64   :  { %v573_v38 = vld [vmem:[%s6140_s1 + $0xfc0] sm:$0xff]  ;;  %3278 = vmatpush1.bf16.msra.mxu0 %v4163_v30  ;;  %v4276_v41 = vcombine.high %v445_v35, %v449_v36  ;;  %v4275_v49 = vcombine.low %v445_v35, %v449_v36 }
  0x65   :  { %v577_v63 = vld [vmem:[%s6140_s1 + $0xfe0] sm:$0xff]  ;;  %3279 = vmatprep.subr.bf16.mxu0 %v4156_v32 }
  0x66   :  { %3319 = vmatpush1.bf16.msra.mxu1 %v4291_v31  ;;  %v4404_v42 = vcombine.high %v573_v38, %v577_v63  ;;  %v437_v5 = vld [vmem:[%s6140_s1 + $0xb80] sm:$0xff]  ;;  %v4403_v50 = vcombine.low %v573_v38, %v577_v63 }
  0x67   :  { %3320 = vmatprep.subr.bf16.mxu1 %v4284_v34  ;;  %v441_v45 = vld [vmem:[%s6140_s1 + $0xba0] sm:$0xff] }
  0x68   :  { %v565_v47 = vld [vmem:[%s6140_s1 + $0xf80] sm:$0xff]  ;;  %3280 = vmatpush1.bf16.msra.mxu0 %v4155_v39  ;;  %v4268_v51 = vcombine.high %v437_v5, %v441_v45  ;;  %v4267_v58 = vcombine.low %v437_v5, %v441_v45 }
  0x69   :  { %v569_v48 = vld [vmem:[%s6140_s1 + $0xfa0] sm:$0xff]  ;;  %3281 = vmatprep.subr.bf16.mxu0 %v4276_v41 }
  0x6a   :  { %3321 = vmatpush1.bf16.msra.mxu1 %v4283_v40  ;;  %v4396_v52 = vcombine.high %v565_v47, %v569_v48  ;;  %v429_v54 = vld [vmem:[%s6140_s1 + $0xb40] sm:$0xff]  ;;  %v4395_v59 = vcombine.low %v565_v47, %v569_v48  ;;  %v126_v47 = vld [vmem:[%s6140_s1 + $0x1c8] sm:$0xff] }
  0x6b   :  { %3322 = vmatprep.subr.bf16.mxu1 %v4404_v42  ;;  %v433_v55 = vld [vmem:[%s6140_s1 + $0xb60] sm:$0xff]  ;;  %v130_v48 = vld [vmem:[%s6140_s1 + $0x1e8] sm:$0xff] }
  0x6c   :  { %v557_v56 = vld [vmem:[%s6140_s1 + $0xf40] sm:$0xff]  ;;  %3282 = vmatpush2.bf16.msra.mxu0 %v4275_v49  ;;  %v4260_v60 = vcombine.high %v429_v54, %v433_v55  ;;  %v4259_v3 = vcombine.low %v429_v54, %v433_v55  ;;  %v254_v49 = vld [vmem:[%s6140_s1 + $0x5c8] sm:$0xff]  ;;  %v3958_v54 = vcombine.high %v126_v47, %v130_v48 }
  0x6d   :  { %v561_v57 = vld [vmem:[%s6140_s1 + $0xf60] sm:$0xff]  ;;  %3283 = vmatprep.subr.bf16.mxu0 %v4268_v51 }
  0x6e   :  { %3323 = vmatpush2.bf16.msra.mxu1 %v4403_v50  ;;  %v4388_v61 = vcombine.high %v557_v56, %v561_v57  ;;  %v421_v62 = vld [vmem:[%s6140_s1 + $0xb00] sm:$0xff]  ;;  %v4387_v4 = vcombine.low %v557_v56, %v561_v57  ;;  %v258_v50 = vld [vmem:[%s6140_s1 + $0x5e8] sm:$0xff] }
  0x6f   :  { %3324 = vmatprep.subr.bf16.mxu1 %v4396_v52  ;;  %v425_v0 = vld [vmem:[%s6140_s1 + $0xb20] sm:$0xff]  ;;  %v4086_v55 = vcombine.high %v254_v49, %v258_v50  ;;  %v118_v56 = vld [vmem:[%s6140_s1 + $0x188] sm:$0xff] }
  0x70   :  { %v549_v1 = vld [vmem:[%s6140_s1 + $0xf00] sm:$0xff]  ;;  %3284 = vmatpush2.bf16.msra.mxu0 %v4267_v58  ;;  %v4252_v6 = vcombine.high %v421_v62, %v425_v0  ;;  %v4251_v13 = vcombine.low %v421_v62, %v425_v0  ;;  %v122_v57 = vld [vmem:[%s6140_s1 + $0x1a8] sm:$0xff]  ;;  %v4917_v58 = vpack.c.bf16 %v4686_v22, %v4686_v22  ;;  %v3957_v62 = vcombine.low %v126_v47, %v130_v48 }
  0x71   :  { %v553_v2 = vld [vmem:[%s6140_s1 + $0xf20] sm:$0xff]  ;;  %3285 = vmatprep.subr.bf16.mxu0 %v4260_v60  ;;  %v250_v60 = vld [vmem:[%s6140_s1 + $0x5a8] sm:$0xff]  ;;  %v4085_v0 = vcombine.low %v254_v49, %v258_v50 }
  0x72   :  { %3325 = vmatpush2.bf16.msra.mxu1 %v4395_v59  ;;  %v4380_v7 = vcombine.high %v549_v1, %v553_v2  ;;  %v413_v8 = vld [vmem:[%s6140_s1 + $0xac0] sm:$0xff]  ;;  %v4379_v14 = vcombine.low %v549_v1, %v553_v2  ;;  %v246_v59 = vld [vmem:[%s6140_s1 + $0x588] sm:$0xff]  ;;  %v3950_v1 = vcombine.high %v118_v56, %v122_v57 }
  0x73   :  { %3326 = vmatprep.subr.bf16.mxu1 %v4388_v61  ;;  %v417_v9 = vld [vmem:[%s6140_s1 + $0xae0] sm:$0xff]  ;;  %v4927_v61 = vpack.c.bf16 %v4695_v25, %v4695_v25  ;;  %v4078_v22 = vcombine.high %v246_v59, %v250_v60  ;;  %v110_v2 = vld [vmem:[%s6140_s1 + $0x148] sm:$0xff] }
  0x74   :  { %v541_v10 = vld [vmem:[%s6140_s1 + $0xec0] sm:$0xff]  ;;  %3286 = vmatpush2.bf16.msra.mxu0 %v4259_v3  ;;  %v4244_v15 = vcombine.high %v413_v8, %v417_v9  ;;  %v4243_v23 = vcombine.low %v413_v8, %v417_v9  ;;  %v114_v3 = vld [vmem:[%s6140_s1 + $0x168] sm:$0xff] }
  0x75   :  { %v545_v12 = vld [vmem:[%s6140_s1 + $0xee0] sm:$0xff]  ;;  %3287 = vmatprep.subr.bf16.mxu0 %v4252_v6  ;;  %v238_v25 = vld [vmem:[%s6140_s1 + $0x548] sm:$0xff]  ;;  %v3949_v6 = vcombine.low %v118_v56, %v122_v57  ;;  %v3942_v8 = vcombine.high %v110_v2, %v114_v3 }
  0x76   :  { %3327 = vmatpush2.bf16.msra.mxu1 %v4387_v4  ;;  %v4372_v17 = vcombine.high %v541_v10, %v545_v12  ;;  %v405_v18 = vld [vmem:[%s6140_s1 + $0xa80] sm:$0xff]  ;;  %v4371_v24 = vcombine.low %v541_v10, %v545_v12  ;;  %v242_v4 = vld [vmem:[%s6140_s1 + $0x568] sm:$0xff] }
  0x77   :  { %3328 = vmatprep.subr.bf16.mxu1 %v4380_v7  ;;  %v409_v19 = vld [vmem:[%s6140_s1 + $0xaa0] sm:$0xff]  ;;  %v4077_v7 = vcombine.low %v246_v59, %v250_v60  ;;  %v4070_v9 = vcombine.high %v238_v25, %v242_v4  ;;  %v102_v10 = vld [vmem:[%s6140_s1 + $0x108] sm:$0xff] }
  0x78   :  { %v533_v20 = vld [vmem:[%s6140_s1 + $0xe80] sm:$0xff]  ;;  %3288 = vmatpush2.bf16.msra.mxu0 %v4251_v13  ;;  %v4236_v26 = vcombine.high %v405_v18, %v409_v19  ;;  %v4235_v32 = vcombine.low %v405_v18, %v409_v19  ;;  %v106_v12 = vld [vmem:[%s6140_s1 + $0x128] sm:$0xff] }
  0x79   :  { %v537_v21 = vld [vmem:[%s6140_s1 + $0xea0] sm:$0xff]  ;;  %3289 = vmatprep.subr.bf16.mxu0 %v4244_v15  ;;  %v230_v13 = vld [vmem:[%s6140_s1 + $0x508] sm:$0xff]  ;;  %v3941_v15 = vcombine.low %v110_v2, %v114_v3  ;;  %v3934_v18 = vcombine.high %v102_v10, %v106_v12 }
  0x7a   :  { %3329 = vmatpush2.bf16.msra.mxu1 %v4379_v14  ;;  %v4364_v27 = vcombine.high %v533_v20, %v537_v21  ;;  %v397_v28 = vld [vmem:[%s6140_s1 + $0xa40] sm:$0xff]  ;;  %v4363_v34 = vcombine.low %v533_v20, %v537_v21  ;;  %v234_v14 = vld [vmem:[%s6140_s1 + $0x528] sm:$0xff] }
  0x7b   :  { %3330 = vmatprep.subr.bf16.mxu1 %v4372_v17  ;;  %v401_v29 = vld [vmem:[%s6140_s1 + $0xa60] sm:$0xff]  ;;  %v4069_v17 = vcombine.low %v238_v25, %v242_v4  ;;  %v4062_v19 = vcombine.high %v230_v13, %v234_v14  ;;  %v94_v20 = vld [vmem:[%s6140_s1 + $0xc8] sm:$0xff] }
  0x7c   :  { %v525_v30 = vld [vmem:[%s6140_s1 + $0xe40] sm:$0xff]  ;;  %3290 = vmatpush2.bf16.msra.mxu0 %v4243_v23  ;;  %v4228_v35 = vcombine.high %v397_v28, %v401_v29  ;;  %v4227_v41 = vcombine.low %v397_v28, %v401_v29  ;;  %v98_v21 = vld [vmem:[%s6140_s1 + $0xe8] sm:$0xff] }
  0x7d   :  { %v529_v31 = vld [vmem:[%s6140_s1 + $0xe60] sm:$0xff]  ;;  %3291 = vmatprep.subr.bf16.mxu0 %v4236_v26  ;;  %v222_v23 = vld [vmem:[%s6140_s1 + $0x4c8] sm:$0xff]  ;;  %v3933_v26 = vcombine.low %v102_v10, %v106_v12  ;;  %v3926_v28 = vcombine.high %v94_v20, %v98_v21 }
  0x7e   :  { %3331 = vmatpush2.bf16.msra.mxu1 %v4371_v24  ;;  %v4356_v36 = vcombine.high %v525_v30, %v529_v31  ;;  %v389_v38 = vld [vmem:[%s6140_s1 + $0xa00] sm:$0xff]  ;;  %v4355_v42 = vcombine.low %v525_v30, %v529_v31  ;;  %v226_v24 = vld [vmem:[%s6140_s1 + $0x4e8] sm:$0xff] }
  0x7f   :  { %3332 = vmatprep.subr.bf16.mxu1 %v4364_v27  ;;  %v393_v63 = vld [vmem:[%s6140_s1 + $0xa20] sm:$0xff]  ;;  %v4061_v27 = vcombine.low %v230_v13, %v234_v14  ;;  %v4054_v29 = vcombine.high %v222_v23, %v226_v24  ;;  %v86_v30 = vld [vmem:[%s6140_s1 + $0x88] sm:$0xff] }
  0x80   :  { %v517_v39 = vld [vmem:[%s6140_s1 + $0xe00] sm:$0xff]  ;;  %3292 = vmatpush2.bf16.msra.mxu0 %v4235_v32  ;;  %v4220_v5 = vcombine.high %v389_v38, %v393_v63  ;;  %v4219_v51 = vcombine.low %v389_v38, %v393_v63  ;;  %v90_v31 = vld [vmem:[%s6140_s1 + $0xa8] sm:$0xff] }
  0x81   :  { %v521_v40 = vld [vmem:[%s6140_s1 + $0xe20] sm:$0xff]  ;;  %3293 = vmatprep.subr.bf16.mxu0 %v4228_v35  ;;  %v214_v32 = vld [vmem:[%s6140_s1 + $0x488] sm:$0xff]  ;;  %v3925_v35 = vcombine.low %v94_v20, %v98_v21  ;;  %v3918_v38 = vcombine.high %v86_v30, %v90_v31 }
  0x82   :  { %3333 = vmatpush2.bf16.msra.mxu1 %v4363_v34  ;;  %v4348_v45 = vcombine.high %v517_v39, %v521_v40  ;;  %v4347_v52 = vcombine.low %v517_v39, %v521_v40  ;;  %v218_v34 = vld [vmem:[%s6140_s1 + $0x4a8] sm:$0xff] }
  0x83   :  { %3334 = vmatprep.subr.bf16.mxu1 %v4356_v36  ;;  %v4053_v36 = vcombine.low %v222_v23, %v226_v24  ;;  %v4046_v63 = vcombine.high %v214_v32, %v218_v34  ;;  %v78_v39 = vld [vmem:[%s6140_s1 + $0x48] sm:$0xff] }
  0x84   :  { %3294 = vmatpush2.bf16.msra.mxu0 %v4227_v41  ;;  %v82_v40 = vld [vmem:[%s6140_s1 + $0x68] sm:$0xff] }
  0x85   :  { %3295 = vmatprep.subr.bf16.mxu0 %v4220_v5  ;;  %v206_v41 = vld [vmem:[%s6140_s1 + $0x448] sm:$0xff]  ;;  %v3917_v5 = vcombine.low %v86_v30, %v90_v31  ;;  %v3910_v47 = vcombine.high %v78_v39, %v82_v40 }
  0x86   :  { %3335 = vmatpush2.bf16.msra.mxu1 %v4355_v42  ;;  %v210_v42 = vld [vmem:[%s6140_s1 + $0x468] sm:$0xff] }
  0x87   :  { %3336 = vmatprep.subr.bf16.mxu1 %v4348_v45  ;;  %v4045_v45 = vcombine.low %v214_v32, %v218_v34  ;;  %v4038_v48 = vcombine.high %v206_v41, %v210_v42  ;;  %v70_v49 = vld [vmem:[%s6140_s1 + $0x8] sm:$0xff] }
  0x88   :  { %3296 = vmatpush2.bf16.msra.mxu0 %v4219_v51  ;;  %v74_v50 = vld [vmem:[%s6140_s1 + $0x28] sm:$0xff] }
  0x89   :  { %3347 = vmatprep.subr.bf16.mxu0 %v3958_v54  ;;  %v198_v51 = vld [vmem:[%s6140_s1 + $0x408] sm:$0xff]  ;;  %v3909_v54 = vcombine.low %v78_v39, %v82_v40  ;;  %v3902_v56 = vcombine.high %v70_v49, %v74_v50 }
  0x8a   :  { %3337 = vmatpush2.bf16.msra.mxu1 %v4347_v52  ;;  %v202_v52 = vld [vmem:[%s6140_s1 + $0x428] sm:$0xff] }
  0x8b   :  { %3388 = vmatprep.subr.bf16.mxu1 %v4086_v55  ;;  %3298 = vmatmul.mubr.bf16.vlgmr.msra.gmra.mxu0 %v4917_v58  ;;  %v4037_v55 = vcombine.low %v206_v41, %v210_v42  ;;  %v4030_v57 = vcombine.high %v198_v51, %v202_v52  ;;  %v190_v59 = vld [vmem:[%s6140_s1 + $0x3c8] sm:$0xff] }
  0x8c   :  { %3348 = vmatpush1.bf16.msra.mxu0 %v3957_v62  ;;  %3379 = vmatprep.mubr.bf16.mxu0 %v4578_v11  ;;  %v194_v60 = vld [vmem:[%s6140_s1 + $0x3e8] sm:$0xff] }
  0x8d   :  { %3339 = vmatmul.mubr.bf16.vlgmr.msra.gmra.mxu1 %v4927_v61  ;;  %3349 = vmatprep.subr.bf16.mxu0 %v3950_v1  ;;  %v318_v62 = vld [vmem:[%s6140_s1 + $0x7c8] sm:$0xff]  ;;  %v3901_v1 = vcombine.low %v70_v49, %v74_v50  ;;  %v4022_v2 = vcombine.high %v190_v59, %v194_v60 }
  0x8e   :  { %3389 = vmatpush1.bf16.msra.mxu1 %v4085_v0  ;;  %3420 = vmatprep.mubr.bf16.mxu1 %v4589_v16  ;;  %v322_v0 = vld [vmem:[%s6140_s1 + $0x7e8] sm:$0xff] }
  0x8f   :  { %3390 = vmatprep.subr.bf16.mxu1 %v4078_v22  ;;  %v4029_v22 = vcombine.low %v198_v51, %v202_v52  ;;  %v4150_v3 = vcombine.high %v318_v62, %v322_v0  ;;  %v182_v25 = vld [vmem:[%s6140_s1 + $0x388] sm:$0xff] }
  0x90   :  { %3350 = vmatpush1.bf16.msra.mxu0 %v3949_v6  ;;  %v186_v4 = vld [vmem:[%s6140_s1 + $0x3a8] sm:$0xff] }
  0x91   :  { %3351 = vmatprep.subr.bf16.mxu0 %v3942_v8  ;;  %v310_v6 = vld [vmem:[%s6140_s1 + $0x788] sm:$0xff]  ;;  %v4021_v8 = vcombine.low %v190_v59, %v194_v60  ;;  %v4014_v10 = vcombine.high %v182_v25, %v186_v4 }
  0x92   :  { %3391 = vmatpush1.bf16.msra.mxu1 %v4077_v7  ;;  %v314_v7 = vld [vmem:[%s6140_s1 + $0x7a8] sm:$0xff] }
  0x93   :  { %3392 = vmatprep.subr.bf16.mxu1 %v4070_v9  ;;  %v4149_v9 = vcombine.low %v318_v62, %v322_v0  ;;  %v4142_v12 = vcombine.high %v310_v6, %v314_v7  ;;  %v174_v13 = vld [vmem:[%s6140_s1 + $0x348] sm:$0xff] }
  0x94   :  { %3352 = vmatpush1.bf16.msra.mxu0 %v3941_v15  ;;  %v178_v14 = vld [vmem:[%s6140_s1 + $0x368] sm:$0xff] }
  0x95   :  { %3353 = vmatprep.subr.bf16.mxu0 %v3934_v18  ;;  %v302_v15 = vld [vmem:[%s6140_s1 + $0x748] sm:$0xff]  ;;  %v4013_v18 = vcombine.low %v182_v25, %v186_v4  ;;  %v4006_v20 = vcombine.high %v174_v13, %v178_v14 }
  0x96   :  { %3393 = vmatpush1.bf16.msra.mxu1 %v4069_v17  ;;  %v306_v17 = vld [vmem:[%s6140_s1 + $0x768] sm:$0xff] }
  0x97   :  { %3394 = vmatprep.subr.bf16.mxu1 %v4062_v19  ;;  %v4141_v19 = vcombine.low %v310_v6, %v314_v7  ;;  %v4134_v21 = vcombine.high %v302_v15, %v306_v17  ;;  %v166_v23 = vld [vmem:[%s6140_s1 + $0x308] sm:$0xff] }
  0x98   :  { %3354 = vmatpush1.bf16.msra.mxu0 %v3933_v26  ;;  %v170_v24 = vld [vmem:[%s6140_s1 + $0x328] sm:$0xff] }
  0x99   :  { %3355 = vmatprep.subr.bf16.mxu0 %v3926_v28  ;;  %v294_v26 = vld [vmem:[%s6140_s1 + $0x708] sm:$0xff]  ;;  %v4005_v28 = vcombine.low %v174_v13, %v178_v14  ;;  %v3998_v30 = vcombine.high %v166_v23, %v170_v24 }
  0x9a   :  { %3395 = vmatpush1.bf16.msra.mxu1 %v4061_v27  ;;  %v298_v27 = vld [vmem:[%s6140_s1 + $0x728] sm:$0xff] }
  0x9b   :  { %3396 = vmatprep.subr.bf16.mxu1 %v4054_v29  ;;  %v4133_v29 = vcombine.low %v302_v15, %v306_v17  ;;  %v4126_v31 = vcombine.high %v294_v26, %v298_v27  ;;  %v158_v32 = vld [vmem:[%s6140_s1 + $0x2c8] sm:$0xff] }
  0x9c   :  { %3356 = vmatpush1.bf16.msra.mxu0 %v3925_v35  ;;  %v162_v34 = vld [vmem:[%s6140_s1 + $0x2e8] sm:$0xff] }
  0x9d   :  { %3357 = vmatprep.subr.bf16.mxu0 %v3918_v38  ;;  %v286_v35 = vld [vmem:[%s6140_s1 + $0x6c8] sm:$0xff]  ;;  %v3997_v38 = vcombine.low %v166_v23, %v170_v24  ;;  %v3990_v39 = vcombine.high %v158_v32, %v162_v34 }
  0x9e   :  { %3397 = vmatpush1.bf16.msra.mxu1 %v4053_v36  ;;  %v290_v36 = vld [vmem:[%s6140_s1 + $0x6e8] sm:$0xff] }
  0x9f   :  { %3398 = vmatprep.subr.bf16.mxu1 %v4046_v63  ;;  %v4125_v63 = vcombine.low %v294_v26, %v298_v27  ;;  %v4118_v40 = vcombine.high %v286_v35, %v290_v36  ;;  %v150_v41 = vld [vmem:[%s6140_s1 + $0x288] sm:$0xff] }
  0xa0   :  { %3358 = vmatpush1.bf16.msra.mxu0 %v3917_v5  ;;  %v154_v42 = vld [vmem:[%s6140_s1 + $0x2a8] sm:$0xff] }
  0xa1   :  { %3359 = vmatprep.subr.bf16.mxu0 %v3910_v47  ;;  %v278_v5 = vld [vmem:[%s6140_s1 + $0x688] sm:$0xff]  ;;  %v3989_v47 = vcombine.low %v158_v32, %v162_v34  ;;  %v3982_v49 = vcombine.high %v150_v41, %v154_v42 }
  0xa2   :  { %3399 = vmatpush1.bf16.msra.mxu1 %v4045_v45  ;;  %v282_v45 = vld [vmem:[%s6140_s1 + $0x6a8] sm:$0xff] }
  0xa3   :  { %3400 = vmatprep.subr.bf16.mxu1 %v4038_v48  ;;  %v4117_v48 = vcombine.low %v286_v35, %v290_v36  ;;  %v4110_v50 = vcombine.high %v278_v5, %v282_v45  ;;  %v142_v51 = vld [vmem:[%s6140_s1 + $0x248] sm:$0xff] }
  0xa4   :  { %3360 = vmatpush1.bf16.msra.mxu0 %v3909_v54  ;;  %v146_v52 = vld [vmem:[%s6140_s1 + $0x268] sm:$0xff] }
  0xa5   :  { %3361 = vmatprep.subr.bf16.mxu0 %v3902_v56  ;;  %v270_v54 = vld [vmem:[%s6140_s1 + $0x648] sm:$0xff]  ;;  %v3981_v56 = vcombine.low %v150_v41, %v154_v42  ;;  %v3974_v59 = vcombine.high %v142_v51, %v146_v52 }
  0xa6   :  { %3401 = vmatpush1.bf16.msra.mxu1 %v4037_v55  ;;  %v274_v55 = vld [vmem:[%s6140_s1 + $0x668] sm:$0xff] }
  0xa7   :  { %3402 = vmatprep.subr.bf16.mxu1 %v4030_v57  ;;  %v4109_v57 = vcombine.low %v278_v5, %v282_v45  ;;  %v4102_v60 = vcombine.high %v270_v54, %v274_v55  ;;  %v134_v62 = vld [vmem:[%s6140_s1 + $0x208] sm:$0xff] }
  0xa8   :  { %3362 = vmatpush1.bf16.msra.mxu0 %v3901_v1  ;;  %v138_v0 = vld [vmem:[%s6140_s1 + $0x228] sm:$0xff] }
  0xa9   :  { %3363 = vmatprep.subr.bf16.mxu0 %v4022_v2  ;;  %v262_v1 = vld [vmem:[%s6140_s1 + $0x608] sm:$0xff]  ;;  %v3973_v2 = vcombine.low %v142_v51, %v146_v52  ;;  %v3966_v25 = vcombine.high %v134_v62, %v138_v0 }
  0xaa   :  { %3403 = vmatpush1.bf16.msra.mxu1 %v4029_v22  ;;  %v266_v22 = vld [vmem:[%s6140_s1 + $0x628] sm:$0xff] }
  0xab   :  { %3404 = vmatprep.subr.bf16.mxu1 %v4150_v3  ;;  %v4101_v3 = vcombine.low %v270_v54, %v274_v55  ;;  %v4094_v4 = vcombine.high %v262_v1, %v266_v22  ;;  %v382_v6 = vld [vmem:[%s6140_s1 + $0x9c8] sm:$0xff] }
  0xac   :  { %3364 = vmatpush2.bf16.msra.mxu0 %v4021_v8  ;;  %v386_v7 = vld [vmem:[%s6140_s1 + $0x9e8] sm:$0xff] }
  0xad   :  { %3365 = vmatprep.subr.bf16.mxu0 %v4014_v10  ;;  %v510_v8 = vld [vmem:[%s6140_s1 + $0xdc8] sm:$0xff]  ;;  %v3965_v10 = vcombine.low %v134_v62, %v138_v0  ;;  %v4214_v13 = vcombine.high %v382_v6, %v386_v7 }
  0xae   :  { %3405 = vmatpush2.bf16.msra.mxu1 %v4149_v9  ;;  %v514_v9 = vld [vmem:[%s6140_s1 + $0xde8] sm:$0xff] }
  0xaf   :  { %3406 = vmatprep.subr.bf16.mxu1 %v4142_v12  ;;  %v4093_v12 = vcombine.low %v262_v1, %v266_v22  ;;  %v4342_v14 = vcombine.high %v510_v8, %v514_v9  ;;  %v374_v15 = vld [vmem:[%s6140_s1 + $0x988] sm:$0xff] }
  0xb0   :  { %3366 = vmatpush2.bf16.msra.mxu0 %v4013_v18  ;;  %v378_v17 = vld [vmem:[%s6140_s1 + $0x9a8] sm:$0xff] }
  0xb1   :  { %3367 = vmatprep.subr.bf16.mxu0 %v4006_v20  ;;  %v502_v18 = vld [vmem:[%s6140_s1 + $0xd88] sm:$0xff]  ;;  %v4213_v20 = vcombine.low %v382_v6, %v386_v7  ;;  %v4206_v23 = vcombine.high %v374_v15, %v378_v17 }
  0xb2   :  { %3407 = vmatpush2.bf16.msra.mxu1 %v4141_v19  ;;  %v506_v19 = vld [vmem:[%s6140_s1 + $0xda8] sm:$0xff] }
  0xb3   :  { %3408 = vmatprep.subr.bf16.mxu1 %v4134_v21  ;;  %v4341_v21 = vcombine.low %v510_v8, %v514_v9  ;;  %v4334_v24 = vcombine.high %v502_v18, %v506_v19  ;;  %v366_v26 = vld [vmem:[%s6140_s1 + $0x948] sm:$0xff] }
  0xb4   :  { %3368 = vmatpush2.bf16.msra.mxu0 %v4005_v28  ;;  %v370_v27 = vld [vmem:[%s6140_s1 + $0x968] sm:$0xff] }
  0xb5   :  { %3369 = vmatprep.subr.bf16.mxu0 %v3998_v30  ;;  %v494_v28 = vld [vmem:[%s6140_s1 + $0xd48] sm:$0xff]  ;;  %v4205_v30 = vcombine.low %v374_v15, %v378_v17  ;;  %v4198_v32 = vcombine.high %v366_v26, %v370_v27 }
  0xb6   :  { %3409 = vmatpush2.bf16.msra.mxu1 %v4133_v29  ;;  %v498_v29 = vld [vmem:[%s6140_s1 + $0xd68] sm:$0xff] }
  0xb7   :  { %3410 = vmatprep.subr.bf16.mxu1 %v4126_v31  ;;  %v4333_v31 = vcombine.low %v502_v18, %v506_v19  ;;  %v4326_v34 = vcombine.high %v494_v28, %v498_v29  ;;  %v358_v35 = vld [vmem:[%s6140_s1 + $0x908] sm:$0xff] }
  0xb8   :  { %3370 = vmatpush2.bf16.msra.mxu0 %v3997_v38  ;;  %v362_v36 = vld [vmem:[%s6140_s1 + $0x928] sm:$0xff] }
  0xb9   :  { %3371 = vmatprep.subr.bf16.mxu0 %v3990_v39  ;;  %v486_v38 = vld [vmem:[%s6140_s1 + $0xd08] sm:$0xff]  ;;  %v4197_v39 = vcombine.low %v366_v26, %v370_v27  ;;  %v4190_v41 = vcombine.high %v358_v35, %v362_v36 }
  0xba   :  { %3411 = vmatpush2.bf16.msra.mxu1 %v4125_v63  ;;  %v490_v63 = vld [vmem:[%s6140_s1 + $0xd28] sm:$0xff] }
  0xbb   :  { %3412 = vmatprep.subr.bf16.mxu1 %v4118_v40  ;;  %v4325_v40 = vcombine.low %v494_v28, %v498_v29  ;;  %v4318_v42 = vcombine.high %v486_v38, %v490_v63  ;;  %v350_v5 = vld [vmem:[%s6140_s1 + $0x8c8] sm:$0xff] }
  0xbc   :  { %3372 = vmatpush2.bf16.msra.mxu0 %v3989_v47  ;;  %v354_v45 = vld [vmem:[%s6140_s1 + $0x8e8] sm:$0xff] }
  0xbd   :  { %3373 = vmatprep.subr.bf16.mxu0 %v3982_v49  ;;  %v478_v47 = vld [vmem:[%s6140_s1 + $0xcc8] sm:$0xff]  ;;  %v4189_v49 = vcombine.low %v358_v35, %v362_v36  ;;  %v4182_v51 = vcombine.high %v350_v5, %v354_v45 }
  0xbe   :  { %3413 = vmatpush2.bf16.msra.mxu1 %v4117_v48  ;;  %v482_v48 = vld [vmem:[%s6140_s1 + $0xce8] sm:$0xff] }
  0xbf   :  { %3414 = vmatprep.subr.bf16.mxu1 %v4110_v50  ;;  %v4317_v50 = vcombine.low %v486_v38, %v490_v63  ;;  %v4310_v52 = vcombine.high %v478_v47, %v482_v48  ;;  %v342_v54 = vld [vmem:[%s6140_s1 + $0x888] sm:$0xff] }
  0xc0   :  { %3374 = vmatpush2.bf16.msra.mxu0 %v3981_v56  ;;  %v346_v55 = vld [vmem:[%s6140_s1 + $0x8a8] sm:$0xff] }
  0xc1   :  { %3375 = vmatprep.subr.bf16.mxu0 %v3974_v59  ;;  %v470_v56 = vld [vmem:[%s6140_s1 + $0xc88] sm:$0xff]  ;;  %v4181_v59 = vcombine.low %v350_v5, %v354_v45  ;;  %v4174_v62 = vcombine.high %v342_v54, %v346_v55 }
  0xc2   :  { %3415 = vmatpush2.bf16.msra.mxu1 %v4109_v57  ;;  %v474_v57 = vld [vmem:[%s6140_s1 + $0xca8] sm:$0xff] }
  0xc3   :  { %3416 = vmatprep.subr.bf16.mxu1 %v4102_v60  ;;  %v4309_v60 = vcombine.low %v478_v47, %v482_v48  ;;  %v4302_v0 = vcombine.high %v470_v56, %v474_v57  ;;  %v334_v1 = vld [vmem:[%s6140_s1 + $0x848] sm:$0xff] }
  0xc4   :  { %3376 = vmatpush2.bf16.msra.mxu0 %v3973_v2  ;;  %v338_v22 = vld [vmem:[%s6140_s1 + $0x868] sm:$0xff] }
  0xc5   :  { %3377 = vmatprep.subr.bf16.mxu0 %v3966_v25  ;;  %v462_v2 = vld [vmem:[%s6140_s1 + $0xc48] sm:$0xff]  ;;  %v4173_v25 = vcombine.low %v342_v54, %v346_v55  ;;  %v4166_v6 = vcombine.high %v334_v1, %v338_v22 }
  0xc6   :  { %3417 = vmatpush2.bf16.msra.mxu1 %v4101_v3  ;;  %v466_v3 = vld [vmem:[%s6140_s1 + $0xc68] sm:$0xff] }
  0xc7   :  { %3418 = vmatprep.subr.bf16.mxu1 %v4094_v4  ;;  %v4301_v4 = vcombine.low %v470_v56, %v474_v57  ;;  %v4294_v7 = vcombine.high %v462_v2, %v466_v3  ;;  %v326_v8 = vld [vmem:[%s6140_s1 + $0x808] sm:$0xff] }
  0xc8   :  { %3378 = vmatpush2.bf16.msra.mxu0 %v3965_v10  ;;  %v330_v9 = vld [vmem:[%s6140_s1 + $0x828] sm:$0xff] }
  0xc9   :  { %3429 = vmatprep.subr.bf16.mxu0 %v4214_v13  ;;  %v454_v10 = vld [vmem:[%s6140_s1 + $0xc08] sm:$0xff]  ;;  %v4165_v13 = vcombine.low %v334_v1, %v338_v22  ;;  %v4158_v15 = vcombine.high %v326_v8, %v330_v9 }
  0xca   :  { %3419 = vmatpush2.bf16.msra.mxu1 %v4093_v12  ;;  %v458_v12 = vld [vmem:[%s6140_s1 + $0xc28] sm:$0xff] }
  0xcb   :  { %3470 = vmatprep.subr.bf16.mxu1 %v4342_v14  ;;  %3380 = vmatmul.mubr.bf16.vlgmr.msra.gmra.mxu0 %v4707_v33  ;;  %v4293_v14 = vcombine.low %v462_v2, %v466_v3  ;;  %v4286_v17 = vcombine.high %v454_v10, %v458_v12  ;;  %v446_v18 = vld [vmem:[%s6140_s1 + $0xbc8] sm:$0xff] }
  0xcc   :  { %3430 = vmatpush1.bf16.msra.mxu0 %v4213_v20  ;;  %3461 = vmatprep.mubr.bf16.mxu0 %v4727_v43  ;;  %v450_v19 = vld [vmem:[%s6140_s1 + $0xbe8] sm:$0xff] }
  0xcd   :  { %3421 = vmatmul.mubr.bf16.vlgmr.msra.gmra.mxu1 %v4719_v37  ;;  %3431 = vmatprep.subr.bf16.mxu0 %v4206_v23  ;;  %v574_v20 = vld [vmem:[%s6140_s1 + $0xfc8] sm:$0xff]  ;;  %v4157_v23 = vcombine.low %v326_v8, %v330_v9  ;;  %v4278_v26 = vcombine.high %v446_v18, %v450_v19 }
  0xce   :  { %3471 = vmatpush1.bf16.msra.mxu1 %v4341_v21  ;;  %3502 = vmatprep.mubr.bf16.mxu1 %v4736_v46  ;;  %v578_v21 = vld [vmem:[%s6140_s1 + $0xfe8] sm:$0xff] }
  0xcf   :  { %3472 = vmatprep.subr.bf16.mxu1 %v4334_v24  ;;  %v4285_v24 = vcombine.low %v454_v10, %v458_v12  ;;  %v4406_v27 = vcombine.high %v574_v20, %v578_v21  ;;  %v438_v28 = vld [vmem:[%s6140_s1 + $0xb88] sm:$0xff] }
  0xd0   :  { %3432 = vmatpush1.bf16.msra.mxu0 %v4205_v30  ;;  %v442_v29 = vld [vmem:[%s6140_s1 + $0xba8] sm:$0xff] }
  0xd1   :  { %3433 = vmatprep.subr.bf16.mxu0 %v4198_v32  ;;  %v566_v30 = vld [vmem:[%s6140_s1 + $0xf88] sm:$0xff]  ;;  %v4277_v32 = vcombine.low %v446_v18, %v450_v19  ;;  %v4270_v35 = vcombine.high %v438_v28, %v442_v29 }
  0xd2   :  { %3473 = vmatpush1.bf16.msra.mxu1 %v4333_v31  ;;  %v570_v31 = vld [vmem:[%s6140_s1 + $0xfa8] sm:$0xff] }
  0xd3   :  { %3474 = vmatprep.subr.bf16.mxu1 %v4326_v34  ;;  %v4405_v34 = vcombine.low %v574_v20, %v578_v21  ;;  %v4398_v36 = vcombine.high %v566_v30, %v570_v31  ;;  %v430_v38 = vld [vmem:[%s6140_s1 + $0xb48] sm:$0xff] }
  0xd4   :  { %3434 = vmatpush1.bf16.msra.mxu0 %v4197_v39  ;;  %v434_v63 = vld [vmem:[%s6140_s1 + $0xb68] sm:$0xff] }
  0xd5   :  { %3435 = vmatprep.subr.bf16.mxu0 %v4190_v41  ;;  %v558_v39 = vld [vmem:[%s6140_s1 + $0xf48] sm:$0xff]  ;;  %v4269_v41 = vcombine.low %v438_v28, %v442_v29  ;;  %v4262_v5 = vcombine.high %v430_v38, %v434_v63 }
  0xd6   :  { %3475 = vmatpush1.bf16.msra.mxu1 %v4325_v40  ;;  %v562_v40 = vld [vmem:[%s6140_s1 + $0xf68] sm:$0xff] }
  0xd7   :  { %3476 = vmatprep.subr.bf16.mxu1 %v4318_v42  ;;  %v4397_v42 = vcombine.low %v566_v30, %v570_v31  ;;  %v4390_v45 = vcombine.high %v558_v39, %v562_v40  ;;  %v422_v47 = vld [vmem:[%s6140_s1 + $0xb08] sm:$0xff]  ;;  %v127_v30 = vld [vmem:[%s6140_s1 + $0x1d0] sm:$0xff] }
  0xd8   :  { %3436 = vmatpush1.bf16.msra.mxu0 %v4189_v49  ;;  %v426_v48 = vld [vmem:[%s6140_s1 + $0xb28] sm:$0xff]  ;;  %v131_v31 = vld [vmem:[%s6140_s1 + $0x1f0] sm:$0xff] }
  0xd9   :  { %3437 = vmatprep.subr.bf16.mxu0 %v4182_v51  ;;  %v550_v49 = vld [vmem:[%s6140_s1 + $0xf08] sm:$0xff]  ;;  %v4261_v51 = vcombine.low %v430_v38, %v434_v63  ;;  %v4254_v54 = vcombine.high %v422_v47, %v426_v48  ;;  %v581_v63 = vld [vmem:[%s6141_s2] sm:$0xff] }
  0xda   :  { %3477 = vmatpush1.bf16.msra.mxu1 %v4317_v50  ;;  %v554_v50 = vld [vmem:[%s6140_s1 + $0xf28] sm:$0xff] }
  0xdb   :  { %3478 = vmatprep.subr.bf16.mxu1 %v4310_v52  ;;  %v4389_v52 = vcombine.low %v558_v39, %v562_v40  ;;  %v4382_v55 = vcombine.high %v550_v49, %v554_v50  ;;  %v414_v56 = vld [vmem:[%s6140_s1 + $0xac8] sm:$0xff]  ;;  %v3960_v39 = vcombine.high %v127_v30, %v131_v31 }
  0xdc   :  { %3438 = vmatpush1.bf16.msra.mxu0 %v4181_v59  ;;  %v418_v57 = vld [vmem:[%s6140_s1 + $0xae8] sm:$0xff] }
  0xdd   :  { %3439 = vmatprep.subr.bf16.mxu0 %v4174_v62  ;;  %v542_v59 = vld [vmem:[%s6140_s1 + $0xec8] sm:$0xff]  ;;  %v4253_v62 = vcombine.low %v422_v47, %v426_v48  ;;  %v4246_v1 = vcombine.high %v414_v56, %v418_v57  ;;  %v251_v47 = vld [vmem:[%s6140_s1 + $0x5b0] sm:$0xff] }
  0xde   :  { %3479 = vmatpush1.bf16.msra.mxu1 %v4309_v60  ;;  %v546_v60 = vld [vmem:[%s6140_s1 + $0xee8] sm:$0xff] }
  0xdf   :  { %3480 = vmatprep.subr.bf16.mxu1 %v4302_v0  ;;  %v4381_v0 = vcombine.low %v550_v49, %v554_v50  ;;  %v4374_v22 = vcombine.high %v542_v59, %v546_v60  ;;  %v406_v2 = vld [vmem:[%s6140_s1 + $0xa88] sm:$0xff]  ;;  %v3959_v49 = vcombine.low %v127_v30, %v131_v31 }
  0xe0   :  { %3440 = vmatpush1.bf16.msra.mxu0 %v4173_v25  ;;  %v410_v3 = vld [vmem:[%s6140_s1 + $0xaa8] sm:$0xff] }
  0xe1   :  { %3441 = vmatprep.subr.bf16.mxu0 %v4166_v6  ;;  %v534_v25 = vld [vmem:[%s6140_s1 + $0xe88] sm:$0xff]  ;;  %v4245_v6 = vcombine.low %v414_v56, %v418_v57  ;;  %v4238_v8 = vcombine.high %v406_v2, %v410_v3  ;;  %v115_v56 = vld [vmem:[%s6140_s1 + $0x170] sm:$0xff] }
  0xe2   :  { %3481 = vmatpush1.bf16.msra.mxu1 %v4301_v4  ;;  %v538_v4 = vld [vmem:[%s6140_s1 + $0xea8] sm:$0xff] }
  0xe3   :  { %3482 = vmatprep.subr.bf16.mxu1 %v4294_v7  ;;  %v4373_v7 = vcombine.low %v542_v59, %v546_v60  ;;  %v4366_v9 = vcombine.high %v534_v25, %v538_v4  ;;  %v398_v10 = vld [vmem:[%s6140_s1 + $0xa48] sm:$0xff]  ;;  %v239_v59 = vld [vmem:[%s6140_s1 + $0x550] sm:$0xff] }
  0xe4   :  { %3442 = vmatpush1.bf16.msra.mxu0 %v4165_v13  ;;  %v402_v12 = vld [vmem:[%s6140_s1 + $0xa68] sm:$0xff]  ;;  %v243_v60 = vld [vmem:[%s6140_s1 + $0x570] sm:$0xff] }
  0xe5   :  { %3443 = vmatprep.subr.bf16.mxu0 %v4158_v15  ;;  %v526_v13 = vld [vmem:[%s6140_s1 + $0xe48] sm:$0xff]  ;;  %v4237_v15 = vcombine.low %v406_v2, %v410_v3  ;;  %v4230_v18 = vcombine.high %v398_v10, %v402_v12 }
  0xe6   :  { %3483 = vmatpush1.bf16.msra.mxu1 %v4293_v14  ;;  %v530_v14 = vld [vmem:[%s6140_s1 + $0xe68] sm:$0xff] }
  0xe7   :  { %3484 = vmatprep.subr.bf16.mxu1 %v4286_v17  ;;  %v4365_v17 = vcombine.low %v534_v25, %v538_v4  ;;  %v4358_v19 = vcombine.high %v526_v13, %v530_v14  ;;  %v390_v20 = vld [vmem:[%s6140_s1 + $0xa08] sm:$0xff] }
  0xe8   :  { %3444 = vmatpush1.bf16.msra.mxu0 %v4157_v23  ;;  %v394_v21 = vld [vmem:[%s6140_s1 + $0xa28] sm:$0xff] }
  0xe9   :  { %3445 = vmatprep.subr.bf16.mxu0 %v4278_v26  ;;  %v518_v23 = vld [vmem:[%s6140_s1 + $0xe08] sm:$0xff]  ;;  %v4229_v26 = vcombine.low %v398_v10, %v402_v12  ;;  %v4222_v28 = vcombine.high %v390_v20, %v394_v21  ;;  %v231_v12 = vld [vmem:[%s6140_s1 + $0x510] sm:$0xff] }
  0xea   :  { %3485 = vmatpush1.bf16.msra.mxu1 %v4285_v24  ;;  %v522_v24 = vld [vmem:[%s6140_s1 + $0xe28] sm:$0xff] }
  0xeb   :  { %3486 = vmatprep.subr.bf16.mxu1 %v4406_v27  ;;  %v4357_v27 = vcombine.low %v526_v13, %v530_v14  ;;  %v4350_v29 = vcombine.high %v518_v23, %v522_v24  ;;  %v4349_v38 = vcombine.low %v518_v23, %v522_v24  ;;  %v235_v13 = vld [vmem:[%s6140_s1 + $0x530] sm:$0xff] }
  0xec   :  { %3446 = vmatpush2.bf16.msra.mxu0 %v4277_v32  ;;  %v255_v32 = vld [vmem:[%s6140_s1 + $0x5d0] sm:$0xff]  ;;  %v4064_v23 = vcombine.high %v231_v12, %v235_v13  ;;  %v4063_v30 = vcombine.low %v231_v12, %v235_v13 }
  0xed   :  { %3447 = vmatprep.subr.bf16.mxu0 %v4270_v35  ;;  %v4221_v35 = vcombine.low %v390_v20, %v394_v21  ;;  %v95_v24 = vld [vmem:[%s6140_s1 + $0xd0] sm:$0xff] }
  0xee   :  { %3487 = vmatpush2.bf16.msra.mxu1 %v4405_v34  ;;  %v259_v34 = vld [vmem:[%s6140_s1 + $0x5f0] sm:$0xff] }
  0xef   :  { %3488 = vmatprep.subr.bf16.mxu1 %v4398_v36  ;;  %v585_v36 = vsub.s32 0, %v4526_v44  ;;  %v4088_v40 = vcombine.high %v255_v32, %v259_v34  ;;  %v4087_v50 = vcombine.low %v255_v32, %v259_v34  ;;  %v87_v34 = vld [vmem:[%s6140_s1 + $0x90] sm:$0xff] }
  0xf0   :  { %3448 = vmatpush2.bf16.msra.mxu0 %v4269_v41  ;;  %v589_v41 = vsub.s32 1, %v4526_v44  ;;  %v315_v12 = vld [vmem:[%s6140_s1 + $0x7b0] sm:$0xff] }
  0xf1   :  { %3449 = vmatprep.subr.bf16.mxu0 %v4262_v5  ;;  %v123_v5 = vld [vmem:[%s6140_s1 + $0x1b0] sm:$0xff]  ;;  %v586_v48 = vrot.slane %v581_v63, %v585_v36 }
  0xf2   :  { %3489 = vmatpush2.bf16.msra.mxu1 %v4397_v42  ;;  %v119_v42 = vld [vmem:[%s6140_s1 + $0x190] sm:$0xff] }
  0xf3   :  { %3490 = vmatprep.subr.bf16.mxu1 %v4390_v45  ;;  %v247_v45 = vld [vmem:[%s6140_s1 + $0x590] sm:$0xff] }
  0xf4   :  { %3450 = vmatpush2.bf16.msra.mxu0 %v4261_v51  ;;  %v3952_v51 = vcombine.high %v119_v42, %v123_v5  ;;  %v4079_v2 = vcombine.low %v247_v45, %v251_v47  ;;  %v215_v36 = vld [vmem:[%s6140_s1 + $0x490] sm:$0xff] }
  0xf5   :  { %3451 = vmatprep.subr.bf16.mxu0 %v4254_v54  ;;  %v4080_v54 = vcombine.high %v247_v45, %v251_v47  ;;  %v207_v45 = vld [vmem:[%s6140_s1 + $0x450] sm:$0xff] }
  0xf6   :  { %3491 = vmatpush2.bf16.msra.mxu1 %v4389_v52  ;;  %v590_v52 = vrot.slane %v581_v63, %v589_v41  ;;  %v211_v47 = vld [vmem:[%s6140_s1 + $0x470] sm:$0xff] }
  0xf7   :  { %3492 = vmatprep.subr.bf16.mxu1 %v4382_v55  ;;  %v111_v55 = vld [vmem:[%s6140_s1 + $0x150] sm:$0xff] }
  0xf8   :  { %3452 = vmatpush2.bf16.msra.mxu0 %v4253_v62  ;;  %v3944_v3 = vcombine.high %v111_v55, %v115_v56 }
  0xf9   :  { %3453 = vmatprep.subr.bf16.mxu0 %v4246_v1  ;;  %v3951_v1 = vcombine.low %v119_v42, %v123_v5  ;;  %v79_v42 = vld [vmem:[%s6140_s1 + $0x50] sm:$0xff] }
  0xfa   :  { %3493 = vmatpush2.bf16.msra.mxu1 %v4381_v0  ;;  %v83_v5 = vld [vmem:[%s6140_s1 + $0x70] sm:$0xff] }
  0xfb   :  { %3494 = vmatprep.subr.bf16.mxu1 %v4374_v22 }
  0xfc   :  { %3454 = vmatpush2.bf16.msra.mxu0 %v4245_v6 }
  0xfd   :  { %3455 = vmatprep.subr.bf16.mxu0 %v4238_v8  ;;  %v103_v8 = vld [vmem:[%s6140_s1 + $0x110] sm:$0xff] }
  0xfe   :  { %3495 = vmatpush2.bf16.msra.mxu1 %v4373_v7  ;;  %v4072_v7 = vcombine.high %v239_v59, %v243_v60 }
  0xff   :  { %3496 = vmatprep.subr.bf16.mxu1 %v4366_v9  ;;  %v107_v9 = vld [vmem:[%s6140_s1 + $0x130] sm:$0xff] }
 0x100   :  { %3456 = vmatpush2.bf16.msra.mxu0 %v4237_v15  ;;  %v3936_v20 = vcombine.high %v103_v8, %v107_v9 }
 0x101   :  { %3457 = vmatprep.subr.bf16.mxu0 %v4230_v18 }
 0x102   :  { %3497 = vmatpush2.bf16.msra.mxu1 %v4365_v17  ;;  %v3943_v17 = vcombine.low %v111_v55, %v115_v56  ;;  %v199_v55 = vld [vmem:[%s6140_s1 + $0x410] sm:$0xff] }
 0x103   :  { %3498 = vmatprep.subr.bf16.mxu1 %v4358_v19  ;;  %v4071_v19 = vcombine.low %v239_v59, %v243_v60  ;;  %v203_v56 = vld [vmem:[%s6140_s1 + $0x430] sm:$0xff]  ;;  %v4039_v59 = vcombine.low %v207_v45, %v211_v47 }
 0x104   :  { %3458 = vmatpush2.bf16.msra.mxu0 %v4229_v26  ;;  %v99_v26 = vld [vmem:[%s6140_s1 + $0xf0] sm:$0xff] }
 0x105   :  { %3459 = vmatprep.subr.bf16.mxu0 %v4222_v28  ;;  %v227_v28 = vld [vmem:[%s6140_s1 + $0x4f0] sm:$0xff]  ;;  %v3928_v31 = vcombine.high %v95_v24, %v99_v26  ;;  %v3927_v63 = vcombine.low %v95_v24, %v99_v26 }
 0x106   :  { %3499 = vmatpush2.bf16.msra.mxu1 %v4357_v27  ;;  %v223_v27 = vld [vmem:[%s6140_s1 + $0x4d0] sm:$0xff] }
 0x107   :  { %3500 = vmatprep.subr.bf16.mxu1 %v4350_v29  ;;  %v3935_v29 = vcombine.low %v103_v8, %v107_v9  ;;  %v4056_v32 = vcombine.high %v223_v27, %v227_v28  ;;  %v183_v8 = vld [vmem:[%s6140_s1 + $0x390] sm:$0xff] }
 0x108   :  { %3460 = vmatpush2.bf16.msra.mxu0 %v4221_v35  ;;  %v91_v35 = vld [vmem:[%s6140_s1 + $0xb0] sm:$0xff] }
 0x109   :  { %3511 = vmatprep.subr.bf16.mxu0 %v3960_v39  ;;  %v4055_v39 = vcombine.low %v223_v27, %v227_v28  ;;  %v187_v9 = vld [vmem:[%s6140_s1 + $0x3b0] sm:$0xff] }
 0x10a   :  { %3501 = vmatpush2.bf16.msra.mxu1 %v4349_v38  ;;  %v219_v38 = vld [vmem:[%s6140_s1 + $0x4b0] sm:$0xff]  ;;  %v4015_v24 = vcombine.low %v183_v8, %v187_v9 }
 0x10b   :  { %3552 = vmatprep.subr.bf16.mxu1 %v4088_v40  ;;  %v3217_v57 = vpop.f32.mrf.mxu0  ;;  %3462 = vmatmul.mubr.bf16.vlgmr.msra.gmra.mxu0 %v4917_v58  ;;  %v3920_v40 = vcombine.high %v87_v34, %v91_v35  ;;  %v4048_v41 = vcombine.high %v215_v36, %v219_v38 }
 0x10c   :  { %v3218_v62 = vadd.f32 %v3217_v57, %v586_v48  ;;  %3512 = vmatpush1.bf16.msra.mxu0 %v3959_v49  ;;  %3543 = vmatprep.mubr.bf16.mxu0 %v4578_v11  ;;  %v3919_v48 = vcombine.low %v87_v34, %v91_v35  ;;  %v4047_v49 = vcombine.low %v215_v36, %v219_v38 }
 0x10d   :  { %v3258_v0 = vpop.f32.mrf.mxu1  ;;  %3503 = vmatmul.mubr.bf16.vlgmr.msra.gmra.mxu1 %v4927_v61  ;;  %v3219_v22 = vpop.f32.mrf.mxu0  ;;  %3513 = vmatprep.subr.bf16.mxu0 %v3952_v51  ;;  %v4040_v51 = vcombine.high %v207_v45, %v211_v47  ;;  %v3911_v57 = vcombine.low %v79_v42, %v83_v5 }
 0x10e   :  { %3553 = vmatpush1.bf16.msra.mxu1 %v4087_v50  ;;  %v5340_v25 = vadd.f32 %v3258_v0, %v3218_v62  ;;  %v3220_v4 = vadd.f32 %v3219_v22, %v590_v52  ;;  %3584 = vmatprep.mubr.bf16.mxu1 %v4589_v16  ;;  %v3912_v50 = vcombine.high %v79_v42, %v83_v5  ;;  %v71_v52 = vld [vmem:[%s6140_s1 + $0x10] sm:$0xff] }
 0x10f   :  { %v3260_v6 = vpop.f32.mrf.mxu1  ;;  %3554 = vmatprep.subr.bf16.mxu1 %v4080_v54  ;;  %v3221_v10 = vpop.f32.mrf.mxu0  ;;  %v75_v54 = vld [vmem:[%s6140_s1 + $0x30] sm:$0xff]  ;;  %v4032_v62 = vcombine.high %v199_v55, %v203_v56 }
 0x110   :  { %v5356_v14 = vadd.f32 %v3260_v6, %v3220_v4  ;;  %3514 = vmatpush1.bf16.msra.mxu0 %v3951_v1  ;;  %v3904_v60 = vcombine.high %v71_v52, %v75_v54  ;;  %v191_v0 = vld [vmem:[%s6140_s1 + $0x3d0] sm:$0xff]  ;;  %v4031_v4 = vcombine.low %v199_v55, %v203_v56 }
 0x111   :  { %v3262_v15 = vpop.f32.mrf.mxu1  ;;  %v3222_v18 = vpop.f32.mrf.mxu0  ;;  %3515 = vmatprep.subr.bf16.mxu0 %v3944_v3  ;;  %v195_v1 = vld [vmem:[%s6140_s1 + $0x3f0] sm:$0xff]  ;;  %v3903_v3 = vcombine.low %v71_v52, %v75_v54 }
 0x112   :  { %3555 = vmatpush1.bf16.msra.mxu1 %v4079_v2  ;;  %v319_v22 = vld [vmem:[%s6140_s1 + $0x7d0] sm:$0xff]  ;;  %v4024_v6 = vcombine.high %v191_v0, %v195_v1  ;;  %v4023_v13 = vcombine.low %v191_v0, %v195_v1 }
 0x113   :  { %v3263_v21 = vpop.f32.mrf.mxu1  ;;  %3556 = vmatprep.subr.bf16.mxu1 %v4072_v7  ;;  %v323_v2 = vld [vmem:[%s6140_s1 + $0x7f0] sm:$0xff] }
 0x114   :  { %3516 = vmatpush1.bf16.msra.mxu0 %v3943_v17  ;;  %v4152_v7 = vcombine.high %v319_v22, %v323_v2  ;;  %v311_v10 = vld [vmem:[%s6140_s1 + $0x790] sm:$0xff]  ;;  %v4151_v15 = vcombine.low %v319_v22, %v323_v2  ;;  %v4016_v17 = vcombine.high %v183_v8, %v187_v9 }
 0x115   :  { %3517 = vmatprep.subr.bf16.mxu0 %v3936_v20  ;;  %v4144_v18 = vcombine.high %v311_v10, %v315_v12  ;;  %v179_v20 = vld [vmem:[%s6140_s1 + $0x370] sm:$0xff]  ;;  %v4143_v26 = vcombine.low %v311_v10, %v315_v12 }
 0x116   :  { %3557 = vmatpush1.bf16.msra.mxu1 %v4071_v19  ;;  %v175_v19 = vld [vmem:[%s6140_s1 + $0x350] sm:$0xff] }
 0x117   :  { %3558 = vmatprep.subr.bf16.mxu1 %v4064_v23  ;;  %v303_v21 = vld [vmem:[%s6140_s1 + $0x750] sm:$0xff]  ;;  %v4008_v27 = vcombine.high %v175_v19, %v179_v20  ;;  %v4007_v34 = vcombine.low %v175_v19, %v179_v20 }
 0x118   :  { %3518 = vmatpush1.bf16.msra.mxu0 %v3935_v29  ;;  %v307_v23 = vld [vmem:[%s6140_s1 + $0x770] sm:$0xff] }
 0x119   :  { %3519 = vmatprep.subr.bf16.mxu0 %v3928_v31  ;;  %v4136_v28 = vcombine.high %v303_v21, %v307_v23  ;;  %v167_v29 = vld [vmem:[%s6140_s1 + $0x310] sm:$0xff]  ;;  %v4135_v35 = vcombine.low %v303_v21, %v307_v23 }
 0x11a   :  { %3559 = vmatpush1.bf16.msra.mxu1 %v4063_v30  ;;  %v171_v30 = vld [vmem:[%s6140_s1 + $0x330] sm:$0xff] }
 0x11b   :  { %3560 = vmatprep.subr.bf16.mxu1 %v4056_v32  ;;  %v295_v31 = vld [vmem:[%s6140_s1 + $0x710] sm:$0xff]  ;;  %v4000_v36 = vcombine.high %v167_v29, %v171_v30  ;;  %v3999_v42 = vcombine.low %v167_v29, %v171_v30 }
 0x11c   :  { %3520 = vmatpush1.bf16.msra.mxu0 %v3927_v63  ;;  %v299_v32 = vld [vmem:[%s6140_s1 + $0x730] sm:$0xff] }
 0x11d   :  { %3521 = vmatprep.subr.bf16.mxu0 %v3920_v40  ;;  %v4128_v38 = vcombine.high %v295_v31, %v299_v32  ;;  %v159_v63 = vld [vmem:[%s6140_s1 + $0x2d0] sm:$0xff]  ;;  %v4127_v5 = vcombine.low %v295_v31, %v299_v32 }
 0x11e   :  { %3561 = vmatpush1.bf16.msra.mxu1 %v4055_v39  ;;  %v163_v39 = vld [vmem:[%s6140_s1 + $0x2f0] sm:$0xff] }
 0x11f   :  { %3562 = vmatprep.subr.bf16.mxu1 %v4048_v41  ;;  %v287_v40 = vld [vmem:[%s6140_s1 + $0x6d0] sm:$0xff]  ;;  %v3992_v45 = vcombine.high %v159_v63, %v163_v39  ;;  %v3991_v52 = vcombine.low %v159_v63, %v163_v39 }
 0x120   :  { %3522 = vmatpush1.bf16.msra.mxu0 %v3919_v48  ;;  %v291_v41 = vld [vmem:[%s6140_s1 + $0x6f0] sm:$0xff] }
 0x121   :  { %3523 = vmatprep.subr.bf16.mxu0 %v3912_v50  ;;  %v4120_v47 = vcombine.high %v287_v40, %v291_v41  ;;  %v151_v48 = vld [vmem:[%s6140_s1 + $0x290] sm:$0xff]  ;;  %v4119_v54 = vcombine.low %v287_v40, %v291_v41 }
 0x122   :  { %3563 = vmatpush1.bf16.msra.mxu1 %v4047_v49  ;;  %v155_v49 = vld [vmem:[%s6140_s1 + $0x2b0] sm:$0xff] }
 0x123   :  { %3564 = vmatprep.subr.bf16.mxu1 %v4040_v51  ;;  %v279_v50 = vld [vmem:[%s6140_s1 + $0x690] sm:$0xff]  ;;  %v3984_v55 = vcombine.high %v151_v48, %v155_v49  ;;  %v3983_v0 = vcombine.low %v151_v48, %v155_v49 }
 0x124   :  { %3524 = vmatpush1.bf16.msra.mxu0 %v3911_v57  ;;  %v283_v51 = vld [vmem:[%s6140_s1 + $0x6b0] sm:$0xff] }
 0x125   :  { %3525 = vmatprep.subr.bf16.mxu0 %v3904_v60  ;;  %v4112_v56 = vcombine.high %v279_v50, %v283_v51  ;;  %v143_v57 = vld [vmem:[%s6140_s1 + $0x250] sm:$0xff]  ;;  %v4111_v1 = vcombine.low %v279_v50, %v283_v51 }
 0x126   :  { %3565 = vmatpush1.bf16.msra.mxu1 %v4039_v59  ;;  %v147_v59 = vld [vmem:[%s6140_s1 + $0x270] sm:$0xff] }
 0x127   :  { %3566 = vmatprep.subr.bf16.mxu1 %v4032_v62  ;;  %v271_v60 = vld [vmem:[%s6140_s1 + $0x650] sm:$0xff]  ;;  %v3976_v22 = vcombine.high %v143_v57, %v147_v59  ;;  %v3975_v8 = vcombine.low %v143_v57, %v147_v59 }
 0x128   :  { %3526 = vmatpush1.bf16.msra.mxu0 %v3903_v3  ;;  %v275_v62 = vld [vmem:[%s6140_s1 + $0x670] sm:$0xff] }
 0x129   :  { %3527 = vmatprep.subr.bf16.mxu0 %v4024_v6  ;;  %v4104_v2 = vcombine.high %v271_v60, %v275_v62  ;;  %v135_v3 = vld [vmem:[%s6140_s1 + $0x210] sm:$0xff]  ;;  %v4103_v9 = vcombine.low %v271_v60, %v275_v62 }
 0x12a   :  { %3567 = vmatpush1.bf16.msra.mxu1 %v4031_v4  ;;  %v139_v4 = vld [vmem:[%s6140_s1 + $0x230] sm:$0xff] }
 0x12b   :  { %3568 = vmatprep.subr.bf16.mxu1 %v4152_v7  ;;  %v263_v6 = vld [vmem:[%s6140_s1 + $0x610] sm:$0xff]  ;;  %v3968_v10 = vcombine.high %v135_v3, %v139_v4  ;;  %v3967_v19 = vcombine.low %v135_v3, %v139_v4 }
 0x12c   :  { %3528 = vmatpush2.bf16.msra.mxu0 %v4023_v13  ;;  %v267_v7 = vld [vmem:[%s6140_s1 + $0x630] sm:$0xff] }
 0x12d   :  { %3529 = vmatprep.subr.bf16.mxu0 %v4016_v17  ;;  %v4096_v12 = vcombine.high %v263_v6, %v267_v7  ;;  %v383_v13 = vld [vmem:[%s6140_s1 + $0x9d0] sm:$0xff]  ;;  %v4095_v20 = vcombine.low %v263_v6, %v267_v7 }
 0x12e   :  { %3569 = vmatpush2.bf16.msra.mxu1 %v4151_v15  ;;  %v387_v15 = vld [vmem:[%s6140_s1 + $0x9f0] sm:$0xff] }
 0x12f   :  { %3570 = vmatprep.subr.bf16.mxu1 %v4144_v18  ;;  %v511_v17 = vld [vmem:[%s6140_s1 + $0xdd0] sm:$0xff]  ;;  %v4216_v21 = vcombine.high %v383_v13, %v387_v15  ;;  %v4215_v29 = vcombine.low %v383_v13, %v387_v15 }
 0x130   :  { %3530 = vmatpush2.bf16.msra.mxu0 %v4015_v24  ;;  %v515_v18 = vld [vmem:[%s6140_s1 + $0xdf0] sm:$0xff] }
 0x131   :  { %3531 = vmatprep.subr.bf16.mxu0 %v4008_v27  ;;  %v4344_v23 = vcombine.high %v511_v17, %v515_v18  ;;  %v375_v24 = vld [vmem:[%s6140_s1 + $0x990] sm:$0xff]  ;;  %v4343_v30 = vcombine.low %v511_v17, %v515_v18 }
 0x132   :  { %3571 = vmatpush2.bf16.msra.mxu1 %v4143_v26  ;;  %v379_v26 = vld [vmem:[%s6140_s1 + $0x9b0] sm:$0xff] }
 0x133   :  { %3572 = vmatprep.subr.bf16.mxu1 %v4136_v28  ;;  %v503_v27 = vld [vmem:[%s6140_s1 + $0xd90] sm:$0xff]  ;;  %v4208_v31 = vcombine.high %v375_v24, %v379_v26  ;;  %v4207_v41 = vcombine.low %v375_v24, %v379_v26 }
 0x134   :  { %3532 = vmatpush2.bf16.msra.mxu0 %v4007_v34  ;;  %v507_v28 = vld [vmem:[%s6140_s1 + $0xdb0] sm:$0xff] }
 0x135   :  { %3533 = vmatprep.subr.bf16.mxu0 %v4000_v36  ;;  %v4336_v32 = vcombine.high %v503_v27, %v507_v28  ;;  %v367_v34 = vld [vmem:[%s6140_s1 + $0x950] sm:$0xff] }
 0x136   :  { %3573 = vmatpush2.bf16.msra.mxu1 %v4135_v35  ;;  %v371_v35 = vld [vmem:[%s6140_s1 + $0x970] sm:$0xff] }
 0x137   :  { %3574 = vmatprep.subr.bf16.mxu1 %v4128_v38  ;;  %v495_v38 = vld [vmem:[%s6140_s1 + $0xd50] sm:$0xff]  ;;  %v4199_v57 = vcombine.low %v367_v34, %v371_v35 }
 0x138   :  { %3534 = vmatpush2.bf16.msra.mxu0 %v3999_v42  ;;  %v499_v63 = vld [vmem:[%s6140_s1 + $0xd70] sm:$0xff] }
 0x139   :  { %3535 = vmatprep.subr.bf16.mxu0 %v3992_v45  ;;  %v4200_v45 = vcombine.high %v367_v34, %v371_v35  ;;  %v4328_v50 = vcombine.high %v495_v38, %v499_v63  ;;  %v363_v51 = vld [vmem:[%s6140_s1 + $0x930] sm:$0xff]  ;;  %v4327_v60 = vcombine.low %v495_v38, %v499_v63 }
 0x13a   :  { %3575 = vmatpush2.bf16.msra.mxu1 %v4127_v5  ;;  %v4335_v5 = vcombine.low %v503_v27, %v507_v28  ;;  %v355_v3 = vld [vmem:[%s6140_s1 + $0x8f0] sm:$0xff] }
 0x13b   :  { %3576 = vmatprep.subr.bf16.mxu1 %v4120_v47  ;;  %v479_v4 = vld [vmem:[%s6140_s1 + $0xcd0] sm:$0xff] }
 0x13c   :  { %3536 = vmatpush2.bf16.msra.mxu0 %v3991_v52  ;;  %v483_v6 = vld [vmem:[%s6140_s1 + $0xcf0] sm:$0xff] }
 0x13d   :  { %3537 = vmatprep.subr.bf16.mxu0 %v3984_v55  ;;  %v347_v13 = vld [vmem:[%s6140_s1 + $0x8b0] sm:$0xff] }
 0x13e   :  { %3577 = vmatpush2.bf16.msra.mxu1 %v4119_v54  ;;  %v487_v54 = vld [vmem:[%s6140_s1 + $0xd10] sm:$0xff] }
 0x13f   :  { %3578 = vmatprep.subr.bf16.mxu1 %v4112_v56  ;;  %v471_v15 = vld [vmem:[%s6140_s1 + $0xc90] sm:$0xff] }
 0x140   :  { %3538 = vmatpush2.bf16.msra.mxu0 %v3983_v0  ;;  %v475_v17 = vld [vmem:[%s6140_s1 + $0xcb0] sm:$0xff] }
 0x141   :  { %3539 = vmatprep.subr.bf16.mxu0 %v3976_v22  ;;  %v339_v24 = vld [vmem:[%s6140_s1 + $0x870] sm:$0xff] }
 0x142   :  { %3579 = vmatpush2.bf16.msra.mxu1 %v4111_v1  ;;  %v463_v26 = vld [vmem:[%s6140_s1 + $0xc50] sm:$0xff] }
 0x143   :  { %3580 = vmatprep.subr.bf16.mxu1 %v4104_v2  ;;  %v351_v2 = vld [vmem:[%s6140_s1 + $0x8d0] sm:$0xff] }
 0x144   :  { %3540 = vmatpush2.bf16.msra.mxu0 %v3975_v8  ;;  %v4183_v18 = vcombine.low %v351_v2, %v355_v3  ;;  %v467_v27 = vld [vmem:[%s6140_s1 + $0xc70] sm:$0xff] }
 0x145   :  { %3541 = vmatprep.subr.bf16.mxu0 %v3968_v10  ;;  %v4312_v10 = vcombine.high %v479_v4, %v483_v6  ;;  %v331_v34 = vld [vmem:[%s6140_s1 + $0x830] sm:$0xff]  ;;  %v4295_v63 = vcombine.low %v463_v26, %v467_v27 }
 0x146   :  { %3581 = vmatpush2.bf16.msra.mxu1 %v4103_v9  ;;  %v4184_v9 = vcombine.high %v351_v2, %v355_v3  ;;  %v455_v35 = vld [vmem:[%s6140_s1 + $0xc10] sm:$0xff] }
 0x147   :  { %3582 = vmatprep.subr.bf16.mxu1 %v4096_v12  ;;  %v343_v12 = vld [vmem:[%s6140_s1 + $0x890] sm:$0xff] }
 0x148   :  { %3542 = vmatpush2.bf16.msra.mxu0 %v3967_v19  ;;  %v4311_v19 = vcombine.low %v479_v4, %v483_v6  ;;  %v4175_v28 = vcombine.low %v343_v12, %v347_v13  ;;  %v563_v2 = vld [vmem:[%s6140_s1 + $0xf70] sm:$0xff] }
 0x149   :  { %3593 = vmatprep.subr.bf16.mxu0 %v4216_v21  ;;  %v4304_v21 = vcombine.high %v471_v15, %v475_v17 }
 0x14a   :  { %3583 = vmatpush2.bf16.msra.mxu1 %v4095_v20  ;;  %v4176_v20 = vcombine.high %v343_v12, %v347_v13  ;;  %v555_v12 = vld [vmem:[%s6140_s1 + $0xf30] sm:$0xff] }
 0x14b   :  { %3634 = vmatprep.subr.bf16.mxu1 %v4344_v23  ;;  %v3299_v36 = vpop.f32.mrf.mxu0  ;;  %3544 = vmatmul.mubr.bf16.vlgmr.msra.gmra.mxu0 %v4707_v33  ;;  %v335_v23 = vld [vmem:[%s6140_s1 + $0x850] sm:$0xff] }
 0x14c   :  { %v3300_v39 = vadd.f32 %v3299_v36, %v5340_v25  ;;  %3594 = vmatpush1.bf16.msra.mxu0 %v4215_v29  ;;  %v359_v25 = vld [vmem:[%s6140_s1 + $0x910] sm:$0xff]  ;;  %3625 = vmatprep.mubr.bf16.mxu0 %v4727_v43  ;;  %v4303_v29 = vcombine.low %v471_v15, %v475_v17  ;;  %v4167_v38 = vcombine.low %v335_v23, %v339_v24 }
 0x14d   :  { %v3340_v40 = vpop.f32.mrf.mxu1  ;;  %3585 = vmatmul.mubr.bf16.vlgmr.msra.gmra.mxu1 %v4719_v37  ;;  %v3301_v42 = vpop.f32.mrf.mxu0  ;;  %3595 = vmatprep.subr.bf16.mxu0 %v4208_v31  ;;  %v4192_v62 = vcombine.high %v359_v25, %v363_v51  ;;  %v4191_v7 = vcombine.low %v359_v25, %v363_v51  ;;  %v4296_v31 = vcombine.high %v463_v26, %v467_v27  ;;  %v459_v36 = vld [vmem:[%s6140_s1 + $0xc30] sm:$0xff] }
 0x14e   :  { %3635 = vmatpush1.bf16.msra.mxu1 %v4343_v30  ;;  %v5541_v47 = vadd.f32 %v3340_v40, %v3300_v39  ;;  %v3302_v48 = vadd.f32 %v3301_v42, %v5356_v14  ;;  %v491_v14 = vld [vmem:[%s6140_s1 + $0xd30] sm:$0xff]  ;;  %3666 = vmatprep.mubr.bf16.mxu1 %v4736_v46  ;;  %v4168_v30 = vcombine.high %v335_v23, %v339_v24 }
 0x14f   :  { %v3342_v49 = vpop.f32.mrf.mxu1  ;;  %3636 = vmatprep.subr.bf16.mxu1 %v4336_v32  ;;  %v3303_v52 = vpop.f32.mrf.mxu0  ;;  %v4320_v22 = vcombine.high %v487_v54, %v491_v14  ;;  %v4319_v8 = vcombine.low %v487_v54, %v491_v14  ;;  %v327_v32 = vld [vmem:[%s6140_s1 + $0x810] sm:$0xff]  ;;  %v4288_v40 = vcombine.high %v455_v35, %v459_v36 }
 0x150   :  { %v5558_v55 = vadd.f32 %v3342_v49, %v3302_v48  ;;  %3596 = vmatpush1.bf16.msra.mxu0 %v4207_v41  ;;  %v4160_v39 = vcombine.high %v327_v32, %v331_v34  ;;  %v447_v41 = vld [vmem:[%s6140_s1 + $0xbd0] sm:$0xff]  ;;  %v4159_v48 = vcombine.low %v327_v32, %v331_v34  ;;  %v4287_v49 = vcombine.low %v455_v35, %v459_v36 }
 0x151   :  { %v3344_v56 = vpop.f32.mrf.mxu1  ;;  %v3304_v59 = vpop.f32.mrf.mxu0  ;;  %3597 = vmatprep.subr.bf16.mxu0 %v4200_v45  ;;  %v451_v42 = vld [vmem:[%s6140_s1 + $0xbf0] sm:$0xff] }
 0x152   :  { %3637 = vmatpush1.bf16.msra.mxu1 %v4335_v5  ;;  %v3847_v0 = vcombine.low %v5541_v47, %v5558_v55  ;;  %v575_v5 = vld [vmem:[%s6140_s1 + $0xfd0] sm:$0xff]  ;;  %v4279_v56 = vcombine.low %v447_v41, %v451_v42  ;;  %v472_v55 = vld [vmem:[%s6140_s1 + $0xc98] sm:$0xff] }
 0x153   :  { %v3345_v1 = vpop.f32.mrf.mxu1  ;;  %3638 = vmatprep.subr.bf16.mxu1 %v4328_v50  ;;  %v579_v45 = vld [vmem:[%s6140_s1 + $0xff0] sm:$0xff]  ;;  %v4280_v50 = vcombine.high %v447_v41, %v451_v42 }
 0x154   :  { %3598 = vmatpush1.bf16.msra.mxu0 %v4199_v57  ;;  %v4408_v25 = vcombine.high %v575_v5, %v579_v45  ;;  %v439_v51 = vld [vmem:[%s6140_s1 + $0xb90] sm:$0xff]  ;;  %v4407_v57 = vcombine.low %v575_v5, %v579_v45 }
 0x155   :  { %3599 = vmatprep.subr.bf16.mxu0 %v4192_v62  ;;  %v443_v52 = vld [vmem:[%s6140_s1 + $0xbb0] sm:$0xff] }
 0x156   :  { %3639 = vmatpush1.bf16.msra.mxu1 %v4327_v60  ;;  %v567_v54 = vld [vmem:[%s6140_s1 + $0xf90] sm:$0xff]  ;;  %v4272_v59 = vcombine.high %v439_v51, %v443_v52  ;;  %v4271_v3 = vcombine.low %v439_v51, %v443_v52 }
 0x157   :  { %3640 = vmatprep.subr.bf16.mxu1 %v4320_v22  ;;  %v571_v14 = vld [vmem:[%s6140_s1 + $0xfb0] sm:$0xff] }
 0x158   :  { %3600 = vmatpush1.bf16.msra.mxu0 %v4191_v7  ;;  %v4400_v60 = vcombine.high %v567_v54, %v571_v14  ;;  %v431_v62 = vld [vmem:[%s6140_s1 + $0xb50] sm:$0xff]  ;;  %v4399_v4 = vcombine.low %v567_v54, %v571_v14 }
 0x159   :  { %3601 = vmatprep.subr.bf16.mxu0 %v4184_v9  ;;  %v435_v1 = vld [vmem:[%s6140_s1 + $0xb70] sm:$0xff] }
 0x15a   :  { %3641 = vmatpush1.bf16.msra.mxu1 %v4319_v8  ;;  %v559_v22 = vld [vmem:[%s6140_s1 + $0xf50] sm:$0xff]  ;;  %v4264_v6 = vcombine.high %v431_v62, %v435_v1  ;;  %v4263_v13 = vcombine.low %v431_v62, %v435_v1  ;;  %v260_v62 = vld [vmem:[%s6140_s1 + $0x5f8] sm:$0xff] }
 0x15b   :  { %3642 = vmatprep.subr.bf16.mxu1 %v4312_v10  ;;  %v4392_v7 = vcombine.high %v559_v22, %v563_v2  ;;  %v423_v8 = vld [vmem:[%s6140_s1 + $0xb10] sm:$0xff]  ;;  %v4391_v15 = vcombine.low %v559_v22, %v563_v2 }
 0x15c   :  { %3602 = vmatpush1.bf16.msra.mxu0 %v4183_v18  ;;  %v427_v9 = vld [vmem:[%s6140_s1 + $0xb30] sm:$0xff] }
 0x15d   :  { %3603 = vmatprep.subr.bf16.mxu0 %v4176_v20  ;;  %v551_v10 = vld [vmem:[%s6140_s1 + $0xf10] sm:$0xff]  ;;  %v4256_v17 = vcombine.high %v423_v8, %v427_v9  ;;  %v4255_v24 = vcombine.low %v423_v8, %v427_v9  ;;  %v252_v8 = vld [vmem:[%s6140_s1 + $0x5b8] sm:$0xff] }
 0x15e   :  { %3643 = vmatpush1.bf16.msra.mxu1 %v4311_v19  ;;  %v4384_v18 = vcombine.high %v551_v10, %v555_v12  ;;  %v415_v19 = vld [vmem:[%s6140_s1 + $0xad0] sm:$0xff]  ;;  %v4383_v26 = vcombine.low %v551_v10, %v555_v12 }
 0x15f   :  { %3644 = vmatprep.subr.bf16.mxu1 %v4304_v21  ;;  %v419_v20 = vld [vmem:[%s6140_s1 + $0xaf0] sm:$0xff] }
 0x160   :  { %3604 = vmatpush1.bf16.msra.mxu0 %v4175_v28  ;;  %v543_v21 = vld [vmem:[%s6140_s1 + $0xed0] sm:$0xff]  ;;  %v4248_v27 = vcombine.high %v415_v19, %v419_v20  ;;  %v4247_v34 = vcombine.low %v415_v19, %v419_v20  ;;  %v240_v19 = vld [vmem:[%s6140_s1 + $0x558] sm:$0xff] }
 0x161   :  { %3605 = vmatprep.subr.bf16.mxu0 %v4168_v30  ;;  %v547_v23 = vld [vmem:[%s6140_s1 + $0xef0] sm:$0xff]  ;;  %v244_v20 = vld [vmem:[%s6140_s1 + $0x578] sm:$0xff] }
 0x162   :  { %3645 = vmatpush1.bf16.msra.mxu1 %v4303_v29  ;;  %v4376_v28 = vcombine.high %v543_v21, %v547_v23  ;;  %v407_v29 = vld [vmem:[%s6140_s1 + $0xa90] sm:$0xff]  ;;  %v4375_v35 = vcombine.low %v543_v21, %v547_v23 }
 0x163   :  { %3646 = vmatprep.subr.bf16.mxu1 %v4296_v31  ;;  %v411_v30 = vld [vmem:[%s6140_s1 + $0xab0] sm:$0xff] }
 0x164   :  { %3606 = vmatpush1.bf16.msra.mxu0 %v4167_v38  ;;  %v535_v31 = vld [vmem:[%s6140_s1 + $0xe90] sm:$0xff]  ;;  %v4240_v36 = vcombine.high %v407_v29, %v411_v30  ;;  %v4239_v42 = vcombine.low %v407_v29, %v411_v30  ;;  %v4074_v29 = vcombine.high %v240_v19, %v244_v20  ;;  %v104_v30 = vld [vmem:[%s6140_s1 + $0x118] sm:$0xff] }
 0x165   :  { %3607 = vmatprep.subr.bf16.mxu0 %v4160_v39  ;;  %v539_v32 = vld [vmem:[%s6140_s1 + $0xeb0] sm:$0xff] }
 0x166   :  { %3647 = vmatpush1.bf16.msra.mxu1 %v4295_v63  ;;  %v4368_v38 = vcombine.high %v535_v31, %v539_v32  ;;  %v399_v63 = vld [vmem:[%s6140_s1 + $0xa50] sm:$0xff]  ;;  %v4367_v5 = vcombine.low %v535_v31, %v539_v32  ;;  %v108_v31 = vld [vmem:[%s6140_s1 + $0x138] sm:$0xff] }
 0x167   :  { %3648 = vmatprep.subr.bf16.mxu1 %v4288_v40  ;;  %v403_v39 = vld [vmem:[%s6140_s1 + $0xa70] sm:$0xff] }
 0x168   :  { %3608 = vmatpush1.bf16.msra.mxu0 %v4159_v48  ;;  %v527_v40 = vld [vmem:[%s6140_s1 + $0xe50] sm:$0xff]  ;;  %v4232_v45 = vcombine.high %v399_v63, %v403_v39  ;;  %v4231_v52 = vcombine.low %v399_v63, %v403_v39  ;;  %v4073_v39 = vcombine.low %v240_v19, %v244_v20  ;;  %v192_v20 = vld [vmem:[%s6140_s1 + $0x3d8] sm:$0xff] }
 0x169   :  { %3609 = vmatprep.subr.bf16.mxu0 %v4280_v50  ;;  %v531_v41 = vld [vmem:[%s6140_s1 + $0xe70] sm:$0xff] }
 0x16a   :  { %3649 = vmatpush1.bf16.msra.mxu1 %v4287_v49  ;;  %v4360_v48 = vcombine.high %v527_v40, %v531_v41  ;;  %v391_v49 = vld [vmem:[%s6140_s1 + $0xa10] sm:$0xff]  ;;  %v4359_v54 = vcombine.low %v527_v40, %v531_v41  ;;  %v3938_v40 = vcombine.high %v104_v30, %v108_v31 }
 0x16b   :  { %3650 = vmatprep.subr.bf16.mxu1 %v4408_v25  ;;  %v395_v50 = vld [vmem:[%s6140_s1 + $0xa30] sm:$0xff] }
 0x16c   :  { %3610 = vmatpush2.bf16.msra.mxu0 %v4279_v56  ;;  %v519_v25 = vld [vmem:[%s6140_s1 + $0xe10] sm:$0xff]  ;;  %v4224_v14 = vcombine.high %v391_v49, %v395_v50  ;;  %v4223_v1 = vcombine.low %v391_v49, %v395_v50 }
 0x16d   :  { %3611 = vmatprep.subr.bf16.mxu0 %v4272_v59  ;;  %v523_v51 = vld [vmem:[%s6140_s1 + $0xe30] sm:$0xff]  ;;  %v132_v59 = vld [vmem:[%s6140_s1 + $0x1f8] sm:$0xff] }
 0x16e   :  { %3651 = vmatpush2.bf16.msra.mxu1 %v4407_v57  ;;  %v4352_v56 = vcombine.high %v519_v25, %v523_v51  ;;  %v128_v57 = vld [vmem:[%s6140_s1 + $0x1d8] sm:$0xff]  ;;  %v4351_v22 = vcombine.low %v519_v25, %v523_v51 }
 0x16f   :  { %3652 = vmatprep.subr.bf16.mxu1 %v4400_v60  ;;  %v256_v60 = vld [vmem:[%s6140_s1 + $0x5d8] sm:$0xff]  ;;  %v3962_v2 = vcombine.high %v128_v57, %v132_v59  ;;  %v3961_v9 = vcombine.low %v128_v57, %v132_v59 }
 0x170   :  { %3612 = vmatpush2.bf16.msra.mxu0 %v4271_v3  ;;  %v4090_v3 = vcombine.high %v256_v60, %v260_v62  ;;  %v4089_v10 = vcombine.low %v256_v60, %v260_v62  ;;  %v88_v51 = vld [vmem:[%s6140_s1 + $0x98] sm:$0xff] }
 0x171   :  { %3613 = vmatprep.subr.bf16.mxu0 %v4264_v6  ;;  %v124_v6 = vld [vmem:[%s6140_s1 + $0x1b8] sm:$0xff] }
 0x172   :  { %3653 = vmatpush2.bf16.msra.mxu1 %v4399_v4  ;;  %v120_v4 = vld [vmem:[%s6140_s1 + $0x198] sm:$0xff] }
 0x173   :  { %3654 = vmatprep.subr.bf16.mxu1 %v4392_v7  ;;  %v248_v7 = vld [vmem:[%s6140_s1 + $0x598] sm:$0xff]  ;;  %v3954_v12 = vcombine.high %v120_v4, %v124_v6  ;;  %v3953_v23 = vcombine.low %v120_v4, %v124_v6 }
 0x174   :  { %3614 = vmatpush2.bf16.msra.mxu0 %v4263_v13  ;;  %v4082_v13 = vcombine.high %v248_v7, %v252_v8  ;;  %v80_v62 = vld [vmem:[%s6140_s1 + $0x58] sm:$0xff] }
 0x175   :  { %3615 = vmatprep.subr.bf16.mxu0 %v4256_v17  ;;  %v116_v17 = vld [vmem:[%s6140_s1 + $0x178] sm:$0xff] }
 0x176   :  { %3655 = vmatpush2.bf16.msra.mxu1 %v4391_v15  ;;  %v112_v15 = vld [vmem:[%s6140_s1 + $0x158] sm:$0xff] }
 0x177   :  { %3656 = vmatprep.subr.bf16.mxu1 %v4384_v18 }
 0x178   :  { %3616 = vmatpush2.bf16.msra.mxu0 %v4255_v24 }
 0x179   :  { %3617 = vmatprep.subr.bf16.mxu0 %v4248_v27  ;;  %v3946_v27 = vcombine.high %v112_v15, %v116_v17 }
 0x17a   :  { %3657 = vmatpush2.bf16.msra.mxu1 %v4383_v26  ;;  %v4081_v26 = vcombine.low %v248_v7, %v252_v8  ;;  %v72_v8 = vld [vmem:[%s6140_s1 + $0x18] sm:$0xff] }
 0x17b   :  { %3658 = vmatprep.subr.bf16.mxu1 %v4376_v28 }
 0x17c   :  { %3618 = vmatpush2.bf16.msra.mxu0 %v4247_v34  ;;  %v232_v34 = vld [vmem:[%s6140_s1 + $0x518] sm:$0xff] }
 0x17d   :  { %3619 = vmatprep.subr.bf16.mxu0 %v4240_v36 }
 0x17e   :  { %3659 = vmatpush2.bf16.msra.mxu1 %v4375_v35  ;;  %v236_v35 = vld [vmem:[%s6140_s1 + $0x538] sm:$0xff] }
 0x17f   :  { %3660 = vmatprep.subr.bf16.mxu1 %v4368_v38  ;;  %v3945_v38 = vcombine.low %v112_v15, %v116_v17  ;;  %v4066_v41 = vcombine.high %v232_v34, %v236_v35  ;;  %v4065_v49 = vcombine.low %v232_v34, %v236_v35  ;;  %v184_v34 = vld [vmem:[%s6140_s1 + $0x398] sm:$0xff] }
 0x180   :  { %3620 = vmatpush2.bf16.msra.mxu0 %v4239_v42  ;;  %v96_v42 = vld [vmem:[%s6140_s1 + $0xd8] sm:$0xff] }
 0x181   :  { %3621 = vmatprep.subr.bf16.mxu0 %v4232_v45  ;;  %v228_v45 = vld [vmem:[%s6140_s1 + $0x4f8] sm:$0xff] }
 0x182   :  { %3661 = vmatpush2.bf16.msra.mxu1 %v4367_v5  ;;  %v100_v5 = vld [vmem:[%s6140_s1 + $0xf8] sm:$0xff] }
 0x183   :  { %3662 = vmatprep.subr.bf16.mxu1 %v4360_v48  ;;  %v3937_v48 = vcombine.low %v104_v30, %v108_v31  ;;  %v3930_v50 = vcombine.high %v96_v42, %v100_v5  ;;  %v188_v35 = vld [vmem:[%s6140_s1 + $0x3b8] sm:$0xff] }
 0x184   :  { %3622 = vmatpush2.bf16.msra.mxu0 %v4231_v52  ;;  %v92_v52 = vld [vmem:[%s6140_s1 + $0xb8] sm:$0xff] }
 0x185   :  { %3623 = vmatprep.subr.bf16.mxu0 %v4224_v14  ;;  %v220_v14 = vld [vmem:[%s6140_s1 + $0x4b8] sm:$0xff]  ;;  %v3922_v59 = vcombine.high %v88_v51, %v92_v52 }
 0x186   :  { %3663 = vmatpush2.bf16.msra.mxu1 %v4359_v54  ;;  %v216_v54 = vld [vmem:[%s6140_s1 + $0x498] sm:$0xff] }
 0x187   :  { %3664 = vmatprep.subr.bf16.mxu1 %v4352_v56  ;;  %v3929_v56 = vcombine.low %v96_v42, %v100_v5  ;;  %v4050_v60 = vcombine.high %v216_v54, %v220_v14  ;;  %v4049_v4 = vcombine.low %v216_v54, %v220_v14  ;;  %v180_v42 = vld [vmem:[%s6140_s1 + $0x378] sm:$0xff] }
 0x188   :  { %3624 = vmatpush2.bf16.msra.mxu0 %v4223_v1  ;;  %v84_v1 = vld [vmem:[%s6140_s1 + $0x78] sm:$0xff] }
 0x189   :  { %3675 = vmatprep.subr.bf16.mxu0 %v3962_v2  ;;  %v212_v2 = vld [vmem:[%s6140_s1 + $0x478] sm:$0xff]  ;;  %v3914_v6 = vcombine.high %v80_v62, %v84_v1 }
 0x18a   :  { %3665 = vmatpush2.bf16.msra.mxu1 %v4351_v22  ;;  %v208_v22 = vld [vmem:[%s6140_s1 + $0x458] sm:$0xff] }
 0x18b   :  { %3716 = vmatprep.subr.bf16.mxu1 %v4090_v3  ;;  %v5736_v18 = vpop.f32.mrf.mxu0  ;;  %3626 = vmatmul.mubr.bf16.vlgmr.msra.gmra.mxu0 %v4917_v58  ;;  %v3921_v3 = vcombine.low %v88_v51, %v92_v52  ;;  %v4042_v7 = vcombine.high %v208_v22, %v212_v2  ;;  %v4041_v15 = vcombine.low %v208_v22, %v212_v2  ;;  %v304_v5 = vld [vmem:[%s6140_s1 + $0x758] sm:$0xff] }
 0x18c   :  { %3676 = vmatpush1.bf16.msra.mxu0 %v3961_v9  ;;  %3707 = vmatprep.mubr.bf16.mxu0 %v4578_v11  ;;  %v76_v9 = vld [vmem:[%s6140_s1 + $0x38] sm:$0xff] }
 0x18d   :  { %v5745_v21 = vpop.f32.mrf.mxu1  ;;  %3667 = vmatmul.mubr.bf16.vlgmr.msra.gmra.mxu1 %v4927_v61  ;;  %v5748_v24 = vpop.f32.mrf.mxu0  ;;  %3677 = vmatprep.subr.bf16.mxu0 %v3954_v12  ;;  %v204_v12 = vld [vmem:[%s6140_s1 + $0x438] sm:$0xff]  ;;  %v3906_v17 = vcombine.high %v72_v8, %v76_v9 }
 0x18e   :  { %3717 = vmatpush1.bf16.msra.mxu1 %v4089_v10  ;;  %3748 = vmatprep.mubr.bf16.mxu1 %v4589_v16  ;;  %v224_v16 = vld [vmem:[%s6140_s1 + $0x4d8] sm:$0xff] }
 0x18f   :  { %v5750_v28 = vpop.f32.mrf.mxu1  ;;  %3718 = vmatprep.subr.bf16.mxu1 %v4082_v13  ;;  %v3385_v32 = vpop.f32.mrf.mxu0  ;;  %v4058_v25 = vcombine.high %v224_v16, %v228_v45  ;;  %v4057_v57 = vcombine.low %v224_v16, %v228_v45  ;;  %v200_v10 = vld [vmem:[%s6140_s1 + $0x418] sm:$0xff]  ;;  %v3913_v13 = vcombine.low %v80_v62, %v84_v1  ;;  %v4017_v45 = vcombine.low %v184_v34, %v188_v35 }
 0x190   :  { %3678 = vmatpush1.bf16.msra.mxu0 %v3953_v23  ;;  %v4034_v19 = vcombine.high %v200_v10, %v204_v12  ;;  %v196_v23 = vld [vmem:[%s6140_s1 + $0x3f8] sm:$0xff]  ;;  %v4033_v30 = vcombine.low %v200_v10, %v204_v12 }
 0x191   :  { %v3426_v36 = vpop.f32.mrf.mxu1  ;;  %v3386_v63 = vpop.f32.mrf.mxu0  ;;  %3679 = vmatprep.subr.bf16.mxu0 %v3946_v27  ;;  %v324_v27 = vld [vmem:[%s6140_s1 + $0x7f8] sm:$0xff]  ;;  %v4026_v31 = vcombine.high %v192_v20, %v196_v23 }
 0x192   :  { %3719 = vmatpush1.bf16.msra.mxu1 %v4081_v26  ;;  %v320_v26 = vld [vmem:[%s6140_s1 + $0x7d8] sm:$0xff]  ;;  %v4025_v63 = vcombine.low %v192_v20, %v196_v23 }
 0x193   :  { %v3427_v11 = vpop.f32.mrf.mxu1  ;;  %3720 = vmatprep.subr.bf16.mxu1 %v4074_v29  ;;  %v3905_v29 = vcombine.low %v72_v8, %v76_v9  ;;  %v4154_v32 = vcombine.high %v320_v26, %v324_v27  ;;  %v312_v36 = vld [vmem:[%s6140_s1 + $0x798] sm:$0xff] }
 0x194   :  { %3680 = vmatpush1.bf16.msra.mxu0 %v3945_v38  ;;  %v316_v38 = vld [vmem:[%s6140_s1 + $0x7b8] sm:$0xff] }
 0x195   :  { %3681 = vmatprep.subr.bf16.mxu0 %v3938_v40  ;;  %v4018_v40 = vcombine.high %v184_v34, %v188_v35  ;;  %v4146_v11 = vcombine.high %v312_v36, %v316_v38  ;;  %v308_v16 = vld [vmem:[%s6140_s1 + $0x778] sm:$0xff] }
 0x196   :  { %3721 = vmatpush1.bf16.msra.mxu1 %v4073_v39  ;;  %v4153_v39 = vcombine.low %v320_v26, %v324_v27  ;;  %v172_v51 = vld [vmem:[%s6140_s1 + $0x338] sm:$0xff] }
 0x197   :  { %3722 = vmatprep.subr.bf16.mxu1 %v4066_v41  ;;  %v176_v41 = vld [vmem:[%s6140_s1 + $0x358] sm:$0xff] }
 0x198   :  { %3682 = vmatpush1.bf16.msra.mxu0 %v3937_v48  ;;  %v4145_v48 = vcombine.low %v312_v36, %v316_v38  ;;  %v296_v52 = vld [vmem:[%s6140_s1 + $0x718] sm:$0xff]  ;;  %v4009_v14 = vcombine.low %v176_v41, %v180_v42 }
 0x199   :  { %3683 = vmatprep.subr.bf16.mxu0 %v3930_v50  ;;  %v4138_v50 = vcombine.high %v304_v5, %v308_v16  ;;  %v300_v54 = vld [vmem:[%s6140_s1 + $0x738] sm:$0xff] }
 0x19a   :  { %3723 = vmatpush1.bf16.msra.mxu1 %v4065_v49  ;;  %v4010_v49 = vcombine.high %v176_v41, %v180_v42  ;;  %v164_v62 = vld [vmem:[%s6140_s1 + $0x2f8] sm:$0xff]  ;;  %v5915_v41 = vld [vmem:[%s6141_s2] sm:$0xff] }
 0x19b   :  { %3724 = vmatprep.subr.bf16.mxu1 %v4058_v25  ;;  %v168_v25 = vld [vmem:[%s6140_s1 + $0x318] sm:$0xff] }
 0x19c   :  { %3684 = vmatpush1.bf16.msra.mxu0 %v3929_v56  ;;  %v4137_v56 = vcombine.low %v304_v5, %v308_v16  ;;  %v288_v1 = vld [vmem:[%s6140_s1 + $0x6d8] sm:$0xff]  ;;  %v4001_v2 = vcombine.low %v168_v25, %v172_v51 }
 0x19d   :  { %3685 = vmatprep.subr.bf16.mxu0 %v3922_v59  ;;  %v4130_v59 = vcombine.high %v296_v52, %v300_v54  ;;  %v292_v22 = vld [vmem:[%s6140_s1 + $0x6f8] sm:$0xff] }
 0x19e   :  { %3725 = vmatpush1.bf16.msra.mxu1 %v4057_v57  ;;  %v4002_v57 = vcombine.high %v168_v25, %v172_v51  ;;  %v156_v8 = vld [vmem:[%s6140_s1 + $0x2b8] sm:$0xff] }
 0x19f   :  { %3726 = vmatprep.subr.bf16.mxu1 %v4050_v60  ;;  %v160_v60 = vld [vmem:[%s6140_s1 + $0x2d8] sm:$0xff] }
 0x1a0   :  { %3686 = vmatpush1.bf16.msra.mxu0 %v3921_v3  ;;  %v4129_v3 = vcombine.low %v296_v52, %v300_v54  ;;  %v280_v9 = vld [vmem:[%s6140_s1 + $0x698] sm:$0xff]  ;;  %v3993_v12 = vcombine.low %v160_v60, %v164_v62 }
 0x1a1   :  { %3687 = vmatprep.subr.bf16.mxu0 %v3914_v6  ;;  %v4122_v6 = vcombine.high %v288_v1, %v292_v22  ;;  %v284_v10 = vld [vmem:[%s6140_s1 + $0x6b8] sm:$0xff] }
 0x1a2   :  { %3727 = vmatpush1.bf16.msra.mxu1 %v4049_v4  ;;  %v3994_v4 = vcombine.high %v160_v60, %v164_v62  ;;  %v148_v20 = vld [vmem:[%s6140_s1 + $0x278] sm:$0xff] }
 0x1a3   :  { %3728 = vmatprep.subr.bf16.mxu1 %v4042_v7  ;;  %v152_v7 = vld [vmem:[%s6140_s1 + $0x298] sm:$0xff] }
 0x1a4   :  { %3688 = vmatpush1.bf16.msra.mxu0 %v3913_v13  ;;  %v4121_v13 = vcombine.low %v288_v1, %v292_v22  ;;  %v272_v23 = vld [vmem:[%s6140_s1 + $0x658] sm:$0xff]  ;;  %v3985_v27 = vcombine.low %v152_v7, %v156_v8 }
 0x1a5   :  { %3689 = vmatprep.subr.bf16.mxu0 %v3906_v17  ;;  %v4114_v17 = vcombine.high %v280_v9, %v284_v10  ;;  %v276_v26 = vld [vmem:[%s6140_s1 + $0x678] sm:$0xff] }
 0x1a6   :  { %3729 = vmatpush1.bf16.msra.mxu1 %v4041_v15  ;;  %v3986_v15 = vcombine.high %v152_v7, %v156_v8  ;;  %v136_v34 = vld [vmem:[%s6140_s1 + $0x218] sm:$0xff] }
 0x1a7   :  { %3730 = vmatprep.subr.bf16.mxu1 %v4034_v19  ;;  %v144_v19 = vld [vmem:[%s6140_s1 + $0x258] sm:$0xff] }
 0x1a8   :  { %3690 = vmatpush1.bf16.msra.mxu0 %v3905_v29  ;;  %v4113_v29 = vcombine.low %v280_v9, %v284_v10  ;;  %v140_v35 = vld [vmem:[%s6140_s1 + $0x238] sm:$0xff] }
 0x1a9   :  { %3691 = vmatprep.subr.bf16.mxu0 %v4026_v31  ;;  %v593_v31 = vsub.s32 2, %v4526_v44  ;;  %v264_v36 = vld [vmem:[%s6140_s1 + $0x618] sm:$0xff]  ;;  %v3969_v25 = vcombine.low %v136_v34, %v140_v35 }
 0x1aa   :  { %3731 = vmatpush1.bf16.msra.mxu1 %v4033_v30  ;;  %v3978_v30 = vcombine.high %v144_v19, %v148_v20  ;;  %v268_v38 = vld [vmem:[%s6140_s1 + $0x638] sm:$0xff] }
 0x1ab   :  { %3732 = vmatprep.subr.bf16.mxu1 %v4154_v32  ;;  %v4106_v32 = vcombine.high %v272_v23, %v276_v26  ;;  %v594_v42 = vrot.slane %v5915_v41, %v593_v31  ;;  %v4098_v5 = vcombine.high %v264_v36, %v268_v38  ;;  %v384_v16 = vld [vmem:[%s6140_s1 + $0x9d8] sm:$0xff]  ;;  %v4097_v51 = vcombine.low %v264_v36, %v268_v38 }
 0x1ac   :  { %3692 = vmatpush2.bf16.msra.mxu0 %v4025_v63  ;;  %v597_v63 = vsub.s32 3, %v4526_v44  ;;  %v508_v60 = vld [vmem:[%s6140_s1 + $0xdb8] sm:$0xff] }
 0x1ad   :  { %3693 = vmatprep.subr.bf16.mxu0 %v4018_v40  ;;  %v4105_v40 = vcombine.low %v272_v23, %v276_v26  ;;  %v3382_v54 = vadd.f32 %v5736_v18, %v594_v42  ;;  %v360_v23 = vld [vmem:[%s6140_s1 + $0x918] sm:$0xff]  ;;  %v3855_v42 = vrot.slane %v3847_v0, %v4541_v53 }
 0x1ae   :  { %3733 = vmatpush2.bf16.msra.mxu1 %v4153_v39  ;;  %v3977_v39 = vcombine.low %v144_v19, %v148_v20  ;;  %v488_v26 = vld [vmem:[%s6140_s1 + $0xd18] sm:$0xff] }
 0x1af   :  { %3734 = vmatprep.subr.bf16.mxu1 %v4146_v11  ;;  %v3970_v11 = vcombine.high %v136_v34, %v140_v35  ;;  %v476_v0 = vld [vmem:[%s6140_s1 + $0xcb8] sm:$0xff] }
 0x1b0   :  { %3694 = vmatpush2.bf16.msra.mxu0 %v4017_v45  ;;  %v388_v45 = vld [vmem:[%s6140_s1 + $0x9f8] sm:$0xff] }
 0x1b1   :  { %3695 = vmatprep.subr.bf16.mxu0 %v4010_v49  ;;  %v516_v49 = vld [vmem:[%s6140_s1 + $0xdf8] sm:$0xff]  ;;  %v4218_v52 = vcombine.high %v384_v16, %v388_v45  ;;  %v4217_v62 = vcombine.low %v384_v16, %v388_v45 }
 0x1b2   :  { %3735 = vmatpush2.bf16.msra.mxu1 %v4145_v48  ;;  %v512_v48 = vld [vmem:[%s6140_s1 + $0xdd8] sm:$0xff] }
 0x1b3   :  { %3736 = vmatprep.subr.bf16.mxu1 %v4138_v50  ;;  %v598_v50 = vrot.slane %v5915_v41, %v597_v63  ;;  %v4345_v1 = vcombine.low %v512_v48, %v516_v49 }
 0x1b4   :  { %3696 = vmatpush2.bf16.msra.mxu0 %v4009_v14  ;;  %v4346_v14 = vcombine.high %v512_v48, %v516_v49 }
 0x1b5   :  { %3697 = vmatprep.subr.bf16.mxu0 %v4002_v57  ;;  %v380_v57 = vld [vmem:[%s6140_s1 + $0x9b8] sm:$0xff]  ;;  %v3384_v18 = vadd.f32 %v5748_v24, %v598_v50 }
 0x1b6   :  { %3737 = vmatpush2.bf16.msra.mxu1 %v4137_v56  ;;  %v376_v56 = vld [vmem:[%s6140_s1 + $0x998] sm:$0xff] }
 0x1b7   :  { %3738 = vmatprep.subr.bf16.mxu1 %v4130_v59  ;;  %v504_v59 = vld [vmem:[%s6140_s1 + $0xd98] sm:$0xff]  ;;  %v4210_v22 = vcombine.high %v376_v56, %v380_v57  ;;  %v3425_v8 = vadd.f32 %v5750_v28, %v3384_v18 }
 0x1b8   :  { %3698 = vmatpush2.bf16.msra.mxu0 %v4001_v2  ;;  %v3423_v2 = vadd.f32 %v5745_v21, %v3382_v54  ;;  %v496_v24 = vld [vmem:[%s6140_s1 + $0xd58] sm:$0xff] }
 0x1b9   :  { %3699 = vmatprep.subr.bf16.mxu0 %v3994_v4  ;;  %v368_v4 = vld [vmem:[%s6140_s1 + $0x958] sm:$0xff] }
 0x1ba   :  { %3739 = vmatpush2.bf16.msra.mxu1 %v4129_v3  ;;  %v4338_v3 = vcombine.high %v504_v59, %v508_v60  ;;  %v500_v21 = vld [vmem:[%s6140_s1 + $0xd78] sm:$0xff] }
 0x1bb   :  { %3740 = vmatprep.subr.bf16.mxu1 %v4122_v6  ;;  %v372_v6 = vld [vmem:[%s6140_s1 + $0x978] sm:$0xff]  ;;  %v4330_v20 = vcombine.high %v496_v24, %v500_v21 }
 0x1bc   :  { %3700 = vmatpush2.bf16.msra.mxu0 %v3993_v12  ;;  %v4209_v12 = vcombine.low %v376_v56, %v380_v57  ;;  %v364_v28 = vld [vmem:[%s6140_s1 + $0x938] sm:$0xff] }
 0x1bd   :  { %3701 = vmatprep.subr.bf16.mxu0 %v3986_v15  ;;  %v4202_v15 = vcombine.high %v368_v4, %v372_v6  ;;  %v4194_v35 = vcombine.high %v360_v23, %v364_v28  ;;  %v4193_v16 = vcombine.low %v360_v23, %v364_v28  ;;  %v344_v50 = vld [vmem:[%s6140_s1 + $0x898] sm:$0xff] }
 0x1be   :  { %3741 = vmatpush2.bf16.msra.mxu1 %v4121_v13  ;;  %v336_v56 = vld [vmem:[%s6140_s1 + $0x858] sm:$0xff] }
 0x1bf   :  { %3742 = vmatprep.subr.bf16.mxu1 %v4114_v17  ;;  %v340_v57 = vld [vmem:[%s6140_s1 + $0x878] sm:$0xff] }
 0x1c0   :  { %3702 = vmatpush2.bf16.msra.mxu0 %v3985_v27  ;;  %v492_v27 = vld [vmem:[%s6140_s1 + $0xd38] sm:$0xff] }
 0x1c1   :  { %3703 = vmatprep.subr.bf16.mxu0 %v3978_v30  ;;  %v4322_v63 = vcombine.high %v488_v26, %v492_v27  ;;  %v4321_v45 = vcombine.low %v488_v26, %v492_v27  ;;  %v444_v23 = vld [vmem:[%s6140_s1 + $0xbb8] sm:$0xff] }
 0x1c2   :  { %3743 = vmatpush2.bf16.msra.mxu1 %v4113_v29  ;;  %v568_v28 = vld [vmem:[%s6140_s1 + $0xf98] sm:$0xff] }
 0x1c3   :  { %3744 = vmatprep.subr.bf16.mxu1 %v4106_v32  ;;  %v4201_v32 = vcombine.low %v368_v4, %v372_v6  ;;  %v456_v4 = vld [vmem:[%s6140_s1 + $0xc18] sm:$0xff] }
 0x1c4   :  { %3704 = vmatpush2.bf16.msra.mxu0 %v3977_v39  ;;  %v352_v39 = vld [vmem:[%s6140_s1 + $0x8d8] sm:$0xff] }
 0x1c5   :  { %3705 = vmatprep.subr.bf16.mxu0 %v3970_v11  ;;  %v484_v11 = vld [vmem:[%s6140_s1 + $0xcf8] sm:$0xff] }
 0x1c6   :  { %3745 = vmatpush2.bf16.msra.mxu1 %v4105_v40  ;;  %v480_v40 = vld [vmem:[%s6140_s1 + $0xcd8] sm:$0xff] }
 0x1c7   :  { %3746 = vmatprep.subr.bf16.mxu1 %v4098_v5  ;;  %v4314_v49 = vcombine.high %v480_v40, %v484_v11  ;;  %v460_v6 = vld [vmem:[%s6140_s1 + $0xc38] sm:$0xff] }
 0x1c8   :  { %3706 = vmatpush2.bf16.msra.mxu0 %v3969_v25  ;;  %v348_v25 = vld [vmem:[%s6140_s1 + $0x8b8] sm:$0xff] }
 0x1c9   :  { %3757 = vmatprep.subr.bf16.mxu0 %v4218_v52  ;;  %v4313_v52 = vcombine.low %v480_v40, %v484_v11  ;;  %v4178_v54 = vcombine.high %v344_v50, %v348_v25  ;;  %v4177_v18 = vcombine.low %v344_v50, %v348_v25  ;;  %v552_v40 = vld [vmem:[%s6140_s1 + $0xf18] sm:$0xff] }
 0x1ca   :  { %3747 = vmatpush2.bf16.msra.mxu1 %v4097_v51  ;;  %v556_v11 = vld [vmem:[%s6140_s1 + $0xf38] sm:$0xff] }
 0x1cb   :  { %3798 = vmatprep.subr.bf16.mxu1 %v4346_v14  ;;  %v3463_v7 = vpop.f32.mrf.mxu0  ;;  %3708 = vmatmul.mubr.bf16.vlgmr.msra.gmra.mxu0 %v4707_v33  ;;  %v4337_v33 = vcombine.low %v504_v59, %v508_v60  ;;  %v4306_v14 = vcombine.high %v472_v55, %v476_v0  ;;  %v464_v59 = vld [vmem:[%s6140_s1 + $0xc58] sm:$0xff] }
 0x1cc   :  { %v3464_v9 = vadd.f32 %v3463_v7, %v3423_v2  ;;  %3758 = vmatpush1.bf16.msra.mxu0 %v4217_v62  ;;  %3789 = vmatprep.mubr.bf16.mxu0 %v4727_v43  ;;  %v4329_v43 = vcombine.low %v496_v24, %v500_v21  ;;  %v468_v60 = vld [vmem:[%s6140_s1 + $0xc78] sm:$0xff]  ;;  %v4305_v62 = vcombine.low %v472_v55, %v476_v0 }
 0x1cd   :  { %v3504_v10 = vpop.f32.mrf.mxu1  ;;  %3749 = vmatmul.mubr.bf16.vlgmr.msra.gmra.mxu1 %v4719_v37  ;;  %v3465_v13 = vpop.f32.mrf.mxu0  ;;  %3759 = vmatprep.subr.bf16.mxu0 %v4210_v22  ;;  %v4298_v22 = vcombine.high %v464_v59, %v468_v60  ;;  %v328_v2 = vld [vmem:[%s6140_s1 + $0x818] sm:$0xff]  ;;  %v4169_v7 = vcombine.low %v336_v56, %v340_v57  ;;  %v4297_v24 = vcombine.low %v464_v59, %v468_v60 }
 0x1ce   :  { %3799 = vmatpush1.bf16.msra.mxu1 %v4345_v1  ;;  %v3466_v17 = vadd.f32 %v3465_v13, %v3425_v8  ;;  %3830 = vmatprep.mubr.bf16.mxu1 %v4736_v46  ;;  %v3505_v29 = vadd.f32 %v3504_v10, %v3464_v9  ;;  %v356_v46 = vld [vmem:[%s6140_s1 + $0x8f8] sm:$0xff]  ;;  %v4170_v1 = vcombine.high %v336_v56, %v340_v57 }
 0x1cf   :  { %v3506_v19 = vpop.f32.mrf.mxu1  ;;  %3800 = vmatprep.subr.bf16.mxu1 %v4338_v3  ;;  %v3467_v37 = vpop.f32.mrf.mxu0  ;;  %v4186_v48 = vcombine.high %v352_v39, %v356_v46  ;;  %v4185_v51 = vcombine.low %v352_v39, %v356_v46  ;;  %v332_v3 = vld [vmem:[%s6140_s1 + $0x838] sm:$0xff]  ;;  %v4290_v8 = vcombine.high %v456_v4, %v460_v6  ;;  %v4385_v55 = vcombine.low %v552_v40, %v556_v11 }
 0x1d0   :  { %v3507_v30 = vadd.f32 %v3506_v19, %v3466_v17  ;;  %3760 = vmatpush1.bf16.msra.mxu0 %v4209_v12  ;;  %v4162_v21 = vcombine.high %v328_v2, %v332_v3  ;;  %v448_v9 = vld [vmem:[%s6140_s1 + $0xbd8] sm:$0xff] }
 0x1d1   :  { %v3508_v31 = vpop.f32.mrf.mxu1  ;;  %v3468_v34 = vpop.f32.mrf.mxu0  ;;  %3761 = vmatprep.subr.bf16.mxu0 %v4202_v15  ;;  %v452_v10 = vld [vmem:[%s6140_s1 + $0xbf8] sm:$0xff]  ;;  %v4289_v15 = vcombine.low %v456_v4, %v460_v6 }
 0x1d2   :  { %3801 = vmatpush1.bf16.msra.mxu1 %v4337_v33  ;;  %v3848_v36 = vcombine.low %v3505_v29, %v3507_v30  ;;  %v576_v12 = vld [vmem:[%s6140_s1 + $0xfd8] sm:$0xff]  ;;  %v4161_v33 = vcombine.low %v328_v2, %v332_v3  ;;  %v4282_v17 = vcombine.high %v448_v9, %v452_v10  ;;  %v4281_v26 = vcombine.low %v448_v9, %v452_v10 }
 0x1d3   :  { %v3509_v38 = vpop.f32.mrf.mxu1  ;;  %3802 = vmatprep.subr.bf16.mxu1 %v4330_v20  ;;  %v580_v13 = vld [vmem:[%s6140_s1 + $0xff8] sm:$0xff] }
 0x1d4   :  { %v3862_v5 = vrot.slane %v3848_v36, %v4541_v53  ;;  %3762 = vmatpush1.bf16.msra.mxu0 %v4201_v32  ;;  %v4410_v19 = vcombine.high %v576_v12, %v580_v13  ;;  %v440_v20 = vld [vmem:[%s6140_s1 + $0xb98] sm:$0xff]  ;;  %v4409_v27 = vcombine.low %v576_v12, %v580_v13 }
 0x1d5   :  { %3763 = vmatprep.subr.bf16.mxu0 %v4194_v35  ;;  %v572_v37 = vld [vmem:[%s6140_s1 + $0xfb8] sm:$0xff]  ;;  %v4274_v29 = vcombine.high %v440_v20, %v444_v23  ;;  %v4273_v35 = vcombine.low %v440_v20, %v444_v23  ;;  %v605_v20 = vsub.s32 5, %v4526_v44 }
 0x1d6   :  { %3803 = vmatpush1.bf16.msra.mxu1 %v4329_v43  ;;  %v3863_v47 = vcombine.low %v3855_v42, %v3862_v5  ;;  %v4402_v30 = vcombine.high %v568_v28, %v572_v37  ;;  %v432_v31 = vld [vmem:[%s6140_s1 + $0xb58] sm:$0xff]  ;;  %v4401_v36 = vcombine.low %v568_v28, %v572_v37 }
 0x1d7   :  { %3804 = vmatprep.subr.bf16.mxu1 %v4322_v63  ;;  %v436_v32 = vld [vmem:[%s6140_s1 + $0xb78] sm:$0xff]  ;;  %v606_v28 = vrot.slane %v5915_v41, %v605_v20 }
 0x1d8   :  { %3764 = vmatpush1.bf16.msra.mxu0 %v4193_v16  ;;  %3883 = vst [vmem:[#allocation2] sm:$0xff] %v3863_v47  ;;  %v560_v34 = vld [vmem:[%s6140_s1 + $0xf58] sm:$0xff]  ;;  %v4266_v38 = vcombine.high %v432_v31, %v436_v32  ;;  %v4265_v42 = vcombine.low %v432_v31, %v436_v32 }
 0x1d9   :  { %3765 = vmatprep.subr.bf16.mxu0 %v4186_v48  ;;  %v564_v43 = vld [vmem:[%s6140_s1 + $0xf78] sm:$0xff] }
 0x1da   :  { %3805 = vmatpush1.bf16.msra.mxu1 %v4321_v45  ;;  %v4394_v63 = vcombine.high %v560_v34, %v564_v43  ;;  %v424_v39 = vld [vmem:[%s6140_s1 + $0xb18] sm:$0xff]  ;;  %v4393_v5 = vcombine.low %v560_v34, %v564_v43  ;;  %v4386_v45 = vcombine.high %v552_v40, %v556_v11 }
 0x1db   :  { %3806 = vmatprep.subr.bf16.mxu1 %v4314_v49  ;;  %v428_v46 = vld [vmem:[%s6140_s1 + $0xb38] sm:$0xff] }
 0x1dc   :  { %3766 = vmatpush1.bf16.msra.mxu0 %v4185_v51  ;;  %v4258_v16 = vcombine.high %v424_v39, %v428_v46  ;;  %v416_v48 = vld [vmem:[%s6140_s1 + $0xad8] sm:$0xff]  ;;  %v4257_v47 = vcombine.low %v424_v39, %v428_v46 }
 0x1dd   :  { %3767 = vmatprep.subr.bf16.mxu0 %v4178_v54  ;;  %v420_v49 = vld [vmem:[%s6140_s1 + $0xaf8] sm:$0xff] }
 0x1de   :  { %3807 = vmatpush1.bf16.msra.mxu1 %v4313_v52  ;;  %v544_v50 = vld [vmem:[%s6140_s1 + $0xed8] sm:$0xff]  ;;  %v4250_v0 = vcombine.high %v416_v48, %v420_v49  ;;  %v4249_v57 = vcombine.low %v416_v48, %v420_v49 }
 0x1df   :  { %3808 = vmatprep.subr.bf16.mxu1 %v4306_v14  ;;  %v548_v25 = vld [vmem:[%s6140_s1 + $0xef8] sm:$0xff] }
 0x1e0   :  { %3768 = vmatpush1.bf16.msra.mxu0 %v4177_v18  ;;  %v4378_v51 = vcombine.high %v544_v50, %v548_v25  ;;  %v408_v52 = vld [vmem:[%s6140_s1 + $0xa98] sm:$0xff]  ;;  %v4377_v59 = vcombine.low %v544_v50, %v548_v25 }
 0x1e1   :  { %3769 = vmatprep.subr.bf16.mxu0 %v4170_v1  ;;  %v412_v54 = vld [vmem:[%s6140_s1 + $0xab8] sm:$0xff] }
 0x1e2   :  { %3809 = vmatpush1.bf16.msra.mxu1 %v4305_v62  ;;  %v536_v14 = vld [vmem:[%s6140_s1 + $0xe98] sm:$0xff]  ;;  %v4242_v60 = vcombine.high %v408_v52, %v412_v54  ;;  %v4241_v3 = vcombine.low %v408_v52, %v412_v54 }
 0x1e3   :  { %3810 = vmatprep.subr.bf16.mxu1 %v4298_v22  ;;  %v540_v56 = vld [vmem:[%s6140_s1 + $0xeb8] sm:$0xff] }
 0x1e4   :  { %3770 = vmatpush1.bf16.msra.mxu0 %v4169_v7  ;;  %v4370_v18 = vcombine.high %v536_v14, %v540_v56  ;;  %v400_v62 = vld [vmem:[%s6140_s1 + $0xa58] sm:$0xff]  ;;  %v4369_v4 = vcombine.low %v536_v14, %v540_v56  ;;  %v609_v14 = vsub.s32 6, %v4526_v44  ;;  %v613_v56 = vsub.s32 7, %v4526_v44 }
 0x1e5   :  { %3771 = vmatprep.subr.bf16.mxu0 %v4162_v21  ;;  %v404_v1 = vld [vmem:[%s6140_s1 + $0xa78] sm:$0xff] }
 0x1e6   :  { %3811 = vmatpush1.bf16.msra.mxu1 %v4297_v24  ;;  %v528_v22 = vld [vmem:[%s6140_s1 + $0xe58] sm:$0xff]  ;;  %v4234_v6 = vcombine.high %v400_v62, %v404_v1  ;;  %v4233_v10 = vcombine.low %v400_v62, %v404_v1 }
 0x1e7   :  { %3812 = vmatprep.subr.bf16.mxu1 %v4290_v8  ;;  %v532_v2 = vld [vmem:[%s6140_s1 + $0xe78] sm:$0xff] }
 0x1e8   :  { %3772 = vmatpush1.bf16.msra.mxu0 %v4161_v33  ;;  %v4362_v7 = vcombine.high %v528_v22, %v532_v2  ;;  %v392_v24 = vld [vmem:[%s6140_s1 + $0xa18] sm:$0xff]  ;;  %v4361_v12 = vcombine.low %v528_v22, %v532_v2 }
 0x1e9   :  { %3773 = vmatprep.subr.bf16.mxu0 %v4282_v17  ;;  %v396_v21 = vld [vmem:[%s6140_s1 + $0xa38] sm:$0xff]  ;;  %v601_v17 = vsub.s32 4, %v4526_v44 }
 0x1ea   :  { %3813 = vmatpush1.bf16.msra.mxu1 %v4289_v15  ;;  %v520_v8 = vld [vmem:[%s6140_s1 + $0xe18] sm:$0xff]  ;;  %v4226_v13 = vcombine.high %v392_v24, %v396_v21  ;;  %v4225_v15 = vcombine.low %v392_v24, %v396_v21 }
 0x1eb   :  { %3814 = vmatprep.subr.bf16.mxu1 %v4410_v19  ;;  %v524_v9 = vld [vmem:[%s6140_s1 + $0xe38] sm:$0xff]  ;;  %v602_v23 = vrot.slane %v5915_v41, %v601_v17  ;;  %s4439_s1 = smov [#allocation2]  }
 0x1ec   :  { %3774 = vmatpush2.bf16.msra.mxu0 %v4281_v26  ;;  %v4354_v33 = vcombine.high %v520_v8, %v524_v9  ;;  %v4353_v19 = vcombine.low %v520_v8, %v524_v9  ;;  %s3891_s0 = sshll.u32 %s4439_s1, 4  ;;  %s3892_s0 = int_to_ptr.vmem [resolvable:$true] %s3891_s0 }
 0x1ed   :  { %3775 = vmatprep.subr.bf16.mxu0 %v4274_v29  ;;  %s4416_s8 = scalar_lea.vmem %s3892_s0, 256  ;;  %p4421_p1 = scmp.lt.s32.totalorder %s3892_s0, %s3892_s0 }
 0x1ee   :  { %3815 = vmatpush2.bf16.msra.mxu1 %v4409_v27  ;;  %p4417_p0 = scmp.ne.s32.totalorder %s3892_s0, %s4416_s8  ;;  %p4422_p2 = scmp.lt.s32.totalorder %s4416_s8, %s4416_s8 }
 0x1ef   :  { %3816 = vmatprep.subr.bf16.mxu1 %v4402_v30 }
 0x1f0   :  { %3776 = vmatpush2.bf16.msra.mxu0 %v4273_v35  ;;  %p4423_p3 = por %p4422_p2, %p4421_p1 }
 0x1f1   :  { %3777 = vmatprep.subr.bf16.mxu0 %v4266_v38 }
 0x1f2   :  { %3817 = vmatpush2.bf16.msra.mxu1 %v4401_v36  ;;  %p4424_p4 = pnand %p4423_p3, %p4417_p0 }
 0x1f3   :  { %3818 = vmatprep.subr.bf16.mxu1 %v4394_v63 }
 0x1f4   :  { %3778 = vmatpush2.bf16.msra.mxu0 %v4265_v42 }
 0x1f5   :  { %3779 = vmatprep.subr.bf16.mxu0 %v4258_v16 }
 0x1f6   :  { %3819 = vmatpush2.bf16.msra.mxu1 %v4393_v5 }
 0x1f7   :  { %3820 = vmatprep.subr.bf16.mxu1 %v4386_v45 }
 0x1f8   :  { %3780 = vmatpush2.bf16.msra.mxu0 %v4257_v47 }
 0x1f9   :  { %3781 = vmatprep.subr.bf16.mxu0 %v4250_v0 }
 0x1fa   :  { %3821 = vmatpush2.bf16.msra.mxu1 %v4385_v55 }
 0x1fb   :  { %3822 = vmatprep.subr.bf16.mxu1 %v4378_v51 }
 0x1fc   :  { %3782 = vmatpush2.bf16.msra.mxu0 %v4249_v57  ;;  %v610_v57 = vrot.slane %v5915_v41, %v609_v14 }
 0x1fd   :  { %3783 = vmatprep.subr.bf16.mxu0 %v4242_v60 }
 0x1fe   :  { %3823 = vmatpush2.bf16.msra.mxu1 %v4377_v59  ;;  %v614_v59 = vrot.slane %v5915_v41, %v613_v56 }
 0x1ff   :  { %3824 = vmatprep.subr.bf16.mxu1 %v4370_v18 }
 0x200   :  { %3784 = vmatpush2.bf16.msra.mxu0 %v4241_v3 }
 0x201   :  { %3785 = vmatprep.subr.bf16.mxu0 %v4234_v6 }
 0x202   :  { %3825 = vmatpush2.bf16.msra.mxu1 %v4369_v4 }
 0x203   :  { %3826 = vmatprep.subr.bf16.mxu1 %v4362_v7 }
 0x204   :  { %3786 = vmatpush2.bf16.msra.mxu0 %v4233_v10 }
 0x205   :  { %3787 = vmatprep.subr.bf16.mxu0 %v4226_v13 }
 0x206   :  { %3827 = vmatpush2.bf16.msra.mxu1 %v4361_v12 }
 0x207   :  { %3828 = vmatprep.subr.bf16.mxu1 %v4354_v33 }
 0x208   :  { %3788 = vmatpush2.bf16.msra.mxu0 %v4225_v15 }
 0x20a   :  { %3829 = vmatpush2.bf16.msra.mxu1 %v4353_v19 }
 0x20b   :  { %v3545_v37 = vpop.f32.mrf.mxu0  ;;  %3790 = vmatmul.mubr.bf16.vlgmr.msra.gmra.mxu0 %v4917_v58 }
 0x20c   :  { %v3546_v26 = vadd.f32 %v3545_v37, %v602_v23 }
 0x20d   :  { %v3586_v27 = vpop.f32.mrf.mxu1  ;;  %3831 = vmatmul.mubr.bf16.vlgmr.msra.gmra.mxu1 %v4927_v61  ;;  %v3547_v29 = vpop.f32.mrf.mxu0 }
 0x20e   :  { %v3587_v30 = vadd.f32 %v3586_v27, %v3546_v26  ;;  %v3548_v31 = vadd.f32 %v3547_v29, %v606_v28 }
 0x20f   :  { %v3588_v32 = vpop.f32.mrf.mxu1  ;;  %v3549_v34 = vpop.f32.mrf.mxu0 }
 0x210   :  { %v3589_v43 = vadd.f32 %v3588_v32, %v3548_v31 }
 0x211   :  { %v3590_v35 = vpop.f32.mrf.mxu1  ;;  %v3550_v36 = vpop.f32.mrf.mxu0 }
 0x213   :  { %v3591_v38 = vpop.f32.mrf.mxu1 }
 0x24b   :  { %v3627_v63 = vpop.f32.mrf.mxu0 }
 0x24c   :  { %v3628_v39 = vadd.f32 %v3627_v63, %v3587_v30 }
 0x24d   :  { %v3668_v46 = vpop.f32.mrf.mxu1  ;;  %v3629_v40 = vpop.f32.mrf.mxu0 }
 0x24e   :  { %v3669_v11 = vadd.f32 %v3668_v46, %v3628_v39  ;;  %v3630_v42 = vadd.f32 %v3629_v40, %v3589_v43 }
 0x24f   :  { %v3670_v58 = vpop.f32.mrf.mxu1  ;;  %v3631_v5 = vpop.f32.mrf.mxu0 }
 0x250   :  { %v3671_v16 = vadd.f32 %v3670_v58, %v3630_v42 }
 0x251   :  { %v3672_v45 = vpop.f32.mrf.mxu1  ;;  %v3632_v61 = vpop.f32.mrf.mxu0 }
 0x252   :  { %v3864_v48 = vcombine.low %v3669_v11, %v3671_v16 }
 0x253   :  { %v3673_v49 = vpop.f32.mrf.mxu1 }
 0x254   :  { %v3872_v41 = vrot.slane %v3864_v48, %v4541_v53 }
 0x28b   :  { %v3709_v50 = vpop.f32.mrf.mxu0 }
 0x28c   :  { %v3710_v60 = vadd.f32 %v3709_v50, %v610_v57 }
 0x28d   :  { %v3750_v25 = vpop.f32.mrf.mxu1  ;;  %v3711_v47 = vpop.f32.mrf.mxu0 }
 0x28e   :  { %v3712_v18 = vadd.f32 %v3711_v47, %v614_v59  ;;  %v3751_v62 = vadd.f32 %v3750_v25, %v3710_v60 }
 0x28f   :  { %v3752_v55 = vpop.f32.mrf.mxu1  ;;  %v3713_v0 = vpop.f32.mrf.mxu0 }
 0x290   :  { %v3753_v22 = vadd.f32 %v3752_v55, %v3712_v18 }
 0x291   :  { %v3754_v51 = vpop.f32.mrf.mxu1  ;;  %v3714_v52 = vpop.f32.mrf.mxu0 }
 0x293   :  { %v3755_v54 = vpop.f32.mrf.mxu1 }
 0x2cb   :  { %v3791_v1 = vpop.f32.mrf.mxu0 }
 0x2cc   :  { %v3792_v2 = vadd.f32 %v3791_v1, %v3751_v62 }
 0x2cd   :  { %v3832_v3 = vpop.f32.mrf.mxu1  ;;  %v3793_v4 = vpop.f32.mrf.mxu0 }
 0x2ce   :  { %v3794_v6 = vadd.f32 %v3793_v4, %v3753_v22  ;;  %v3833_v21 = vadd.f32 %v3832_v3, %v3792_v2 }
 0x2cf   :  { %v3834_v7 = vpop.f32.mrf.mxu1  ;;  %v3795_v24 = vpop.f32.mrf.mxu0 }
 0x2d0   :  { %v3835_v8 = vadd.f32 %v3834_v7, %v3794_v6 }
 0x2d1   :  { %v3836_v9 = vpop.f32.mrf.mxu1  ;;  %v3796_v10 = vpop.f32.mrf.mxu0 }
 0x2d2   :  { %v3865_v44 = vcombine.low %v3833_v21, %v3835_v8 }
 0x2d3   :  { %v3837_v12 = vpop.f32.mrf.mxu1 }
 0x2d4   :  { %v3879_v13 = vrot.slane %v3865_v44, %v4541_v53 }
 0x2d6   :  { %v3880_v33 = vcombine.low %v3872_v41, %v3879_v13 }
 0x2d8   :  { %3884 = vst [vmem:[#allocation2 + $0x8] sm:$0xff] %v3880_v33 }
 0x2d9   :  { %4427 = shalt.err (!%p4424_p4)
}
 0x2da   :  { %3894 = dma.vmem_to_hbm [thread:$0]  %s3892_s0, 256, %s6142_s3, [#allocation3]  }
 0x2db   :  { %4436 = dma.done.wait [#allocation3], 256  }
 0x2dc   :  { %4437 = vsyncadd [#allocation3], 4294967040 }
 0x2dd   :  { %3898 = vsyncpa [#allocation3], 1 }

// kernel: cnn2_forward.2
= control target key start
LH: loop header
LB: loop body
LE: loop exit
PB: predicated region body
PF: predicated region fallthrough
CT: control target
= control target key end

     0   :  { %12 = vsyncpa [#allocation5], 0  ;;  %s10144_s24 = smov 0   ;;  %s13604_s0 = inlined_call_operand.vmem [shape: bf16[2,18,18,256], index: 0, kind: input, shape index: {}]   ;;  %s13605_s1 = inlined_call_operand.hbm [shape: bf16[3,768,128], index: 1, kind: input, shape index: {}]   ;;  %s13606_s2 = inlined_call_operand.vmem [shape: f32[1,128], index: 2, kind: input, shape index: {}]   ;;  %s13607_s3 = inlined_call_operand.vmem [shape: bf16[3,384,64], index: 3, kind: input, shape index: {}]   ;;  %s13608_s4 = inlined_call_operand.vmem [shape: f32[1,64], index: 4, kind: input, shape index: {}]   ;;  %s13609_s5 = inlined_call_operand.vmem [shape: bf16[3,192,32], index: 5, kind: input, shape index: {}]   ;;  %s13610_s6 = inlined_call_operand.vmem [shape: f32[1,32], index: 6, kind: input, shape index: {}]   ;;  %s13611_s7 = inlined_call_operand.vmem [shape: f32[2,32,32], index: 7, kind: output, shape index: {}]  }
   0x1 LB: > { %s10150_s25 = sadd.s32 4294967295, %s10096_s24   ;;  %p7445_p0 = scmp.ge.s32.totalorder %s10096_s24, 1  ;;  %s10096_s24 = sphi %s10144_s24, %s18_s24  }
   0x2   : > { %p201_p1 = scmp.lt.s32.totalorder %s10096_s24, 3  ;;  %s10098_s26 = smov [#allocation4]  }
   0x3   : > { %s213_s27 = sshll.u32 %s10098_s26, 4  ;;  %p9624_p3 = scmp.eq.s32.totalorder %s10150_s25, 0  ;;  %s214_s27 = int_to_ptr.vmem [resolvable:$true] %s213_s27 }
   0x4   : > { %p10154_p2 = pnand %p7445_p0, %p201_p1  ;;  %s10071_s29 = scalar_lea.vmem %s214_s27, 18432 }
   0x5   : > { %p10072_p7 = scmp.ne.s32.totalorder %s214_s27, %s10071_s29  ;;  %p10079_p10 = scmp.lt.s32.totalorder %s214_s27, %s214_s27 }
   0x6   : > { %p9620_p4 = pneg %p10154_p2  ;;  %p10080_p11 = scmp.lt.s32.totalorder %s10071_s29, %s10071_s29 }
   0x8   : > { %p9621_p5 = pnand %p9624_p3, %p9620_p4  ;;  %p10081_p12 = por %p10080_p11, %p10079_p10 }
   0xa   : > { %p10062_p6 = pneg %p9621_p5 }
   0xc   : > { %p10074_p8 = pnand %p10072_p7, %p10062_p6 }
   0xe   : > { %p10075_p9 = pneg %p10074_p8 }
  0x10   : > { %p10082_p13 = pnand %p10081_p12, %p10075_p9 }
  0x12   : > { %10085 = shalt.err (!%p10082_p13)
}
  0x13   : > { %s10099_s30 = smov 64   ;;  %s10100_s8 = smov 4  }
  0x14   : > { %9623 = dma.hbm_to_vmem [thread:$0]  (!%p9621_p5), %s13605_s1, 18432, %s214_s27, [#allocation5], %s10099_s30, %s10099_s30, %s10100_s8  }
  0x15   : > { %252 = sbr.rel (%p10154_p2) target bundleno = 2118 (0x846), region = 48 }
  0x1a   : > { %10091 = dma.done.wait (%p9624_p3), [#allocation5], 18432  }
  0x1b   : > { %10093 = vsyncadd (%p9624_p3), [#allocation5], 4294948864  ;;  %v9692_v0 = vld [vmem:[#allocation4 + $0x1f8] sm:$0xff]   ;;  %v9696_v4 = vld [vmem:[#allocation4 + $0x1f0] sm:$0xff]   ;;  %p284_p0 = scmp.lt.s32.totalorder %s10150_s25, 1  ;;  %vm1196_vm1 = vcmask 1046528  }
  0x1c   : > { %v9693_v1 = vld [vmem:[#allocation4 + $0x278] sm:$0xff]   ;;  %8011 = vmatprep.subr.bf16.mxu0 %v9692_v0  ;;  %v9697_v5 = vld [vmem:[#allocation4 + $0x270] sm:$0xff]   ;;  %v9700_v8 = vld [vmem:[#allocation4 + $0x1e8] sm:$0xff]   ;;  %vm637_vm0 = vsmask.f32 7424  ;;  %vm5943_vm2 = vcmask 523264  }
  0x1d   : > { %v9694_v2 = vld [vmem:[#allocation4 + $0x1b8] sm:$0xff]   ;;  %8123 = vmatprep.subr.bf16.mxu1 %v9693_v1  ;;  %v9698_v6 = vld [vmem:[#allocation4 + $0x1b0] sm:$0xff]   ;;  %v9701_v9 = vld [vmem:[#allocation4 + $0x268] sm:$0xff]   ;;  %s14247_s25 = smov (!%p284_p0, %s10150_s25), 1  ;;  %vm5946_vm3 = vcmask 517120   ;;  %s10103_s26 = smov 64  }
  0x1e   : > { %v9695_v3 = vld [vmem:[#allocation4 + $0x238] sm:$0xff]   ;;  %8012 = vmatpush3.bf16.msra.mxu0 %v9694_v2  ;;  %v9699_v7 = vld [vmem:[#allocation4 + $0x230] sm:$0xff]   ;;  %v9702_v10 = vld [vmem:[#allocation4 + $0x1a8] sm:$0xff]   ;;  %s9615_s11 = smul.u32 432, %s14247_s25  ;;  %vm7371_vm4 = vcmask 261120  }
  0x1f   : > { %8124 = vmatpush3.bf16.msra.mxu1 %v9695_v3  ;;  %8013 = vmatprep.subr.bf16.mxu0 %v9696_v4  ;;  %v9703_v11 = vld [vmem:[#allocation4 + $0x228] sm:$0xff]   ;;  %v9704_v12 = vld [vmem:[#allocation4 + $0x1e0] sm:$0xff]   ;;  %v9708_v16 = vld [vmem:[#allocation4 + $0x1d8] sm:$0xff]  }
  0x20   : > { %8125 = vmatprep.subr.bf16.mxu1 %v9697_v5  ;;  %v9705_v13 = vld [vmem:[#allocation4 + $0x260] sm:$0xff]   ;;  %v9709_v17 = vld [vmem:[#allocation4 + $0x258] sm:$0xff]   ;;  %v9712_v20 = vld [vmem:[#allocation4 + $0x1d0] sm:$0xff]   ;;  %s10180_s14 = scalar_lea.vmem %s13604_s0, %s9615_s11  ;;  %s8010_s11 = sshll.u32 %s14247_s25, 5 }
  0x21   : > { %v9706_v14 = vld [vmem:[#allocation4 + $0x1a0] sm:$0xff]   ;;  %v9710_v18 = vld [vmem:[#allocation4 + $0x198] sm:$0xff]   ;;  %v9713_v21 = vld [vmem:[#allocation4 + $0x250] sm:$0xff]   ;;  %s293_s13 = scalar_lea.vmem %s13611_s7, %s8010_s11 }
  0x22   : > { %8014 = vmatpush3.bf16.msra.mxu0 %v9698_v6  ;;  %v9707_v15 = vld [vmem:[#allocation4 + $0x220] sm:$0xff]   ;;  %v9711_v19 = vld [vmem:[#allocation4 + $0x218] sm:$0xff]   ;;  %v9714_v22 = vld [vmem:[#allocation4 + $0x190] sm:$0xff]  }
  0x23   : > { %8126 = vmatpush3.bf16.msra.mxu1 %v9699_v7  ;;  %8015 = vmatprep.subr.bf16.mxu0 %v9700_v8  ;;  %v9715_v23 = vld [vmem:[#allocation4 + $0x210] sm:$0xff]   ;;  %v9716_v24 = vld [vmem:[#allocation4 + $0x1c8] sm:$0xff]   ;;  %v9720_v28 = vld [vmem:[#allocation4 + $0x1c0] sm:$0xff]  }
  0x24   : > { %8127 = vmatprep.subr.bf16.mxu1 %v9701_v9  ;;  %v9717_v25 = vld [vmem:[#allocation4 + $0x248] sm:$0xff]   ;;  %v9721_v29 = vld [vmem:[#allocation4 + $0x240] sm:$0xff]   ;;  %v297_v32 = vld [vmem:[%s10180_s14 + $0x18] sm:$0xff] }
  0x25   : > { %v9718_v26 = vld [vmem:[#allocation4 + $0x188] sm:$0xff]   ;;  %v9722_v30 = vld [vmem:[#allocation4 + $0x180] sm:$0xff]   ;;  %v299_v39 = vld [vmem:[%s10180_s14 + $0x30] sm:$0xff] }
  0x26   : > { %8016 = vmatpush3.bf16.msra.mxu0 %v9702_v10  ;;  %v9719_v27 = vld [vmem:[#allocation4 + $0x208] sm:$0xff]   ;;  %v9723_v31 = vld [vmem:[#allocation4 + $0x200] sm:$0xff]   ;;  %v300_v40 = vld [vmem:[%s10180_s14 + $0x38] sm:$0xff] }
  0x27   : > { %8128 = vmatpush3.bf16.msra.mxu1 %v9703_v11  ;;  %8017 = vmatprep.subr.bf16.mxu0 %v9704_v12  ;;  %v298_v33 = vld [vmem:[%s10180_s14 + $0x20] sm:$0xff]  ;;  %v332_v34 = vld [vmem:[%s10180_s14 + $0x28] sm:$0x11]  ;;  %v10196_v42 = vcombine.high %v299_v39, %v300_v40  ;;  %v10200_v44 = vcombine.low %v299_v39, %v300_v40  ;;  %v302_v55 = vld [vmem:[%s10180_s14 + $0x50] sm:$0xff] }
  0x28   : > { %8129 = vmatprep.subr.bf16.mxu1 %v9705_v13  ;;  %v10185_v35 = vcombine.high %v297_v32, %v298_v33  ;;  %v10187_v36 = vcombine.high %v332_v34, %v332_v34  ;;  %v10189_v37 = vcombine.low %v297_v32, %v298_v33  ;;  %v10191_v38 = vcombine.low %v332_v34, %v332_v34  ;;  %v333_v41 = vld [vmem:[%s10180_s14 + $0x40] sm:$0x11]  ;;  %v301_v54 = vld [vmem:[%s10180_s14 + $0x48] sm:$0xff]  ;;  %v334_v60 = vld [vmem:[%s10180_s14 + $0x58] sm:$0x11] }
  0x29   : > { %13793 = vst [vmem:[#allocation11_spill] sm:$0xff] %v10196_v42  ;;  %v10198_v43 = vcombine.high %v333_v41, %v333_v41  ;;  %13795 = vst [vmem:[#allocation13_spill] sm:$0xff] %v10200_v44  ;;  %v10202_v45 = vcombine.low %v333_v41, %v333_v41  ;;  %v699_v52 = vshrl.u32 %v10196_v42, 16  ;;  %v701_v53 = vshll.u32 %v10196_v42, 16  ;;  %v303_v9 = vld [vmem:[%s10180_s14 + $0x60] sm:$0xff]  ;;  %v304_v10 = vld [vmem:[%s10180_s14 + $0x68] sm:$0xff] }
  0x2a   : > { %8018 = vmatpush3.bf16.msra.mxu0 %v9706_v14  ;;  %13789 = vst [vmem:[#allocation7_spill] sm:$0xff] %v10185_v35  ;;  %13790 = vst [vmem:[#allocation8_spill] sm:$0xff] %v10187_v36  ;;  %1854 = vmatprep.mubr.bf16.mxu0 %v10185_v35  ;;  %v675_v46 = vshrl.u32 %v10185_v35, 16  ;;  %v677_v47 = vshll.u32 %v10185_v35, 16  ;;  %v682_v48 = vshll.u32 %v10187_v36, 16  ;;  %v663_v49 = vshrl.u32 %v10189_v37, 16 }
  0x2b   : > { %8130 = vmatpush3.bf16.msra.mxu1 %v9707_v15  ;;  %8019 = vmatprep.subr.bf16.mxu0 %v9708_v16  ;;  %13791 = vst [vmem:[#allocation9_spill] sm:$0xff] %v10189_v37  ;;  %13792 = vst [vmem:[#allocation10_spill] sm:$0xff] %v10191_v38  ;;  %v665_v50 = vshll.u32 %v10189_v37, 16  ;;  %v670_v51 = vshll.u32 %v10191_v38, 16  ;;  %v706_v58 = vshll.u32 %v10198_v43, 16  ;;  %v687_v59 = vshrl.u32 %v10200_v44, 16 }
  0x2c   : > { %8131 = vmatprep.subr.bf16.mxu1 %v9709_v17  ;;  %13794 = vst [vmem:[#allocation12_spill] sm:$0xff] %v10198_v43  ;;  %13796 = vst [vmem:[#allocation14_spill] sm:$0xff] %v10202_v45  ;;  %v679_v56 = vrot.slane %v677_v47, 1  ;;  %v684_v57 = vrot.slane %v682_v48, 1  ;;  %v703_v63 = vrot.slane %v701_v53, 1  ;;  %v689_v0 = vshll.u32 %v10200_v44, 16 }
  0x2d   : > { %v667_v61 = vrot.slane %v665_v50, 1  ;;  %v672_v62 = vrot.slane %v670_v51, 1  ;;  %v708_v2 = vrot.slane %v706_v58, 1  ;;  %v694_v3 = vshll.u32 %v10202_v45, 16  ;;  %v335_v14 = vld [vmem:[%s10180_s14 + $0x70] sm:$0x11] }
  0x2e   : > { %8020 = vmatpush3.bf16.msra.mxu0 %v9710_v18  ;;  %v680_v1 = vor.u32 %v679_v56, %v675_v46  ;;  %v10222_v4 = vcombine.high %v301_v54, %v302_v55  ;;  %v704_v6 = vor.u32 %v703_v63, %v699_v52  ;;  %v691_v7 = vrot.slane %v689_v0, 1  ;;  %v9756_v15 = vld [vmem:[#allocation4 + $0x2f8] sm:$0xff]   ;;  %v306_v33 = vld [vmem:[%s10180_s14 + $0x80] sm:$0xff]  ;;  %v9767_v34 = vld [vmem:[#allocation4 + $0x2b0] sm:$0xff]  }
  0x2f   : > { %8132 = vmatpush3.bf16.msra.mxu1 %v9711_v19  ;;  %8021 = vmatprep.subr.bf16.mxu0 %v9712_v20  ;;  %v668_v5 = vor.u32 %v667_v61, %v663_v49  ;;  %v10224_v8 = vcombine.high %v334_v60, %v334_v60  ;;  %v696_v18 = vrot.slane %v694_v3, 1  ;;  %v9757_v20 = vld [vmem:[#allocation4 + $0x2b8] sm:$0xff]   ;;  %v10261_v40 = vcombine.low %v303_v9, %v304_v10  ;;  %v336_v53 = vld [vmem:[%s10180_s14 + $0x88] sm:$0x11]  ;;  %v307_v0 = vld [vmem:[%s10180_s14 + $0x90] sm:$0xff] }
  0x30   : > { %8133 = vmatprep.subr.bf16.mxu1 %v9713_v21  ;;  %13797 = vst [vmem:[#allocation15_spill] sm:$0xff] %v10222_v4  ;;  %v10229_v11 = vsel %vm637_vm0, %v680_v1, %v684_v57  ;;  %v723_v12 = vshrl.u32 %v10222_v4, 16  ;;  %v725_v13 = vshll.u32 %v10222_v4, 16  ;;  %v10239_v17 = vsel %vm637_vm0, %v704_v6, %v708_v2  ;;  %v305_v32 = vld [vmem:[%s10180_s14 + $0x78] sm:$0xff]  ;;  %v9777_v63 = vld [vmem:[#allocation4 + $0x2a8] sm:$0xff]  }
  0x31   : > { %13798 = vst [vmem:[#allocation16_spill] sm:$0xff] %v10224_v8  ;;  %13799 = vst [vmem:[#allocation17_spill] sm:$0xff] %v10229_v11  ;;  %2015 = vmatprep.mubr.bf16.mxu1 %v10229_v11  ;;  %v10236_v16 = vsel %vm637_vm0, %v668_v5, %v672_v62  ;;  %v730_v19 = vshll.u32 %v10224_v8, 16  ;;  %v692_v21 = vor.u32 %v691_v7, %v687_v59  ;;  %v737_v58 = vshll.u32 %v10261_v40, 16  ;;  %v10285_v1 = vld [vmem:[%s10180_s14 + $0x98] sm:$0xff] }
  0x32   : > { %8022 = vmatpush3.bf16.msra.mxu0 %v9714_v22  ;;  %13800 = vst [vmem:[#allocation18_spill] sm:$0xff] %v10236_v16  ;;  %13801 = vst [vmem:[#allocation19_spill] sm:$0xff] %v10239_v17  ;;  %v727_v22 = vrot.slane %v725_v13, 1  ;;  %v10270_v52 = vcombine.high %v305_v32, %v306_v33  ;;  %v10280_v61 = vcombine.high %v336_v53, %v336_v53  ;;  %v735_v2 = vshrl.u32 %v10261_v40, 16  ;;  %v337_v5 = vld [vmem:[%s10180_s14 + $0xa0] sm:$0x11] }
  0x33   : > { %8134 = vmatpush3.bf16.msra.mxu1 %v9715_v23  ;;  %8023 = vmatprep.subr.bf16.mxu0 %v9716_v24  ;;  %v10243_v23 = vcombine.low %v301_v54, %v302_v55  ;;  %v10245_v24 = vcombine.high %v303_v9, %v304_v10  ;;  %v10259_v39 = vsel %vm637_vm0, %v692_v21, %v696_v18  ;;  %v9776_v55 = vld [vmem:[#allocation4 + $0x2e8] sm:$0xff]   ;;  %v9782_v6 = vld [vmem:[#allocation4 + $0x78] sm:$0xff]   ;;  %v739_v9 = vrot.slane %v737_v58, 1 }
  0x34   : > { %8135 = vmatprep.subr.bf16.mxu1 %v9717_v25  ;;  %v10249_v25 = vcombine.low %v334_v60, %v334_v60  ;;  %13806 = vst [vmem:[#allocation24_spill] sm:$0xff] %v10259_v39  ;;  %13807 = vst [vmem:[#allocation25_spill] sm:$0xff] %v10261_v40  ;;  %v10274_v54 = vcombine.low %v335_v14, %v335_v14  ;;  %v773_v62 = vshll.u32 %v10270_v52, 16  ;;  %v771_v10 = vshrl.u32 %v10270_v52, 16  ;;  %v342_v11 = vld [vmem:[%s10180_s14 + $0x118] sm:$0x11] }
  0x35   : > { %13802 = vst [vmem:[#allocation20_spill] sm:$0xff] %v10243_v23  ;;  %13803 = vst [vmem:[#allocation21_spill] sm:$0xff] %v10245_v24  ;;  %v711_v41 = vshrl.u32 %v10243_v23, 16  ;;  %v747_v48 = vshrl.u32 %v10245_v24, 16  ;;  %v10301_v18 = vcombine.high %v307_v0, %v10285_v1  ;;  %v10304_v21 = vcombine.low %v336_v53, %v336_v53 }
  0x36   : > { %8024 = vmatpush3.bf16.msra.mxu0 %v9718_v26  ;;  %13804 = vst [vmem:[#allocation22_spill] sm:$0xff] %v10249_v25  ;;  %v728_v26 = vor.u32 %v727_v22, %v723_v12  ;;  %v718_v47 = vshll.u32 %v10249_v25, 16  ;;  %13809 = vst [vmem:[#allocation27_spill] sm:$0xff] %v10270_v52  ;;  %v742_v3 = vshll.u32 %v10274_v54, 16  ;;  %v10294_v12 = vcombine.low %v305_v32, %v306_v33  ;;  %v9785_v33 = vld [vmem:[#allocation4 + $0x30] sm:$0xff]  }
  0x37   : > { %8136 = vmatpush3.bf16.msra.mxu1 %v9719_v27  ;;  %8025 = vmatprep.subr.bf16.mxu0 %v9720_v28  ;;  %v732_v27 = vrot.slane %v730_v19, 1  ;;  %v713_v28 = vshll.u32 %v10243_v23, 16  ;;  %13810 = vst [vmem:[#allocation28_spill] sm:$0xff] %v10274_v54  ;;  %13811 = vst [vmem:[#allocation29_spill] sm:$0xff] %v10280_v61  ;;  %v9783_v19 = vld [vmem:[#allocation4 + $0x38] sm:$0xff]   ;;  %v740_v22 = vor.u32 %v739_v9, %v735_v2  ;;  %v797_v32 = vshll.u32 %v10301_v18, 16 }
  0x38   : > { %8137 = vmatprep.subr.bf16.mxu1 %v9721_v29  ;;  %v10253_v29 = vcombine.high %v335_v14, %v335_v14  ;;  %v720_v57 = vrot.slane %v718_v47, 1  ;;  %13813 = vst [vmem:[#allocation31_spill] sm:$0xff] %v10294_v12  ;;  %v775_v14 = vrot.slane %v773_v62, 1  ;;  %13815 = vst [vmem:[#allocation33_spill] sm:$0xff] %v10301_v18  ;;  %v766_v47 = vshll.u32 %v10304_v21, 16  ;;  %v9792_v62 = vld [vmem:[#allocation4 + $0x2e0] sm:$0xff]  }
  0x39   : > { %v715_v46 = vrot.slane %v713_v28, 1  ;;  %v10267_v49 = vsel %vm637_vm0, %v728_v26, %v732_v27  ;;  %13816 = vst [vmem:[#allocation34_spill] sm:$0xff] %v10304_v21  ;;  %v744_v26 = vrot.slane %v742_v3, 1  ;;  %v761_v27 = vshll.u32 %v10294_v12, 16 }
  0x3a   : > { %8026 = vmatpush3.bf16.msra.mxu0 %v9722_v30  ;;  %13805 = vst [vmem:[#allocation23_spill] sm:$0xff] %v10253_v29  ;;  %v9766_v30 = vld [vmem:[#allocation4 + $0x2f0] sm:$0xff]   ;;  %13808 = vst [vmem:[#allocation26_spill] sm:$0xff] %v10267_v49  ;;  %v754_v51 = vshll.u32 %v10253_v29, 16  ;;  %v10309_v28 = vcombine.high %v337_v5, %v337_v5  ;;  %v10335_v2 = vcombine.low %v337_v5, %v337_v5 }
  0x3b   : > { %8138 = vmatpush3.bf16.msra.mxu1 %v9723_v31  ;;  %8235 = vmatprep.subr.bf16.mxu0 %v9756_v15  ;;  %v749_v31 = vshll.u32 %v10245_v24, 16  ;;  %v716_v56 = vor.u32 %v715_v46, %v711_v41  ;;  %v778_v15 = vshll.u32 %v10280_v61, 16  ;;  %v309_v41 = vld [vmem:[%s10180_s14 + $0xa8] sm:$0xff]  ;;  %v10316_v46 = vld [vmem:[%s10180_s14 + $0xb0] sm:$0xff]  ;;  %v763_v53 = vrot.slane %v761_v27, 1 }
  0x3c   : > { %v756_v60 = vrot.slane %v754_v51, 1  ;;  %8347 = vmatprep.subr.bf16.mxu1 %v9782_v6  ;;  %v10323_v51 = vsel %vm637_vm0, %v740_v22, %v744_v26  ;;  %v9794_v6 = vld [vmem:[#allocation4 + $0x60] sm:$0xff]   ;;  %v10346_v22 = vld [vmem:[%s10180_s14 + $0xc8] sm:$0xff] }
  0x3d   : > { %1855 = vmatmul.mubr.bf16.vlgmr.msra.gmra.mxu0 %v10189_v37  ;;  %v751_v50 = vrot.slane %v749_v31, 1  ;;  %v10291_v7 = vsel %vm637_vm0, %v716_v56, %v720_v57  ;;  %v780_v31 = vrot.slane %v778_v15, 1  ;;  %13818 = vst [vmem:[#allocation36_spill] sm:$0xff] %v10323_v51  ;;  %v802_v56 = vshll.u32 %v10309_v28, 16  ;;  %v9791_v57 = vld [vmem:[#allocation4 + $0x28] sm:$0xff]   ;;  %v9795_v26 = vld [vmem:[#allocation4 + $0x20] sm:$0xff]  }
  0x3e   : > { %1862 = vmatprep.mubr.bf16.mxu0 %v10196_v42  ;;  %2016 = vmatmul.mubr.bf16.vlgmr.msra.gmra.mxu1 %v10236_v16  ;;  %13812 = vst [vmem:[#allocation30_spill] sm:$0xff] %v10291_v7  ;;  %v345_v37 = vld [vmem:[%s10180_s14 + $0x160] sm:$0x11] }
  0x3f   : > { %2023 = vmatprep.mubr.bf16.mxu1 %v10239_v17  ;;  %8236 = vmatpush3.bf16.msra.mxu0 %v9757_v20  ;;  %v752_v59 = vor.u32 %v751_v50, %v747_v48  ;;  %v9784_v20 = vld [vmem:[#allocation4 + $0x70] sm:$0xff]   ;;  %v10320_v48 = vcombine.low %v307_v0, %v10285_v1  ;;  %v9790_v50 = vld [vmem:[#allocation4 + $0x68] sm:$0xff]   ;;  %v9793_v0 = vld [vmem:[#allocation4 + $0x2a0] sm:$0xff]   ;;  %v804_v15 = vrot.slane %v802_v56, 1  ;;  %v10530_v54 = vcombine.high %v345_v37, %v345_v37 }
  0x40   : > { %8237 = vmatprep.subr.bf16.mxu0 %v9766_v30  ;;  %v776_v30 = vor.u32 %v775_v14, %v771_v10  ;;  %8348 = vmatpush3.bf16.msra.mxu1 %v9783_v19  ;;  %v768_v10 = vrot.slane %v766_v47, 1  ;;  %v10356_v47 = vcombine.low %v309_v41, %v10316_v46 }
  0x41   : > { %v10297_v13 = vsel %vm637_vm0, %v752_v59, %v756_v60  ;;  %8349 = vmatprep.subr.bf16.mxu1 %v9784_v20  ;;  %13817 = vst [vmem:[#allocation35_spill] sm:$0xff] %v10320_v48  ;;  %v799_v59 = vrot.slane %v797_v32, 1  ;;  %v10331_v60 = vcombine.high %v309_v41, %v10316_v46  ;;  %v785_v3 = vshll.u32 %v10320_v48, 16  ;;  %v311_v20 = vld [vmem:[%s10180_s14 + $0xc0] sm:$0xff]  ;;  %v339_v32 = vld [vmem:[%s10180_s14 + $0xd0] sm:$0x11] }
  0x42   : > { %13814 = vst [vmem:[#allocation32_spill] sm:$0xff] %v10297_v13  ;;  %v10328_v58 = vsel %vm637_vm0, %v776_v30, %v780_v31  ;;  %v783_v27 = vshrl.u32 %v10320_v48, 16  ;;  %v790_v31 = vshll.u32 %v10335_v2, 16  ;;  %13822 = vst [vmem:[#allocation40_spill] sm:$0xff] %v10356_v47  ;;  %v9803_v41 = vld [vmem:[#allocation4 + $0x18] sm:$0xff]  }
  0x43   : > { %8238 = vmatpush3.bf16.msra.mxu0 %v9767_v34  ;;  %v759_v34 = vshrl.u32 %v10294_v12, 16  ;;  %13819 = vst [vmem:[#allocation37_spill] sm:$0xff] %v10328_v58  ;;  %13820 = vst [vmem:[#allocation38_spill] sm:$0xff] %v10331_v60  ;;  %v821_v5 = vshll.u32 %v10331_v60, 16  ;;  %v787_v30 = vrot.slane %v785_v3, 1 }
  0x44   : > { %8239 = vmatprep.subr.bf16.mxu0 %v9776_v55  ;;  %v795_v55 = vshrl.u32 %v10301_v18, 16  ;;  %8350 = vmatpush3.bf16.msra.mxu1 %v9785_v33 }
  0x45   : > { %1863 = vmatmul.mubr.bf16.gmra.mxu0 %v10200_v44  ;;  %8351 = vmatprep.subr.bf16.mxu1 %v9790_v50  ;;  %v764_v9 = vor.u32 %v763_v53, %v759_v34  ;;  %v819_v34 = vshrl.u32 %v10331_v60, 16  ;;  %v9800_v50 = vld [vmem:[#allocation4 + $0x2d8] sm:$0xff]   ;;  %v788_v3 = vor.u32 %v787_v30, %v783_v27  ;;  %v340_v27 = vld [vmem:[%s10180_s14 + $0xe8] sm:$0x11] }
  0x46   : > { %1870 = vmatprep.mubr.bf16.mxu0 %v10222_v4  ;;  %2024 = vmatmul.mubr.bf16.gmra.mxu1 %v10259_v39  ;;  %v800_v14 = vor.u32 %v799_v59, %v795_v55  ;;  %v823_v55 = vrot.slane %v821_v5, 1  ;;  %v9801_v59 = vld [vmem:[#allocation4 + $0x58] sm:$0xff]  }
  0x47   : > { %2031 = vmatprep.mubr.bf16.mxu1 %v10267_v49  ;;  %8240 = vmatpush3.bf16.msra.mxu0 %v9777_v63  ;;  %v338_v63 = vld [vmem:[%s10180_s14 + $0xb8] sm:$0x11]  ;;  %v10352_v33 = vsel %vm637_vm0, %v764_v9, %v768_v10  ;;  %v809_v9 = vshll.u32 %v10356_v47, 16  ;;  %v10371_v10 = vcombine.high %v339_v32, %v339_v32 }
  0x48   : > { %8241 = vmatprep.subr.bf16.mxu0 %v9792_v62  ;;  %v10341_v19 = vcombine.high %v338_v63, %v338_v63  ;;  %8352 = vmatpush3.bf16.msra.mxu1 %v9791_v57  ;;  %13821 = vst [vmem:[#allocation39_spill] sm:$0xff] %v10352_v33  ;;  %v10359_v53 = vsel %vm637_vm0, %v800_v14, %v804_v15  ;;  %v9802_v62 = vld [vmem:[#allocation4 + $0x298] sm:$0xff]   ;;  %v9804_v15 = vld [vmem:[#allocation4 + $0x2d0] sm:$0xff]  }
  0x49   : > { %8353 = vmatprep.subr.bf16.mxu1 %v9794_v6  ;;  %13823 = vst [vmem:[#allocation41_spill] sm:$0xff] %v10359_v53  ;;  %v10363_v57 = vcombine.high %v311_v20, %v10346_v22  ;;  %v792_v6 = vrot.slane %v790_v31, 1  ;;  %v313_v14 = vld [vmem:[%s10180_s14 + $0xd8] sm:$0xff]  ;;  %v10383_v31 = vcombine.low %v311_v20, %v10346_v22 }
  0x4a   : > { %v826_v56 = vshll.u32 %v10341_v19, 16 }
  0x4b   : > { %8242 = vmatpush3.bf16.msra.mxu0 %v9793_v0  ;;  %13824 = vst [vmem:[#allocation42_spill] sm:$0xff] %v10363_v57  ;;  %v10366_v0 = vcombine.low %v338_v63, %v338_v63  ;;  %v824_v63 = vor.u32 %v823_v55, %v819_v34  ;;  %13825 = vst [vmem:[#allocation43_spill] sm:$0xff] %v10383_v31  ;;  %v9805_v34 = vld [vmem:[#allocation4 + $0x50] sm:$0xff]   ;;  %v10387_v55 = vsel %vm637_vm0, %v788_v3, %v792_v6  ;;  %v341_v6 = vld [vmem:[%s10180_s14 + $0x100] sm:$0x11] }
  0x4c   : > { %8354 = vmatpush3.bf16.msra.mxu1 %v9795_v26  ;;  %8243 = vmatprep.subr.bf16.mxu0 %v9800_v50  ;;  %v828_v5 = vrot.slane %v826_v56, 1  ;;  %v845_v26 = vshll.u32 %v10363_v57, 16  ;;  %v807_v50 = vshrl.u32 %v10356_v47, 16  ;;  %13826 = vst [vmem:[#allocation44_spill] sm:$0xff] %v10387_v55  ;;  %v811_v56 = vrot.slane %v809_v9, 1  ;;  %v9807_v9 = vld [vmem:[#allocation4 + $0x10] sm:$0xff]  }
  0x4d   : > { %1871 = vmatmul.mubr.bf16.gmra.mxu0 %v10243_v23  ;;  %8355 = vmatprep.subr.bf16.mxu1 %v9801_v59  ;;  %v10378_v59 = vld [vmem:[%s10180_s14 + $0xe0] sm:$0xff]  ;;  %v814_v30 = vshll.u32 %v10366_v0, 16  ;;  %v833_v49 = vshll.u32 %v10383_v31, 16 }
  0x4e   : > { %1878 = vmatprep.mubr.bf16.mxu0 %v10245_v24  ;;  %2032 = vmatmul.mubr.bf16.gmra.mxu1 %v10291_v7  ;;  %v10400_v20 = vcombine.high %v313_v14, %v10378_v59  ;;  %v10403_v3 = vcombine.low %v313_v14, %v10378_v59  ;;  %v831_v14 = vshrl.u32 %v10383_v31, 16  ;;  %v9819_v24 = vld [vmem:[#allocation4] sm:$0xff]  }
  0x4f   : > { %2039 = vmatprep.mubr.bf16.mxu1 %v10297_v13  ;;  %8244 = vmatpush3.bf16.msra.mxu0 %v9802_v62  ;;  %v843_v62 = vshrl.u32 %v10363_v57, 16  ;;  %v9806_v13 = vld [vmem:[#allocation4 + $0x290] sm:$0xff]   ;;  %v816_v7 = vrot.slane %v814_v30, 1  ;;  %v835_v17 = vrot.slane %v833_v49, 1 }
  0x50   : > { %8356 = vmatpush3.bf16.msra.mxu1 %v9803_v41  ;;  %8245 = vmatprep.subr.bf16.mxu0 %v9804_v15  ;;  %v10395_v41 = vsel %vm637_vm0, %v824_v63, %v828_v5  ;;  %v847_v15 = vrot.slane %v845_v26, 1  ;;  %13828 = vst [vmem:[#allocation46_spill] sm:$0xff] %v10400_v20  ;;  %13829 = vst [vmem:[#allocation47_spill] sm:$0xff] %v10403_v3  ;;  %v10408_v63 = vcombine.high %v340_v27, %v340_v27 }
  0x51   : > { %13827 = vst [vmem:[#allocation45_spill] sm:$0xff] %v10395_v41  ;;  %8357 = vmatprep.subr.bf16.mxu1 %v9805_v34  ;;  %v812_v5 = vor.u32 %v811_v56, %v807_v50  ;;  %v9814_v50 = vld [vmem:[#allocation4 + $0x288] sm:$0xff]   ;;  %v857_v56 = vshll.u32 %v10403_v3, 16  ;;  %v855_v49 = vshrl.u32 %v10403_v3, 16 }
  0x52   : > { %v848_v30 = vor.u32 %v847_v15, %v843_v62  ;;  %v874_v16 = vshll.u32 %v10408_v63, 16  ;;  %v10424_v62 = vcombine.high %v341_v6, %v341_v6  ;;  %v317_v15 = vld [vmem:[%s10180_s14 + $0x108] sm:$0xff] }
  0x53   : > { %8246 = vmatpush3.bf16.msra.mxu0 %v9806_v13  ;;  %v869_v13 = vshll.u32 %v10400_v20, 16 }
  0x54   : > { %8358 = vmatpush3.bf16.msra.mxu1 %v9807_v9 }
  0x55   : > { %1879 = vmatmul.mubr.bf16.gmra.mxu0 %v10261_v40  ;;  %v10458_v40 = vcombine.high %v342_v11, %v342_v11 }
  0x56   : > { %1886 = vmatprep.mubr.bf16.mxu0 %v10270_v52  ;;  %2040 = vmatmul.mubr.bf16.gmra.mxu1 %v10323_v51  ;;  %v10397_v51 = vcombine.low %v339_v32, %v339_v32  ;;  %v9812_v32 = vld [vmem:[#allocation4 + $0x2c8] sm:$0xff]   ;;  %v9817_v52 = vld [vmem:[#allocation4 + $0x40] sm:$0xff]  }
  0x57   : > { %2047 = vmatprep.mubr.bf16.mxu1 %v10328_v58  ;;  %v10392_v58 = vld [vmem:[%s10180_s14 + $0xf8] sm:$0xff]  ;;  %8247 = vmatprep.subr.bf16.mxu0 %v9812_v32 }
  0x58   : > { %v838_v39 = vshll.u32 %v10397_v51, 16  ;;  %8248 = vmatpush3.bf16.msra.mxu0 %v9814_v50 }
  0x5d   : > { %1887 = vmatmul.mubr.bf16.gmra.mxu0 %v10294_v12  ;;  %v9816_v12 = vld [vmem:[#allocation4 + $0x2c0] sm:$0xff]  }
  0x5e   : > { %1894 = vmatprep.mubr.bf16.mxu0 %v10301_v18  ;;  %2048 = vmatmul.mubr.bf16.gmra.mxu1 %v10352_v33  ;;  %v850_v33 = vshll.u32 %v10371_v10, 16  ;;  %v10447_v18 = vld [vmem:[%s10180_s14 + $0x128] sm:$0xff] }
  0x5f   : > { %2055 = vmatprep.mubr.bf16.mxu1 %v10359_v53  ;;  %v315_v53 = vld [vmem:[%s10180_s14 + $0xf0] sm:$0xff]  ;;  %8249 = vmatprep.subr.bf16.mxu0 %v9816_v12 }
  0x60   : > { %v852_v26 = vrot.slane %v850_v33, 1  ;;  %v10414_v34 = vcombine.high %v315_v53, %v10392_v58  ;;  %v867_v33 = vshrl.u32 %v10400_v20, 16  ;;  %v10441_v50 = vcombine.low %v315_v53, %v10392_v58 }
  0x61   : > { %v836_v53 = vor.u32 %v835_v17, %v831_v14  ;;  %v343_v17 = vld [vmem:[%s10180_s14 + $0x130] sm:$0x11] }
  0x62   : > { %13830 = vst [vmem:[#allocation48_spill] sm:$0xff] %v10414_v34  ;;  %v893_v9 = vshll.u32 %v10414_v34, 16  ;;  %13833 = vst [vmem:[#allocation51_spill] sm:$0xff] %v10441_v50 }
  0x65   : > { %1895 = vmatmul.mubr.bf16.gmra.mxu0 %v10320_v48  ;;  %v859_v48 = vrot.slane %v857_v56, 1 }
  0x66   : > { %1902 = vmatprep.mubr.bf16.mxu0 %v10331_v60  ;;  %2056 = vmatmul.mubr.bf16.gmra.mxu1 %v10387_v55  ;;  %v9813_v55 = vld [vmem:[#allocation4 + $0x48] sm:$0xff]   ;;  %v10438_v60 = vld [vmem:[%s10180_s14 + $0x110] sm:$0xff] }
  0x67   : > { %2063 = vmatprep.mubr.bf16.mxu1 %v10395_v41  ;;  %v10419_v41 = vcombine.low %v340_v27, %v340_v27  ;;  %8359 = vmatprep.subr.bf16.mxu1 %v9813_v55  ;;  %v10428_v27 = vsel %vm637_vm0, %v812_v5, %v816_v7  ;;  %v871_v55 = vrot.slane %v869_v13, 1  ;;  %v10443_v7 = vcombine.low %v341_v6, %v341_v6  ;;  %v319_v5 = vld [vmem:[%s10180_s14 + $0x120] sm:$0xff] }
  0x68   : > { %13831 = vst [vmem:[#allocation49_spill] sm:$0xff] %v10428_v27  ;;  %v898_v13 = vshll.u32 %v10424_v62, 16  ;;  %v895_v6 = vrot.slane %v893_v9, 1  ;;  %v10455_v56 = vcombine.high %v317_v15, %v10438_v60  ;;  %v860_v23 = vor.u32 %v859_v48, %v855_v49 }
  0x69   : > { %v862_v32 = vshll.u32 %v10419_v41, 16  ;;  %v10464_v14 = vcombine.low %v317_v15, %v10438_v60  ;;  %v10469_v12 = vcombine.high %v319_v5, %v10447_v18  ;;  %v879_v15 = vshrl.u32 %v10441_v50, 16 }
  0x6a   : > { %13834 = vst [vmem:[#allocation52_spill] sm:$0xff] %v10455_v56  ;;  %v900_v9 = vrot.slane %v898_v13, 1  ;;  %v10480_v49 = vcombine.high %v343_v17, %v343_v17  ;;  %v10500_v42 = vcombine.low %v319_v5, %v10447_v18 }
  0x6b   : > { %v864_v4 = vrot.slane %v862_v32, 1  ;;  %13835 = vst [vmem:[#allocation53_spill] sm:$0xff] %v10464_v14  ;;  %13836 = vst [vmem:[#allocation54_spill] sm:$0xff] %v10469_v12  ;;  %v321_v32 = vld [vmem:[%s10180_s14 + $0x138] sm:$0xff]  ;;  %v941_v44 = vshll.u32 %v10469_v12, 16 }
  0x6c   : > { %13842 = vst [vmem:[#allocation60_spill] sm:$0xff] %v10500_v42  ;;  %v946_v5 = vshll.u32 %v10480_v49, 16  ;;  %v929_v61 = vshll.u32 %v10500_v42, 16  ;;  %v927_v25 = vshrl.u32 %v10500_v42, 16 }
  0x6d   : > { %1903 = vmatmul.mubr.bf16.gmra.mxu0 %v10356_v47  ;;  %v10433_v47 = vsel %vm637_vm0, %v848_v30, %v852_v26  ;;  %v840_v26 = vrot.slane %v838_v39, 1  ;;  %v891_v30 = vshrl.u32 %v10414_v34, 16  ;;  %v876_v39 = vrot.slane %v874_v16, 1 }
  0x6e   : > { %1910 = vmatprep.mubr.bf16.mxu0 %v10363_v57  ;;  %v9815_v57 = vld [vmem:[#allocation4 + $0x8] sm:$0xff]   ;;  %13832 = vst [vmem:[#allocation50_spill] sm:$0xff] %v10433_v47  ;;  %2064 = vmatmul.mubr.bf16.gmra.mxu1 %v10428_v27  ;;  %v872_v27 = vor.u32 %v871_v55, %v867_v33  ;;  %v10466_v16 = vcombine.low %v342_v11, %v342_v11  ;;  %v922_v11 = vshll.u32 %v10458_v40, 16  ;;  %v931_v36 = vrot.slane %v929_v61, 1 }
  0x6f   : > { %8360 = vmatpush3.bf16.msra.mxu1 %v9815_v57  ;;  %2071 = vmatprep.mubr.bf16.mxu1 %v10433_v47  ;;  %v9818_v57 = vld [vmem:[#allocation4 + $0x280] sm:$0xff]   ;;  %v881_v47 = vshll.u32 %v10441_v50, 16  ;;  %v10472_v48 = vsel %vm637_vm0, %v836_v53, %v840_v26  ;;  %v896_v33 = vor.u32 %v895_v6, %v891_v30  ;;  %v10488_v26 = vsel %vm637_vm0, %v860_v23, %v864_v4  ;;  %v10493_v6 = vld [vmem:[%s10180_s14 + $0x158] sm:$0xff] }
  0x70   : > { %8361 = vmatprep.subr.bf16.mxu1 %v9817_v52  ;;  %8250 = vmatpush3.bf16.msra.mxu0 %v9818_v57  ;;  %13837 = vst [vmem:[#allocation55_spill] sm:$0xff] %v10472_v48  ;;  %v917_v52 = vshll.u32 %v10455_v56, 16  ;;  %v10476_v55 = vsel %vm637_vm0, %v872_v27, %v876_v39  ;;  %v344_v57 = vld [vmem:[%s10180_s14 + $0x148] sm:$0x11]  ;;  %13840 = vst [vmem:[#allocation58_spill] sm:$0xff] %v10488_v26  ;;  %v915_v53 = vshrl.u32 %v10455_v56, 16 }
  0x71   : > { %13838 = vst [vmem:[#allocation56_spill] sm:$0xff] %v10476_v55  ;;  %v883_v30 = vrot.slane %v881_v47, 1  ;;  %v323_v27 = vld [vmem:[%s10180_s14 + $0x150] sm:$0xff]  ;;  %13841 = vst [vmem:[#allocation59_spill] sm:$0xff] %v10493_v6  ;;  %v905_v39 = vshll.u32 %v10464_v14, 16  ;;  %v9838_v4 = vld [vmem:[#allocation4 + $0xf8] sm:$0xff]   ;;  %v10505_v23 = vsel %vm637_vm0, %v896_v33, %v900_v9  ;;  %v10515_v21 = vcombine.high %v344_v57, %v344_v57 }
  0x72   : > { %13843 = vst [vmem:[#allocation61_spill] sm:$0xff] %v10505_v23  ;;  %v919_v47 = vrot.slane %v917_v52, 1  ;;  %v924_v35 = vrot.slane %v922_v11, 1  ;;  %8459 = vmatprep.subr.bf16.mxu0 %v9838_v4  ;;  %v903_v33 = vshrl.u32 %v10464_v14, 16  ;;  %v10522_v9 = vcombine.low %v344_v57, %v344_v57 }
  0x73   : > { %8362 = vmatpush3.bf16.msra.mxu1 %v9819_v24  ;;  %v10484_v24 = vld [vmem:[%s10180_s14 + $0x140] sm:$0xff]  ;;  %13845 = vst [vmem:[#allocation63_spill] sm:$0xff] %v10515_v21  ;;  %v10525_v52 = vcombine.high %v323_v27, %v10493_v6  ;;  %v907_v11 = vrot.slane %v905_v39, 1  ;;  %v10533_v29 = vcombine.low %v323_v27, %v10493_v6  ;;  %v948_v57 = vrot.slane %v946_v5, 1  ;;  %v10542_v39 = vld [vmem:[%s10180_s14 + $0x170] sm:$0xff] }
  0x74   : > { %13839 = vst [vmem:[#allocation57_spill] sm:$0xff] %v10484_v24  ;;  %13847 = vst [vmem:[#allocation65_spill] sm:$0xff] %v10522_v9  ;;  %v970_v8 = vshll.u32 %v10515_v21, 16  ;;  %v884_v45 = vor.u32 %v883_v30, %v879_v15  ;;  %v958_v43 = vshll.u32 %v10522_v9, 16  ;;  %v920_v27 = vor.u32 %v919_v47, %v915_v53  ;;  %v10551_v21 = vld [vmem:[%s10180_s14 + $0x178] sm:$0x11] }
  0x75   : > { %1911 = vmatmul.mubr.bf16.gmra.mxu0 %v10383_v31  ;;  %v886_v31 = vshll.u32 %v10443_v7, 16  ;;  %13848 = vst [vmem:[#allocation66_spill] sm:$0xff] %v10525_v52  ;;  %13849 = vst [vmem:[#allocation67_spill] sm:$0xff] %v10533_v29  ;;  %v989_v38 = vshll.u32 %v10525_v52, 16  ;;  %v10548_v6 = vcombine.low %v345_v37, %v345_v37  ;;  %v994_v30 = vshll.u32 %v10530_v54, 16 }
  0x76   : > { %1918 = vmatprep.mubr.bf16.mxu0 %v10400_v20  ;;  %2072 = vmatmul.mubr.bf16.gmra.mxu1 %v10472_v48  ;;  %v910_v20 = vshll.u32 %v10466_v16, 16  ;;  %v10510_v48 = vcombine.high %v321_v32, %v10484_v24  ;;  %v977_v9 = vshll.u32 %v10533_v29, 16  ;;  %v10558_v53 = vrot.slane %v970_v8, 1 }
  0x77   : > { %v888_v13 = vrot.slane %v886_v31, 1  ;;  %2079 = vmatprep.mubr.bf16.mxu1 %v10476_v55  ;;  %v10507_v31 = vcombine.low %v343_v17, %v343_v17  ;;  %v10518_v55 = vcombine.low %v321_v32, %v10484_v24  ;;  %v939_v17 = vshrl.u32 %v10469_v12, 16 }
  0x78   : > { %13844 = vst [vmem:[#allocation62_spill] sm:$0xff] %v10510_v48  ;;  %v965_v4 = vshll.u32 %v10510_v48, 16  ;;  %v963_v5 = vshrl.u32 %v10510_v48, 16  ;;  %v908_v8 = vor.u32 %v907_v11, %v903_v33  ;;  %v982_v61 = vshll.u32 %v10548_v6, 16  ;;  %v356_v33 = vld [vmem:[%s10180_s14 + $0xa8] sm:$0xee] }
  0x79   : > { %13846 = vst [vmem:[#allocation64_spill] sm:$0xff] %v10518_v55  ;;  %v934_v32 = vshll.u32 %v10507_v31, 16  ;;  %v10579_v47 = vrot.slane %v977_v9, 1 }
  0x7a   : > { %v967_v15 = vrot.slane %v965_v4, 1  ;;  %v10569_v4 = vrot.slane %v989_v38, 1  ;;  %v10598_v11 = vrot.slane %v982_v61, 1  ;;  %v7540_v61 = vcombine.high %v356_v33, %v10316_v46 }
  0x7b   : > { %v936_v24 = vrot.slane %v934_v32, 1  ;;  %v10567_v32 = vrot.slane %v958_v43, 1  ;;  %v10583_v43 = vcombine.high %v10551_v21, %v10551_v21 }
  0x7d   : > { %1919 = vmatmul.mubr.bf16.gmra.mxu0 %v10403_v3  ;;  %v943_v3 = vrot.slane %v941_v44, 1  ;;  %v10539_v44 = vld [vmem:[%s10180_s14 + $0x168] sm:$0xff] }
  0x7e   : > { %1926 = vmatprep.mubr.bf16.mxu0 %v10414_v34  ;;  %v912_v34 = vrot.slane %v910_v20, 1  ;;  %v953_v20 = vshll.u32 %v10518_v55, 16  ;;  %2080 = vmatmul.mubr.bf16.gmra.mxu1 %v10488_v26  ;;  %v10573_v26 = vcombine.high %v10539_v44, %v10542_v39 }
  0x7f   : > { %2087 = vmatprep.mubr.bf16.mxu1 %v10505_v23  ;;  %v10565_v23 = vsel %vm637_vm0, %v884_v45, %v888_v13  ;;  %v10587_v45 = vsel %vm637_vm0, %v920_v27, %v924_v35  ;;  %v932_v13 = vor.u32 %v931_v36, %v927_v25  ;;  %v1237_v25 = vrot.slane %v10309_v28, 1  ;;  %v357_v27 = vld [vmem:[%s10180_s14 + $0xc0] sm:$0xee] }
  0x80   : > { %v10561_v37 = vrot.slane %v953_v20, 1  ;;  %13850 = vst [vmem:[#allocation68_spill] sm:$0xff] %v10565_v23  ;;  %13851 = vst [vmem:[#allocation69_spill] sm:$0xff] %v10573_v26  ;;  %v1243_v35 = vrot.slane %v10341_v19, 1  ;;  %v7539_v28 = vcombine.low %v356_v33, %v10316_v46 }
  0x81   : > { %13852 = vst [vmem:[#allocation70_spill] sm:$0xff] %v10587_v45 }
  0x85   : > { %1927 = vmatmul.mubr.bf16.gmra.mxu0 %v10441_v50  ;;  %v10577_v50 = vrot.slane %v994_v30, 1  ;;  %v1242_v30 = vrot.slane %v7540_v61, 1 }
  0x86   : > { %1934 = vmatprep.mubr.bf16.mxu0 %v10455_v56  ;;  %v944_v56 = vor.u32 %v943_v3, %v939_v17  ;;  %v355_v3 = vld [vmem:[%s10180_s14 + $0x90] sm:$0xee]  ;;  %2088 = vmatmul.mubr.bf16.gmra.mxu1 %v10565_v23  ;;  %v10593_v17 = vsel %vm637_vm0, %v908_v8, %v912_v34  ;;  %v358_v8 = vld [vmem:[%s10180_s14 + $0xd8] sm:$0xee]  ;;  %v1239_v23 = vrot.slane %v7539_v28, 1 }
  0x87   : > { %13853 = vst [vmem:[#allocation71_spill] sm:$0xff] %v10593_v17  ;;  %2095 = vmatprep.mubr.bf16.mxu1 %v10587_v45  ;;  %v7538_v36 = vcombine.high %v355_v3, %v10285_v1  ;;  %v7537_v34 = vcombine.low %v355_v3, %v10285_v1  ;;  %v359_v1 = vld [vmem:[%s10180_s14 + $0xf0] sm:$0xee]  ;;  %v968_v3 = vor.u32 %v967_v15, %v963_v5  ;;  %v1240_v45 = vrot.slane %v10366_v0, 1 }
  0x88   : > { %v10596_v9 = vsel %vm637_vm0, %v944_v56, %v948_v57  ;;  %v10610_v56 = vsel %vm637_vm0, %v932_v13, %v936_v24  ;;  %v1234_v57 = vrot.slane %v10335_v2, 1  ;;  %v7542_v24 = vcombine.high %v357_v27, %v10346_v22 }
  0x89   : > { %13854 = vst [vmem:[#allocation72_spill] sm:$0xff] %v10596_v9  ;;  %13855 = vst [vmem:[#allocation73_spill] sm:$0xff] %v10610_v56  ;;  %v1236_v38 = vrot.slane %v7538_v36, 1  ;;  %v1233_v20 = vrot.slane %v7537_v34, 1  ;;  %v1249_v36 = vrot.slane %v10371_v10, 1  ;;  %v10629_v19 = vsel %vm1196_vm1, %v1242_v30, %v1243_v35 }
  0x8a   : > { %v360_v34 = vld [vmem:[%s10180_s14 + $0x108] sm:$0xee]  ;;  %13858 = vst [vmem:[#allocation76_spill] sm:$0xff] %v10629_v19  ;;  %v1248_v46 = vrot.slane %v7542_v24, 1  ;;  %v7541_v5 = vcombine.low %v357_v27, %v10346_v22  ;;  %v1246_v0 = vrot.slane %v10397_v51, 1  ;;  %v10634_v15 = vsel %vm1196_vm1, %v1239_v23, %v1240_v45 }
  0x8b   : > { %v10621_v13 = vsel %vm1196_vm1, %v1236_v38, %v1237_v25  ;;  %v10624_v2 = vsel %vm1196_vm1, %v1233_v20, %v1234_v57  ;;  %13859 = vst [vmem:[#allocation77_spill] sm:$0xff] %v10634_v15  ;;  %v7544_v38 = vcombine.high %v358_v8, %v10378_v59  ;;  %v1255_v20 = vrot.slane %v10408_v63, 1  ;;  %v361_v35 = vld [vmem:[%s10180_s14 + $0x120] sm:$0xee] }
  0x8c   : > { %13856 = vst [vmem:[#allocation74_spill] sm:$0xff] %v10621_v13  ;;  %13857 = vst [vmem:[#allocation75_spill] sm:$0xff] %v10624_v2  ;;  %v7543_v33 = vcombine.low %v358_v8, %v10378_v59  ;;  %v10641_v10 = vsel %vm1196_vm1, %v1248_v46, %v1249_v36  ;;  %v1245_v30 = vrot.slane %v7541_v5, 1  ;;  %v1252_v22 = vrot.slane %v10419_v41, 1 }
  0x8d   : > { %1935 = vmatmul.mubr.bf16.gmra.mxu0 %v10464_v14  ;;  %13860 = vst [vmem:[#allocation78_spill] sm:$0xff] %v10641_v10  ;;  %v7546_v51 = vcombine.high %v359_v1, %v10392_v58  ;;  %v1254_v23 = vrot.slane %v7544_v38, 1  ;;  %v1261_v63 = vrot.slane %v10424_v62, 1  ;;  %v7545_v59 = vcombine.low %v359_v1, %v10392_v58 }
  0x8e   : > { %1942 = vmatprep.mubr.bf16.mxu0 %v10469_v12  ;;  %2096 = vmatmul.mubr.bf16.gmra.mxu1 %v10593_v17  ;;  %v1251_v45 = vrot.slane %v7543_v33, 1  ;;  %v10652_v25 = vsel %vm1196_vm1, %v1245_v30, %v1246_v0  ;;  %v1258_v41 = vrot.slane %v10443_v7, 1  ;;  %v7548_v57 = vcombine.high %v360_v34, %v10438_v60  ;;  %v9850_v17 = vld [vmem:[#allocation4 + $0xe8] sm:$0xff]  }
  0x8f   : > { %2103 = vmatprep.mubr.bf16.mxu1 %v10596_v9  ;;  %13861 = vst [vmem:[#allocation79_spill] sm:$0xff] %v10652_v25  ;;  %v1260_v27 = vrot.slane %v7546_v51, 1  ;;  %v10657_v61 = vsel %vm1196_vm1, %v1254_v23, %v1255_v20  ;;  %v1257_v62 = vrot.slane %v7545_v59, 1  ;;  %v1267_v58 = vrot.slane %v10458_v40, 1  ;;  %v13873_v23 = vld [vmem:[#allocation57_spill] sm:$0xff] }
  0x90   : > { %13862 = vst [vmem:[#allocation80_spill] sm:$0xff] %v10657_v61  ;;  %v10660_v8 = vsel %vm1196_vm1, %v1251_v45, %v1252_v22  ;;  %v1266_v1 = vrot.slane %v7548_v57, 1  ;;  %v7547_v24 = vcombine.low %v360_v34, %v10438_v60  ;;  %v1264_v36 = vrot.slane %v10466_v16, 1  ;;  %v362_v22 = vld [vmem:[%s10180_s14 + $0x138] sm:$0xee]  ;;  %v13876_v57 = vld [vmem:[#allocation63_spill] sm:$0xff] }
  0x91   : > { %13863 = vst [vmem:[#allocation81_spill] sm:$0xff] %v10660_v8  ;;  %v10664_v28 = vsel %vm1196_vm1, %v1260_v27, %v1261_v63  ;;  %v10669_v7 = vsel %vm1196_vm1, %v1257_v62, %v1258_v41  ;;  %v7550_v46 = vcombine.high %v361_v35, %v10447_v18  ;;  %v1273_v5 = vrot.slane %v10480_v49, 1 }
  0x92   : > { %13864 = vst [vmem:[#allocation82_spill] sm:$0xff] %v10664_v28  ;;  %13865 = vst [vmem:[#allocation83_spill] sm:$0xff] %v10669_v7  ;;  %v7549_v0 = vcombine.low %v361_v35, %v10447_v18  ;;  %v10676_v40 = vsel %vm637_vm0, %v968_v3, %v10558_v53  ;;  %v10679_v60 = vsel %vm1196_vm1, %v1266_v1, %v1267_v58  ;;  %v1263_v16 = vrot.slane %v7547_v24, 1  ;;  %v327_v53 = vld [vmem:[%s10180_s14 + $0x180] sm:$0xff]  ;;  %v10693_v3 = vld [vmem:[%s10180_s14 + $0x188] sm:$0xff] }
  0x93   : > { %13866 = vst [vmem:[#allocation84_spill] sm:$0xff] %v10676_v40  ;;  %13867 = vst [vmem:[#allocation85_spill] sm:$0xff] %v10679_v60  ;;  %v1270_v34 = vrot.slane %v10507_v31, 1  ;;  %v1272_v38 = vrot.slane %v7550_v46, 1  ;;  %v13868_v33 = vshrl.u32 %v10518_v55, 16  ;;  %v7552_v45 = vcombine.high %v362_v22, %v13873_v23  ;;  %v13879_v46 = vld [vmem:[#allocation65_spill] sm:$0xff] }
  0x94   : > { %v1269_v20 = vrot.slane %v7549_v0, 1  ;;  %v10687_v18 = vsel %vm1196_vm1, %v1263_v16, %v1264_v36  ;;  %v10709_v63 = vcombine.low %v10539_v44, %v10542_v39  ;;  %v10713_v59 = vcombine.low %v10551_v21, %v10551_v21  ;;  %v347_v24 = vld [vmem:[%s10180_s14 + $0x190] sm:$0x11] }
  0x95   : > { %1943 = vmatmul.mubr.bf16.gmra.mxu0 %v10500_v42  ;;  %v956_v49 = vor.u32 %v10561_v37, %v13868_v33  ;;  %13869 = vst [vmem:[#allocation86_spill] sm:$0xff] %v10687_v18  ;;  %v10696_v31 = vsel %vm1196_vm1, %v1272_v38, %v1273_v5  ;;  %v13872_v37 = vshrl.u32 %v10525_v52, 16  ;;  %v7551_v35 = vcombine.low %v362_v22, %v13873_v23 }
  0x96   : > { %1950 = vmatprep.mubr.bf16.mxu0 %v10510_v48  ;;  %2104 = vmatmul.mubr.bf16.gmra.mxu1 %v10610_v56  ;;  %13870 = vst [vmem:[#allocation87_spill] sm:$0xff] %v10696_v31  ;;  %v10699_v30 = vsel %vm1196_vm1, %v1269_v20, %v1270_v34  ;;  %13874 = vst [vmem:[#allocation57_spill] sm:$0xff] %v10709_v63  ;;  %v1278_v41 = vrot.slane %v7552_v45, 1  ;;  %v1279_v62 = vrot.slane %v13876_v57, 1  ;;  %v13878_v1 = vshll.u32 %v10583_v43, 16  ;;  %v9854_v34 = vld [vmem:[#allocation4 + $0x178] sm:$0xff]  }
  0x97   : > { %2111 = vmatprep.mubr.bf16.mxu1 %v10676_v40  ;;  %13871 = vst [vmem:[#allocation88_spill] sm:$0xff] %v10699_v30  ;;  %v992_v51 = vor.u32 %v10569_v4, %v13872_v37  ;;  %v10718_v27 = vsel %vm637_vm0, %v956_v49, %v10567_v32  ;;  %v13877_v4 = vshll.u32 %v10573_v26, 16  ;;  %v1275_v36 = vrot.slane %v7551_v35, 1  ;;  %8571 = vmatprep.subr.bf16.mxu1 %v9854_v34  ;;  %v13886_v57 = vld [vmem:[#allocation59_spill] sm:$0xff]  ;;  %v13908_v56 = vld [vmem:[#allocation28_spill] sm:$0xff] }
  0x98   : > { %13875 = vst [vmem:[#allocation89_spill] sm:$0xff] %v10718_v27  ;;  %v1020_v44 = vrot.slane %v13878_v1, 1  ;;  %v1276_v21 = vrot.slane %v13879_v46, 1  ;;  %v999_v32 = vshrl.u32 %v10709_v63, 16  ;;  %v10733_v0 = vcombine.high %v327_v53, %v10693_v3 }
  0x99   : > { %v1015_v58 = vrot.slane %v13877_v4, 1  ;;  %v10729_v5 = vsel %vm637_vm0, %v992_v51, %v10577_v50  ;;  %v10736_v16 = vsel %vm1196_vm1, %v1278_v41, %v1279_v62  ;;  %v1001_v38 = vshll.u32 %v10709_v63, 16  ;;  %v363_v51 = vld [vmem:[%s10180_s14 + $0x150] sm:$0xee]  ;;  %v350_v41 = vld [vmem:[%s10180_s14 + $0x18] sm:$0xee] }
  0x9a   : > { %13880 = vst [vmem:[#allocation63_spill] sm:$0xff] %v10729_v5  ;;  %13881 = vst [vmem:[#allocation65_spill] sm:$0xff] %v10733_v0  ;;  %v1006_v20 = vshll.u32 %v10713_v59, 16  ;;  %v10741_v33 = vsel %vm1196_vm1, %v1275_v36, %v1276_v21  ;;  %v13884_v50 = vshrl.u32 %v10533_v29, 16  ;;  %v13885_v22 = vshrl.u32 %v10573_v26, 16 }
  0x9b   : > { %13882 = vst [vmem:[#allocation90_spill] sm:$0xff] %v10736_v16  ;;  %13883 = vst [vmem:[#allocation91_spill] sm:$0xff] %v10741_v33  ;;  %v10753_v23 = vcombine.high %v347_v24, %v347_v24  ;;  %v1035_v45 = vshrl.u32 %v10733_v0, 16  ;;  %v1037_v35 = vshll.u32 %v10733_v0, 16  ;;  %v7554_v62 = vcombine.high %v363_v51, %v13886_v57 }
  0x9c   : > { %v980_v49 = vor.u32 %v10579_v47, %v13884_v50  ;;  %v1016_v37 = vor.u32 %v1015_v58, %v13885_v22  ;;  %v1003_v4 = vrot.slane %v1001_v38, 1  ;;  %v1008_v1 = vrot.slane %v1006_v20, 1 }
  0x9d   : > { %1951 = vmatmul.mubr.bf16.gmra.mxu0 %v10518_v55  ;;  %v10760_v47 = vcombine.low %v327_v53, %v10693_v3  ;;  %v7553_v58 = vcombine.low %v363_v51, %v13886_v57  ;;  %v1284_v36 = vrot.slane %v7554_v62, 1  ;;  %v1285_v46 = vrot.slane %v10530_v54, 1 }
  0x9e   : > { %1958 = vmatprep.mubr.bf16.mxu0 %v10525_v52  ;;  %2112 = vmatmul.mubr.bf16.gmra.mxu1 %v10718_v27  ;;  %v10766_v21 = vsel %vm637_vm0, %v980_v49, %v10598_v11  ;;  %v10769_v34 = vsel %vm637_vm0, %v1016_v37, %v1020_v44  ;;  %v1282_v38 = vrot.slane %v10548_v6, 1  ;;  %v1039_v20 = vrot.slane %v1037_v35, 1  ;;  %v10052_v49 = vld [vmem:[%s10180_s14 + $0x20] sm:$0xff]  ;;  %v364_v35 = vld [vmem:[%s10180_s14 + $0x168] sm:$0xee] }
  0x9f   : > { %2119 = vmatprep.mubr.bf16.mxu1 %v10729_v5  ;;  %13887 = vst [vmem:[#allocation59_spill] sm:$0xff] %v10760_v47  ;;  %13888 = vst [vmem:[#allocation92_spill] sm:$0xff] %v10766_v21  ;;  %v1281_v50 = vrot.slane %v7553_v58, 1  ;;  %v1042_v53 = vshll.u32 %v10753_v23, 16  ;;  %v10773_v22 = vcombine.low %v347_v24, %v347_v24  ;;  %v10776_v51 = vsel %vm1196_vm1, %v1284_v36, %v1285_v46  ;;  %v10791_v36 = vld [vmem:[%s10180_s14 + $0x30] sm:$0xee] }
  0xa0   : > { %13889 = vst [vmem:[#allocation93_spill] sm:$0xff] %v10769_v34  ;;  %13890 = vst [vmem:[#allocation94_spill] sm:$0xff] %v10776_v51  ;;  %v1023_v54 = vshrl.u32 %v10760_v47, 16  ;;  %v1025_v11 = vshll.u32 %v10760_v47, 16  ;;  %v7528_v44 = vcombine.high %v350_v41, %v10052_v49  ;;  %v1004_v6 = vor.u32 %v1003_v4, %v999_v32 }
  0xa1   : > { %v10782_v37 = vsel %vm1196_vm1, %v1281_v50, %v1282_v38  ;;  %v7527_v24 = vcombine.low %v350_v41, %v10052_v49  ;;  %v1040_v57 = vor.u32 %v1039_v20, %v1035_v45  ;;  %v1044_v62 = vrot.slane %v1042_v53, 1 }
  0xa2   : > { %13891 = vst [vmem:[#allocation95_spill] sm:$0xff] %v10782_v37  ;;  %v1030_v58 = vshll.u32 %v10773_v22, 16  ;;  %v7556_v46 = vcombine.high %v364_v35, %v10542_v39  ;;  %v1027_v50 = vrot.slane %v1025_v11, 1  ;;  %v1206_v38 = vrot.slane %v7528_v44, 1 }
  0xa3   : > { %v7555_v32 = vcombine.low %v364_v35, %v10542_v39  ;;  %v1291_v4 = vrot.slane %v10583_v43, 1  ;;  %v10798_v45 = vsel %vm637_vm0, %v1004_v6, %v1008_v1  ;;  %v1288_v53 = vrot.slane %v10713_v59, 1  ;;  %v295_v43 = vld [vmem:[%s10180_s14] sm:$0xff]  ;;  %v296_v1 = vld [vmem:[%s10180_s14 + $0x8] sm:$0xff]  ;;  %v13896_v6 = vld [vmem:[#allocation10_spill] sm:$0xff] }
  0xa4   : > { %v1290_v41 = vrot.slane %v7556_v46, 1  ;;  %v10802_v49 = vsel %vm637_vm0, %v1040_v57, %v1044_v62  ;;  %v1032_v11 = vrot.slane %v1030_v58, 1  ;;  %v1203_v44 = vrot.slane %v7527_v24, 1  ;;  %v10053_v59 = vld [vmem:[%s10180_s14 + $0x38] sm:$0xff]  ;;  %v352_v62 = vld [vmem:[%s10180_s14 + $0x48] sm:$0xee] }
  0xa5   : > { %1959 = vmatmul.mubr.bf16.gmra.mxu0 %v10533_v29  ;;  %v1287_v20 = vrot.slane %v7555_v32, 1  ;;  %13894 = vst [vmem:[#allocation96_spill] sm:$0xff] %v10802_v49  ;;  %v1204_v35 = vrot.slane %v13896_v6, 1  ;;  %v7530_v46 = vcombine.high %v10791_v36, %v10053_v59  ;;  %v1028_v24 = vor.u32 %v1027_v50, %v1023_v54  ;;  %v353_v58 = vld [vmem:[%s10180_s14 + $0x60] sm:$0xee] }
  0xa6   : > { %1966 = vmatprep.mubr.bf16.mxu0 %v10573_v26  ;;  %2120 = vmatmul.mubr.bf16.gmra.mxu1 %v10766_v21  ;;  %v10829_v6 = vcombine.high %v295_v43, %v296_v1  ;;  %v1297_v54 = vrot.slane %v10753_v23, 1  ;;  %v1222_v9 = vrot.slane %v13908_v56, 1  ;;  %v9856_v56 = vld [vmem:[#allocation4 + $0x170] sm:$0xff]  }
  0xa7   : > { %2127 = vmatprep.mubr.bf16.mxu1 %v10769_v34  ;;  %v13892_v34 = vld [vmem:[#allocation8_spill] sm:$0xff]  ;;  %v10816_v57 = vsel %vm1196_vm1, %v1287_v20, %v1288_v53  ;;  %v1212_v32 = vrot.slane %v7530_v46, 1  ;;  %v354_v20 = vld [vmem:[%s10180_s14 + $0x78] sm:$0xee]  ;;  %v10833_v50 = vsel %vm637_vm0, %v1028_v24, %v1032_v11  ;;  %v1294_v46 = vrot.slane %v10773_v22, 1 }
  0xa8   : > { %v1207_v21 = vrot.slane %v13892_v34, 1  ;;  %13893 = vst [vmem:[#allocation8_spill] sm:$0xff] %v10798_v45  ;;  %v10805_v34 = vsel %vm1196_vm1, %v1290_v41, %v1291_v4  ;;  %13897 = vst [vmem:[#allocation10_spill] sm:$0xff] %v10816_v57  ;;  %v13898_v41 = vld [vmem:[#allocation12_spill] sm:$0xff] }
  0xa9   : > { %13895 = vst [vmem:[#allocation97_spill] sm:$0xff] %v10805_v34  ;;  %v1213_v4 = vrot.slane %v13898_v41, 1  ;;  %13899 = vst [vmem:[#allocation12_spill] sm:$0xff] %v10833_v50  ;;  %v7529_v41 = vcombine.low %v10791_v36, %v10053_v59  ;;  %v10055_v11 = vld [vmem:[%s10180_s14 + $0x68] sm:$0xff]  ;;  %v10056_v36 = vld [vmem:[%s10180_s14 + $0x80] sm:$0xff] }
  0xaa   : > { %v10808_v39 = vsel %vm1196_vm1, %v1206_v38, %v1207_v21  ;;  %v365_v21 = vld [vmem:[%s10180_s14 + $0x180] sm:$0xee]  ;;  %v7534_v24 = vcombine.high %v353_v58, %v10055_v11  ;;  %v7533_v22 = vcombine.low %v353_v58, %v10055_v11  ;;  %v7536_v59 = vcombine.high %v354_v20, %v10056_v36  ;;  %v9845_v58 = vld [vmem:[#allocation4 + $0xb0] sm:$0xff]  }
  0xab   : > { %v7558_v38 = vcombine.high %v365_v21, %v10693_v3  ;;  %v7557_v53 = vcombine.low %v365_v21, %v10693_v3  ;;  %v9839_v21 = vld [vmem:[#allocation4 + $0xb8] sm:$0xff]   ;;  %v10845_v23 = vsel %vm1196_vm1, %v1212_v32, %v1213_v4  ;;  %v7535_v4 = vcombine.low %v354_v20, %v10056_v36  ;;  %v13909_v36 = vld [vmem:[#allocation29_spill] sm:$0xff] }
  0xac   : > { %13902 = vst [vmem:[#allocation100_spill] sm:$0xff] %v10845_v23  ;;  %v1224_v11 = vrot.slane %v7534_v24, 1  ;;  %v1230_v20 = vrot.slane %v7536_v59, 1  ;;  %v9860_v59 = vld [vmem:[#allocation4 + $0x168] sm:$0xff]  }
  0xad   : > { %1967 = vmatmul.mubr.bf16.gmra.mxu0 %v10709_v63 }
  0xae   : > { %1974 = vmatprep.mubr.bf16.mxu0 %v10733_v0  ;;  %2128 = vmatmul.mubr.bf16.gmra.mxu1 %v10798_v45  ;;  %v1293_v0 = vrot.slane %v7557_v53, 1  ;;  %v10054_v45 = vld [vmem:[%s10180_s14 + $0x50] sm:$0xff]  ;;  %v1209_v53 = vrot.slane %v7529_v41, 1  ;;  %v9851_v41 = vld [vmem:[#allocation4 + $0xa8] sm:$0xff]  }
  0xaf   : > { %2135 = vmatprep.mubr.bf16.mxu1 %v10802_v49  ;;  %v1296_v49 = vrot.slane %v7558_v38, 1  ;;  %v7532_v5 = vcombine.high %v352_v62, %v10054_v45  ;;  %v7531_v3 = vcombine.low %v352_v62, %v10054_v45  ;;  %v13904_v45 = vld [vmem:[#allocation14_spill] sm:$0xff]  ;;  %v13905_v62 = vld [vmem:[#allocation16_spill] sm:$0xff] }
  0xb0   : > { %v1219_v32 = vrot.slane %v13905_v62, 1  ;;  %v1221_v62 = vrot.slane %v7533_v22, 1  ;;  %v9868_v22 = vld [vmem:[#allocation4 + $0xd8] sm:$0xff]  }
  0xb1   : > { %v10842_v38 = vsel %vm1196_vm1, %v1296_v49, %v1297_v54  ;;  %v1210_v49 = vrot.slane %v13904_v45, 1  ;;  %v1218_v54 = vrot.slane %v7532_v5, 1  ;;  %v10861_v45 = vcombine.low %v295_v43, %v296_v1  ;;  %v9863_v43 = vld [vmem:[#allocation4 + $0xa0] sm:$0xff]  }
  0xb2   : > { %13901 = vst [vmem:[#allocation99_spill] sm:$0xff] %v10842_v38  ;;  %v10864_v5 = vrot.slane %v7535_v4, 1  ;;  %v13913_v1 = vld [vmem:[#allocation7_spill] sm:$0xff]  ;;  %v9872_v4 = vld [vmem:[#allocation4 + $0xd0] sm:$0xff]  }
  0xb3   : > { %v10868_v24 = vsel %vm1196_vm1, %v1209_v53, %v1210_v49  ;;  %v9870_v49 = vld [vmem:[#allocation4 + $0x98] sm:$0xff]   ;;  %v9864_v53 = vld [vmem:[#allocation4 + $0x160] sm:$0xff]  }
  0xb4   : > { %13911 = vst [vmem:[#allocation14_spill] sm:$0xff] %v10868_v24 }
  0xb5   : > { %1975 = vmatmul.mubr.bf16.gmra.mxu0 %v10760_v47  ;;  %v10836_v47 = vsel %vm1196_vm1, %v1203_v44, %v1204_v35  ;;  %v9844_v44 = vld [vmem:[#allocation4 + $0xf0] sm:$0xff]   ;;  %v10849_v35 = vsel %vm1196_vm1, %v1293_v0, %v1294_v46  ;;  %v1215_v0 = vrot.slane %v7531_v3, 1  ;;  %v13906_v46 = vld [vmem:[#allocation22_spill] sm:$0xff] }
  0xb6   : > { %2176 = vmatprep.mubr.bf16.mxu0 %v10808_v39  ;;  %13900 = vst [vmem:[#allocation98_spill] sm:$0xff] %v10836_v47  ;;  %13903 = vst [vmem:[#allocation101_spill] sm:$0xff] %v10849_v35  ;;  %2136 = vmatmul.mubr.bf16.gmra.mxu1 %v10833_v50  ;;  %v1216_v27 = vrot.slane %v13906_v46, 1  ;;  %v13907_v50 = vld [vmem:[#allocation23_spill] sm:$0xff]  ;;  %v13910_v3 = vld [vmem:[#allocation34_spill] sm:$0xff] }
  0xb7   : > { %2625 = vmatprep.mubr.bf16.mxu1 %v10829_v6  ;;  %v1225_v40 = vrot.slane %v13907_v50, 1  ;;  %v1228_v46 = vrot.slane %v13910_v3, 1  ;;  %v10871_v50 = vsel %vm1196_vm1, %v1218_v54, %v1219_v32  ;;  %v9861_v32 = vld [vmem:[#allocation4 + $0x128] sm:$0xff]   ;;  %v13925_v3 = vld [vmem:[#allocation25_spill] sm:$0xff] }
  0xb8   : > { %13912 = vst [vmem:[#allocation16_spill] sm:$0xff] %v10871_v50 }
  0xb9   : > { %v10881_v54 = vsel %vm1196_vm1, %v1224_v11, %v1225_v40  ;;  %v9880_v40 = vld [vmem:[#allocation4 + $0x88] sm:$0xff]   ;;  %v9882_v11 = vld [vmem:[#allocation4 + $0xc0] sm:$0xff]  }
  0xba   : > { %13915 = vst [vmem:[#allocation23_spill] sm:$0xff] %v10881_v54 }
  0xbd   : > { %2177 = vmatmul.mubr.bf16.vlgmr.msra.gmra.mxu0 %v10836_v47  ;;  %v9862_v47 = vld [vmem:[#allocation4 + $0xe0] sm:$0xff]  }
  0xbe   : > { %2184 = vmatprep.mubr.bf16.mxu0 %v10845_v23  ;;  %8460 = vmatpush3.bf16.msra.mxu0 %v9839_v21  ;;  %v1231_v23 = vrot.slane %v13909_v36, 1  ;;  %v9855_v21 = vld [vmem:[#allocation4 + $0x138] sm:$0xff]   ;;  %v9874_v36 = vld [vmem:[#allocation4 + $0x90] sm:$0xff]  }
  0xbf   : > { %8461 = vmatprep.subr.bf16.mxu0 %v9844_v44  ;;  %2626 = vmatmul.mubr.bf16.vlgmr.msra.gmra.mxu1 %v10861_v45  ;;  %v9857_v44 = vld [vmem:[#allocation4 + $0x130] sm:$0xff]  }
  0xc0   : > { %2633 = vmatprep.mubr.bf16.mxu1 %v13913_v1  ;;  %8572 = vmatpush3.bf16.msra.mxu1 %v9855_v21  ;;  %v9878_v21 = vld [vmem:[#allocation4 + $0xc8] sm:$0xff]   ;;  %v10891_v1 = vsel %vm1196_vm1, %v1230_v20, %v1231_v23  ;;  %v9883_v20 = vld [vmem:[#allocation4 + $0x140] sm:$0xff]  }
  0xc1   : > { %8573 = vmatprep.subr.bf16.mxu1 %v9856_v56  ;;  %v10888_v56 = vsel %vm1196_vm1, %v1221_v62, %v1222_v9  ;;  %13919 = vst [vmem:[#allocation29_spill] sm:$0xff] %v10891_v1  ;;  %v9879_v9 = vld [vmem:[#allocation4 + $0x148] sm:$0xff]   ;;  %v10901_v62 = vsel %vm1196_vm1, %v10864_v5, %v1228_v46  ;;  %v13926_v5 = vld [vmem:[#allocation27_spill] sm:$0xff] }
  0xc2   : > { %8462 = vmatpush3.bf16.msra.mxu0 %v9845_v58  ;;  %v13916_v58 = vld [vmem:[#allocation9_spill] sm:$0xff]  ;;  %13918 = vst [vmem:[#allocation28_spill] sm:$0xff] %v10888_v56  ;;  %v9881_v23 = vld [vmem:[#allocation4 + $0x108] sm:$0xff]   ;;  %13922 = vst [vmem:[#allocation34_spill] sm:$0xff] %v10901_v62 }
  0xc3   : > { %8463 = vmatprep.subr.bf16.mxu0 %v9850_v17  ;;  %v10878_v17 = vsel %vm1196_vm1, %v1215_v0, %v1216_v27  ;;  %v9869_v27 = vld [vmem:[#allocation4 + $0x158] sm:$0xff]   ;;  %v13927_v46 = vld [vmem:[#allocation31_spill] sm:$0xff] }
  0xc4   : > { %13914 = vst [vmem:[#allocation22_spill] sm:$0xff] %v10878_v17  ;;  %8574 = vmatpush3.bf16.msra.mxu1 %v9857_v44  ;;  %v9871_v0 = vld [vmem:[#allocation4 + $0x118] sm:$0xff]   ;;  %v13920_v44 = vld [vmem:[#allocation13_spill] sm:$0xff] }
  0xc5   : > { %2185 = vmatmul.mubr.bf16.gmra.mxu0 %v10868_v24  ;;  %8575 = vmatprep.subr.bf16.mxu1 %v9860_v59  ;;  %v13921_v59 = vld [vmem:[#allocation15_spill] sm:$0xff] }
  0xc6   : > { %2192 = vmatprep.mubr.bf16.mxu0 %v10871_v50  ;;  %8464 = vmatpush3.bf16.msra.mxu0 %v9851_v41  ;;  %v13917_v41 = vld [vmem:[#allocation11_spill] sm:$0xff] }
  0xc7   : > { %8465 = vmatprep.subr.bf16.mxu0 %v9862_v47  ;;  %2634 = vmatmul.mubr.bf16.gmra.mxu1 %v13916_v58  ;;  %v9865_v47 = vld [vmem:[#allocation4 + $0x120] sm:$0xff]   ;;  %v13928_v58 = vld [vmem:[#allocation33_spill] sm:$0xff] }
  0xc8   : > { %2641 = vmatprep.mubr.bf16.mxu1 %v13917_v41  ;;  %8576 = vmatpush3.bf16.msra.mxu1 %v9861_v32  ;;  %v13923_v32 = vld [vmem:[#allocation20_spill] sm:$0xff] }
  0xc9   : > { %8577 = vmatprep.subr.bf16.mxu1 %v9864_v53  ;;  %v9885_v53 = vld [vmem:[#allocation4 + $0x100] sm:$0xff]  }
  0xca   : > { %8466 = vmatpush3.bf16.msra.mxu0 %v9863_v43  ;;  %v9873_v43 = vld [vmem:[#allocation4 + $0x150] sm:$0xff]  }
  0xcb   : > { %8467 = vmatprep.subr.bf16.mxu0 %v9868_v22  ;;  %v9884_v22 = vld [vmem:[#allocation4 + $0x80] sm:$0xff]  }
  0xcc   : > { %8578 = vmatpush3.bf16.msra.mxu1 %v9865_v47  ;;  %v13930_v47 = vld [vmem:[#allocation38_spill] sm:$0xff] }
  0xcd   : > { %2193 = vmatmul.mubr.bf16.gmra.mxu0 %v10878_v17  ;;  %8579 = vmatprep.subr.bf16.mxu1 %v9869_v27  ;;  %v13932_v27 = vld [vmem:[#allocation42_spill] sm:$0xff] }
  0xce   : > { %2200 = vmatprep.mubr.bf16.mxu0 %v10881_v54  ;;  %8468 = vmatpush3.bf16.msra.mxu0 %v9870_v49  ;;  %v9875_v49 = vld [vmem:[#allocation4 + $0x110] sm:$0xff]  }
  0xcf   : > { %8469 = vmatprep.subr.bf16.mxu0 %v9872_v4  ;;  %2642 = vmatmul.mubr.bf16.gmra.mxu1 %v13920_v44  ;;  %v13924_v4 = vld [vmem:[#allocation21_spill] sm:$0xff] }
  0xd0   : > { %2649 = vmatprep.mubr.bf16.mxu1 %v13921_v59  ;;  %8580 = vmatpush3.bf16.msra.mxu1 %v9871_v0  ;;  %v13938_v59 = vld [vmem:[#allocation52_spill] sm:$0xff] }
  0xd1   : > { %8581 = vmatprep.subr.bf16.mxu1 %v9873_v43 }
  0xd2   : > { %8470 = vmatpush3.bf16.msra.mxu0 %v9874_v36  ;;  %v13929_v36 = vld [vmem:[#allocation35_spill] sm:$0xff] }
  0xd3   : > { %8471 = vmatprep.subr.bf16.mxu0 %v9878_v21  ;;  %v13931_v21 = vld [vmem:[#allocation40_spill] sm:$0xff] }
  0xd4   : > { %8582 = vmatpush3.bf16.msra.mxu1 %v9875_v49 }
  0xd5   : > { %2201 = vmatmul.mubr.bf16.gmra.mxu0 %v10888_v56  ;;  %8583 = vmatprep.subr.bf16.mxu1 %v9879_v9 }
  0xd6   : > { %2208 = vmatprep.mubr.bf16.mxu0 %v10891_v1  ;;  %8472 = vmatpush3.bf16.msra.mxu0 %v9880_v40 }
  0xd7   : > { %8473 = vmatprep.subr.bf16.mxu0 %v9882_v11  ;;  %2650 = vmatmul.mubr.bf16.gmra.mxu1 %v13923_v32 }
  0xd8   : > { %2657 = vmatprep.mubr.bf16.mxu1 %v13924_v4  ;;  %8584 = vmatpush3.bf16.msra.mxu1 %v9881_v23  ;;  %v13933_v23 = vld [vmem:[#allocation43_spill] sm:$0xff]  ;;  %v13936_v4 = vld [vmem:[#allocation48_spill] sm:$0xff] }
  0xd9   : > { %8585 = vmatprep.subr.bf16.mxu1 %v9883_v20 }
  0xda   : > { %8474 = vmatpush3.bf16.msra.mxu0 %v9884_v22  ;;  %v9890_v22 = vld [vmem:[#allocation4 + $0x378] sm:$0xff]  }
  0xdb   : > { %8683 = vmatprep.subr.bf16.mxu0 %v9890_v22 }
  0xdc   : > { %8586 = vmatpush3.bf16.msra.mxu1 %v9885_v53  ;;  %v13934_v53 = vld [vmem:[#allocation46_spill] sm:$0xff] }
  0xdd   : > { %2209 = vmatmul.mubr.bf16.gmra.mxu0 %v10901_v62 }
  0xde   : > { %2216 = vmatprep.mubr.bf16.mxu0 %v10621_v13 }
  0xdf   : > { %2658 = vmatmul.mubr.bf16.gmra.mxu1 %v13925_v3 }
  0xe0   : > { %2665 = vmatprep.mubr.bf16.mxu1 %v13926_v5 }
  0xe5   : > { %2217 = vmatmul.mubr.bf16.gmra.mxu0 %v10624_v2 }
  0xe6   : > { %2224 = vmatprep.mubr.bf16.mxu0 %v10629_v19 }
  0xe7   : > { %2666 = vmatmul.mubr.bf16.gmra.mxu1 %v13927_v46 }
  0xe8   : > { %2673 = vmatprep.mubr.bf16.mxu1 %v13928_v58 }
  0xed   : > { %2225 = vmatmul.mubr.bf16.gmra.mxu0 %v10634_v15 }
  0xee   : > { %2232 = vmatprep.mubr.bf16.mxu0 %v10641_v10 }
  0xef   : > { %2674 = vmatmul.mubr.bf16.gmra.mxu1 %v13929_v36 }
  0xf0   : > { %2681 = vmatprep.mubr.bf16.mxu1 %v13930_v47 }
  0xf5   : > { %2233 = vmatmul.mubr.bf16.gmra.mxu0 %v10652_v25 }
  0xf6   : > { %2240 = vmatprep.mubr.bf16.mxu0 %v10657_v61 }
  0xf7   : > { %2682 = vmatmul.mubr.bf16.gmra.mxu1 %v13931_v21 }
  0xf8   : > { %2689 = vmatprep.mubr.bf16.mxu1 %v13932_v27 }
  0xfd   : > { %v8027_v40 = vpop.f32.mrf.mxu0  ;;  %2241 = vmatmul.mubr.bf16.gmra.mxu0 %v10660_v8 }
  0xfe   : > { %2248 = vmatprep.mubr.bf16.mxu0 %v10664_v28  ;;  %v8139_v9 = vpop.f32.mrf.mxu1 }
  0xff   : > { %v8028_v0 = vpop.f32.mrf.mxu0  ;;  %2690 = vmatmul.mubr.bf16.gmra.mxu1 %v13933_v23 }
 0x100   : > { %v8029_v11 = vadd.f32 %v8028_v0, %v8027_v40  ;;  %2697 = vmatprep.mubr.bf16.mxu1 %v13934_v53  ;;  %v8140_v27 = vpop.f32.mrf.mxu1 }
 0x101   : > { %v8030_v43 = vpop.f32.mrf.mxu0  ;;  %v8141_v47 = vadd.f32 %v8140_v27, %v8139_v9 }
 0x102   : > { %v8142_v58 = vpop.f32.mrf.mxu1 }
 0x103   : > { %v8031_v49 = vpop.f32.mrf.mxu0  ;;  %v10927_v0 = vadd.f32 %v8141_v47, %v8029_v11 }
 0x104   : > { %v8032_v20 = vadd.f32 %v8031_v49, %v8030_v43  ;;  %v8143_v22 = vpop.f32.mrf.mxu1  ;;  %v13935_v43 = vld [vmem:[#allocation47_spill] sm:$0xff] }
 0x105   : > { %v8033_v21 = vpop.f32.mrf.mxu0  ;;  %2249 = vmatmul.mubr.bf16.gmra.mxu0 %v10669_v7  ;;  %v8144_v5 = vadd.f32 %v8143_v22, %v8142_v58 }
 0x106   : > { %2256 = vmatprep.mubr.bf16.mxu0 %v10679_v60  ;;  %v8145_v23 = vpop.f32.mrf.mxu1 }
 0x107   : > { %v8034_v36 = vpop.f32.mrf.mxu0  ;;  %2698 = vmatmul.mubr.bf16.gmra.mxu1 %v13935_v43  ;;  %v10930_v53 = vadd.f32 %v8144_v5, %v8032_v20 }
 0x108   : > { %v8035_v40 = vadd.f32 %v8034_v36, %v8033_v21  ;;  %2705 = vmatprep.mubr.bf16.mxu1 %v13936_v4  ;;  %v8146_v27 = vpop.f32.mrf.mxu1 }
 0x109   : > { %v8036_v46 = vpop.f32.mrf.mxu0  ;;  %v8147_v36 = vadd.f32 %v8146_v27, %v8145_v23 }
 0x10a   : > { %v8148_v21 = vpop.f32.mrf.mxu1 }
 0x10b   : > { %v8037_v3 = vpop.f32.mrf.mxu0  ;;  %v10935_v58 = vadd.f32 %v8147_v36, %v8035_v40 }
 0x10c   : > { %v8038_v49 = vadd.f32 %v8037_v3, %v8036_v46  ;;  %v8149_v22 = vpop.f32.mrf.mxu1  ;;  %v13937_v46 = vld [vmem:[#allocation51_spill] sm:$0xff] }
 0x10d   : > { %v8039_v32 = vpop.f32.mrf.mxu0  ;;  %2257 = vmatmul.mubr.bf16.gmra.mxu0 %v10687_v18  ;;  %v8150_v43 = vadd.f32 %v8149_v22, %v8148_v21 }
 0x10e   : > { %2264 = vmatprep.mubr.bf16.mxu0 %v10696_v31  ;;  %v8151_v5 = vpop.f32.mrf.mxu1 }
 0x10f   : > { %v8040_v47 = vpop.f32.mrf.mxu0  ;;  %2706 = vmatmul.mubr.bf16.gmra.mxu1 %v13937_v46  ;;  %v10938_v4 = vadd.f32 %v8150_v43, %v8038_v49 }
 0x110   : > { %v8041_v11 = vadd.f32 %v8040_v47, %v8039_v32  ;;  %2713 = vmatprep.mubr.bf16.mxu1 %v13938_v59  ;;  %v8152_v23 = vpop.f32.mrf.mxu1 }
 0x111   : > { %v8042_v9 = vpop.f32.mrf.mxu0  ;;  %v8153_v32 = vadd.f32 %v8152_v23, %v8151_v5 }
 0x112   : > { %v8154_v27 = vpop.f32.mrf.mxu1 }
 0x113   : > { %v8043_v3 = vpop.f32.mrf.mxu0  ;;  %v10943_v47 = vadd.f32 %v8153_v32, %v8041_v11 }
 0x114   : > { %v8044_v20 = vadd.f32 %v8043_v3, %v8042_v9  ;;  %v8155_v22 = vpop.f32.mrf.mxu1 }
 0x115   : > { %v8045_v44 = vpop.f32.mrf.mxu0  ;;  %2265 = vmatmul.mubr.bf16.gmra.mxu0 %v10699_v30  ;;  %v8156_v46 = vadd.f32 %v8155_v22, %v8154_v27 }
 0x116   : > { %2272 = vmatprep.mubr.bf16.mxu0 %v10736_v16  ;;  %v8157_v43 = vpop.f32.mrf.mxu1 }
 0x117   : > { %v8046_v40 = vpop.f32.mrf.mxu0  ;;  %2714 = vmatmul.mubr.bf16.gmra.mxu1 %v10464_v14  ;;  %v10946_v3 = vadd.f32 %v8156_v46, %v8044_v20  ;;  %v331_v14 = vld [vmem:[%s10180_s14 + $0x10] sm:$0x11] }
 0x118   : > { %v8047_v36 = vadd.f32 %v8046_v40, %v8045_v44  ;;  %2721 = vmatprep.mubr.bf16.mxu1 %v10469_v12  ;;  %v8158_v5 = vpop.f32.mrf.mxu1 }
 0x119   : > { %v8048_v21 = vpop.f32.mrf.mxu0  ;;  %v8159_v44 = vadd.f32 %v8158_v5, %v8157_v43 }
 0x11a   : > { %v8160_v23 = vpop.f32.mrf.mxu1 }
 0x11b   : > { %v8049_v9 = vpop.f32.mrf.mxu0  ;;  %v10951_v40 = vadd.f32 %v8159_v44, %v8047_v36  ;;  %v653_v36 = vshll.u32 %v10829_v6, 16 }
 0x11c   : > { %v8050_v49 = vadd.f32 %v8049_v9, %v8048_v21  ;;  %v8161_v22 = vpop.f32.mrf.mxu1  ;;  %v9896_v21 = vld [vmem:[#allocation4 + $0x3f8] sm:$0xff]  }
 0x11d   : > { %v8051_v59 = vpop.f32.mrf.mxu0  ;;  %2273 = vmatmul.mubr.bf16.gmra.mxu0 %v10741_v33  ;;  %v8162_v46 = vadd.f32 %v8161_v22, %v8160_v23  ;;  %8795 = vmatprep.subr.bf16.mxu1 %v9896_v21 }
 0x11e   : > { %2280 = vmatprep.mubr.bf16.mxu0 %v10776_v51  ;;  %v8163_v9 = vpop.f32.mrf.mxu1 }
 0x11f   : > { %v8052_v11 = vpop.f32.mrf.mxu0  ;;  %2722 = vmatmul.mubr.bf16.gmra.mxu1 %v10500_v42  ;;  %v10955_v41 = vadd.f32 %v8162_v46, %v8050_v49  ;;  %v655_v42 = vrot.slane %v653_v36, 1 }
 0x120   : > { %v8053_v32 = vadd.f32 %v8052_v11, %v8051_v59  ;;  %2729 = vmatprep.mubr.bf16.mxu1 %v10510_v48  ;;  %v8164_v59 = vpop.f32.mrf.mxu1  ;;  %v10961_v11 = vcombine.high %v331_v14, %v331_v14  ;;  %v651_v48 = vshrl.u32 %v10829_v6, 16  ;;  %v10974_v6 = vcombine.low %v331_v14, %v331_v14 }
 0x121   : > { %v8054_v27 = vpop.f32.mrf.mxu0  ;;  %v8165_v5 = vadd.f32 %v8164_v59, %v8163_v9 }
 0x122   : > { %v8166_v23 = vpop.f32.mrf.mxu1  ;;  %v646_v33 = vshll.u32 %v10974_v6, 16 }
 0x123   : > { %v8055_v20 = vpop.f32.mrf.mxu0  ;;  %v10963_v22 = vadd.f32 %v8165_v5, %v8053_v32 }
 0x124   : > { %v8056_v12 = vadd.f32 %v8055_v20, %v8054_v27  ;;  %v8167_v21 = vpop.f32.mrf.mxu1 }
 0x125   : > { %v8057_v43 = vpop.f32.mrf.mxu0  ;;  %2281 = vmatmul.mubr.bf16.gmra.mxu0 %v10782_v37  ;;  %v8168_v46 = vadd.f32 %v8167_v21, %v8166_v23  ;;  %v658_v37 = vshll.u32 %v10961_v11, 16  ;;  %v656_v23 = vor.u32 %v655_v42, %v651_v48 }
 0x126   : > { %2288 = vmatprep.mubr.bf16.mxu0 %v10805_v34  ;;  %v8169_v34 = vpop.f32.mrf.mxu1 }
 0x127   : > { %v8058_v44 = vpop.f32.mrf.mxu0  ;;  %2730 = vmatmul.mubr.bf16.gmra.mxu1 %v10518_v55  ;;  %v10968_v59 = vadd.f32 %v8168_v46, %v8056_v12  ;;  %v660_v21 = vrot.slane %v658_v37, 1  ;;  %v639_v55 = vshrl.u32 %v10861_v45, 16 }
 0x128   : > { %v8059_v27 = vadd.f32 %v8058_v44, %v8057_v43  ;;  %2737 = vmatprep.mubr.bf16.mxu1 %v10525_v52  ;;  %v641_v43 = vshll.u32 %v10861_v45, 16  ;;  %v8170_v5 = vpop.f32.mrf.mxu1 }
 0x129   : > { %v8060_v49 = vpop.f32.mrf.mxu0  ;;  %13939 = vst [vmem:[#allocation7_spill] sm:$0xff] %v10968_v59  ;;  %v8171_v36 = vadd.f32 %v8170_v5, %v8169_v34  ;;  %v10057_v59 = vld [vmem:[%s10180_s14 + $0x8] sm:$0xff]  ;;  %v661_v34 = vsel %vm637_vm0, %v656_v23, %v660_v21  ;;  %v648_v5 = vrot.slane %v646_v33, 1 }
 0x12a   : > { %v8172_v12 = vpop.f32.mrf.mxu1 }
 0x12b   : > { %v8061_v20 = vpop.f32.mrf.mxu0 }
 0x12c   : > { %v8062_v9 = vadd.f32 %v8061_v20, %v8060_v49  ;;  %v349_v49 = vld [vmem:[%s10180_s14] sm:$0xee]  ;;  %v10977_v20 = vadd.f32 %v8171_v36, %v8059_v27  ;;  %v8173_v51 = vpop.f32.mrf.mxu1 }
 0x12d   : > { %v8063_v32 = vpop.f32.mrf.mxu0  ;;  %2289 = vmatmul.mubr.bf16.gmra.mxu0 %v10816_v57  ;;  %v643_v57 = vrot.slane %v641_v43, 1  ;;  %v8174_v14 = vadd.f32 %v8173_v51, %v8172_v12  ;;  %v1201_v51 = vrot.slane %v10961_v11, 1 }
 0x12e   : > { %2296 = vmatprep.mubr.bf16.mxu0 %v10842_v38  ;;  %v7526_v38 = vcombine.high %v349_v49, %v10057_v59  ;;  %v8175_v42 = vpop.f32.mrf.mxu1 }
 0x12f   : > { %v8064_v44 = vpop.f32.mrf.mxu0  ;;  %2738 = vmatmul.mubr.bf16.gmra.mxu1 %v10533_v29  ;;  %v10984_v37 = vadd.f32 %v8174_v14, %v8062_v9  ;;  %v644_v45 = vor.u32 %v643_v57, %v639_v55  ;;  %v9891_v55 = vld [vmem:[#allocation4 + $0x338] sm:$0xff]  }
 0x130   : > { %v8065_v46 = vadd.f32 %v8064_v44, %v8063_v32  ;;  %2745 = vmatprep.mubr.bf16.mxu1 %v10573_v26  ;;  %v8176_v32 = vpop.f32.mrf.mxu1  ;;  %v1200_v43 = vrot.slane %v7526_v38, 1  ;;  %v9892_v38 = vld [vmem:[#allocation4 + $0x370] sm:$0xff]  }
 0x131   : > { %v8066_v52 = vpop.f32.mrf.mxu0  ;;  %v8177_v36 = vadd.f32 %v8176_v32, %v8175_v42 }
 0x132   : > { %v8178_v23 = vpop.f32.mrf.mxu1  ;;  %v1202_v14 = vsel %vm1196_vm1, %v1200_v43, %v1201_v51  ;;  %v9894_v51 = vld [vmem:[#allocation4 + $0x368] sm:$0xff]  }
 0x133   : > { %v8067_v16 = vpop.f32.mrf.mxu0  ;;  %v10989_v12 = vadd.f32 %v8177_v36, %v8065_v46  ;;  %v1198_v46 = vrot.slane %v10974_v6, 1 }
 0x134   : > { %v8068_v48 = vadd.f32 %v8067_v16, %v8066_v52  ;;  %v7525_v16 = vcombine.low %v349_v49, %v10057_v59  ;;  %v8179_v9 = vpop.f32.mrf.mxu1 }
 0x135   : > { %v8069_v27 = vpop.f32.mrf.mxu0  ;;  %2297 = vmatmul.mubr.bf16.gmra.mxu0 %v10849_v35  ;;  %v649_v35 = vsel %vm637_vm0, %v644_v45, %v648_v5  ;;  %v8180_v57 = vadd.f32 %v8179_v9, %v8178_v23  ;;  %v9893_v45 = vld [vmem:[#allocation4 + $0x330] sm:$0xff]   ;;  %v9897_v9 = vld [vmem:[#allocation4 + $0x3b8] sm:$0xff]  }
 0x136   : > { %2786 = vmatprep.mubr.bf16.mxu0 %v661_v34  ;;  %v8181_v26 = vpop.f32.mrf.mxu1  ;;  %v1197_v42 = vrot.slane %v7525_v16, 1 }
 0x137   : > { %v8070_v44 = vpop.f32.mrf.mxu0  ;;  %2746 = vmatmul.mubr.bf16.gmra.mxu1 %v10709_v63  ;;  %v10994_v11 = vadd.f32 %v8180_v57, %v8068_v48  ;;  %v9898_v57 = vld [vmem:[#allocation4 + $0x3f0] sm:$0xff]  }
 0x138   : > { %v8071_v21 = vadd.f32 %v8070_v44, %v8069_v27  ;;  %2947 = vmatprep.mubr.bf16.mxu1 %v1202_v14  ;;  %v8182_v49 = vpop.f32.mrf.mxu1  ;;  %v13940_v27 = vld [vmem:[#allocation17_spill] sm:$0xff]  ;;  %v1199_v48 = vsel %vm1196_vm1, %v1197_v42, %v1198_v46  ;;  %v9902_v14 = vld [vmem:[#allocation4 + $0x360] sm:$0xff]  }
 0x139   : > { %v8072_v52 = vpop.f32.mrf.mxu0  ;;  %v8183_v32 = vadd.f32 %v8182_v49, %v8181_v26  ;;  %v13942_v42 = vld [vmem:[#allocation19_spill] sm:$0xff] }
 0x13a   : > { %v8184_v5 = vpop.f32.mrf.mxu1 }
 0x13b   : > { %v8073_v34 = vpop.f32.mrf.mxu0  ;;  %v10998_v44 = vadd.f32 %v8183_v32, %v8071_v21  ;;  %v9906_v32 = vld [vmem:[#allocation4 + $0x358] sm:$0xff]  }
 0x13c   : > { %v8074_v33 = vadd.f32 %v8073_v34, %v8072_v52  ;;  %v8185_v23 = vpop.f32.mrf.mxu1  ;;  %v9895_v52 = vld [vmem:[#allocation4 + $0x328] sm:$0xff]  }
 0x13d   : > { %v8075_v59 = vpop.f32.mrf.mxu0  ;;  %2787 = vmatmul.mubr.bf16.vlgmr.msra.gmra.mxu0 %v649_v35  ;;  %v8186_v35 = vadd.f32 %v8185_v23, %v8184_v5 }
 0x13e   : > { %2794 = vmatprep.mubr.bf16.mxu0 %v13940_v27  ;;  %8684 = vmatpush3.bf16.msra.mxu0 %v9891_v55  ;;  %v8187_v55 = vpop.f32.mrf.mxu1 }
 0x13f   : > { %v8076_v43 = vpop.f32.mrf.mxu0  ;;  %8685 = vmatprep.subr.bf16.mxu0 %v9892_v38  ;;  %2948 = vmatmul.mubr.bf16.vlgmr.msra.gmra.mxu1 %v1199_v48  ;;  %v11001_v34 = vadd.f32 %v8186_v35, %v8074_v33  ;;  %v13941_v38 = vld [vmem:[#allocation18_spill] sm:$0xff]  ;;  %v9900_v33 = vld [vmem:[#allocation4 + $0x3e8] sm:$0xff]  }
 0x140   : > { %v8077_v36 = vadd.f32 %v8076_v43, %v8075_v59  ;;  %2955 = vmatprep.mubr.bf16.mxu1 %v10808_v39  ;;  %v8188_v46 = vpop.f32.mrf.mxu1  ;;  %v9903_v59 = vld [vmem:[#allocation4 + $0x320] sm:$0xff]   ;;  %8796 = vmatpush3.bf16.msra.mxu1 %v9897_v9 }
 0x141   : > { %v8078_v6 = vpop.f32.mrf.mxu0  ;;  %v8189_v49 = vadd.f32 %v8188_v46, %v8187_v55  ;;  %8797 = vmatprep.subr.bf16.mxu1 %v9898_v57  ;;  %v13943_v55 = vld [vmem:[#allocation98_spill] sm:$0xff]  ;;  %v13945_v46 = vld [vmem:[#allocation24_spill] sm:$0xff] }
 0x142   : > { %8686 = vmatpush3.bf16.msra.mxu0 %v9893_v45  ;;  %v9899_v45 = vld [vmem:[#allocation4 + $0x3b0] sm:$0xff]   ;;  %v8190_v43 = vpop.f32.mrf.mxu1 }
 0x143   : > { %v8079_v16 = vpop.f32.mrf.mxu0  ;;  %8687 = vmatprep.subr.bf16.mxu0 %v9894_v51  ;;  %v11006_v5 = vadd.f32 %v8189_v49, %v8077_v36  ;;  %v13944_v36 = vld [vmem:[#allocation100_spill] sm:$0xff]  ;;  %v13946_v49 = vld [vmem:[#allocation26_spill] sm:$0xff] }
 0x144   : > { %v8080_v26 = vadd.f32 %v8079_v16, %v8078_v6  ;;  %v8191_v48 = vpop.f32.mrf.mxu1  ;;  %v9908_v6 = vld [vmem:[#allocation4 + $0x318] sm:$0xff]   ;;  %8798 = vmatpush3.bf16.msra.mxu1 %v9899_v45  ;;  %v9910_v16 = vld [vmem:[#allocation4 + $0x350] sm:$0xff]  }
 0x145   : > { %v8081_v21 = vpop.f32.mrf.mxu0  ;;  %2795 = vmatmul.mubr.bf16.gmra.mxu0 %v13941_v38  ;;  %v8192_v23 = vadd.f32 %v8191_v48, %v8190_v43  ;;  %8799 = vmatprep.subr.bf16.mxu1 %v9900_v33  ;;  %v9905_v43 = vld [vmem:[#allocation4 + $0x3a0] sm:$0xff]  }
 0x146   : > { %2802 = vmatprep.mubr.bf16.mxu0 %v13942_v42  ;;  %8688 = vmatpush3.bf16.msra.mxu0 %v9895_v52  ;;  %v9901_v52 = vld [vmem:[#allocation4 + $0x3a8] sm:$0xff]   ;;  %v8193_v9 = vpop.f32.mrf.mxu1 }
 0x147   : > { %v8082_v27 = vpop.f32.mrf.mxu0  ;;  %8689 = vmatprep.subr.bf16.mxu0 %v9902_v14  ;;  %2956 = vmatmul.mubr.bf16.gmra.mxu1 %v13943_v55  ;;  %v11009_v57 = vadd.f32 %v8192_v23, %v8080_v26  ;;  %v9907_v26 = vld [vmem:[#allocation4 + $0x3d8] sm:$0xff]  }
 0x148   : > { %v8083_v51 = vadd.f32 %v8082_v27, %v8081_v21  ;;  %v9904_v21 = vld [vmem:[#allocation4 + $0x3e0] sm:$0xff]   ;;  %2963 = vmatprep.mubr.bf16.mxu1 %v13944_v36  ;;  %v9912_v27 = vld [vmem:[#allocation4 + $0x310] sm:$0xff]   ;;  %8800 = vmatpush3.bf16.msra.mxu1 %v9901_v52  ;;  %v9916_v36 = vld [vmem:[#allocation4 + $0x308] sm:$0xff]  }
 0x149   : > { %v8084_v39 = vpop.f32.mrf.mxu0  ;;  %8801 = vmatprep.subr.bf16.mxu1 %v9904_v21 }
 0x14a   : > { %8690 = vmatpush3.bf16.msra.mxu0 %v9903_v59  ;;  %v8194_v59 = vpop.f32.mrf.mxu1 }
 0x14b   : > { %v8085_v35 = vpop.f32.mrf.mxu0  ;;  %8691 = vmatprep.subr.bf16.mxu0 %v9906_v32  ;;  %v8195_v45 = vadd.f32 %v8194_v59, %v8193_v9  ;;  %v9918_v9 = vld [vmem:[#allocation4 + $0x340] sm:$0xff]   ;;  %v13948_v59 = vld [vmem:[#allocation30_spill] sm:$0xff] }
 0x14c   : > { %v8086_v14 = vadd.f32 %v8085_v35, %v8084_v39  ;;  %v9914_v39 = vld [vmem:[#allocation4 + $0x348] sm:$0xff]   ;;  %v8196_v33 = vpop.f32.mrf.mxu1  ;;  %8802 = vmatpush3.bf16.msra.mxu1 %v9905_v43 }
 0x14d   : > { %v8087_v38 = vpop.f32.mrf.mxu0  ;;  %2803 = vmatmul.mubr.bf16.gmra.mxu0 %v13945_v46  ;;  %v11014_v23 = vadd.f32 %v8195_v45, %v8083_v51  ;;  %8803 = vmatprep.subr.bf16.mxu1 %v9907_v26  ;;  %v13949_v45 = vld [vmem:[#allocation32_spill] sm:$0xff] }
 0x14e   : > { %2810 = vmatprep.mubr.bf16.mxu0 %v13946_v49  ;;  %8692 = vmatpush3.bf16.msra.mxu0 %v9908_v6  ;;  %v8197_v55 = vpop.f32.mrf.mxu1  ;;  %v9909_v6 = vld [vmem:[#allocation4 + $0x398] sm:$0xff]  }
 0x14f   : > { %v8088_v32 = vpop.f32.mrf.mxu0  ;;  %8693 = vmatprep.subr.bf16.mxu0 %v9910_v16  ;;  %v8198_v63 = vadd.f32 %v8197_v55, %v8196_v33  ;;  %2964 = vmatmul.mubr.bf16.gmra.mxu1 %v10868_v24  ;;  %v9913_v33 = vld [vmem:[#allocation4 + $0x390] sm:$0xff]  }
 0x150   : > { %v8089_v48 = vadd.f32 %v8088_v32, %v8087_v38  ;;  %v8199_v52 = vpop.f32.mrf.mxu1  ;;  %v9911_v38 = vld [vmem:[#allocation4 + $0x3d0] sm:$0xff]   ;;  %2971 = vmatprep.mubr.bf16.mxu1 %v10871_v50  ;;  %v9920_v32 = vld [vmem:[#allocation4 + $0x300] sm:$0xff]   ;;  %8804 = vmatpush3.bf16.msra.mxu1 %v9909_v6 }
 0x151   : > { %v8090_v35 = vpop.f32.mrf.mxu0  ;;  %v11017_v21 = vadd.f32 %v8198_v63, %v8086_v14  ;;  %8805 = vmatprep.subr.bf16.mxu1 %v9911_v38  ;;  %v9915_v63 = vld [vmem:[#allocation4 + $0x3c8] sm:$0xff]   ;;  %v9919_v6 = vld [vmem:[#allocation4 + $0x3c0] sm:$0xff]  }
 0x152   : > { %8694 = vmatpush3.bf16.msra.mxu0 %v9912_v27  ;;  %v8200_v27 = vpop.f32.mrf.mxu1 }
 0x153   : > { %v8091_v29 = vpop.f32.mrf.mxu0  ;;  %8695 = vmatprep.subr.bf16.mxu0 %v9914_v39  ;;  %13947 = vst [vmem:[#allocation9_spill] sm:$0xff] %v11017_v21  ;;  %v8201_v43 = vadd.f32 %v8200_v27, %v8199_v52  ;;  %v9917_v21 = vld [vmem:[#allocation4 + $0x388] sm:$0xff]   ;;  %v13951_v27 = vld [vmem:[#allocation37_spill] sm:$0xff] }
 0x154   : > { %v8092_v16 = vadd.f32 %v8091_v29, %v8090_v35  ;;  %v8202_v29 = vpop.f32.mrf.mxu1  ;;  %8806 = vmatpush3.bf16.msra.mxu1 %v9913_v33 }
 0x155   : > { %v8093_v51 = vpop.f32.mrf.mxu0  ;;  %2811 = vmatmul.mubr.bf16.gmra.mxu0 %v13948_v59  ;;  %v11022_v14 = vadd.f32 %v8201_v43, %v8089_v48  ;;  %8807 = vmatprep.subr.bf16.mxu1 %v9915_v63  ;;  %v13950_v48 = vld [vmem:[#allocation36_spill] sm:$0xff] }
 0x156   : > { %2818 = vmatprep.mubr.bf16.mxu0 %v13949_v45  ;;  %8696 = vmatpush3.bf16.msra.mxu0 %v9916_v36  ;;  %v8203_v55 = vpop.f32.mrf.mxu1 }
 0x157   : > { %v8094_v39 = vpop.f32.mrf.mxu0  ;;  %8697 = vmatprep.subr.bf16.mxu0 %v9918_v9  ;;  %v8204_v50 = vadd.f32 %v8203_v55, %v8202_v29  ;;  %2972 = vmatmul.mubr.bf16.gmra.mxu1 %v10878_v17 }
 0x158   : > { %v8095_v26 = vadd.f32 %v8094_v39, %v8093_v51  ;;  %v8205_v36 = vpop.f32.mrf.mxu1  ;;  %2979 = vmatprep.mubr.bf16.mxu1 %v10881_v54  ;;  %8808 = vmatpush3.bf16.msra.mxu1 %v9917_v21  ;;  %v9921_v39 = vld [vmem:[#allocation4 + $0x380] sm:$0xff]  }
 0x159   : > { %v8096_v35 = vpop.f32.mrf.mxu0  ;;  %v11025_v9 = vadd.f32 %v8204_v50, %v8092_v16  ;;  %8809 = vmatprep.subr.bf16.mxu1 %v9919_v6  ;;  %v13954_v6 = vld [vmem:[#allocation41_spill] sm:$0xff] }
 0x15a   : > { %8698 = vmatpush3.bf16.msra.mxu0 %v9920_v32  ;;  %v8206_v51 = vpop.f32.mrf.mxu1 }
 0x15b   : > { %v8097_v24 = vpop.f32.mrf.mxu0  ;;  %v8207_v32 = vadd.f32 %v8206_v51, %v8205_v36  ;;  %v13953_v36 = vld [vmem:[#allocation39_spill] sm:$0xff] }
 0x15c   : > { %v8098_v52 = vadd.f32 %v8097_v24, %v8096_v35  ;;  %v8208_v33 = vpop.f32.mrf.mxu1  ;;  %8810 = vmatpush3.bf16.msra.mxu1 %v9921_v39 }
 0x15d   : > { %v8099_v38 = vpop.f32.mrf.mxu0  ;;  %2819 = vmatmul.mubr.bf16.gmra.mxu0 %v13950_v48  ;;  %v11030_v24 = vadd.f32 %v8207_v32, %v8095_v26 }
 0x15e   : > { %2826 = vmatprep.mubr.bf16.mxu0 %v13951_v27  ;;  %v8209_v50 = vpop.f32.mrf.mxu1 }
 0x15f   : > { %v8100_v43 = vpop.f32.mrf.mxu0  ;;  %v8210_v16 = vadd.f32 %v8209_v50, %v8208_v33  ;;  %2980 = vmatmul.mubr.bf16.gmra.mxu1 %v10888_v56 }
 0x160   : > { %v8101_v29 = vadd.f32 %v8100_v43, %v8099_v38  ;;  %v8211_v55 = vpop.f32.mrf.mxu1  ;;  %2987 = vmatprep.mubr.bf16.mxu1 %v10891_v1 }
 0x161   : > { %v8102_v63 = vpop.f32.mrf.mxu0  ;;  %v11033_v17 = vadd.f32 %v8210_v16, %v8098_v52 }
 0x162   : > { %v8212_v38 = vpop.f32.mrf.mxu1 }
 0x163   : > { %v8103_v35 = vpop.f32.mrf.mxu0  ;;  %13952 = vst [vmem:[#allocation17_spill] sm:$0xff] %v11033_v17  ;;  %v8213_v26 = vadd.f32 %v8212_v38, %v8211_v55  ;;  %v13957_v17 = vld [vmem:[#allocation44_spill] sm:$0xff]  ;;  %v13958_v38 = vld [vmem:[#allocation45_spill] sm:$0xff] }
 0x164   : > { %v8104_v54 = vadd.f32 %v8103_v35, %v8102_v63  ;;  %v8214_v32 = vpop.f32.mrf.mxu1 }
 0x165   : > { %v8105_v21 = vpop.f32.mrf.mxu0  ;;  %2827 = vmatmul.mubr.bf16.gmra.mxu0 %v13953_v36  ;;  %v11038_v33 = vadd.f32 %v8213_v26, %v8101_v29 }
 0x166   : > { %2834 = vmatprep.mubr.bf16.mxu0 %v13954_v6  ;;  %v8215_v50 = vpop.f32.mrf.mxu1 }
 0x167   : > { %v8106_v51 = vpop.f32.mrf.mxu0  ;;  %13955 = vst [vmem:[#allocation18_spill] sm:$0xff] %v11038_v33  ;;  %v8216_v56 = vadd.f32 %v8215_v50, %v8214_v32  ;;  %2988 = vmatmul.mubr.bf16.gmra.mxu1 %v10901_v62 }
 0x168   : > { %v8107_v43 = vadd.f32 %v8106_v51, %v8105_v21  ;;  %v8217_v52 = vpop.f32.mrf.mxu1  ;;  %2995 = vmatprep.mubr.bf16.mxu1 %v10621_v13 }
 0x169   : > { %v8108_v39 = vpop.f32.mrf.mxu0  ;;  %v11041_v35 = vadd.f32 %v8216_v56, %v8104_v54 }
 0x16a   : > { %v8218_v55 = vpop.f32.mrf.mxu1 }
 0x16b   : > { %v8109_v63 = vpop.f32.mrf.mxu0  ;;  %13956 = vst [vmem:[#allocation19_spill] sm:$0xff] %v11041_v35  ;;  %v8219_v29 = vadd.f32 %v8218_v55, %v8217_v52  ;;  %v13961_v35 = vld [vmem:[#allocation49_spill] sm:$0xff]  ;;  %v13962_v55 = vld [vmem:[#allocation50_spill] sm:$0xff] }
 0x16c   : > { %v8110_v16 = vadd.f32 %v8109_v63, %v8108_v39  ;;  %v8220_v26 = vpop.f32.mrf.mxu1 }
 0x16d   : > { %v8111_v1 = vpop.f32.mrf.mxu0  ;;  %2835 = vmatmul.mubr.bf16.gmra.mxu0 %v13957_v17  ;;  %v11046_v32 = vadd.f32 %v8219_v29, %v8107_v43 }
 0x16e   : > { %2842 = vmatprep.mubr.bf16.mxu0 %v13958_v38  ;;  %v8221_v33 = vpop.f32.mrf.mxu1 }
 0x16f   : > { %v8112_v21 = vpop.f32.mrf.mxu0  ;;  %13959 = vst [vmem:[#allocation98_spill] sm:$0xff] %v11046_v32  ;;  %v8222_v62 = vadd.f32 %v8221_v33, %v8220_v26  ;;  %2996 = vmatmul.mubr.bf16.gmra.mxu1 %v10624_v2 }
 0x170   : > { %v8113_v51 = vadd.f32 %v8112_v21, %v8111_v1  ;;  %v8223_v54 = vpop.f32.mrf.mxu1  ;;  %3003 = vmatprep.mubr.bf16.mxu1 %v10629_v19 }
 0x171   : > { %v8114_v50 = vpop.f32.mrf.mxu0  ;;  %v11049_v63 = vadd.f32 %v8222_v62, %v8110_v16 }
 0x172   : > { %v8224_v52 = vpop.f32.mrf.mxu1 }
 0x173   : > { %v8115_v39 = vpop.f32.mrf.mxu0  ;;  %13960 = vst [vmem:[#allocation24_spill] sm:$0xff] %v11049_v63  ;;  %v8225_v1 = vadd.f32 %v8224_v52, %v8223_v54  ;;  %v13965_v63 = vld [vmem:[#allocation55_spill] sm:$0xff]  ;;  %v13966_v52 = vld [vmem:[#allocation56_spill] sm:$0xff] }
 0x174   : > { %v8116_v56 = vadd.f32 %v8115_v39, %v8114_v50  ;;  %v8226_v29 = vpop.f32.mrf.mxu1 }
 0x175   : > { %v8117_v13 = vpop.f32.mrf.mxu0  ;;  %2843 = vmatmul.mubr.bf16.gmra.mxu0 %v13961_v35  ;;  %v11054_v33 = vadd.f32 %v8225_v1, %v8113_v51 }
 0x176   : > { %2850 = vmatprep.mubr.bf16.mxu0 %v13962_v55  ;;  %v8227_v32 = vpop.f32.mrf.mxu1 }
 0x177   : > { %v8118_v43 = vpop.f32.mrf.mxu0  ;;  %13963 = vst [vmem:[#allocation26_spill] sm:$0xff] %v11054_v33  ;;  %v8228_v2 = vadd.f32 %v8227_v32, %v8226_v29  ;;  %3004 = vmatmul.mubr.bf16.gmra.mxu1 %v10634_v15  ;;  %v9922_v33 = vld [vmem:[#allocation4 + $0x478] sm:$0xff]  }
 0x178   : > { %v8119_v21 = vadd.f32 %v8118_v43, %v8117_v13  ;;  %v8229_v62 = vpop.f32.mrf.mxu1  ;;  %3011 = vmatprep.mubr.bf16.mxu1 %v10641_v10  ;;  %8907 = vmatprep.subr.bf16.mxu0 %v9922_v33 }
 0x179   : > { %v8120_v26 = vpop.f32.mrf.mxu0  ;;  %v11057_v39 = vadd.f32 %v8228_v2, %v8116_v56 }
 0x17a   : > { %v8230_v54 = vpop.f32.mrf.mxu1 }
 0x17b   : > { %v8121_v50 = vpop.f32.mrf.mxu0  ;;  %13964 = vst [vmem:[#allocation30_spill] sm:$0xff] %v11057_v39  ;;  %v8231_v13 = vadd.f32 %v8230_v54, %v8229_v62 }
 0x17c   : > { %v8122_v16 = vadd.f32 %v8121_v50, %v8120_v26  ;;  %v8232_v1 = vpop.f32.mrf.mxu1 }
 0x17d   : > { %v8251_v19 = vpop.f32.mrf.mxu0  ;;  %2851 = vmatmul.mubr.bf16.gmra.mxu0 %v13965_v63  ;;  %v11062_v32 = vadd.f32 %v8231_v13, %v8119_v21  ;;  %v13969_v13 = vld [vmem:[#allocation61_spill] sm:$0xff] }
 0x17e   : > { %2858 = vmatprep.mubr.bf16.mxu0 %v13966_v52  ;;  %v8233_v15 = vpop.f32.mrf.mxu1 }
 0x17f   : > { %v8252_v51 = vpop.f32.mrf.mxu0  ;;  %v8234_v56 = vadd.f32 %v8233_v15, %v8232_v1  ;;  %3012 = vmatmul.mubr.bf16.gmra.mxu1 %v10652_v25 }
 0x180   : > { %v8253_v43 = vadd.f32 %v8252_v51, %v8251_v19  ;;  %v8363_v50 = vpop.f32.mrf.mxu1  ;;  %3019 = vmatprep.mubr.bf16.mxu1 %v10657_v61  ;;  %v13968_v19 = vld [vmem:[#allocation58_spill] sm:$0xff] }
 0x181   : > { %v8254_v29 = vpop.f32.mrf.mxu0  ;;  %v11066_v39 = vadd.f32 %v8234_v56, %v8122_v16 }
 0x182   : > { %v2179_v2 = vadd.f32 %v8253_v43, %v10927_v0  ;;  %v8364_v21 = vpop.f32.mrf.mxu1 }
 0x183   : > { %v8255_v26 = vpop.f32.mrf.mxu0  ;;  %13967 = vst [vmem:[#allocation32_spill] sm:$0xff] %v11066_v39  ;;  %v8365_v0 = vadd.f32 %v8364_v21, %v8363_v50 }
 0x184   : > { %v8256_v10 = vadd.f32 %v8255_v26, %v8254_v29  ;;  %v8366_v51 = vpop.f32.mrf.mxu1 }
 0x185   : > { %v8257_v62 = vpop.f32.mrf.mxu0  ;;  %2859 = vmatmul.mubr.bf16.gmra.mxu0 %v13968_v19  ;;  %v11072_v1 = vadd.f32 %v8365_v0, %v2179_v2 }
 0x186   : > { %v2182_v54 = vadd.f32 %v8256_v10, %v10930_v53  ;;  %2866 = vmatprep.mubr.bf16.mxu0 %v13969_v13  ;;  %v8367_v29 = vpop.f32.mrf.mxu1  ;;  %v13970_v53 = vld [vmem:[#allocation68_spill] sm:$0xff] }
 0x187   : > { %v8258_v15 = vpop.f32.mrf.mxu0  ;;  %v8368_v56 = vadd.f32 %v8367_v29, %v8366_v51  ;;  %3020 = vmatmul.mubr.bf16.gmra.mxu1 %v10660_v8 }
 0x188   : > { %v8259_v33 = vadd.f32 %v8258_v15, %v8257_v62  ;;  %v8369_v61 = vpop.f32.mrf.mxu1  ;;  %3027 = vmatprep.mubr.bf16.mxu1 %v10664_v28  ;;  %v13971_v62 = vld [vmem:[#allocation70_spill] sm:$0xff] }
 0x189   : > { %v8260_v43 = vpop.f32.mrf.mxu0  ;;  %v11076_v39 = vadd.f32 %v8368_v56, %v2182_v54 }
 0x18a   : > { %v2187_v16 = vadd.f32 %v8259_v33, %v10935_v58  ;;  %v8370_v50 = vpop.f32.mrf.mxu1 }
 0x18b   : > { %v8261_v26 = vpop.f32.mrf.mxu0  ;;  %v8371_v21 = vadd.f32 %v8370_v50, %v8369_v61  ;;  %v13972_v61 = vld [vmem:[#allocation71_spill] sm:$0xff] }
 0x18c   : > { %v8262_v25 = vadd.f32 %v8261_v26, %v8260_v43  ;;  %v8372_v0 = vpop.f32.mrf.mxu1 }
 0x18d   : > { %v8263_v10 = vpop.f32.mrf.mxu0  ;;  %2867 = vmatmul.mubr.bf16.gmra.mxu0 %v13970_v53  ;;  %v11082_v51 = vadd.f32 %v8371_v21, %v2187_v16 }
 0x18e   : > { %v2190_v2 = vadd.f32 %v8262_v25, %v10938_v4  ;;  %2874 = vmatprep.mubr.bf16.mxu0 %v13971_v62  ;;  %v8373_v43 = vpop.f32.mrf.mxu1 }
 0x18f   : > { %v8264_v58 = vpop.f32.mrf.mxu0  ;;  %v8374_v29 = vadd.f32 %v8373_v43, %v8372_v0  ;;  %3028 = vmatmul.mubr.bf16.gmra.mxu1 %v10669_v7 }
 0x190   : > { %v8265_v15 = vadd.f32 %v8264_v58, %v8263_v10  ;;  %v8375_v26 = vpop.f32.mrf.mxu1  ;;  %3035 = vmatprep.mubr.bf16.mxu1 %v10679_v60  ;;  %v13973_v10 = vld [vmem:[#allocation72_spill] sm:$0xff] }
 0x191   : > { %v8266_v33 = vpop.f32.mrf.mxu0  ;;  %v11086_v8 = vadd.f32 %v8374_v29, %v2190_v2 }
 0x192   : > { %v2195_v54 = vadd.f32 %v8265_v15, %v10943_v47  ;;  %v8376_v4 = vpop.f32.mrf.mxu1 }
 0x193   : > { %v8267_v56 = vpop.f32.mrf.mxu0  ;;  %v8377_v50 = vadd.f32 %v8376_v4, %v8375_v26 }
 0x194   : > { %v8268_v28 = vadd.f32 %v8267_v56, %v8266_v33  ;;  %v8378_v21 = vpop.f32.mrf.mxu1 }
 0x195   : > { %v8269_v25 = vpop.f32.mrf.mxu0  ;;  %2875 = vmatmul.mubr.bf16.gmra.mxu0 %v13972_v61  ;;  %v11092_v0 = vadd.f32 %v8377_v50, %v2195_v54 }
 0x196   : > { %v2198_v16 = vadd.f32 %v8268_v28, %v10946_v3  ;;  %2882 = vmatprep.mubr.bf16.mxu0 %v13973_v10  ;;  %v8379_v33 = vpop.f32.mrf.mxu1  ;;  %v13974_v3 = vld [vmem:[#allocation73_spill] sm:$0xff] }
 0x197   : > { %v8270_v47 = vpop.f32.mrf.mxu0  ;;  %v8380_v43 = vadd.f32 %v8379_v33, %v8378_v21  ;;  %3036 = vmatmul.mubr.bf16.gmra.mxu1 %v10687_v18 }
 0x198   : > { %v8271_v58 = vadd.f32 %v8270_v47, %v8269_v25  ;;  %v8381_v56 = vpop.f32.mrf.mxu1  ;;  %3043 = vmatprep.mubr.bf16.mxu1 %v10696_v31  ;;  %v13975_v25 = vld [vmem:[#allocation84_spill] sm:$0xff] }
 0x199   : > { %v8272_v15 = vpop.f32.mrf.mxu0  ;;  %v11096_v7 = vadd.f32 %v8380_v43, %v2198_v16 }
 0x19a   : > { %v2203_v2 = vadd.f32 %v8271_v58, %v10951_v40  ;;  %v8382_v26 = vpop.f32.mrf.mxu1 }
 0x19b   : > { %v8273_v29 = vpop.f32.mrf.mxu0  ;;  %v8383_v4 = vadd.f32 %v8382_v26, %v8381_v56  ;;  %v13979_v56 = vld [vmem:[#allocation89_spill] sm:$0xff] }
 0x19c   : > { %v8274_v60 = vadd.f32 %v8273_v29, %v8272_v15  ;;  %v8384_v50 = vpop.f32.mrf.mxu1 }
 0x19d   : > { %v8275_v28 = vpop.f32.mrf.mxu0  ;;  %2883 = vmatmul.mubr.bf16.gmra.mxu0 %v13974_v3  ;;  %v11102_v21 = vadd.f32 %v8383_v4, %v2203_v2  ;;  %v13980_v2 = vld [vmem:[#allocation7_spill] sm:$0xff] }
 0x19e   : > { %v2206_v54 = vadd.f32 %v8274_v60, %v10955_v41  ;;  %2890 = vmatprep.mubr.bf16.mxu0 %v13975_v25  ;;  %v8385_v15 = vpop.f32.mrf.mxu1  ;;  %v13978_v60 = vld [vmem:[#allocation90_spill] sm:$0xff]  ;;  %v13981_v4 = vld [vmem:[#allocation63_spill] sm:$0xff] }
 0x19f   : > { %v8276_v40 = vpop.f32.mrf.mxu0  ;;  %13976 = vst [vmem:[#allocation36_spill] sm:$0xff] %v11102_v21  ;;  %v8386_v33 = vadd.f32 %v8385_v15, %v8384_v50  ;;  %3044 = vmatmul.mubr.bf16.gmra.mxu1 %v10699_v30 }
 0x1a0   : > { %v8277_v47 = vadd.f32 %v8276_v40, %v8275_v28  ;;  %v8387_v29 = vpop.f32.mrf.mxu1  ;;  %3051 = vmatprep.mubr.bf16.mxu1 %v13978_v60 }
 0x1a1   : > { %v8278_v58 = vpop.f32.mrf.mxu0  ;;  %v11106_v18 = vadd.f32 %v8386_v33, %v2206_v54 }
 0x1a2   : > { %v2211_v16 = vadd.f32 %v8277_v47, %v10963_v22  ;;  %v8388_v28 = vpop.f32.mrf.mxu1 }
 0x1a3   : > { %v8279_v43 = vpop.f32.mrf.mxu0  ;;  %13977 = vst [vmem:[#allocation37_spill] sm:$0xff] %v11106_v18  ;;  %v8389_v40 = vadd.f32 %v8388_v28, %v8387_v29  ;;  %v13982_v18 = vld [vmem:[#allocation91_spill] sm:$0xff]  ;;  %v13985_v28 = vld [vmem:[#allocation92_spill] sm:$0xff] }
 0x1a4   : > { %v8280_v31 = vadd.f32 %v8279_v43, %v8278_v58  ;;  %v8390_v50 = vpop.f32.mrf.mxu1 }
 0x1a5   : > { %v8281_v41 = vpop.f32.mrf.mxu0  ;;  %2891 = vmatmul.mubr.bf16.gmra.mxu0 %v13979_v56  ;;  %v11112_v15 = vadd.f32 %v8389_v40, %v2211_v16 }
 0x1a6   : > { %v2214_v26 = vadd.f32 %v8280_v31, %v13980_v2  ;;  %2898 = vmatprep.mubr.bf16.mxu0 %v13981_v4  ;;  %v8391_v58 = vpop.f32.mrf.mxu1  ;;  %v13984_v31 = vld [vmem:[#allocation94_spill] sm:$0xff]  ;;  %v13986_v2 = vld [vmem:[#allocation93_spill] sm:$0xff] }
 0x1a7   : > { %v8282_v22 = vpop.f32.mrf.mxu0  ;;  %v8392_v33 = vadd.f32 %v8391_v58, %v8390_v50  ;;  %3052 = vmatmul.mubr.bf16.gmra.mxu1 %v13982_v18  ;;  %v13987_v18 = vld [vmem:[#allocation95_spill] sm:$0xff] }
 0x1a8   : > { %v8283_v47 = vadd.f32 %v8282_v22, %v8281_v41  ;;  %v8393_v60 = vpop.f32.mrf.mxu1  ;;  %3059 = vmatprep.mubr.bf16.mxu1 %v13984_v31 }
 0x1a9   : > { %v8284_v30 = vpop.f32.mrf.mxu0  ;;  %v11116_v21 = vadd.f32 %v8392_v33, %v2214_v26 }
 0x1aa   : > { %v2219_v54 = vadd.f32 %v8283_v47, %v10977_v20  ;;  %v8394_v41 = vpop.f32.mrf.mxu1 }
 0x1ab   : > { %v8285_v43 = vpop.f32.mrf.mxu0  ;;  %13983 = vst [vmem:[#allocation39_spill] sm:$0xff] %v11116_v21  ;;  %v8395_v40 = vadd.f32 %v8394_v41, %v8393_v60  ;;  %v13991_v41 = vld [vmem:[#allocation11_spill] sm:$0xff] }
 0x1ac   : > { %v8286_v56 = vadd.f32 %v8285_v43, %v8284_v30  ;;  %v8396_v22 = vpop.f32.mrf.mxu1 }
 0x1ad   : > { %v8287_v29 = vpop.f32.mrf.mxu0  ;;  %2899 = vmatmul.mubr.bf16.gmra.mxu0 %v13985_v28  ;;  %v11122_v47 = vadd.f32 %v8395_v40, %v2219_v54 }
 0x1ae   : > { %v2222_v16 = vadd.f32 %v8286_v56, %v10984_v37  ;;  %2906 = vmatprep.mubr.bf16.mxu0 %v13986_v2  ;;  %v8397_v30 = vpop.f32.mrf.mxu1  ;;  %v13989_v37 = vld [vmem:[#allocation97_spill] sm:$0xff]  ;;  %v13990_v56 = vld [vmem:[#allocation8_spill] sm:$0xff] }
 0x1af   : > { %v8288_v20 = vpop.f32.mrf.mxu0  ;;  %v8398_v33 = vadd.f32 %v8397_v30, %v8396_v22  ;;  %3060 = vmatmul.mubr.bf16.gmra.mxu1 %v13987_v18  ;;  %v9924_v18 = vld [vmem:[#allocation4 + $0x470] sm:$0xff]  }
 0x1b0   : > { %v8289_v50 = vadd.f32 %v8288_v20, %v8287_v29  ;;  %v8399_v31 = vpop.f32.mrf.mxu1  ;;  %3067 = vmatprep.mubr.bf16.mxu1 %v13989_v37 }
 0x1b1   : > { %v8290_v58 = vpop.f32.mrf.mxu0  ;;  %v11126_v28 = vadd.f32 %v8398_v33, %v2222_v16  ;;  %v9923_v33 = vld [vmem:[#allocation4 + $0x438] sm:$0xff]  }
 0x1b2   : > { %v2227_v26 = vadd.f32 %v8289_v50, %v10989_v12  ;;  %v8400_v29 = vpop.f32.mrf.mxu1 }
 0x1b3   : > { %v8291_v43 = vpop.f32.mrf.mxu0  ;;  %13988 = vst [vmem:[#allocation41_spill] sm:$0xff] %v11126_v28  ;;  %v8401_v40 = vadd.f32 %v8400_v29, %v8399_v31 }
 0x1b4   : > { %v8292_v21 = vadd.f32 %v8291_v43, %v8290_v58  ;;  %v8402_v20 = vpop.f32.mrf.mxu1 }
 0x1b5   : > { %v8293_v60 = vpop.f32.mrf.mxu0  ;;  %2907 = vmatmul.mubr.bf16.gmra.mxu0 %v13990_v56  ;;  %v11132_v50 = vadd.f32 %v8401_v40, %v2227_v26  ;;  %v13992_v56 = vld [vmem:[#allocation10_spill] sm:$0xff] }
 0x1b6   : > { %v2230_v54 = vadd.f32 %v8292_v21, %v10994_v11  ;;  %3493 = vmatprep.mubr.bf16.mxu0 %v13991_v41  ;;  %v8403_v58 = vpop.f32.mrf.mxu1  ;;  %v13994_v41 = vld [vmem:[#allocation15_spill] sm:$0xff] }
 0x1b7   : > { %v8294_v12 = vpop.f32.mrf.mxu0  ;;  %v8404_v43 = vadd.f32 %v8403_v58, %v8402_v20  ;;  %3068 = vmatmul.mubr.bf16.gmra.mxu1 %v13992_v56  ;;  %v9926_v20 = vld [vmem:[#allocation4 + $0x468] sm:$0xff]  }
 0x1b8   : > { %v8295_v22 = vadd.f32 %v8294_v12, %v8293_v60  ;;  %v8405_v28 = vpop.f32.mrf.mxu1  ;;  %3654 = vmatprep.mubr.bf16.mxu1 %v13942_v42  ;;  %v13993_v60 = vld [vmem:[#allocation13_spill] sm:$0xff] }
 0x1b9   : > { %v8296_v30 = vpop.f32.mrf.mxu0  ;;  %v11136_v21 = vadd.f32 %v8404_v43, %v2230_v54  ;;  %v9927_v43 = vld [vmem:[#allocation4 + $0x428] sm:$0xff]  }
 0x1ba   : > { %v2235_v16 = vadd.f32 %v8295_v22, %v10998_v44  ;;  %v8406_v26 = vpop.f32.mrf.mxu1  ;;  %v9925_v44 = vld [vmem:[#allocation4 + $0x430] sm:$0xff]  }
 0x1bb   : > { %v8297_v37 = vpop.f32.mrf.mxu0  ;;  %v8407_v40 = vadd.f32 %v8406_v26, %v8405_v28 }
 0x1bc   : > { %v8298_v11 = vadd.f32 %v8297_v37, %v8296_v30  ;;  %v8408_v22 = vpop.f32.mrf.mxu1 }
 0x1bd   : > { %v8299_v31 = vpop.f32.mrf.mxu0  ;;  %3494 = vmatmul.mubr.bf16.vlgmr.msra.gmra.mxu0 %v13993_v60  ;;  %v11142_v54 = vadd.f32 %v8407_v40, %v2235_v16 }
 0x1be   : > { %v2238_v29 = vadd.f32 %v8298_v11, %v11001_v34  ;;  %3501 = vmatprep.mubr.bf16.mxu0 %v13994_v41  ;;  %8908 = vmatpush3.bf16.msra.mxu0 %v9923_v33  ;;  %v8409_v42 = vpop.f32.mrf.mxu1  ;;  %v9928_v11 = vld [vmem:[#allocation4 + $0x460] sm:$0xff]   ;;  %v13996_v41 = vld [vmem:[#allocation21_spill] sm:$0xff] }
 0x1bf   : > { %v8300_v12 = vpop.f32.mrf.mxu0  ;;  %8909 = vmatprep.subr.bf16.mxu0 %v9924_v18  ;;  %v8410_v60 = vadd.f32 %v8409_v42, %v8408_v22  ;;  %3655 = vmatmul.mubr.bf16.vlgmr.msra.gmra.mxu1 %v13945_v46  ;;  %v9931_v42 = vld [vmem:[#allocation4 + $0x418] sm:$0xff]  }
 0x1c0   : > { %v8301_v37 = vadd.f32 %v8300_v12, %v8299_v31  ;;  %v8411_v33 = vpop.f32.mrf.mxu1  ;;  %3662 = vmatprep.mubr.bf16.mxu1 %v13946_v49  ;;  %v13995_v31 = vld [vmem:[#allocation20_spill] sm:$0xff] }
 0x1c1   : > { %v8302_v30 = vpop.f32.mrf.mxu0  ;;  %v11146_v18 = vadd.f32 %v8410_v60, %v2238_v29 }
 0x1c2   : > { %v2243_v58 = vadd.f32 %v8301_v37, %v11006_v5  ;;  %8910 = vmatpush3.bf16.msra.mxu0 %v9925_v44  ;;  %v8412_v26 = vpop.f32.mrf.mxu1  ;;  %v9929_v44 = vld [vmem:[#allocation4 + $0x420] sm:$0xff]  }
 0x1c3   : > { %v8303_v34 = vpop.f32.mrf.mxu0  ;;  %8911 = vmatprep.subr.bf16.mxu0 %v9926_v20  ;;  %v8413_v40 = vadd.f32 %v8412_v26, %v8411_v33  ;;  %v9930_v20 = vld [vmem:[#allocation4 + $0x458] sm:$0xff]   ;;  %v13999_v26 = vld [vmem:[#allocation27_spill] sm:$0xff] }
 0x1c4   : > { %v8304_v28 = vadd.f32 %v8303_v34, %v8302_v30  ;;  %v8414_v46 = vpop.f32.mrf.mxu1  ;;  %v9932_v34 = vld [vmem:[#allocation4 + $0x450] sm:$0xff]  }
 0x1c5   : > { %v8305_v16 = vpop.f32.mrf.mxu0  ;;  %3502 = vmatmul.mubr.bf16.gmra.mxu0 %v13995_v31  ;;  %v11152_v29 = vadd.f32 %v8413_v40, %v2243_v58  ;;  %v13998_v31 = vld [vmem:[#allocation9_spill] sm:$0xff] }
 0x1c6   : > { %v2246_v5 = vadd.f32 %v8304_v28, %v11009_v57  ;;  %3509 = vmatprep.mubr.bf16.mxu0 %v13996_v41  ;;  %8912 = vmatpush3.bf16.msra.mxu0 %v9927_v43  ;;  %v8415_v49 = vpop.f32.mrf.mxu1  ;;  %v13997_v28 = vld [vmem:[#allocation25_spill] sm:$0xff] }
 0x1c7   : > { %v8306_v12 = vpop.f32.mrf.mxu0  ;;  %8913 = vmatprep.subr.bf16.mxu0 %v9928_v11  ;;  %v8416_v60 = vadd.f32 %v8415_v49, %v8414_v46  ;;  %3663 = vmatmul.mubr.bf16.gmra.mxu1 %v13948_v59  ;;  %v9933_v41 = vld [vmem:[#allocation4 + $0x410] sm:$0xff]  }
 0x1c8   : > { %v8307_v22 = vadd.f32 %v8306_v12, %v8305_v16  ;;  %v8417_v43 = vpop.f32.mrf.mxu1  ;;  %3670 = vmatprep.mubr.bf16.mxu1 %v13949_v45  ;;  %v9938_v12 = vld [vmem:[#allocation4 + $0x448] sm:$0xff]  }
 0x1c9   : > { %v8308_v37 = vpop.f32.mrf.mxu0  ;;  %v11156_v11 = vadd.f32 %v8416_v60, %v2246_v5 }
 0x1ca   : > { %v2251_v30 = vadd.f32 %v8307_v22, %v11014_v23  ;;  %8914 = vmatpush3.bf16.msra.mxu0 %v9929_v44  ;;  %v8418_v16 = vpop.f32.mrf.mxu1 }
 0x1cb   : > { %v8309_v57 = vpop.f32.mrf.mxu0  ;;  %8915 = vmatprep.subr.bf16.mxu0 %v9930_v20  ;;  %v8419_v44 = vadd.f32 %v8418_v16, %v8417_v43  ;;  %v9941_v16 = vld [vmem:[#allocation4 + $0x400] sm:$0xff]  }
 0x1cc   : > { %v8310_v33 = vadd.f32 %v8309_v57, %v8308_v37  ;;  %v8420_v59 = vpop.f32.mrf.mxu1  ;;  %v9939_v37 = vld [vmem:[#allocation4 + $0x408] sm:$0xff]   ;;  %v9940_v57 = vld [vmem:[#allocation4 + $0x440] sm:$0xff]  }
 0x1cd   : > { %v8311_v58 = vpop.f32.mrf.mxu0  ;;  %3510 = vmatmul.mubr.bf16.gmra.mxu0 %v13997_v28  ;;  %v11162_v5 = vadd.f32 %v8419_v44, %v2251_v30  ;;  %v14001_v28 = vld [vmem:[#allocation33_spill] sm:$0xff] }
 0x1ce   : > { %v2254_v23 = vadd.f32 %v8310_v33, %v13998_v31  ;;  %3517 = vmatprep.mubr.bf16.mxu0 %v13999_v26  ;;  %8916 = vmatpush3.bf16.msra.mxu0 %v9931_v42  ;;  %v8421_v45 = vpop.f32.mrf.mxu1  ;;  %v14000_v33 = vld [vmem:[#allocation31_spill] sm:$0xff] }
 0x1cf   : > { %v8312_v40 = vpop.f32.mrf.mxu0  ;;  %8917 = vmatprep.subr.bf16.mxu0 %v9932_v34  ;;  %v8422_v49 = vadd.f32 %v8421_v45, %v8420_v59  ;;  %3671 = vmatmul.mubr.bf16.gmra.mxu1 %v13950_v48 }
 0x1d0   : > { %v8313_v20 = vadd.f32 %v8312_v40, %v8311_v58  ;;  %v8423_v42 = vpop.f32.mrf.mxu1  ;;  %3678 = vmatprep.mubr.bf16.mxu1 %v13951_v27 }
 0x1d1   : > { %v8314_v46 = vpop.f32.mrf.mxu0  ;;  %v11166_v34 = vadd.f32 %v8422_v49, %v2254_v23  ;;  %v14003_v49 = vld [vmem:[#allocation17_spill] sm:$0xff] }
 0x1d2   : > { %v2259_v22 = vadd.f32 %v8313_v20, %v11022_v14  ;;  %8918 = vmatpush3.bf16.msra.mxu0 %v9933_v41  ;;  %v8424_v58 = vpop.f32.mrf.mxu1 }
 0x1d3   : > { %v8315_v60 = vpop.f32.mrf.mxu0  ;;  %8919 = vmatprep.subr.bf16.mxu0 %v9938_v12  ;;  %v8425_v31 = vadd.f32 %v8424_v58, %v8423_v42 }
 0x1d4   : > { %v8316_v43 = vadd.f32 %v8315_v60, %v8314_v46  ;;  %v8426_v41 = vpop.f32.mrf.mxu1 }
 0x1d5   : > { %v8317_v30 = vpop.f32.mrf.mxu0  ;;  %3518 = vmatmul.mubr.bf16.gmra.mxu0 %v14000_v33  ;;  %v11172_v44 = vadd.f32 %v8425_v31, %v2259_v22 }
 0x1d6   : > { %v2262_v14 = vadd.f32 %v8316_v43, %v11025_v9  ;;  %3525 = vmatprep.mubr.bf16.mxu0 %v14001_v28  ;;  %8920 = vmatpush3.bf16.msra.mxu0 %v9939_v37  ;;  %v8427_v40 = vpop.f32.mrf.mxu1  ;;  %v14002_v37 = vld [vmem:[#allocation35_spill] sm:$0xff] }
 0x1d7   : > { %v8318_v26 = vpop.f32.mrf.mxu0  ;;  %8921 = vmatprep.subr.bf16.mxu0 %v9940_v57  ;;  %v8428_v12 = vadd.f32 %v8427_v40, %v8426_v41  ;;  %3679 = vmatmul.mubr.bf16.gmra.mxu1 %v13953_v36  ;;  %v14004_v57 = vld [vmem:[#allocation38_spill] sm:$0xff] }
 0x1d8   : > { %v8319_v48 = vadd.f32 %v8318_v26, %v8317_v30  ;;  %v8429_v20 = vpop.f32.mrf.mxu1  ;;  %3686 = vmatprep.mubr.bf16.mxu1 %v13954_v6 }
 0x1d9   : > { %v8320_v23 = vpop.f32.mrf.mxu0  ;;  %v11176_v46 = vadd.f32 %v8428_v12, %v2262_v14  ;;  %v14005_v14 = vld [vmem:[#allocation18_spill] sm:$0xff] }
 0x1da   : > { %v2267_v27 = vadd.f32 %v8319_v48, %v11030_v24  ;;  %8922 = vmatpush3.bf16.msra.mxu0 %v9941_v16  ;;  %v8430_v22 = vpop.f32.mrf.mxu1 }
 0x1db   : > { %v8321_v59 = vpop.f32.mrf.mxu0  ;;  %v8431_v24 = vadd.f32 %v8430_v22, %v8429_v20 }
 0x1dc   : > { %v8322_v9 = vadd.f32 %v8321_v59, %v8320_v23  ;;  %v8432_v43 = vpop.f32.mrf.mxu1  ;;  %v14006_v23 = vld [vmem:[#allocation40_spill] sm:$0xff]  ;;  %v14008_v59 = vld [vmem:[#allocation42_spill] sm:$0xff] }
 0x1dd   : > { %v8323_v45 = vpop.f32.mrf.mxu0  ;;  %3526 = vmatmul.mubr.bf16.gmra.mxu0 %v14002_v37  ;;  %v11182_v33 = vadd.f32 %v8431_v24, %v2267_v27  ;;  %v14007_v27 = vld [vmem:[#allocation19_spill] sm:$0xff] }
 0x1de   : > { %v2270_v60 = vadd.f32 %v8322_v9, %v14003_v49  ;;  %3533 = vmatprep.mubr.bf16.mxu0 %v14004_v57  ;;  %v8433_v58 = vpop.f32.mrf.mxu1 }
 0x1df   : > { %v8324_v42 = vpop.f32.mrf.mxu0  ;;  %v8434_v16 = vadd.f32 %v8433_v58, %v8432_v43  ;;  %3687 = vmatmul.mubr.bf16.gmra.mxu1 %v13957_v17  ;;  %v14010_v58 = vld [vmem:[#allocation43_spill] sm:$0xff] }
 0x1e0   : > { %v8325_v30 = vadd.f32 %v8324_v42, %v8323_v45  ;;  %v8435_v31 = vpop.f32.mrf.mxu1  ;;  %3694 = vmatprep.mubr.bf16.mxu1 %v13958_v38 }
 0x1e1   : > { %v8326_v36 = vpop.f32.mrf.mxu0  ;;  %v11186_v41 = vadd.f32 %v8434_v16, %v2270_v60  ;;  %v14009_v60 = vld [vmem:[#allocation98_spill] sm:$0xff] }
 0x1e2   : > { %v2275_v28 = vadd.f32 %v8325_v30, %v14005_v14  ;;  %v8436_v40 = vpop.f32.mrf.mxu1 }
 0x1e3   : > { %v8327_v6 = vpop.f32.mrf.mxu0  ;;  %v8437_v20 = vadd.f32 %v8436_v40, %v8435_v31 }
 0x1e4   : > { %v8328_v26 = vadd.f32 %v8327_v6, %v8326_v36  ;;  %v8438_v45 = vpop.f32.mrf.mxu1  ;;  %v14012_v6 = vld [vmem:[#allocation46_spill] sm:$0xff] }
 0x1e5   : > { %v8329_v48 = vpop.f32.mrf.mxu0  ;;  %3534 = vmatmul.mubr.bf16.gmra.mxu0 %v14006_v23  ;;  %v11192_v22 = vadd.f32 %v8437_v20, %v2275_v28  ;;  %v14011_v28 = vld [vmem:[#allocation24_spill] sm:$0xff] }
 0x1e6   : > { %v2278_v12 = vadd.f32 %v8328_v26, %v14007_v27  ;;  %3541 = vmatprep.mubr.bf16.mxu0 %v14008_v59  ;;  %v8439_v49 = vpop.f32.mrf.mxu1 }
 0x1e7   : > { %v8330_v9 = vpop.f32.mrf.mxu0  ;;  %v8440_v24 = vadd.f32 %v8439_v49, %v8438_v45  ;;  %3695 = vmatmul.mubr.bf16.gmra.mxu1 %v13961_v35  ;;  %v14014_v49 = vld [vmem:[#allocation47_spill] sm:$0xff] }
 0x1e8   : > { %v8331_v37 = vadd.f32 %v8330_v9, %v8329_v48  ;;  %v8441_v42 = vpop.f32.mrf.mxu1  ;;  %3702 = vmatprep.mubr.bf16.mxu1 %v13962_v55 }
 0x1e9   : > { %v8332_v17 = vpop.f32.mrf.mxu0  ;;  %v11196_v30 = vadd.f32 %v8440_v24, %v2278_v12  ;;  %v14013_v12 = vld [vmem:[#allocation26_spill] sm:$0xff] }
 0x1ea   : > { %v2283_v57 = vadd.f32 %v8331_v37, %v14009_v60  ;;  %v8442_v14 = vpop.f32.mrf.mxu1 }
 0x1eb   : > { %v8333_v38 = vpop.f32.mrf.mxu0  ;;  %v8443_v31 = vadd.f32 %v8442_v14, %v8441_v42 }
 0x1ec   : > { %v8334_v43 = vadd.f32 %v8333_v38, %v8332_v17  ;;  %v8444_v48 = vpop.f32.mrf.mxu1  ;;  %v14016_v38 = vld [vmem:[#allocation48_spill] sm:$0xff] }
 0x1ed   : > { %v8335_v36 = vpop.f32.mrf.mxu0  ;;  %3542 = vmatmul.mubr.bf16.gmra.mxu0 %v14010_v58  ;;  %v11202_v40 = vadd.f32 %v8443_v31, %v2283_v57  ;;  %v14015_v57 = vld [vmem:[#allocation30_spill] sm:$0xff] }
 0x1ee   : > { %v2286_v16 = vadd.f32 %v8334_v43, %v14011_v28  ;;  %3549 = vmatprep.mubr.bf16.mxu0 %v14012_v6  ;;  %v8445_v27 = vpop.f32.mrf.mxu1 }
 0x1ef   : > { %v8336_v26 = vpop.f32.mrf.mxu0  ;;  %v8446_v20 = vadd.f32 %v8445_v27, %v8444_v48  ;;  %3703 = vmatmul.mubr.bf16.gmra.mxu1 %v13965_v63 }
 0x1f0   : > { %v8337_v23 = vadd.f32 %v8336_v26, %v8335_v36  ;;  %v8447_v9 = vpop.f32.mrf.mxu1  ;;  %3710 = vmatprep.mubr.bf16.mxu1 %v13966_v52 }
 0x1f1   : > { %v8338_v35 = vpop.f32.mrf.mxu0  ;;  %v11206_v37 = vadd.f32 %v8446_v20, %v2286_v16  ;;  %v14019_v20 = vld [vmem:[#allocation52_spill] sm:$0xff] }
 0x1f2   : > { %v2291_v59 = vadd.f32 %v8337_v23, %v14013_v12  ;;  %v8448_v60 = vpop.f32.mrf.mxu1  ;;  %v14018_v12 = vld [vmem:[#allocation32_spill] sm:$0xff] }
 0x1f3   : > { %v8339_v55 = vpop.f32.mrf.mxu0  ;;  %v8449_v42 = vadd.f32 %v8448_v60, %v8447_v9 }
 0x1f4   : > { %v8340_v45 = vadd.f32 %v8339_v55, %v8338_v35  ;;  %v8450_v36 = vpop.f32.mrf.mxu1  ;;  %v14017_v35 = vld [vmem:[#allocation51_spill] sm:$0xff] }
 0x1f5   : > { %v8341_v17 = vpop.f32.mrf.mxu0  ;;  %3550 = vmatmul.mubr.bf16.gmra.mxu0 %v14014_v49  ;;  %v11212_v14 = vadd.f32 %v8449_v42, %v2291_v59 }
 0x1f6   : > { %v2294_v24 = vadd.f32 %v8340_v45, %v14015_v57  ;;  %3557 = vmatprep.mubr.bf16.mxu0 %v14016_v38  ;;  %v8451_v28 = vpop.f32.mrf.mxu1 }
 0x1f7   : > { %v8342_v43 = vpop.f32.mrf.mxu0  ;;  %v8452_v6 = vadd.f32 %v8451_v28, %v8450_v36  ;;  %3711 = vmatmul.mubr.bf16.gmra.mxu1 %v13968_v19  ;;  %v14020_v36 = vld [vmem:[#allocation53_spill] sm:$0xff]  ;;  %v14021_v28 = vld [vmem:[#allocation54_spill] sm:$0xff] }
 0x1f8   : > { %v8343_v58 = vadd.f32 %v8342_v43, %v8341_v17  ;;  %v8453_v31 = vpop.f32.mrf.mxu1  ;;  %3718 = vmatprep.mubr.bf16.mxu1 %v13969_v13 }
 0x1f9   : > { %v8344_v63 = vpop.f32.mrf.mxu0  ;;  %v11216_v48 = vadd.f32 %v8452_v6, %v2294_v24 }
 0x1fa   : > { %v2299_v16 = vadd.f32 %v8343_v58, %v11062_v32  ;;  %v8454_v27 = vpop.f32.mrf.mxu1 }
 0x1fb   : > { %v8345_v52 = vpop.f32.mrf.mxu0  ;;  %v8455_v55 = vadd.f32 %v8454_v27, %v8453_v31 }
 0x1fc   : > { %v8346_v26 = vadd.f32 %v8345_v52, %v8344_v63  ;;  %v8456_v9 = vpop.f32.mrf.mxu1 }
 0x1fd   : > { %v8475_v23 = vpop.f32.mrf.mxu0  ;;  %3558 = vmatmul.mubr.bf16.gmra.mxu0 %v14017_v35  ;;  %v11222_v17 = vadd.f32 %v8455_v55, %v2299_v16 }
 0x1fe   : > { %v2302_v59 = vadd.f32 %v8346_v26, %v14018_v12  ;;  %3565 = vmatprep.mubr.bf16.mxu0 %v14019_v20  ;;  %v8457_v49 = vpop.f32.mrf.mxu1  ;;  %v14022_v20 = vld [vmem:[#allocation60_spill] sm:$0xff] }
 0x1ff   : > { %v8476_v32 = vpop.f32.mrf.mxu0  ;;  %v8458_v57 = vadd.f32 %v8457_v49, %v8456_v9  ;;  %3719 = vmatmul.mubr.bf16.gmra.mxu1 %v13970_v53  ;;  %v14023_v9 = vld [vmem:[#allocation62_spill] sm:$0xff] }
 0x200   : > { %v8477_v45 = vadd.f32 %v8476_v32, %v8475_v23  ;;  %v8587_v24 = vpop.f32.mrf.mxu1  ;;  %3726 = vmatprep.mubr.bf16.mxu1 %v13971_v62 }
 0x201   : > { %v8478_v19 = vpop.f32.mrf.mxu0  ;;  %v11226_v42 = vadd.f32 %v8458_v57, %v2302_v59 }
 0x202   : > { %v2789_v60 = vadd.f32 %v8477_v45, %v11072_v1  ;;  %v8588_v58 = vpop.f32.mrf.mxu1 }
 0x203   : > { %v8479_v13 = vpop.f32.mrf.mxu0  ;;  %v8589_v16 = vadd.f32 %v8588_v58, %v8587_v24  ;;  %v14024_v58 = vld [vmem:[#allocation64_spill] sm:$0xff] }
 0x204   : > { %v8480_v38 = vadd.f32 %v8479_v13, %v8478_v19  ;;  %v8590_v6 = vpop.f32.mrf.mxu1 }
 0x205   : > { %v8481_v43 = vpop.f32.mrf.mxu0  ;;  %3566 = vmatmul.mubr.bf16.gmra.mxu0 %v14020_v36  ;;  %v11232_v31 = vadd.f32 %v8589_v16, %v2789_v60  ;;  %v14025_v16 = vld [vmem:[#allocation66_spill] sm:$0xff] }
 0x206   : > { %v2792_v63 = vadd.f32 %v8480_v38, %v11076_v39  ;;  %3573 = vmatprep.mubr.bf16.mxu0 %v14021_v28  ;;  %v8591_v26 = vpop.f32.mrf.mxu1 }
 0x207   : > { %v8482_v1 = vpop.f32.mrf.mxu0  ;;  %v8592_v35 = vadd.f32 %v8591_v26, %v8590_v6  ;;  %3727 = vmatmul.mubr.bf16.gmra.mxu1 %v13972_v61 }
 0x208   : > { %v8483_v52 = vadd.f32 %v8482_v1, %v8481_v43  ;;  %v8593_v27 = vpop.f32.mrf.mxu1  ;;  %3734 = vmatprep.mubr.bf16.mxu1 %v13973_v10 }
 0x209   : > { %v8484_v53 = vpop.f32.mrf.mxu0  ;;  %v11236_v59 = vadd.f32 %v8592_v35, %v2792_v63 }
 0x20a   : > { %v2797_v23 = vadd.f32 %v8483_v52, %v11082_v51  ;;  %v8594_v55 = vpop.f32.mrf.mxu1 }
 0x20b   : > { %v8485_v62 = vpop.f32.mrf.mxu0  ;;  %v8595_v45 = vadd.f32 %v8594_v55, %v8593_v27  ;;  %v14028_v55 = vld [vmem:[#allocation67_spill] sm:$0xff] }
 0x20c   : > { %v8486_v12 = vadd.f32 %v8485_v62, %v8484_v53  ;;  %v8596_v19 = vpop.f32.mrf.mxu1 }
 0x20d   : > { %v8487_v39 = vpop.f32.mrf.mxu0  ;;  %3574 = vmatmul.mubr.bf16.gmra.mxu0 %v14022_v20  ;;  %v11242_v60 = vadd.f32 %v8595_v45, %v2797_v23  ;;  %v14026_v23 = vld [vmem:[#allocation36_spill] sm:$0xff] }
 0x20e   : > { %v2800_v32 = vadd.f32 %v8486_v12, %v11086_v8  ;;  %3581 = vmatprep.mubr.bf16.mxu0 %v14023_v9  ;;  %v8597_v57 = vpop.f32.mrf.mxu1  ;;  %v14027_v12 = vld [vmem:[#allocation89_spill] sm:$0xff] }
 0x20f   : > { %v8488_v51 = vpop.f32.mrf.mxu0  ;;  %v8598_v24 = vadd.f32 %v8597_v57, %v8596_v19  ;;  %3735 = vmatmul.mubr.bf16.gmra.mxu1 %v13974_v3  ;;  %v14029_v9 = vld [vmem:[#allocation37_spill] sm:$0xff]  ;;  %v11264_v57 = vld [vmem:[%s10180_s14 + $0x1a0] sm:$0xff] }
 0x210   : > { %v8489_v49 = vadd.f32 %v8488_v51, %v8487_v39  ;;  %v8599_v38 = vpop.f32.mrf.mxu1  ;;  %3742 = vmatprep.mubr.bf16.mxu1 %v13975_v25  ;;  %v14030_v51 = vld [vmem:[#allocation69_spill] sm:$0xff] }
 0x211   : > { %v8490_v61 = vpop.f32.mrf.mxu0  ;;  %v11246_v36 = vadd.f32 %v8598_v24, %v2800_v32 }
 0x212   : > { %v2805_v13 = vadd.f32 %v8489_v49, %v11092_v0  ;;  %v8600_v63 = vpop.f32.mrf.mxu1 }
 0x213   : > { %v8491_v10 = vpop.f32.mrf.mxu0  ;;  %v8601_v1 = vadd.f32 %v8600_v63, %v8599_v38 }
 0x214   : > { %v8492_v43 = vadd.f32 %v8491_v10, %v8490_v61  ;;  %v8602_v6 = vpop.f32.mrf.mxu1  ;;  %v329_v61 = vld [vmem:[%s10180_s14 + $0x198] sm:$0xff] }
 0x215   : > { %v8493_v8 = vpop.f32.mrf.mxu0  ;;  %3582 = vmatmul.mubr.bf16.gmra.mxu0 %v14024_v58  ;;  %v11252_v53 = vadd.f32 %v8601_v1, %v2805_v13  ;;  %v14031_v1 = vld [vmem:[#allocation92_spill] sm:$0xff] }
 0x216   : > { %v2808_v28 = vadd.f32 %v8492_v43, %v11096_v7  ;;  %3589 = vmatprep.mubr.bf16.mxu0 %v14025_v16  ;;  %v8603_v26 = vpop.f32.mrf.mxu1 }
 0x217   : > { %v8494_v0 = vpop.f32.mrf.mxu0  ;;  %v8604_v25 = vadd.f32 %v8603_v26, %v8602_v6  ;;  %3743 = vmatmul.mubr.bf16.gmra.mxu1 %v14027_v12 }
 0x218   : > { %v8495_v52 = vadd.f32 %v8494_v0, %v8493_v8  ;;  %v8605_v27 = vpop.f32.mrf.mxu1  ;;  %3750 = vmatprep.mubr.bf16.mxu1 %v13981_v4  ;;  %v7488_v8 = vcombine.high %v329_v61, %v11264_v57 }
 0x219   : > { %v8496_v3 = vpop.f32.mrf.mxu0  ;;  %v11256_v39 = vadd.f32 %v8604_v25, %v2808_v28  ;;  %v348_v28 = vld [vmem:[%s10180_s14 + $0x1a8] sm:$0x11] }
 0x21a   : > { %v2813_v35 = vadd.f32 %v8495_v52, %v14026_v23  ;;  %v8606_v32 = vpop.f32.mrf.mxu1  ;;  %v14033_v23 = vld [vmem:[#allocation39_spill] sm:$0xff]  ;;  %v1061_v25 = vshll.u32 %v7488_v8, 16 }
 0x21b   : > { %v8497_v62 = vpop.f32.mrf.mxu0  ;;  %v8607_v19 = vadd.f32 %v8606_v32, %v8605_v27 }
 0x21c   : > { %v8498_v7 = vadd.f32 %v8497_v62, %v8496_v3  ;;  %v8608_v13 = vpop.f32.mrf.mxu1  ;;  %v14032_v3 = vld [vmem:[#allocation57_spill] sm:$0xff]  ;;  %v11278_v62 = vcombine.high %v348_v28, %v348_v28 }
 0x21d   : > { %v8499_v20 = vpop.f32.mrf.mxu0  ;;  %3590 = vmatmul.mubr.bf16.gmra.mxu0 %v14028_v55  ;;  %v11266_v10 = vadd.f32 %v8607_v19, %v2813_v35  ;;  %v1063_v19 = vrot.slane %v1061_v25, 1 }
 0x21e   : > { %v2816_v45 = vadd.f32 %v8498_v7, %v14029_v9  ;;  %3597 = vmatprep.mubr.bf16.mxu0 %v14030_v51  ;;  %v8609_v4 = vpop.f32.mrf.mxu1  ;;  %v1059_v51 = vshrl.u32 %v7488_v8, 16 }
 0x21f   : > { %v8500_v49 = vpop.f32.mrf.mxu0  ;;  %v8610_v58 = vadd.f32 %v8609_v4, %v8608_v13  ;;  %3751 = vmatmul.mubr.bf16.gmra.mxu1 %v14031_v1  ;;  %v14035_v4 = vld [vmem:[#allocation8_spill] sm:$0xff]  ;;  %v14037_v1 = vld [vmem:[#allocation59_spill] sm:$0xff] }
 0x220   : > { %v8501_v24 = vadd.f32 %v8500_v49, %v8499_v20  ;;  %v8611_v16 = vpop.f32.mrf.mxu1  ;;  %3758 = vmatprep.mubr.bf16.mxu1 %v13986_v2  ;;  %v7487_v2 = vcombine.low %v329_v61, %v11264_v57  ;;  %v1066_v49 = vshll.u32 %v11278_v62, 16  ;;  %v11290_v61 = vcombine.low %v348_v28, %v348_v28 }
 0x221   : > { %v8502_v38 = vpop.f32.mrf.mxu0  ;;  %v11272_v6 = vadd.f32 %v8610_v58, %v2816_v45 }
 0x222   : > { %v2821_v43 = vadd.f32 %v8501_v24, %v11112_v15  ;;  %v8612_v26 = vpop.f32.mrf.mxu1  ;;  %v14034_v15 = vld [vmem:[#allocation65_spill] sm:$0xff] }
 0x223   : > { %v8503_v63 = vpop.f32.mrf.mxu0  ;;  %v8613_v27 = vadd.f32 %v8612_v26, %v8611_v16  ;;  %v1064_v26 = vor.u32 %v1063_v19, %v1059_v51  ;;  %v14040_v19 = vld [vmem:[#allocation12_spill] sm:$0xff] }
 0x224   : > { %v8504_v0 = vadd.f32 %v8503_v63, %v8502_v38  ;;  %v8614_v7 = vpop.f32.mrf.mxu1 }
 0x225   : > { %v8505_v52 = vpop.f32.mrf.mxu0  ;;  %3598 = vmatmul.mubr.bf16.gmra.mxu0 %v14032_v3  ;;  %v11280_v55 = vadd.f32 %v8613_v27, %v2821_v43  ;;  %v14036_v43 = vld [vmem:[#allocation96_spill] sm:$0xff] }
 0x226   : > { %v2824_v35 = vadd.f32 %v8504_v0, %v14033_v23  ;;  %3605 = vmatprep.mubr.bf16.mxu0 %v14034_v15  ;;  %v8615_v9 = vpop.f32.mrf.mxu1  ;;  %v1068_v23 = vrot.slane %v1066_v49, 1 }
 0x227   : > { %v8506_v12 = vpop.f32.mrf.mxu0  ;;  %v8616_v13 = vadd.f32 %v8615_v9, %v8614_v7  ;;  %3759 = vmatmul.mubr.bf16.gmra.mxu1 %v14035_v4  ;;  %v1054_v9 = vshll.u32 %v11290_v61, 16 }
 0x228   : > { %v8507_v20 = vadd.f32 %v8506_v12, %v8505_v52  ;;  %v8617_v38 = vpop.f32.mrf.mxu1  ;;  %3766 = vmatprep.mubr.bf16.mxu1 %v14036_v43  ;;  %v14038_v52 = vld [vmem:[#allocation41_spill] sm:$0xff] }
 0x229   : > { %v8508_v32 = vpop.f32.mrf.mxu0  ;;  %v11286_v63 = vadd.f32 %v8616_v13, %v2824_v35  ;;  %v1056_v43 = vrot.slane %v1054_v9, 1  ;;  %v14045_v9 = vld [vmem:[#allocation14_spill] sm:$0xff] }
 0x22a   : > { %v2829_v45 = vadd.f32 %v8507_v20, %v11122_v47  ;;  %v1049_v47 = vshll.u32 %v7487_v2, 16  ;;  %v8618_v0 = vpop.f32.mrf.mxu1  ;;  %v1047_v20 = vshrl.u32 %v7487_v2, 16 }
 0x22b   : > { %v8509_v24 = vpop.f32.mrf.mxu0  ;;  %v8619_v15 = vadd.f32 %v8618_v0, %v8617_v38 }
 0x22c   : > { %v8510_v58 = vadd.f32 %v8509_v24, %v8508_v32  ;;  %v8620_v27 = vpop.f32.mrf.mxu1  ;;  %v1051_v32 = vrot.slane %v1049_v47, 1  ;;  %v1069_v24 = vsel %vm637_vm0, %v1064_v26, %v1068_v23  ;;  %v14042_v47 = vld [vmem:[#allocation100_spill] sm:$0xff] }
 0x22d   : > { %v8511_v16 = vpop.f32.mrf.mxu0  ;;  %3606 = vmatmul.mubr.bf16.gmra.mxu0 %v14037_v1  ;;  %v11293_v35 = vadd.f32 %v8619_v15, %v2829_v45 }
 0x22e   : > { %v2832_v3 = vadd.f32 %v8510_v58, %v14038_v52  ;;  %3613 = vmatprep.mubr.bf16.mxu0 %v7488_v8  ;;  %v8621_v28 = vpop.f32.mrf.mxu1  ;;  %v1052_v58 = vor.u32 %v1051_v32, %v1047_v20 }
 0x22f   : > { %v8512_v25 = vpop.f32.mrf.mxu0  ;;  %14039 = vst [vmem:[#allocation44_spill] sm:$0xff] %v11293_v35  ;;  %v8622_v4 = vadd.f32 %v8621_v28, %v8620_v27  ;;  %3767 = vmatmul.mubr.bf16.gmra.mxu1 %v14040_v19 }
 0x230   : > { %v8513_v12 = vadd.f32 %v8512_v25, %v8511_v16  ;;  %v8623_v51 = vpop.f32.mrf.mxu1  ;;  %3774 = vmatprep.mubr.bf16.mxu1 %v1069_v24  ;;  %v1057_v15 = vsel %vm637_vm0, %v1052_v58, %v1056_v43  ;;  %v14046_v24 = vld [vmem:[#allocation16_spill] sm:$0xff] }
 0x231   : > { %v8514_v7 = vpop.f32.mrf.mxu0  ;;  %v11299_v38 = vadd.f32 %v8622_v4, %v2832_v3 }
 0x232   : > { %v2837_v13 = vadd.f32 %v8513_v12, %v11132_v50  ;;  %v8624_v16 = vpop.f32.mrf.mxu1 }
 0x233   : > { %v8515_v8 = vpop.f32.mrf.mxu0  ;;  %14041 = vst [vmem:[#allocation45_spill] sm:$0xff] %v11299_v38  ;;  %v8625_v50 = vadd.f32 %v8624_v16, %v8623_v51 }
 0x234   : > { %v8516_v49 = vadd.f32 %v8515_v8, %v8514_v7  ;;  %v8626_v52 = vpop.f32.mrf.mxu1 }
 0x235   : > { %v8517_v45 = vpop.f32.mrf.mxu0  ;;  %3614 = vmatmul.mubr.bf16.gmra.mxu0 %v7487_v2  ;;  %v11303_v23 = vadd.f32 %v8625_v50, %v2837_v13 }
 0x236   : > { %v2840_v1 = vadd.f32 %v8516_v49, %v11136_v21  ;;  %3815 = vmatprep.mubr.bf16.mxu0 %v14042_v47  ;;  %v8627_v25 = vpop.f32.mrf.mxu1 }
 0x237   : > { %v8518_v0 = vpop.f32.mrf.mxu0  ;;  %14043 = vst [vmem:[#allocation49_spill] sm:$0xff] %v11303_v23  ;;  %v8628_v2 = vadd.f32 %v8627_v25, %v8626_v52  ;;  %3775 = vmatmul.mubr.bf16.gmra.mxu1 %v1057_v15  ;;  %v14050_v15 = vld [vmem:[#allocation23_spill] sm:$0xff] }
 0x238   : > { %v8519_v26 = vadd.f32 %v8518_v0, %v8517_v45  ;;  %v8629_v7 = vpop.f32.mrf.mxu1 }
 0x239   : > { %v8520_v3 = vpop.f32.mrf.mxu0  ;;  %v11307_v21 = vadd.f32 %v8628_v2, %v2840_v1 }
 0x23a   : > { %v2845_v27 = vadd.f32 %v8519_v26, %v11142_v54  ;;  %v8630_v28 = vpop.f32.mrf.mxu1 }
 0x23b   : > { %v8521_v12 = vpop.f32.mrf.mxu0  ;;  %14044 = vst [vmem:[#allocation50_spill] sm:$0xff] %v11307_v21  ;;  %v8631_v4 = vadd.f32 %v8630_v28, %v8629_v7 }
 0x23c   : > { %v8522_v20 = vadd.f32 %v8521_v12, %v8520_v3  ;;  %v8632_v51 = vpop.f32.mrf.mxu1 }
 0x23d   : > { %v8523_v32 = vpop.f32.mrf.mxu0  ;;  %3816 = vmatmul.mubr.bf16.vlgmr.msra.gmra.mxu0 %v14045_v9  ;;  %v11312_v54 = vadd.f32 %v8631_v4, %v2845_v27 }
 0x23e   : > { %v2848_v13 = vadd.f32 %v8522_v20, %v11146_v18  ;;  %3823 = vmatprep.mubr.bf16.mxu0 %v14046_v24  ;;  %v8633_v45 = vpop.f32.mrf.mxu1  ;;  %v14049_v18 = vld [vmem:[#allocation22_spill] sm:$0xff] }
 0x23f   : > { %v8524_v8 = vpop.f32.mrf.mxu0  ;;  %14047 = vst [vmem:[#allocation55_spill] sm:$0xff] %v11312_v54  ;;  %v8634_v43 = vadd.f32 %v8633_v45, %v8632_v51 }
 0x240   : > { %v8525_v19 = vadd.f32 %v8524_v8, %v8523_v32  ;;  %v8635_v1 = vpop.f32.mrf.mxu1 }
 0x241   : > { %v8526_v49 = vpop.f32.mrf.mxu0  ;;  %v11315_v50 = vadd.f32 %v8634_v43, %v2848_v13 }
 0x242   : > { %v2853_v58 = vadd.f32 %v8525_v19, %v11152_v29  ;;  %v8636_v52 = vpop.f32.mrf.mxu1  ;;  %v14054_v19 = vld [vmem:[#allocation29_spill] sm:$0xff] }
 0x243   : > { %v8527_v16 = vpop.f32.mrf.mxu0  ;;  %14048 = vst [vmem:[#allocation56_spill] sm:$0xff] %v11315_v50  ;;  %v8637_v3 = vadd.f32 %v8636_v52, %v8635_v1 }
 0x244   : > { %v8528_v47 = vadd.f32 %v8527_v16, %v8526_v49  ;;  %v8638_v27 = vpop.f32.mrf.mxu1 }
 0x245   : > { %v8529_v0 = vpop.f32.mrf.mxu0  ;;  %3824 = vmatmul.mubr.bf16.gmra.mxu0 %v14049_v18  ;;  %v11320_v12 = vadd.f32 %v8637_v3, %v2853_v58 }
 0x246   : > { %v2856_v26 = vadd.f32 %v8528_v47, %v11156_v11  ;;  %3831 = vmatprep.mubr.bf16.mxu0 %v14050_v15  ;;  %v8639_v7 = vpop.f32.mrf.mxu1  ;;  %v14053_v11 = vld [vmem:[#allocation28_spill] sm:$0xff] }
 0x247   : > { %v8530_v25 = vpop.f32.mrf.mxu0  ;;  %14051 = vst [vmem:[#allocation58_spill] sm:$0xff] %v11320_v12  ;;  %v8640_v32 = vadd.f32 %v8639_v7, %v8638_v27 }
 0x248   : > { %v8531_v2 = vadd.f32 %v8530_v25, %v8529_v0  ;;  %v8641_v28 = vpop.f32.mrf.mxu1 }
 0x249   : > { %v8532_v29 = vpop.f32.mrf.mxu0  ;;  %v11323_v24 = vadd.f32 %v8640_v32, %v2856_v26 }
 0x24a   : > { %v2861_v20 = vadd.f32 %v8531_v2, %v11162_v5  ;;  %v8642_v8 = vpop.f32.mrf.mxu1  ;;  %v14058_v2 = vld [vmem:[#allocation74_spill] sm:$0xff] }
 0x24b   : > { %v8533_v9 = vpop.f32.mrf.mxu0  ;;  %14052 = vst [vmem:[#allocation61_spill] sm:$0xff] %v11323_v24  ;;  %v8643_v49 = vadd.f32 %v8642_v8, %v8641_v28 }
 0x24c   : > { %v8534_v13 = vadd.f32 %v8533_v9, %v8532_v29  ;;  %v8644_v58 = vpop.f32.mrf.mxu1 }
 0x24d   : > { %v8535_v4 = vpop.f32.mrf.mxu0  ;;  %3832 = vmatmul.mubr.bf16.gmra.mxu0 %v14053_v11  ;;  %v11328_v16 = vadd.f32 %v8643_v49, %v2861_v20 }
 0x24e   : > { %v2864_v51 = vadd.f32 %v8534_v13, %v11166_v34  ;;  %3839 = vmatprep.mubr.bf16.mxu0 %v14054_v19  ;;  %v8645_v1 = vpop.f32.mrf.mxu1  ;;  %v14057_v34 = vld [vmem:[#allocation34_spill] sm:$0xff] }
 0x24f   : > { %v8536_v45 = vpop.f32.mrf.mxu0  ;;  %14055 = vst [vmem:[#allocation68_spill] sm:$0xff] %v11328_v16  ;;  %v8646_v0 = vadd.f32 %v8645_v1, %v8644_v58  ;;  %v9945_v58 = vld [vmem:[%s13607_s3 + $0xf8] sm:$0xff]  }
 0x250   : > { %v8537_v43 = vadd.f32 %v8536_v45, %v8535_v4  ;;  %v8647_v52 = vpop.f32.mrf.mxu1  ;;  %v9944_v45 = vld [vmem:[%s13607_s3 + $0x138] sm:$0xff]  }
 0x251   : > { %v8538_v5 = vpop.f32.mrf.mxu0  ;;  %v11331_v15 = vadd.f32 %v8646_v0, %v2864_v51  ;;  %9019 = vmatprep.subr.bf16.mxu1 %v9944_v45 }
 0x252   : > { %v2869_v47 = vadd.f32 %v8537_v43, %v11172_v44  ;;  %v8648_v25 = vpop.f32.mrf.mxu1  ;;  %9020 = vmatpush3.bf16.msra.mxu1 %v9945_v58 }
 0x253   : > { %v8539_v18 = vpop.f32.mrf.mxu0  ;;  %14056 = vst [vmem:[#allocation70_spill] sm:$0xff] %v11331_v15  ;;  %v8649_v29 = vadd.f32 %v8648_v25, %v8647_v52 }
 0x254   : > { %v8540_v26 = vadd.f32 %v8539_v18, %v8538_v5  ;;  %v8650_v20 = vpop.f32.mrf.mxu1  ;;  %v14062_v5 = vld [vmem:[#allocation76_spill] sm:$0xff] }
 0x255   : > { %v8541_v3 = vpop.f32.mrf.mxu0  ;;  %3840 = vmatmul.mubr.bf16.gmra.mxu0 %v14057_v34  ;;  %v11336_v9 = vadd.f32 %v8649_v29, %v2869_v47 }
 0x256   : > { %v2872_v27 = vadd.f32 %v8540_v26, %v11176_v46  ;;  %3847 = vmatprep.mubr.bf16.mxu0 %v14058_v2  ;;  %v8651_v28 = vpop.f32.mrf.mxu1  ;;  %v14061_v46 = vld [vmem:[#allocation75_spill] sm:$0xff] }
 0x257   : > { %v8542_v7 = vpop.f32.mrf.mxu0  ;;  %14059 = vst [vmem:[#allocation71_spill] sm:$0xff] %v11336_v9  ;;  %v8652_v4 = vadd.f32 %v8651_v28, %v8650_v20  ;;  %v14065_v20 = vld [vmem:[#allocation77_spill] sm:$0xff]  ;;  %v14066_v28 = vld [vmem:[#allocation78_spill] sm:$0xff] }
 0x258   : > { %v8543_v32 = vadd.f32 %v8542_v7, %v8541_v3  ;;  %v8653_v8 = vpop.f32.mrf.mxu1 }
 0x259   : > { %v8544_v44 = vpop.f32.mrf.mxu0  ;;  %v11339_v19 = vadd.f32 %v8652_v4, %v2872_v27 }
 0x25a   : > { %v2877_v13 = vadd.f32 %v8543_v32, %v11182_v33  ;;  %v8654_v43 = vpop.f32.mrf.mxu1 }
 0x25b   : > { %v8545_v11 = vpop.f32.mrf.mxu0  ;;  %14060 = vst [vmem:[#allocation72_spill] sm:$0xff] %v11339_v19  ;;  %v8655_v1 = vadd.f32 %v8654_v43, %v8653_v8 }
 0x25c   : > { %v8546_v51 = vadd.f32 %v8545_v11, %v8544_v44  ;;  %v8656_v0 = vpop.f32.mrf.mxu1 }
 0x25d   : > { %v8547_v49 = vpop.f32.mrf.mxu0  ;;  %3848 = vmatmul.mubr.bf16.gmra.mxu0 %v14061_v46  ;;  %v11350_v52 = vadd.f32 %v8655_v1, %v2877_v13 }
 0x25e   : > { %v2880_v33 = vadd.f32 %v8546_v51, %v11186_v41  ;;  %3855 = vmatprep.mubr.bf16.mxu0 %v14062_v5  ;;  %v8657_v3 = vpop.f32.mrf.mxu1 }
 0x25f   : > { %v8548_v47 = vpop.f32.mrf.mxu0  ;;  %14063 = vst [vmem:[#allocation73_spill] sm:$0xff] %v11350_v52  ;;  %v8658_v25 = vadd.f32 %v8657_v3, %v8656_v0  ;;  %v9947_v0 = vld [vmem:[%s13607_s3 + $0xf0] sm:$0xff]  }
 0x260   : > { %v8549_v18 = vadd.f32 %v8548_v47, %v8547_v49  ;;  %v8659_v2 = vpop.f32.mrf.mxu1  ;;  %v9946_v47 = vld [vmem:[%s13607_s3 + $0x130] sm:$0xff]  }
 0x261   : > { %v8550_v26 = vpop.f32.mrf.mxu0  ;;  %v11353_v7 = vadd.f32 %v8658_v25, %v2880_v33  ;;  %9021 = vmatprep.subr.bf16.mxu1 %v9946_v47 }
 0x262   : > { %v2885_v34 = vadd.f32 %v8549_v18, %v11192_v22  ;;  %v8660_v32 = vpop.f32.mrf.mxu1  ;;  %9022 = vmatpush3.bf16.msra.mxu1 %v9947_v0 }
 0x263   : > { %v8551_v27 = vpop.f32.mrf.mxu0  ;;  %14064 = vst [vmem:[#allocation84_spill] sm:$0xff] %v11353_v7  ;;  %v8661_v13 = vadd.f32 %v8660_v32, %v8659_v2 }
 0x264   : > { %v8552_v29 = vadd.f32 %v8551_v27, %v8550_v26  ;;  %v8662_v11 = vpop.f32.mrf.mxu1  ;;  %v14070_v26 = vld [vmem:[#allocation80_spill] sm:$0xff] }
 0x265   : > { %v8553_v41 = vpop.f32.mrf.mxu0  ;;  %3856 = vmatmul.mubr.bf16.gmra.mxu0 %v14065_v20  ;;  %v11358_v51 = vadd.f32 %v8661_v13, %v2885_v34 }
 0x266   : > { %v2888_v44 = vadd.f32 %v8552_v29, %v11196_v30  ;;  %3863 = vmatprep.mubr.bf16.mxu0 %v14066_v28  ;;  %v8663_v49 = vpop.f32.mrf.mxu1  ;;  %v14069_v30 = vld [vmem:[#allocation79_spill] sm:$0xff] }
 0x267   : > { %v8554_v4 = vpop.f32.mrf.mxu0  ;;  %14067 = vst [vmem:[#allocation7_spill] sm:$0xff] %v11358_v51  ;;  %v8664_v45 = vadd.f32 %v8663_v49, %v8662_v11  ;;  %v14073_v11 = vld [vmem:[#allocation81_spill] sm:$0xff]  ;;  %v14074_v49 = vld [vmem:[#allocation82_spill] sm:$0xff] }
 0x268   : > { %v8555_v8 = vadd.f32 %v8554_v4, %v8553_v41  ;;  %v8665_v43 = vpop.f32.mrf.mxu1 }
 0x269   : > { %v8556_v22 = vpop.f32.mrf.mxu0  ;;  %v11361_v5 = vadd.f32 %v8664_v45, %v2888_v44 }
 0x26a   : > { %v2893_v46 = vadd.f32 %v8555_v8, %v11202_v40  ;;  %v8666_v18 = vpop.f32.mrf.mxu1 }
 0x26b   : > { %v8557_v58 = vpop.f32.mrf.mxu0  ;;  %14068 = vst [vmem:[#allocation63_spill] sm:$0xff] %v11361_v5  ;;  %v8667_v3 = vadd.f32 %v8666_v18, %v8665_v43 }
 0x26c   : > { %v8558_v33 = vadd.f32 %v8557_v58, %v8556_v22  ;;  %v8668_v25 = vpop.f32.mrf.mxu1 }
 0x26d   : > { %v8559_v1 = vpop.f32.mrf.mxu0  ;;  %3864 = vmatmul.mubr.bf16.gmra.mxu0 %v14069_v30  ;;  %v11372_v2 = vadd.f32 %v8667_v3, %v2893_v46 }
 0x26e   : > { %v2896_v40 = vadd.f32 %v8558_v33, %v11206_v37  ;;  %3871 = vmatprep.mubr.bf16.mxu0 %v14070_v26  ;;  %v8669_v41 = vpop.f32.mrf.mxu1 }
 0x26f   : > { %v8560_v34 = vpop.f32.mrf.mxu0  ;;  %14071 = vst [vmem:[#allocation93_spill] sm:$0xff] %v11372_v2  ;;  %v8670_v32 = vadd.f32 %v8669_v41, %v8668_v25  ;;  %v9949_v25 = vld [vmem:[%s13607_s3 + $0xe8] sm:$0xff]  }
 0x270   : > { %v8561_v27 = vadd.f32 %v8560_v34, %v8559_v1  ;;  %v8671_v28 = vpop.f32.mrf.mxu1  ;;  %v9948_v34 = vld [vmem:[%s13607_s3 + $0x128] sm:$0xff]  }
 0x271   : > { %v8562_v29 = vpop.f32.mrf.mxu0  ;;  %v11375_v4 = vadd.f32 %v8670_v32, %v2896_v40  ;;  %9023 = vmatprep.subr.bf16.mxu1 %v9948_v34  ;;  %v9952_v34 = vld [vmem:[%s13607_s3 + $0xe0] sm:$0xff]  }
 0x272   : > { %v2901_v20 = vadd.f32 %v8561_v27, %v11212_v14  ;;  %v8672_v8 = vpop.f32.mrf.mxu1  ;;  %9024 = vmatpush3.bf16.msra.mxu1 %v9949_v25 }
 0x273   : > { %v8563_v44 = vpop.f32.mrf.mxu0  ;;  %14072 = vst [vmem:[#allocation11_spill] sm:$0xff] %v11375_v4  ;;  %v8673_v46 = vadd.f32 %v8672_v8, %v8671_v28 }
 0x274   : > { %v8564_v13 = vadd.f32 %v8563_v44, %v8562_v29  ;;  %v8674_v58 = vpop.f32.mrf.mxu1  ;;  %v14078_v29 = vld [vmem:[#allocation85_spill] sm:$0xff] }
 0x275   : > { %v8565_v37 = vpop.f32.mrf.mxu0  ;;  %3872 = vmatmul.mubr.bf16.gmra.mxu0 %v14073_v11  ;;  %v11380_v33 = vadd.f32 %v8673_v46, %v2901_v20 }
 0x276   : > { %v2904_v22 = vadd.f32 %v8564_v13, %v11216_v48  ;;  %3879 = vmatprep.mubr.bf16.mxu0 %v14074_v49  ;;  %v8675_v1 = vpop.f32.mrf.mxu1  ;;  %v14077_v48 = vld [vmem:[#allocation83_spill] sm:$0xff] }
 0x277   : > { %v8566_v45 = vpop.f32.mrf.mxu0  ;;  %14075 = vst [vmem:[#allocation10_spill] sm:$0xff] %v11380_v33  ;;  %v8676_v47 = vadd.f32 %v8675_v1, %v8674_v58  ;;  %v9950_v58 = vld [vmem:[%s13607_s3 + $0x178] sm:$0xff]  }
 0x278   : > { %v8567_v43 = vadd.f32 %v8566_v45, %v8565_v37  ;;  %v8677_v18 = vpop.f32.mrf.mxu1  ;;  %v14081_v45 = vld [vmem:[#allocation86_spill] sm:$0xff]  ;;  %9471 = vmatprep.subr.bf16.mxu0 %v9950_v58 }
 0x279   : > { %v8568_v14 = vpop.f32.mrf.mxu0  ;;  %v11383_v26 = vadd.f32 %v8676_v47, %v2904_v22  ;;  %9472 = vmatpush3.bf16.msra.mxu0 %v9950_v58 }
 0x27a   : > { %v2909_v30 = vadd.f32 %v8567_v43, %v11222_v17  ;;  %v8678_v27 = vpop.f32.mrf.mxu1 }
 0x27b   : > { %v8569_v0 = vpop.f32.mrf.mxu0  ;;  %14076 = vst [vmem:[#allocation13_spill] sm:$0xff] %v11383_v26  ;;  %v8679_v41 = vadd.f32 %v8678_v27, %v8677_v18  ;;  %v10101_v18 = vmov 0.0   ;;  %v1303_v26 = vrot.slane %v11278_v62, 1  ;;  %v1300_v62 = vrot.slane %v11290_v61, 1 }
 0x27c   : > { %v8570_v40 = vadd.f32 %v8569_v0, %v8568_v14  ;;  %v8680_v32 = vpop.f32.mrf.mxu1  ;;  %v14082_v14 = vld [vmem:[#allocation87_spill] sm:$0xff]  ;;  %4050 = vst [vmem:[#allocation2 + $0x18] sm:$0xff] %v10101_v18  ;;  %4051 = vst [vmem:[#allocation2 + $0x20] sm:$0xff] %v10101_v18 }
 0x27d   : > { %v8699_v3 = vpop.f32.mrf.mxu0  ;;  %3880 = vmatmul.mubr.bf16.gmra.mxu0 %v14077_v48  ;;  %v11396_v28 = vadd.f32 %v8679_v41, %v2909_v30  ;;  %4047 = vst [vmem:[#allocation2] sm:$0xff] %v10101_v18  ;;  %4048 = vst [vmem:[#allocation2 + $0x8] sm:$0xff] %v10101_v18  ;;  %v14083_v41 = vld [vmem:[#allocation88_spill] sm:$0xff] }
 0x27e   : > { %v2912_v17 = vadd.f32 %v8570_v40, %v11226_v42  ;;  %3887 = vmatprep.mubr.bf16.mxu0 %v14078_v29  ;;  %v8681_v37 = vpop.f32.mrf.mxu1  ;;  %4049 = vst [vmem:[#allocation2 + $0x10] sm:$0x3] %v10101_v18  ;;  %4052 = vst [vmem:[#allocation2 + $0x28] sm:$0x3] %v10101_v18  ;;  %v9951_v40 = vld [vmem:[%s13607_s3 + $0x120] sm:$0xff]  }
 0x27f   : > { %v8700_v20 = vpop.f32.mrf.mxu0  ;;  %14079 = vst [vmem:[#allocation15_spill] sm:$0xff] %v11396_v28  ;;  %v8682_v11 = vadd.f32 %v8681_v37, %v8680_v32  ;;  %4053 = vst [vmem:[#allocation2 + $0x30] sm:$0xff] %v10101_v18  ;;  %9025 = vmatprep.subr.bf16.mxu1 %v9951_v40  ;;  %v9955_v32 = vld [vmem:[%s13607_s3 + $0x118] sm:$0xff]  }
 0x280   : > { %v11394_v44 = vadd.f32 %v8700_v20, %v8699_v3  ;;  %v11398_v22 = vpop.f32.mrf.mxu1  ;;  %4054 = vst [vmem:[#allocation2 + $0x38] sm:$0xff] %v10101_v18  ;;  %4055 = vst [vmem:[#allocation2 + $0x40] sm:$0x3] %v10101_v18  ;;  %v9953_v3 = vld [vmem:[%s13607_s3 + $0x170] sm:$0xff]   ;;  %9026 = vmatpush3.bf16.msra.mxu1 %v9952_v34  ;;  %v9954_v20 = vld [vmem:[%s13607_s3 + $0x168] sm:$0xff]  }
 0x281   : > { %v8702_v13 = vpop.f32.mrf.mxu0  ;;  %v11402_v42 = vadd.f32 %v8682_v11, %v2912_v17  ;;  %4056 = vst [vmem:[#allocation2 + $0x48] sm:$0xff] %v10101_v18  ;;  %4057 = vst [vmem:[#allocation2 + $0x50] sm:$0xff] %v10101_v18  ;;  %9473 = vmatprep.subr.bf16.mxu0 %v9953_v3  ;;  %v14084_v37 = vld [vmem:[#allocation90_spill] sm:$0xff]  ;;  %9027 = vmatprep.subr.bf16.mxu1 %v9955_v32  ;;  %v9962_v32 = vld [vmem:[%s13607_s3 + $0xc8] sm:$0xff]  }
 0x282   : > { %v11408_v43 = vpop.f32.mrf.mxu1  ;;  %4058 = vst [vmem:[#allocation2 + $0x58] sm:$0x3] %v10101_v18  ;;  %4059 = vst [vmem:[#allocation2 + $0x60] sm:$0xff] %v10101_v18  ;;  %9474 = vmatpush3.bf16.msra.mxu0 %v9953_v3  ;;  %v9956_v11 = vld [vmem:[%s13607_s3 + $0xd8] sm:$0xff]  }
 0x283   : > { %v8703_v8 = vpop.f32.mrf.mxu0  ;;  %14080 = vst [vmem:[#allocation20_spill] sm:$0xff] %v11402_v42  ;;  %4060 = vst [vmem:[#allocation2 + $0x68] sm:$0xff] %v10101_v18  ;;  %9475 = vmatprep.subr.bf16.mxu0 %v9954_v20 }
 0x284   : > { %v11400_v49 = vadd.f32 %v8703_v8, %v8702_v13  ;;  %v11411_v30 = vpop.f32.mrf.mxu1  ;;  %4061 = vst [vmem:[#allocation2 + $0x70] sm:$0x3] %v10101_v18  ;;  %4062 = vst [vmem:[#allocation2 + $0x78] sm:$0xff] %v10101_v18  ;;  %9028 = vmatpush3.bf16.msra.mxu1 %v9956_v11 }
 0x285   : > { %v8705_v46 = vpop.f32.mrf.mxu0  ;;  %3888 = vmatmul.mubr.bf16.gmra.mxu0 %v14081_v45  ;;  %4063 = vst [vmem:[#allocation2 + $0x80] sm:$0xff] %v10101_v18  ;;  %4064 = vst [vmem:[#allocation2 + $0x88] sm:$0x3] %v10101_v18 }
 0x286   : > { %3895 = vmatprep.mubr.bf16.mxu0 %v14082_v14  ;;  %4065 = vst [vmem:[#allocation2 + $0x90] sm:$0xff] %v10101_v18  ;;  %4066 = vst [vmem:[#allocation2 + $0x98] sm:$0xff] %v10101_v18  ;;  %v11423_v48 = vpop.f32.mrf.mxu1  ;;  %9476 = vmatpush3.bf16.msra.mxu0 %v9954_v20  ;;  %v9957_v14 = vld [vmem:[%s13607_s3 + $0x160] sm:$0xff]   ;;  %v14086_v20 = vld [vmem:[#allocation94_spill] sm:$0xff] }
 0x287   : > { %v8706_v1 = vpop.f32.mrf.mxu0  ;;  %4067 = vst [vmem:[#allocation2 + $0xa0] sm:$0x3] %v10101_v18  ;;  %4068 = vst [vmem:[#allocation2 + $0xa8] sm:$0xff] %v10101_v18  ;;  %9477 = vmatprep.subr.bf16.mxu0 %v9957_v14 }
 0x288   : > { %v11413_v47 = vadd.f32 %v8706_v1, %v8705_v46  ;;  %4069 = vst [vmem:[#allocation2 + $0xb0] sm:$0xff] %v10101_v18  ;;  %4070 = vst [vmem:[#allocation2 + $0xb8] sm:$0x3] %v10101_v18  ;;  %v11428_v27 = vpop.f32.mrf.mxu1  ;;  %v9958_v1 = vld [vmem:[%s13607_s3 + $0x110] sm:$0xff]  }
 0x289   : > { %v11415_v0 = vpop.f32.mrf.mxu0  ;;  %4071 = vst [vmem:[#allocation2 + $0xc0] sm:$0xff] %v10101_v18  ;;  %4072 = vst [vmem:[#allocation2 + $0xc8] sm:$0xff] %v10101_v18  ;;  %9029 = vmatprep.subr.bf16.mxu1 %v9958_v1  ;;  %v9964_v1 = vld [vmem:[%s13607_s3 + $0x100] sm:$0xff]  }
 0x28a   : > { %4073 = vst [vmem:[#allocation2 + $0xd0] sm:$0x3] %v10101_v18  ;;  %4074 = vst [vmem:[#allocation2 + $0xd8] sm:$0xff] %v10101_v18  ;;  %v11440_v13 = vpop.f32.mrf.mxu1  ;;  %9478 = vmatpush3.bf16.msra.mxu0 %v9957_v14  ;;  %v9963_v14 = vld [vmem:[%s13607_s3 + $0x150] sm:$0xff]  }
 0x28b   : > { %4075 = vst [vmem:[#allocation2 + $0xe0] sm:$0xff] %v10101_v18  ;;  %4076 = vst [vmem:[#allocation2 + $0xe8] sm:$0x3] %v10101_v18  ;;  %v8709_v25 = vpop.f32.mrf.mxu0 }
 0x28c   : > { %4077 = vst [vmem:[#allocation2 + $0xf0] sm:$0xff] %v10101_v18  ;;  %4078 = vst [vmem:[#allocation2 + $0xf8] sm:$0xff] %v10101_v18  ;;  %v11431_v17 = vadd.f32 %v8709_v25, %v11415_v0  ;;  %v11448_v45 = vpop.f32.mrf.mxu1  ;;  %v9959_v0 = vld [vmem:[%s13607_s3 + $0xd0] sm:$0xff]   ;;  %v14085_v25 = vld [vmem:[#allocation91_spill] sm:$0xff] }
 0x28d   : > { %4079 = vst [vmem:[#allocation2 + $0x100] sm:$0x3] %v10101_v18  ;;  %4080 = vst [vmem:[#allocation2 + $0x108] sm:$0xff] %v10101_v18  ;;  %v8711_v29 = vpop.f32.mrf.mxu0  ;;  %3896 = vmatmul.mubr.bf16.gmra.mxu0 %v14083_v41  ;;  %9030 = vmatpush3.bf16.msra.mxu1 %v9959_v0  ;;  %v9961_v41 = vld [vmem:[%s13607_s3 + $0x108] sm:$0xff]   ;;  %v9965_v0 = vld [vmem:[%s13607_s3 + $0xc0] sm:$0xff]  }
 0x28e   : > { %4081 = vst [vmem:[#allocation2 + $0x110] sm:$0xff] %v10101_v18  ;;  %4082 = vst [vmem:[#allocation2 + $0x118] sm:$0x3] %v10101_v18  ;;  %3903 = vmatprep.mubr.bf16.mxu0 %v14084_v37  ;;  %v11461_v3 = vpop.f32.mrf.mxu1  ;;  %9031 = vmatprep.subr.bf16.mxu1 %v9961_v41  ;;  %v14087_v41 = vld [vmem:[#allocation95_spill] sm:$0xff] }
 0x28f   : > { %4083 = vst [vmem:[#allocation2 + $0x120] sm:$0xff] %v10101_v18  ;;  %4084 = vst [vmem:[#allocation2 + $0x128] sm:$0xff] %v10101_v18  ;;  %v8712_v8 = vpop.f32.mrf.mxu0 }
 0x290   : > { %4085 = vst [vmem:[#allocation2 + $0x130] sm:$0x3] %v10101_v18  ;;  %4086 = vst [vmem:[#allocation2 + $0x138] sm:$0xff] %v10101_v18  ;;  %v11446_v46 = vadd.f32 %v8712_v8, %v8711_v29  ;;  %v9960_v29 = vld [vmem:[%s13607_s3 + $0x158] sm:$0xff]   ;;  %v11476_v8 = vpop.f32.mrf.mxu1 }
 0x291   : > { %4087 = vst [vmem:[#allocation2 + $0x140] sm:$0xff] %v10101_v18  ;;  %4088 = vst [vmem:[#allocation2 + $0x148] sm:$0x3] %v10101_v18  ;;  %v8714_v58 = vpop.f32.mrf.mxu0  ;;  %9479 = vmatprep.subr.bf16.mxu0 %v9960_v29  ;;  %9032 = vmatpush3.bf16.msra.mxu1 %v9962_v32  ;;  %v14088_v32 = vld [vmem:[#allocation97_spill] sm:$0xff] }
 0x292   : > { %4089 = vst [vmem:[#allocation2 + $0x150] sm:$0xff] %v10101_v18  ;;  %4090 = vst [vmem:[#allocation2 + $0x158] sm:$0xff] %v10101_v18  ;;  %9480 = vmatpush3.bf16.msra.mxu0 %v9960_v29  ;;  %9033 = vmatprep.subr.bf16.mxu1 %v9964_v1  ;;  %v366_v1 = vld [vmem:[%s10180_s14 + $0x198] sm:$0xee] }
 0x293   : > { %4091 = vst [vmem:[#allocation2 + $0x160] sm:$0x3] %v10101_v18  ;;  %4092 = vst [vmem:[#allocation2 + $0x168] sm:$0xff] %v10101_v18  ;;  %9481 = vmatprep.subr.bf16.mxu0 %v9963_v14  ;;  %v7559_v5 = vcombine.low %v366_v1, %v11264_v57 }
 0x294   : > { %4093 = vst [vmem:[#allocation2 + $0x170] sm:$0xff] %v10101_v18  ;;  %4094 = vst [vmem:[#allocation2 + $0x178] sm:$0x3] %v10101_v18 }
 0x295   : > { %4095 = vst [vmem:[#allocation2 + $0x180] sm:$0xff] %v10101_v18  ;;  %4096 = vst [vmem:[#allocation2 + $0x188] sm:$0xff] %v10101_v18  ;;  %3904 = vmatmul.mubr.bf16.gmra.mxu0 %v14085_v25  ;;  %9034 = vmatpush3.bf16.msra.mxu1 %v9965_v0  ;;  %v11489_v25 = vpop.f32.mrf.mxu1  ;;  %v9967_v0 = vld [vmem:[%s13607_s3 + $0x140] sm:$0xff]  }
 0x296   : > { %4097 = vst [vmem:[#allocation2 + $0x190] sm:$0x3] %v10101_v18  ;;  %4098 = vst [vmem:[#allocation2 + $0x198] sm:$0xff] %v10101_v18  ;;  %3911 = vmatprep.mubr.bf16.mxu0 %v14086_v20  ;;  %9482 = vmatpush3.bf16.msra.mxu0 %v9963_v14  ;;  %v9966_v20 = vld [vmem:[%s13607_s3 + $0x148] sm:$0xff]  }
 0x297   : > { %4099 = vst [vmem:[#allocation2 + $0x1a0] sm:$0xff] %v10101_v18  ;;  %4100 = vst [vmem:[#allocation2 + $0x1a8] sm:$0x3] %v10101_v18  ;;  %v8715_v18 = vpop.f32.mrf.mxu0  ;;  %9483 = vmatprep.subr.bf16.mxu0 %v9966_v20 }
 0x298   : > { %v11459_v40 = vadd.f32 %v8715_v18, %v8714_v58 }
 0x299   : > { %v8717_v34 = vpop.f32.mrf.mxu0 }
 0x29a   : > { %9484 = vmatpush3.bf16.msra.mxu0 %v9966_v20  ;;  %v14089_v20 = vld [vmem:[#allocation99_spill] sm:$0xff] }
 0x29b   : > { %v8718_v37 = vpop.f32.mrf.mxu0  ;;  %9485 = vmatprep.subr.bf16.mxu0 %v9967_v0 }
 0x29c   : > { %v11474_v11 = vadd.f32 %v8718_v37, %v8717_v34 }
 0x29d   : > { %v8720_v58 = vpop.f32.mrf.mxu0  ;;  %3912 = vmatmul.mubr.bf16.gmra.mxu0 %v14087_v41  ;;  %v7560_v41 = vcombine.high %v366_v1, %v11264_v57 }
 0x29e   : > { %3919 = vmatprep.mubr.bf16.mxu0 %v14088_v32  ;;  %9486 = vmatpush3.bf16.msra.mxu0 %v9967_v0 }
 0x29f   : > { %v8721_v18 = vpop.f32.mrf.mxu0  ;;  %v1302_v28 = vrot.slane %v7560_v41, 1  ;;  %v1299_v41 = vrot.slane %v7559_v5, 1 }
 0x2a0   : > { %v11487_v34 = vadd.f32 %v8721_v18, %v8720_v58  ;;  %v11499_v58 = vpop.f32.mrf.mxu1 }
 0x2a1   : > { %v8723_v29 = vpop.f32.mrf.mxu0  ;;  %v1304_v51 = vsel %vm1196_vm1, %v1302_v28, %v1303_v26  ;;  %v1301_v57 = vsel %vm1196_vm1, %v1299_v41, %v1300_v62 }
 0x2a2   : > { %v11509_v32 = vpop.f32.mrf.mxu1 }
 0x2a3   : > { %v8724_v37 = vpop.f32.mrf.mxu0 }
 0x2a4   : > { %v11496_v42 = vadd.f32 %v8724_v37, %v8723_v29  ;;  %v11516_v4 = vpop.f32.mrf.mxu1 }
 0x2a5   : > { %v11501_v14 = vpop.f32.mrf.mxu0  ;;  %3920 = vmatmul.mubr.bf16.gmra.mxu0 %v13992_v56 }
 0x2a6   : > { %3927 = vmatprep.mubr.bf16.mxu0 %v14089_v20  ;;  %v11524_v7 = vpop.f32.mrf.mxu1  ;;  %v14090_v20 = vld [vmem:[#allocation101_spill] sm:$0xff] }
 0x2a7   : > { %v11506_v18 = vpop.f32.mrf.mxu0 }
 0x2a8   : > { %v11530_v52 = vpop.f32.mrf.mxu1 }
 0x2a9   : > { %v8729_v29 = vpop.f32.mrf.mxu0 }
 0x2aa   : > { %v11537_v26 = vpop.f32.mrf.mxu1 }
 0x2ab   : > { %v8730_v37 = vpop.f32.mrf.mxu0 }
 0x2ac   : > { %v11514_v33 = vadd.f32 %v8730_v37, %v8729_v29  ;;  %v11541_v5 = vpop.f32.mrf.mxu1 }
 0x2ad   : > { %v11518_v2 = vpop.f32.mrf.mxu0  ;;  %3928 = vmatmul.mubr.bf16.gmra.mxu0 %v14090_v20 }
 0x2ae   : > { %3935 = vmatprep.mubr.bf16.mxu0 %v1304_v51 }
 0x2af   : > { %v11521_v0 = vpop.f32.mrf.mxu0 }
 0x2b1   : > { %v8735_v56 = vpop.f32.mrf.mxu0 }
 0x2b3   : > { %v8736_v29 = vpop.f32.mrf.mxu0 }
 0x2b4   : > { %v11528_v37 = vadd.f32 %v8736_v29, %v8735_v56  ;;  %v11547_v29 = vpop.f32.mrf.mxu1 }
 0x2b5   : > { %v11532_v19 = vpop.f32.mrf.mxu0  ;;  %3936 = vmatmul.mubr.bf16.gmra.mxu0 %v1301_v57 }
 0x2b6   : > { %14091 = vst [vmem:[#allocation21_spill] sm:$0xff] %v11528_v37  ;;  %14092 = vst [vmem:[#allocation25_spill] sm:$0xff] %v11532_v19  ;;  %v11551_v62 = vpop.f32.mrf.mxu1 }
 0x2b7   : > { %v11535_v1 = vpop.f32.mrf.mxu0 }
 0x2b8   : > { %14093 = vst [vmem:[#allocation9_spill] sm:$0xff] %v11535_v1 }
 0x2b9   : > { %v8741_v28 = vpop.f32.mrf.mxu0 }
 0x2bb   : > { %v8742_v20 = vpop.f32.mrf.mxu0 }
 0x2bc   : > { %v11539_v51 = vadd.f32 %v8742_v20, %v8741_v28  ;;  %v11557_v28 = vpop.f32.mrf.mxu1 }
 0x2bd   : > { %v11543_v61 = vpop.f32.mrf.mxu0 }
 0x2be   : > { %14094 = vst [vmem:[#allocation27_spill] sm:$0xff] %v11539_v51  ;;  %14095 = vst [vmem:[#allocation31_spill] sm:$0xff] %v11543_v61  ;;  %v11561_v50 = vpop.f32.mrf.mxu1 }
 0x2bf   : > { %v11545_v56 = vpop.f32.mrf.mxu0 }
 0x2c0   : > { %14096 = vst [vmem:[#allocation33_spill] sm:$0xff] %v11545_v56 }
 0x2c1   : > { %v8747_v9 = vpop.f32.mrf.mxu0 }
 0x2c3   : > { %v8748_v15 = vpop.f32.mrf.mxu0 }
 0x2c4   : > { %v11549_v41 = vadd.f32 %v8748_v15, %v8747_v9  ;;  %v11567_v15 = vpop.f32.mrf.mxu1 }
 0x2c5   : > { %v11553_v16 = vpop.f32.mrf.mxu0 }
 0x2c6   : > { %14097 = vst [vmem:[#allocation35_spill] sm:$0xff] %v11549_v41  ;;  %14098 = vst [vmem:[#allocation17_spill] sm:$0xff] %v11553_v16  ;;  %v11571_v16 = vpop.f32.mrf.mxu1 }
 0x2c7   : > { %v11555_v57 = vpop.f32.mrf.mxu0 }
 0x2c8   : > { %14099 = vst [vmem:[#allocation38_spill] sm:$0xff] %v11555_v57 }
 0x2c9   : > { %v8753_v20 = vpop.f32.mrf.mxu0 }
 0x2cb   : > { %v8754_v24 = vpop.f32.mrf.mxu0 }
 0x2cc   : > { %v11559_v12 = vadd.f32 %v8754_v24, %v8753_v20  ;;  %v11577_v24 = vpop.f32.mrf.mxu1 }
 0x2cd   : > { %v11563_v54 = vpop.f32.mrf.mxu0 }
 0x2ce   : > { %14100 = vst [vmem:[#allocation18_spill] sm:$0xff] %v11559_v12  ;;  %14101 = vst [vmem:[#allocation40_spill] sm:$0xff] %v11563_v54  ;;  %v11581_v54 = vpop.f32.mrf.mxu1 }
 0x2cf   : > { %v11565_v21 = vpop.f32.mrf.mxu0 }
 0x2d0   : > { %14102 = vst [vmem:[#allocation19_spill] sm:$0xff] %v11565_v21 }
 0x2d1   : > { %v8759_v9 = vpop.f32.mrf.mxu0 }
 0x2d3   : > { %v8760_v41 = vpop.f32.mrf.mxu0 }
 0x2d4   : > { %v11569_v56 = vadd.f32 %v8760_v41, %v8759_v9  ;;  %v11587_v41 = vpop.f32.mrf.mxu1 }
 0x2d5   : > { %v11573_v57 = vpop.f32.mrf.mxu0 }
 0x2d6   : > { %14103 = vst [vmem:[#allocation42_spill] sm:$0xff] %v11569_v56  ;;  %14104 = vst [vmem:[#allocation98_spill] sm:$0xff] %v11573_v57  ;;  %v9968_v57 = vld [vmem:[%s13607_s3 + $0x78] sm:$0xff]   ;;  %v11594_v38 = vpop.f32.mrf.mxu1 }
 0x2d7   : > { %v11575_v61 = vpop.f32.mrf.mxu0  ;;  %9155 = vmatprep.subr.bf16.mxu1 %v9968_v57 }
 0x2d8   : > { %14105 = vst [vmem:[#allocation43_spill] sm:$0xff] %v11575_v61 }
 0x2d9   : > { %v8765_v20 = vpop.f32.mrf.mxu0 }
 0x2db   : > { %v8766_v12 = vpop.f32.mrf.mxu0 }
 0x2dc   : > { %v11579_v51 = vadd.f32 %v8766_v12, %v8765_v20 }
 0x2dd   : > { %v11583_v21 = vpop.f32.mrf.mxu0 }
 0x2de   : > { %14106 = vst [vmem:[#allocation24_spill] sm:$0xff] %v11579_v51  ;;  %14107 = vst [vmem:[#allocation46_spill] sm:$0xff] %v11583_v21  ;;  %v11600_v21 = vpop.f32.mrf.mxu1 }
 0x2df   : > { %v11585_v23 = vpop.f32.mrf.mxu0  ;;  %14112 = vst [vmem:[#allocation51_spill] sm:$0xff] %v11600_v21 }
 0x2e0   : > { %14108 = vst [vmem:[#allocation26_spill] sm:$0xff] %v11585_v23  ;;  %v11604_v19 = vpop.f32.mrf.mxu1 }
 0x2e1   : > { %v8771_v9 = vpop.f32.mrf.mxu0  ;;  %14114 = vst [vmem:[#allocation52_spill] sm:$0xff] %v11604_v19 }
 0x2e3   : > { %v8772_v61 = vpop.f32.mrf.mxu0 }
 0x2e4   : > { %v11592_v56 = vadd.f32 %v8772_v61, %v8771_v9  ;;  %v11610_v61 = vpop.f32.mrf.mxu1 }
 0x2e5   : > { %v11596_v12 = vpop.f32.mrf.mxu0  ;;  %14117 = vst [vmem:[#allocation60_spill] sm:$0xff] %v11610_v61 }
 0x2e6   : > { %14109 = vst [vmem:[#allocation47_spill] sm:$0xff] %v11592_v56  ;;  %14110 = vst [vmem:[#allocation30_spill] sm:$0xff] %v11596_v12  ;;  %v11614_v12 = vpop.f32.mrf.mxu1 }
 0x2e7   : > { %v11598_v20 = vpop.f32.mrf.mxu0  ;;  %14119 = vst [vmem:[#allocation64_spill] sm:$0xff] %v11614_v12 }
 0x2e8   : > { %14111 = vst [vmem:[#allocation48_spill] sm:$0xff] %v11598_v20 }
 0x2e9   : > { %v8777_v23 = vpop.f32.mrf.mxu0 }
 0x2eb   : > { %v8778_v51 = vpop.f32.mrf.mxu0 }
 0x2ec   : > { %v11602_v1 = vadd.f32 %v8778_v51, %v8777_v23  ;;  %v11620_v23 = vpop.f32.mrf.mxu1 }
 0x2ed   : > { %v11606_v37 = vpop.f32.mrf.mxu0  ;;  %14122 = vst [vmem:[#allocation89_spill] sm:$0xff] %v11620_v23 }
 0x2ee   : > { %14113 = vst [vmem:[#allocation32_spill] sm:$0xff] %v11602_v1  ;;  %14115 = vst [vmem:[#allocation53_spill] sm:$0xff] %v11606_v37  ;;  %v11624_v37 = vpop.f32.mrf.mxu1 }
 0x2ef   : > { %v11608_v35 = vpop.f32.mrf.mxu0  ;;  %14124 = vst [vmem:[#allocation37_spill] sm:$0xff] %v11624_v37 }
 0x2f0   : > { %14116 = vst [vmem:[#allocation54_spill] sm:$0xff] %v11608_v35 }
 0x2f1   : > { %v8783_v57 = vpop.f32.mrf.mxu0 }
 0x2f3   : > { %v8784_v9 = vpop.f32.mrf.mxu0 }
 0x2f4   : > { %v11612_v56 = vadd.f32 %v8784_v9, %v8783_v57  ;;  %v8813_v57 = vadd.f32 %v11408_v43, %v11398_v22  ;;  %v11632_v9 = vpop.f32.mrf.mxu1 }
 0x2f5   : > { %v11616_v20 = vpop.f32.mrf.mxu0  ;;  %14127 = vst [vmem:[#allocation57_spill] sm:$0xff] %v11632_v9  ;;  %v11650_v9 = vld [vmem:[%s13606_s2] ss:$0 sm:$0xff] }
 0x2f6   : > { %14118 = vst [vmem:[#allocation62_spill] sm:$0xff] %v11612_v56  ;;  %14120 = vst [vmem:[#allocation66_spill] sm:$0xff] %v11616_v20 }
 0x2f7   : > { %v11618_v21 = vpop.f32.mrf.mxu0 }
 0x2f8   : > { %14121 = vst [vmem:[#allocation36_spill] sm:$0xff] %v11618_v21  ;;  %v11637_v21 = vld [vmem:[%s13607_s3 + $0xb8] sm:$0xff]  }
 0x2f9   : > { %v8789_v51 = vpop.f32.mrf.mxu0  ;;  %9519 = vmatprep.subr.bf16.mxu0 %v11637_v21 }
 0x2fb   : > { %v8790_v1 = vpop.f32.mrf.mxu0 }
 0x2fc   : > { %v11622_v19 = vadd.f32 %v8790_v1, %v8789_v51  ;;  %v3657_v1 = vadd.f32 %v8813_v57, %v11394_v44  ;;  %v8816_v51 = vadd.f32 %v11423_v48, %v11411_v30 }
 0x2fd   : > { %v11626_v35 = vpop.f32.mrf.mxu0 }
 0x2fe   : > { %14123 = vst [vmem:[#allocation67_spill] sm:$0xff] %v11622_v19  ;;  %14125 = vst [vmem:[#allocation69_spill] sm:$0xff] %v11626_v35  ;;  %v11643_v35 = vpop.f32.mrf.mxu1  ;;  %v8819_v19 = vadd.f32 %v11440_v13, %v11428_v27  ;;  %v3660_v23 = vadd.f32 %v8816_v51, %v11400_v49  ;;  %v8822_v13 = vadd.f32 %v11461_v3, %v11448_v45 }
 0x2ff   : > { %v11628_v61 = vpop.f32.mrf.mxu0  ;;  %14128 = vst [vmem:[#allocation39_spill] sm:$0xff] %v11643_v35 }
 0x300   : > { %14126 = vst [vmem:[#allocation92_spill] sm:$0xff] %v11628_v61  ;;  %v11654_v30 = vpop.f32.mrf.mxu1 }
 0x301   : > { %v8923_v20 = vpop.f32.mrf.mxu0 }
 0x302   : > { %v11661_v49 = vpop.f32.mrf.mxu1 }
 0x303   : > { %v8924_v56 = vpop.f32.mrf.mxu0 }
 0x304   : > { %v8925_v61 = vadd.f32 %v8924_v56, %v8923_v20 }
 0x305   : > { %v8926_v22 = vpop.f32.mrf.mxu0 }
 0x306   : > { %v3818_v43 = vadd.f32 %v8925_v61, %v3657_v1  ;;  %v3665_v61 = vadd.f32 %v8819_v19, %v11413_v47  ;;  %v3668_v19 = vadd.f32 %v8822_v13, %v11431_v17 }
 0x307   : > { %v8927_v37 = vpop.f32.mrf.mxu0 }
 0x308   : > { %v3944_v44 = vadd.f32 %v3818_v43, %v11232_v31  ;;  %v8928_v57 = vadd.f32 %v8927_v37, %v8926_v22  ;;  %v11668_v43 = vpop.f32.mrf.mxu1 }
 0x309   : > { %v8929_v48 = vpop.f32.mrf.mxu0 }
 0x30a   : > { %v3983_v56 = vadd.f32 %v11650_v9, %v3944_v44  ;;  %v3821_v20 = vadd.f32 %v8928_v57, %v3660_v23  ;;  %v8825_v23 = vadd.f32 %v11489_v25, %v11476_v8  ;;  %v8828_v8 = vadd.f32 %v11509_v32, %v11499_v58 }
 0x30b   : > { %v8930_v27 = vpop.f32.mrf.mxu0 }
 0x30c   : > { %v4015_v1 = vmax.f32 %v3983_v56, 0.0  ;;  %v3945_v35 = vadd.f32 %v3821_v20, %v11236_v59  ;;  %v8931_v12 = vadd.f32 %v8930_v27, %v8929_v48  ;;  %v11678_v56 = vpop.f32.mrf.mxu1 }
 0x30d   : > { %v8932_v31 = vpop.f32.mrf.mxu0 }
 0x30e   : > { %4102 = vst [vmem:[#allocation2 + $0x19] sm:$0xff] %v4015_v1  ;;  %v3984_v37 = vadd.f32 %v11650_v9, %v3945_v35  ;;  %v3826_v51 = vadd.f32 %v8931_v12, %v3665_v61  ;;  %v3673_v35 = vadd.f32 %v8825_v23, %v11446_v46  ;;  %v8831_v46 = vadd.f32 %v11524_v7, %v11516_v4 }
 0x30f   : > { %v8933_v22 = vpop.f32.mrf.mxu0 }
 0x310   : > { %v4016_v47 = vmax.f32 %v3984_v37, 0.0  ;;  %v3946_v45 = vadd.f32 %v3826_v51, %v11242_v60  ;;  %v8934_v3 = vadd.f32 %v8933_v22, %v8932_v31  ;;  %v9969_v37 = vld [vmem:[%s13607_s3 + $0x38] sm:$0xff]   ;;  %v11688_v51 = vpop.f32.mrf.mxu1 }
 0x311   : > { %v8935_v59 = vpop.f32.mrf.mxu0 }
 0x312   : > { %4103 = vst [vmem:[#allocation2 + $0x21] sm:$0xff] %v4016_v47  ;;  %v3985_v44 = vadd.f32 %v11650_v9, %v3946_v45  ;;  %v3829_v57 = vadd.f32 %v8934_v3, %v3668_v19  ;;  %v11671_v48 = vpack.c.bf16 %v4016_v47, %v4015_v1  ;;  %v3676_v1 = vadd.f32 %v8828_v8, %v11459_v40 }
 0x313   : > { %v8936_v12 = vpop.f32.mrf.mxu0  ;;  %v3681_v3 = vadd.f32 %v8831_v46, %v11474_v11  ;;  %v9971_v11 = vld [vmem:[%s13607_s3 + $0x30] sm:$0xff]  }
 0x314   : > { %v4017_v17 = vmax.f32 %v3985_v44, 0.0  ;;  %v3947_v25 = vadd.f32 %v3829_v57, %v11246_v36  ;;  %v8937_v60 = vadd.f32 %v8936_v12, %v8935_v59  ;;  %4569 = vmatprep.mubr.bf16.mxu1 %v11671_v48  ;;  %v8834_v57 = vadd.f32 %v11537_v26, %v11530_v52 }
 0x315   : > { %v8938_v20 = vpop.f32.mrf.mxu0  ;;  %v4136_v31 = vld [vmem:[#allocation2 + $0x18] sm:$0xff] }
 0x316   : > { %4104 = vst [vmem:[#allocation2 + $0x31] sm:$0xff] %v4017_v17  ;;  %v3986_v61 = vadd.f32 %v11650_v9, %v3947_v25  ;;  %v3834_v27 = vadd.f32 %v8937_v60, %v3673_v35  ;;  %v11706_v25 = vpop.f32.mrf.mxu1 }
 0x317   : > { %v8939_v13 = vpop.f32.mrf.mxu0 }
 0x318   : > { %v4018_v58 = vmax.f32 %v3986_v61, 0.0  ;;  %v3948_v32 = vadd.f32 %v3834_v27, %v11252_v53  ;;  %v8940_v36 = vadd.f32 %v8939_v13, %v8938_v20  ;;  %v9970_v53 = vld [vmem:[%s13607_s3 + $0x70] sm:$0xff]   ;;  %v3684_v61 = vadd.f32 %v8834_v57, %v11487_v34 }
 0x319   : > { %v8941_v23 = vpop.f32.mrf.mxu0  ;;  %v4244_v22 = vld [vmem:[#allocation2 + $0x1a] sm:$0xff]  ;;  %v4245_v19 = vld [vmem:[#allocation2 + $0x22] sm:$0xff] }
 0x31a   : > { %v4137_v47 = vld [vmem:[#allocation2 + $0x20] sm:$0xff]  ;;  %4105 = vst [vmem:[#allocation2 + $0x39] sm:$0xff] %v4018_v58  ;;  %v3987_v7 = vadd.f32 %v11650_v9, %v3948_v32  ;;  %v3837_v4 = vadd.f32 %v8940_v36, %v3676_v1  ;;  %v11691_v40 = vpack.c.bf16 %v4245_v19, %v4244_v22  ;;  %v11699_v44 = vpack.c.bf16 %v4018_v58, %v4017_v17  ;;  %v9973_v58 = vld [vmem:[%s13607_s3 + $0x28] sm:$0xff]   ;;  %v11723_v32 = vpop.f32.mrf.mxu1 }
 0x31b   : > { %v11693_v45 = vpack.c.bf16 %v4137_v47, %v4136_v31  ;;  %v8942_v59 = vpop.f32.mrf.mxu0  ;;  %v8837_v17 = vadd.f32 %v11547_v29, %v11541_v5  ;;  %v9977_v22 = vld [vmem:[%s13607_s3 + $0x60] sm:$0xff]   ;;  %v8728_v47 = vadd.f32 %v11506_v18, %v11501_v14 }
 0x31c   : > { %v4019_v35 = vmax.f32 %v3987_v7, 0.0  ;;  %v3949_v12 = vadd.f32 %v3837_v4, %v11256_v39  ;;  %v8943_v8 = vadd.f32 %v8942_v59, %v8941_v23  ;;  %9487 = vmatprep.mubr.bf16.mxu0 %v11691_v40  ;;  %v9972_v39 = vld [vmem:[%s13607_s3 + $0x68] sm:$0xff]   ;;  %v9978_v18 = vld [vmem:[%s13607_s3 + $0x20] sm:$0xff]  }
 0x31d   : > { %4570 = vmatmul.mubr.bf16.vlgmr.msra.gmra.mxu1 %v11693_v45  ;;  %v8944_v60 = vpop.f32.mrf.mxu0  ;;  %v4138_v1 = vld [vmem:[#allocation2 + $0x30] sm:$0xff]  ;;  %v3689_v19 = vadd.f32 %v8837_v17, %v11496_v42  ;;  %v11746_v42 = vpop.f32.mrf.mxu1 }
 0x31e   : > { %4577 = vmatprep.mubr.bf16.mxu1 %v11699_v44  ;;  %9156 = vmatpush3.bf16.msra.mxu1 %v9969_v37  ;;  %4106 = vst [vmem:[#allocation2 + $0x49] sm:$0xff] %v4019_v35  ;;  %v3988_v52 = vadd.f32 %v11650_v9, %v3949_v12  ;;  %v3842_v26 = vadd.f32 %v8943_v8, %v3681_v3  ;;  %v9976_v8 = vld [vmem:[%s13607_s3 + $0xa8] sm:$0xff]  }
 0x31f   : > { %9157 = vmatprep.subr.bf16.mxu1 %v9970_v53  ;;  %v8945_v20 = vpop.f32.mrf.mxu0  ;;  %v9975_v53 = vld [vmem:[%s13607_s3 + $0xb0] sm:$0xff]   ;;  %v8840_v3 = vadd.f32 %v11557_v28, %v11551_v62 }
 0x320   : > { %v4020_v27 = vmax.f32 %v3988_v52, 0.0  ;;  %v3950_v46 = vadd.f32 %v3842_v26, %v11266_v10  ;;  %v8946_v13 = vadd.f32 %v8945_v20, %v8944_v60  ;;  %v9981_v60 = vld [vmem:[%s13607_s3 + $0x58] sm:$0xff]  }
 0x321   : > { %v8947_v36 = vpop.f32.mrf.mxu0  ;;  %v4246_v31 = vld [vmem:[#allocation2 + $0x32] sm:$0xff]  ;;  %v4247_v37 = vld [vmem:[#allocation2 + $0x3a] sm:$0xff] }
 0x322   : > { %v4139_v23 = vld [vmem:[#allocation2 + $0x38] sm:$0xff]  ;;  %9158 = vmatpush3.bf16.msra.mxu1 %v9971_v11  ;;  %4107 = vst [vmem:[#allocation2 + $0x51] sm:$0xff] %v4020_v27  ;;  %v3989_v5 = vadd.f32 %v11650_v9, %v3950_v46  ;;  %v3845_v34 = vadd.f32 %v8946_v13, %v3684_v61  ;;  %v11726_v29 = vpack.c.bf16 %v4247_v37, %v4246_v31 }
 0x323   : > { %v11728_v10 = vpack.c.bf16 %v4139_v23, %v4138_v1  ;;  %9159 = vmatprep.subr.bf16.mxu1 %v9972_v39  ;;  %v8948_v7 = vpop.f32.mrf.mxu0  ;;  %v11736_v4 = vpack.c.bf16 %v4020_v27, %v4019_v35  ;;  %v3692_v11 = vadd.f32 %v8840_v3, %v8728_v47  ;;  %v8734_v31 = vadd.f32 %v11521_v0, %v11518_v2  ;;  %v9985_v0 = vld [vmem:[%s13607_s3 + $0x10] sm:$0xff]   ;;  %v9987_v3 = vld [vmem:[%s13607_s3 + $0x48] sm:$0xff]  }
 0x324   : > { %v4021_v59 = vmax.f32 %v3989_v5, 0.0  ;;  %v3951_v57 = vadd.f32 %v3845_v34, %v11272_v6  ;;  %v8949_v12 = vadd.f32 %v8948_v7, %v8947_v36  ;;  %9488 = vmatmul.mubr.bf16.vlgmr.msra.gmra.mxu0 %v11726_v29  ;;  %v8843_v6 = vadd.f32 %v11567_v15, %v11561_v50  ;;  %v9982_v50 = vld [vmem:[%s13607_s3 + $0x18] sm:$0xff]   ;;  %v11766_v15 = vpop.f32.mrf.mxu1  ;;  %v9979_v5 = vld [vmem:[%s13607_s3 + $0xa0] sm:$0xff]  }
 0x325   : > { %4578 = vmatmul.mubr.bf16.gmra.mxu1 %v11728_v10  ;;  %v8950_v14 = vpop.f32.mrf.mxu0  ;;  %9520 = vmatpush3.bf16.msra.mxu0 %v11637_v21  ;;  %v4140_v21 = vld [vmem:[#allocation2 + $0x48] sm:$0xff]  ;;  %v8846_v34 = vadd.f32 %v11577_v24, %v11571_v16 }
 0x326   : > { %4585 = vmatprep.mubr.bf16.mxu1 %v11736_v4  ;;  %9160 = vmatpush3.bf16.msra.mxu1 %v9973_v58  ;;  %4108 = vst [vmem:[#allocation2 + $0x61] sm:$0xff] %v4021_v59  ;;  %v3990_v62 = vadd.f32 %v11650_v9, %v3951_v57  ;;  %v3850_v28 = vadd.f32 %v8949_v12, %v3689_v19  ;;  %v9984_v58 = vld [vmem:[%s13607_s3 + $0x50] sm:$0xff]   ;;  %v11789_v2 = vpop.f32.mrf.mxu1  ;;  %v14129_v12 = vld [vmem:[#allocation44_spill] sm:$0xff] }
 0x327   : > { %9161 = vmatprep.subr.bf16.mxu1 %v9977_v22  ;;  %v8951_v35 = vpop.f32.mrf.mxu0  ;;  %9521 = vmatprep.subr.bf16.mxu0 %v9975_v53  ;;  %v3697_v36 = vadd.f32 %v8843_v6, %v11514_v33 }
 0x328   : > { %v4022_v52 = vmax.f32 %v3990_v62, 0.0  ;;  %v3952_v26 = vadd.f32 %v3850_v28, %v11280_v55  ;;  %v8952_v39 = vadd.f32 %v8951_v35, %v8950_v14 }
 0x329   : > { %v8953_v17 = vpop.f32.mrf.mxu0  ;;  %v4248_v20 = vld [vmem:[#allocation2 + $0x4a] sm:$0xff]  ;;  %v4249_v61 = vld [vmem:[#allocation2 + $0x52] sm:$0xff]  ;;  %9522 = vmatpush3.bf16.msra.mxu0 %v9975_v53 }
 0x32a   : > { %v4141_v27 = vld [vmem:[#allocation2 + $0x50] sm:$0xff]  ;;  %9162 = vmatpush3.bf16.msra.mxu1 %v9978_v18  ;;  %4109 = vst [vmem:[#allocation2 + $0x69] sm:$0xff] %v4022_v52  ;;  %v3991_v46 = vadd.f32 %v11650_v9, %v3952_v26  ;;  %v3853_v13 = vadd.f32 %v8952_v39, %v3692_v11  ;;  %v11769_v1 = vpack.c.bf16 %v4249_v61, %v4248_v20  ;;  %v9980_v53 = vld [vmem:[%s13607_s3 + $0x98] sm:$0xff]   ;;  %v9990_v39 = vld [vmem:[%s13607_s3 + $0x40] sm:$0xff]  }
 0x32b   : > { %v11771_v55 = vpack.c.bf16 %v4141_v27, %v4140_v21  ;;  %v8954_v37 = vpop.f32.mrf.mxu0  ;;  %v11779_v23 = vpack.c.bf16 %v4022_v52, %v4021_v59  ;;  %9523 = vmatprep.subr.bf16.mxu0 %v9976_v8  ;;  %9163 = vmatprep.subr.bf16.mxu1 %v9981_v60  ;;  %v3700_v59 = vadd.f32 %v8846_v34, %v8734_v31  ;;  %v14130_v21 = vld [vmem:[#allocation21_spill] sm:$0xff] }
 0x32c   : > { %v4023_v22 = vmax.f32 %v3991_v46, 0.0  ;;  %v3953_v19 = vadd.f32 %v3853_v13, %v11286_v63  ;;  %v8955_v47 = vadd.f32 %v8954_v37, %v8953_v17  ;;  %9491 = vmatprep.mubr.bf16.mxu0 %v11769_v1  ;;  %v8849_v63 = vadd.f32 %v11587_v41, %v11581_v54  ;;  %v9988_v54 = vld [vmem:[%s13607_s3 + $0x8] sm:$0xff]   ;;  %v11808_v41 = vpop.f32.mrf.mxu1  ;;  %v14131_v17 = vld [vmem:[#allocation25_spill] sm:$0xff] }
 0x32d   : > { %4586 = vmatmul.mubr.bf16.gmra.mxu1 %v11771_v55  ;;  %v8956_v33 = vpop.f32.mrf.mxu0  ;;  %9524 = vmatpush3.bf16.msra.mxu0 %v9976_v8  ;;  %v4142_v62 = vld [vmem:[#allocation2 + $0x60] sm:$0xff]  ;;  %v14132_v20 = vld [vmem:[#allocation9_spill] sm:$0xff] }
 0x32e   : > { %4593 = vmatprep.mubr.bf16.mxu1 %v11779_v23  ;;  %9164 = vmatpush3.bf16.msra.mxu1 %v9982_v50  ;;  %4110 = vst [vmem:[#allocation2 + $0x79] sm:$0xff] %v4023_v22  ;;  %v3992_v16 = vadd.f32 %v11650_v9, %v3953_v19  ;;  %v3858_v24 = vadd.f32 %v8955_v47, %v3697_v36  ;;  %v9983_v13 = vld [vmem:[%s13607_s3 + $0x90] sm:$0xff]   ;;  %v11831_v19 = vpop.f32.mrf.mxu1  ;;  %v9991_v47 = vld [vmem:[%s13607_s3] sm:$0xff]  }
 0x32f   : > { %9165 = vmatprep.subr.bf16.mxu1 %v9984_v58  ;;  %v8957_v7 = vpop.f32.mrf.mxu0  ;;  %9525 = vmatprep.subr.bf16.mxu0 %v9979_v5  ;;  %v3705_v50 = vadd.f32 %v8849_v63, %v14130_v21  ;;  %v8740_v61 = vadd.f32 %v14132_v20, %v14131_v17  ;;  %v14133_v58 = vld [vmem:[#allocation51_spill] sm:$0xff]  ;;  %v14134_v37 = vld [vmem:[#allocation45_spill] sm:$0xff] }
 0x330   : > { %v4024_v57 = vmax.f32 %v3992_v16, 0.0  ;;  %v3954_v14 = vadd.f32 %v3858_v24, %v14129_v12  ;;  %v8958_v18 = vadd.f32 %v8957_v7, %v8956_v33  ;;  %v8852_v36 = vadd.f32 %v14133_v58, %v11594_v38  ;;  %v14136_v16 = vld [vmem:[#allocation60_spill] sm:$0xff]  ;;  %v14140_v17 = vld [vmem:[#allocation33_spill] sm:$0xff]  ;;  %v9989_v58 = vld [vmem:[%s13607_s3 + $0x80] sm:$0xff]  }
 0x331   : > { %v8959_v28 = vpop.f32.mrf.mxu0  ;;  %v4250_v6 = vld [vmem:[#allocation2 + $0x62] sm:$0xff]  ;;  %v4251_v35 = vld [vmem:[#allocation2 + $0x6a] sm:$0xff]  ;;  %9526 = vmatpush3.bf16.msra.mxu0 %v9979_v5 }
 0x332   : > { %v4143_v8 = vld [vmem:[#allocation2 + $0x68] sm:$0xff]  ;;  %9166 = vmatpush3.bf16.msra.mxu1 %v9985_v0  ;;  %4111 = vst [vmem:[#allocation2 + $0x81] sm:$0xff] %v4024_v57  ;;  %v3993_v60 = vadd.f32 %v11650_v9, %v3954_v14  ;;  %v3861_v11 = vadd.f32 %v8958_v18, %v3700_v59  ;;  %v11811_v52 = vpack.c.bf16 %v4251_v35, %v4250_v6 }
 0x333   : > { %v11813_v26 = vpack.c.bf16 %v4143_v8, %v4142_v62  ;;  %v8960_v27 = vpop.f32.mrf.mxu0  ;;  %v11821_v46 = vpack.c.bf16 %v4024_v57, %v4023_v22  ;;  %9527 = vmatprep.subr.bf16.mxu0 %v9980_v53  ;;  %9167 = vmatprep.subr.bf16.mxu1 %v9987_v3  ;;  %v14135_v0 = vld [vmem:[#allocation52_spill] sm:$0xff]  ;;  %v3708_v3 = vadd.f32 %v8852_v36, %v8740_v61  ;;  %v14137_v57 = vld [vmem:[#allocation49_spill] sm:$0xff]  ;;  %v11844_v62 = vpop.f32.mrf.mxu1 }
 0x334   : > { %v4025_v31 = vmax.f32 %v3993_v60, 0.0  ;;  %v3955_v5 = vadd.f32 %v3861_v11, %v14134_v37  ;;  %v8961_v34 = vadd.f32 %v8960_v27, %v8959_v28  ;;  %9492 = vmatmul.mubr.bf16.gmra.mxu0 %v11811_v52  ;;  %v8855_v24 = vadd.f32 %v14136_v16, %v14135_v0  ;;  %v9986_v7 = vld [vmem:[%s13607_s3 + $0x88] sm:$0xff]   ;;  %v14142_v37 = vld [vmem:[#allocation89_spill] sm:$0xff] }
 0x335   : > { %4594 = vmatmul.mubr.bf16.gmra.mxu1 %v11813_v26  ;;  %v8962_v22 = vpop.f32.mrf.mxu0  ;;  %9528 = vmatpush3.bf16.msra.mxu0 %v9980_v53  ;;  %v4144_v18 = vld [vmem:[#allocation2 + $0x78] sm:$0xff]  ;;  %v14141_v36 = vld [vmem:[#allocation64_spill] sm:$0xff]  ;;  %v14144_v16 = vld [vmem:[#allocation37_spill] sm:$0xff] }
 0x336   : > { %4601 = vmatprep.mubr.bf16.mxu1 %v11821_v46  ;;  %9168 = vmatpush3.bf16.msra.mxu1 %v9988_v54  ;;  %4112 = vst [vmem:[#allocation2 + $0x91] sm:$0xff] %v4025_v31  ;;  %v3994_v38 = vadd.f32 %v11650_v9, %v3955_v5  ;;  %v3866_v33 = vadd.f32 %v8961_v34, %v3705_v50  ;;  %v14139_v50 = vld [vmem:[#allocation31_spill] sm:$0xff] }
 0x337   : > { %9169 = vmatprep.subr.bf16.mxu1 %v9990_v39  ;;  %v8963_v63 = vpop.f32.mrf.mxu0  ;;  %9529 = vmatprep.subr.bf16.mxu0 %v9983_v13  ;;  %v14138_v39 = vld [vmem:[#allocation27_spill] sm:$0xff]  ;;  %v8746_v20 = vadd.f32 %v14140_v17, %v14139_v50  ;;  %v8858_v5 = vadd.f32 %v14142_v37, %v14141_v36  ;;  %v14148_v36 = vld [vmem:[#allocation17_spill] sm:$0xff]  ;;  %v14149_v37 = vld [vmem:[#allocation38_spill] sm:$0xff] }
 0x338   : > { %v4026_v59 = vmax.f32 %v3994_v38, 0.0  ;;  %v3956_v12 = vadd.f32 %v3866_v33, %v14137_v57  ;;  %v8964_v14 = vadd.f32 %v8963_v63, %v8962_v22  ;;  %v3713_v21 = vadd.f32 %v8855_v24, %v14138_v39  ;;  %v14143_v22 = vld [vmem:[#allocation50_spill] sm:$0xff]  ;;  %v11864_v38 = vpop.f32.mrf.mxu1  ;;  %v14145_v24 = vld [vmem:[#allocation57_spill] sm:$0xff] }
 0x339   : > { %v8965_v54 = vpop.f32.mrf.mxu0  ;;  %v4252_v53 = vld [vmem:[#allocation2 + $0x7a] sm:$0xff]  ;;  %v4253_v28 = vld [vmem:[#allocation2 + $0x82] sm:$0xff]  ;;  %9530 = vmatpush3.bf16.msra.mxu0 %v9983_v13  ;;  %v8861_v63 = vadd.f32 %v14145_v24, %v14144_v16  ;;  %v3716_v57 = vadd.f32 %v8858_v5, %v8746_v20  ;;  %v8752_v5 = vadd.f32 %v14149_v37, %v14148_v36 }
 0x33a   : > { %v4145_v6 = vld [vmem:[#allocation2 + $0x80] sm:$0xff]  ;;  %9170 = vmatpush3.bf16.msra.mxu1 %v9991_v47  ;;  %4113 = vst [vmem:[#allocation2 + $0x99] sm:$0xff] %v4026_v59  ;;  %v3995_v35 = vadd.f32 %v11650_v9, %v3956_v12  ;;  %v3869_v8 = vadd.f32 %v8964_v14, %v3708_v3  ;;  %v11847_v60 = vpack.c.bf16 %v4253_v28, %v4252_v53  ;;  %v11874_v28 = vpop.f32.mrf.mxu1  ;;  %v14154_v37 = vld [vmem:[#allocation40_spill] sm:$0xff] }
 0x33b   : > { %v11849_v11 = vpack.c.bf16 %v4145_v6, %v4144_v18  ;;  %v8966_v61 = vpop.f32.mrf.mxu0  ;;  %v11854_v27 = vpack.c.bf16 %v4026_v59, %v4025_v31  ;;  %9531 = vmatprep.subr.bf16.mxu0 %v9986_v7  ;;  %v9992_v59 = vld [vmem:[%s13607_s3 + $0x1f8] sm:$0xff]   ;;  %v14146_v14 = vld [vmem:[#allocation55_spill] sm:$0xff] }
 0x33c   : > { %v4027_v34 = vmax.f32 %v3995_v35, 0.0  ;;  %v3957_v47 = vadd.f32 %v3869_v8, %v14143_v22  ;;  %v8967_v13 = vadd.f32 %v8966_v61, %v8965_v54  ;;  %9495 = vmatprep.mubr.bf16.mxu0 %v11847_v60  ;;  %v14147_v20 = vld [vmem:[#allocation35_spill] sm:$0xff] }
 0x33d   : > { %4602 = vmatmul.mubr.bf16.gmra.mxu1 %v11849_v11  ;;  %v8968_v31 = vpop.f32.mrf.mxu0  ;;  %9532 = vmatpush3.bf16.msra.mxu0 %v9986_v7  ;;  %v4146_v53 = vld [vmem:[#allocation2 + $0x90] sm:$0xff]  ;;  %v3721_v61 = vadd.f32 %v8861_v63, %v14147_v20 }
 0x33e   : > { %4609 = vmatprep.mubr.bf16.mxu1 %v11854_v27  ;;  %4114 = vst [vmem:[#allocation2 + $0xa9] sm:$0xff] %v4027_v34  ;;  %v3996_v33 = vadd.f32 %v11650_v9, %v3957_v47  ;;  %v3874_v0 = vadd.f32 %v8967_v13, %v3713_v21  ;;  %9533 = vmatprep.subr.bf16.mxu0 %v9989_v58  ;;  %v14150_v13 = vld [vmem:[#allocation39_spill] sm:$0xff] }
 0x33f   : > { %v8969_v3 = vpop.f32.mrf.mxu0 }
 0x340   : > { %v4028_v12 = vmax.f32 %v3996_v33, 0.0  ;;  %v3958_v18 = vadd.f32 %v3874_v0, %v14146_v14  ;;  %v8970_v54 = vadd.f32 %v8969_v3, %v8968_v31  ;;  %v8864_v31 = vadd.f32 %v11654_v30, %v14150_v13  ;;  %v14151_v0 = vld [vmem:[#allocation56_spill] sm:$0xff]  ;;  %v14152_v14 = vld [vmem:[#allocation58_spill] sm:$0xff] }
 0x341   : > { %v8971_v6 = vpop.f32.mrf.mxu0  ;;  %v4254_v35 = vld [vmem:[#allocation2 + $0x92] sm:$0xff]  ;;  %v4255_v7 = vld [vmem:[#allocation2 + $0x9a] sm:$0xff]  ;;  %9534 = vmatpush3.bf16.msra.mxu0 %v9989_v58  ;;  %v11891_v58 = vpop.f32.mrf.mxu1  ;;  %v8867_v30 = vadd.f32 %v11668_v43, %v11661_v49 }
 0x342   : > { %v4147_v8 = vld [vmem:[#allocation2 + $0x98] sm:$0xff]  ;;  %4115 = vst [vmem:[#allocation2 + $0xb1] sm:$0xff] %v4028_v12  ;;  %v3997_v39 = vadd.f32 %v11650_v9, %v3958_v18  ;;  %v3877_v21 = vadd.f32 %v8970_v54, %v3716_v57  ;;  %v11877_v50 = vpack.c.bf16 %v4255_v7, %v4254_v35  ;;  %v11884_v47 = vpack.c.bf16 %v4028_v12, %v4027_v34 }
 0x343   : > { %v11879_v17 = vpack.c.bf16 %v4147_v8, %v4146_v53  ;;  %v8972_v22 = vpop.f32.mrf.mxu0  ;;  %9291 = vmatprep.subr.bf16.mxu0 %v9992_v59  ;;  %v3724_v57 = vadd.f32 %v8864_v31, %v8752_v5  ;;  %v14153_v43 = vld [vmem:[#allocation18_spill] sm:$0xff]  ;;  %v14155_v5 = vld [vmem:[#allocation19_spill] sm:$0xff] }
 0x344   : > { %v4029_v33 = vmax.f32 %v3997_v39, 0.0  ;;  %v3959_v16 = vadd.f32 %v3877_v21, %v14151_v0  ;;  %v8973_v24 = vadd.f32 %v8972_v22, %v8971_v6  ;;  %9496 = vmatmul.mubr.bf16.gmra.mxu0 %v11877_v50  ;;  %v11898_v6 = vpop.f32.mrf.mxu1  ;;  %v3729_v36 = vadd.f32 %v8867_v30, %v14153_v43 }
 0x345   : > { %4610 = vmatmul.mubr.bf16.gmra.mxu1 %v11879_v17  ;;  %v8974_v63 = vpop.f32.mrf.mxu0  ;;  %v4148_v53 = vld [vmem:[#allocation2 + $0xa8] sm:$0xff]  ;;  %v8758_v22 = vadd.f32 %v14155_v5, %v14154_v37  ;;  %v8870_v0 = vadd.f32 %v11688_v51, %v11678_v56  ;;  %v8873_v56 = vadd.f32 %v11723_v32, %v11706_v25  ;;  %v14158_v32 = vld [vmem:[#allocation42_spill] sm:$0xff] }
 0x346   : > { %4617 = vmatprep.mubr.bf16.mxu1 %v11884_v47  ;;  %4116 = vst [vmem:[#allocation2 + $0xc1] sm:$0xff] %v4029_v33  ;;  %v3998_v34 = vadd.f32 %v11650_v9, %v3959_v16  ;;  %v3882_v3 = vadd.f32 %v8973_v24, %v3721_v61  ;;  %v14156_v24 = vld [vmem:[#allocation61_spill] sm:$0xff]  ;;  %v14159_v5 = vld [vmem:[#allocation98_spill] sm:$0xff] }
 0x347   : > { %v8975_v59 = vpop.f32.mrf.mxu0  ;;  %v3737_v37 = vadd.f32 %v8873_v56, %v14158_v32 }
 0x348   : > { %v4030_v12 = vmax.f32 %v3998_v34, 0.0  ;;  %v3960_v18 = vadd.f32 %v3882_v3, %v14152_v14  ;;  %v8976_v54 = vadd.f32 %v8975_v59, %v8974_v63  ;;  %v11915_v3 = vpop.f32.mrf.mxu1  ;;  %v14157_v14 = vld [vmem:[#allocation68_spill] sm:$0xff] }
 0x349   : > { %v8977_v35 = vpop.f32.mrf.mxu0  ;;  %v4256_v7 = vld [vmem:[#allocation2 + $0xaa] sm:$0xff]  ;;  %v4257_v8 = vld [vmem:[#allocation2 + $0xb2] sm:$0xff] }
 0x34a   : > { %v4149_v39 = vld [vmem:[#allocation2 + $0xb0] sm:$0xff]  ;;  %4117 = vst [vmem:[#allocation2 + $0xc9] sm:$0xff] %v4030_v12  ;;  %v3999_v21 = vadd.f32 %v11650_v9, %v3960_v18  ;;  %v3885_v20 = vadd.f32 %v8976_v54, %v3724_v57  ;;  %v11901_v61 = vpack.c.bf16 %v4257_v8, %v4256_v7  ;;  %v11908_v31 = vpack.c.bf16 %v4030_v12, %v4029_v33 }
 0x34b   : > { %v11903_v49 = vpack.c.bf16 %v4149_v39, %v4148_v53  ;;  %v8978_v13 = vpop.f32.mrf.mxu0  ;;  %v3732_v57 = vadd.f32 %v8870_v0, %v8758_v22  ;;  %v14160_v22 = vld [vmem:[#allocation43_spill] sm:$0xff] }
 0x34c   : > { %v4031_v16 = vmax.f32 %v3999_v21, 0.0  ;;  %v3961_v63 = vadd.f32 %v3885_v20, %v14156_v24  ;;  %v8979_v34 = vadd.f32 %v8978_v13, %v8977_v35  ;;  %9499 = vmatprep.mubr.bf16.mxu0 %v11901_v61  ;;  %v11922_v35 = vpop.f32.mrf.mxu1  ;;  %v8764_v13 = vadd.f32 %v14160_v22, %v14159_v5  ;;  %v14163_v22 = vld [vmem:[#allocation24_spill] sm:$0xff] }
 0x34d   : > { %4618 = vmatmul.mubr.bf16.gmra.mxu1 %v11903_v49  ;;  %v8980_v30 = vpop.f32.mrf.mxu0  ;;  %v4150_v53 = vld [vmem:[#allocation2 + $0xc0] sm:$0xff] }
 0x34e   : > { %4625 = vmatprep.mubr.bf16.mxu1 %v11908_v31  ;;  %4118 = vst [vmem:[#allocation2 + $0xd9] sm:$0xff] %v4031_v16  ;;  %v4000_v33 = vadd.f32 %v11650_v9, %v3961_v63  ;;  %v3890_v59 = vadd.f32 %v8979_v34, %v3729_v36  ;;  %v8876_v63 = vadd.f32 %v11766_v15, %v11746_v42 }
 0x34f   : > { %v8981_v51 = vpop.f32.mrf.mxu0 }
 0x350   : > { %v4032_v12 = vmax.f32 %v4000_v33, 0.0  ;;  %v3962_v18 = vadd.f32 %v3890_v59, %v14157_v14  ;;  %v8982_v54 = vadd.f32 %v8981_v51, %v8980_v30  ;;  %v14161_v30 = vld [vmem:[#allocation70_spill] sm:$0xff]  ;;  %v11939_v51 = vpop.f32.mrf.mxu1  ;;  %v3740_v14 = vadd.f32 %v8876_v63, %v8764_v13 }
 0x351   : > { %v8983_v7 = vpop.f32.mrf.mxu0  ;;  %v4258_v8 = vld [vmem:[#allocation2 + $0xc2] sm:$0xff]  ;;  %v4259_v39 = vld [vmem:[#allocation2 + $0xca] sm:$0xff]  ;;  %v14165_v63 = vld [vmem:[#allocation26_spill] sm:$0xff] }
 0x352   : > { %v4151_v21 = vld [vmem:[#allocation2 + $0xc8] sm:$0xff]  ;;  %4119 = vst [vmem:[#allocation2 + $0xe1] sm:$0xff] %v4032_v12  ;;  %v4001_v20 = vadd.f32 %v11650_v9, %v3962_v18  ;;  %v3893_v43 = vadd.f32 %v8982_v54, %v3732_v57  ;;  %v11925_v36 = vpack.c.bf16 %v4259_v39, %v4258_v8  ;;  %v11932_v24 = vpack.c.bf16 %v4032_v12, %v4031_v16  ;;  %v11945_v16 = vld [vmem:[%s13607_s3 + $0x238] sm:$0xff]   ;;  %v14162_v54 = vld [vmem:[#allocation71_spill] sm:$0xff]  ;;  %v11952_v39 = vpop.f32.mrf.mxu1 }
 0x353   : > { %v11927_v25 = vpack.c.bf16 %v4151_v21, %v4150_v53  ;;  %v8984_v0 = vpop.f32.mrf.mxu0  ;;  %v8879_v57 = vadd.f32 %v11808_v41, %v11789_v2  ;;  %9567 = vmatprep.subr.bf16.mxu1 %v11945_v16 }
 0x354   : > { %v4033_v34 = vmax.f32 %v4001_v20, 0.0  ;;  %v3963_v33 = vadd.f32 %v3893_v43, %v14161_v30  ;;  %v8985_v59 = vadd.f32 %v8984_v0, %v8983_v7  ;;  %9500 = vmatmul.mubr.bf16.gmra.mxu0 %v11925_v36  ;;  %v14164_v0 = vld [vmem:[#allocation46_spill] sm:$0xff] }
 0x355   : > { %4626 = vmatmul.mubr.bf16.gmra.mxu1 %v11927_v25  ;;  %v8986_v56 = vpop.f32.mrf.mxu0  ;;  %v4152_v8 = vld [vmem:[#allocation2 + $0xd8] sm:$0xff]  ;;  %v3745_v13 = vadd.f32 %v8879_v57, %v14163_v22  ;;  %v8770_v30 = vadd.f32 %v14165_v63, %v14164_v0 }
 0x356   : > { %4633 = vmatprep.mubr.bf16.mxu1 %v11932_v24  ;;  %4120 = vst [vmem:[#allocation2 + $0xf1] sm:$0xff] %v4033_v34  ;;  %v4002_v42 = vadd.f32 %v11650_v9, %v3963_v33  ;;  %v3898_v15 = vadd.f32 %v8985_v59, %v3737_v37 }
 0x357   : > { %v8987_v12 = vpop.f32.mrf.mxu0 }
 0x358   : > { %v4034_v18 = vmax.f32 %v4002_v42, 0.0  ;;  %v3964_v53 = vadd.f32 %v3898_v15, %v14162_v54  ;;  %v8988_v7 = vadd.f32 %v8987_v12, %v8986_v56  ;;  %v8882_v56 = vadd.f32 %v11844_v62, %v11831_v19  ;;  %v14166_v15 = vld [vmem:[#allocation72_spill] sm:$0xff] }
 0x359   : > { %v8989_v21 = vpop.f32.mrf.mxu0  ;;  %v4260_v20 = vld [vmem:[#allocation2 + $0xda] sm:$0xff]  ;;  %v4261_v43 = vld [vmem:[#allocation2 + $0xe2] sm:$0xff]  ;;  %v8885_v19 = vadd.f32 %v11874_v28, %v11864_v38 }
 0x35a   : > { %v4153_v32 = vld [vmem:[#allocation2 + $0xe0] sm:$0xff]  ;;  %4121 = vst [vmem:[#allocation2 + $0xf9] sm:$0xff] %v4034_v18  ;;  %v4003_v37 = vadd.f32 %v11650_v9, %v3964_v53  ;;  %v3901_v5 = vadd.f32 %v8988_v7, %v3740_v14  ;;  %v11955_v2 = vpack.c.bf16 %v4261_v43, %v4260_v20  ;;  %v11962_v59 = vpack.c.bf16 %v4034_v18, %v4033_v34  ;;  %v11969_v14 = vpop.f32.mrf.mxu1 }
 0x35b   : > { %v11957_v41 = vpack.c.bf16 %v4153_v32, %v4152_v8  ;;  %v8990_v33 = vpop.f32.mrf.mxu0  ;;  %v3748_v53 = vadd.f32 %v8882_v56, %v8770_v30  ;;  %v14167_v8 = vld [vmem:[#allocation73_spill] sm:$0xff]  ;;  %v14168_v38 = vld [vmem:[#allocation47_spill] sm:$0xff]  ;;  %v14169_v30 = vld [vmem:[#allocation30_spill] sm:$0xff] }
 0x35c   : > { %v4035_v42 = vmax.f32 %v4003_v37, 0.0  ;;  %v3965_v12 = vadd.f32 %v3901_v5, %v14166_v15  ;;  %v8991_v54 = vadd.f32 %v8990_v33, %v8989_v21  ;;  %9503 = vmatprep.mubr.bf16.mxu0 %v11955_v2  ;;  %v8896_v32 = vpop.f32.mrf.mxu1  ;;  %v3753_v28 = vadd.f32 %v8885_v19, %v14168_v38  ;;  %v14170_v56 = vld [vmem:[#allocation48_spill] sm:$0xff] }
 0x35d   : > { %4634 = vmatmul.mubr.bf16.gmra.mxu1 %v11957_v41  ;;  %v8992_v57 = vpop.f32.mrf.mxu0  ;;  %v4154_v43 = vld [vmem:[#allocation2 + $0xf0] sm:$0xff] }
 0x35e   : > { %4641 = vmatprep.mubr.bf16.mxu1 %v11962_v59  ;;  %4122 = vst [vmem:[#allocation2 + $0x109] sm:$0xff] %v4035_v42  ;;  %v4004_v34 = vadd.f32 %v11650_v9, %v3965_v12  ;;  %v3906_v18 = vadd.f32 %v8991_v54, %v3745_v13  ;;  %v8776_v12 = vadd.f32 %v14170_v56, %v14169_v30 }
 0x35f   : > { %v8993_v62 = vpop.f32.mrf.mxu0 }
 0x360   : > { %v4036_v7 = vmax.f32 %v4004_v34, 0.0  ;;  %v3966_v21 = vadd.f32 %v3906_v18, %v14167_v8  ;;  %v8994_v20 = vadd.f32 %v8993_v62, %v8992_v57  ;;  %v8888_v34 = vadd.f32 %v11898_v6, %v11891_v58  ;;  %v14172_v62 = vld [vmem:[#allocation84_spill] sm:$0xff] }
 0x361   : > { %v8995_v37 = vpop.f32.mrf.mxu0  ;;  %v4262_v5 = vld [vmem:[#allocation2 + $0xf2] sm:$0xff]  ;;  %v4263_v22 = vld [vmem:[#allocation2 + $0xfa] sm:$0xff] }
 0x362   : > { %v4155_v0 = vld [vmem:[#allocation2 + $0xf8] sm:$0xff]  ;;  %4123 = vst [vmem:[#allocation2 + $0x111] sm:$0xff] %v4036_v7  ;;  %v4005_v63 = vadd.f32 %v11650_v9, %v3966_v21  ;;  %v3909_v33 = vadd.f32 %v8994_v20, %v3748_v53  ;;  %v11977_v13 = vpack.c.bf16 %v4263_v22, %v4262_v5  ;;  %v11984_v57 = vpack.c.bf16 %v4036_v7, %v4035_v42  ;;  %v8898_v53 = vpop.f32.mrf.mxu1  ;;  %v14173_v5 = vld [vmem:[#allocation7_spill] sm:$0xff] }
 0x363   : > { %v11979_v15 = vpack.c.bf16 %v4155_v0, %v4154_v43  ;;  %v8996_v54 = vpop.f32.mrf.mxu0  ;;  %v8891_v7 = vadd.f32 %v11922_v35, %v11915_v3  ;;  %v3756_v6 = vadd.f32 %v8888_v34, %v8776_v12  ;;  %v14175_v3 = vld [vmem:[#allocation32_spill] sm:$0xff]  ;;  %v14176_v12 = vld [vmem:[#allocation53_spill] sm:$0xff]  ;;  %v14177_v34 = vld [vmem:[#allocation54_spill] sm:$0xff] }
 0x364   : > { %14171 = vst [vmem:[#allocation65_spill] sm:$0xff] %v11984_v57  ;;  %v4037_v18 = vmax.f32 %v4005_v63, 0.0  ;;  %v3967_v8 = vadd.f32 %v3909_v33, %v14172_v62  ;;  %v8997_v21 = vadd.f32 %v8996_v54, %v8995_v37  ;;  %9504 = vmatmul.mubr.bf16.gmra.mxu0 %v11977_v13  ;;  %v8899_v63 = vpop.f32.mrf.mxu1 }
 0x365   : > { %4642 = vmatmul.mubr.bf16.gmra.mxu1 %v11979_v15  ;;  %v8998_v20 = vpop.f32.mrf.mxu0  ;;  %v4156_v0 = vld [vmem:[#allocation2 + $0x108] sm:$0xff]  ;;  %v3761_v35 = vadd.f32 %v8891_v7, %v14175_v3 }
 0x366   : > { %4649 = vmatprep.mubr.bf16.mxu1 %v11984_v57  ;;  %4124 = vst [vmem:[#allocation2 + $0x121] sm:$0xff] %v4037_v18  ;;  %v4006_v19 = vadd.f32 %v11650_v9, %v3967_v8  ;;  %v3914_v42 = vadd.f32 %v8997_v21, %v3753_v28  ;;  %v8782_v21 = vadd.f32 %v14177_v34, %v14176_v12 }
 0x367   : > { %v8999_v58 = vpop.f32.mrf.mxu0 }
 0x368   : > { %v4038_v43 = vmax.f32 %v4006_v19, 0.0  ;;  %v3968_v37 = vadd.f32 %v3914_v42, %v14173_v5  ;;  %v9000_v22 = vadd.f32 %v8999_v58, %v8998_v20  ;;  %v8894_v42 = vadd.f32 %v11952_v39, %v11939_v51  ;;  %v14179_v5 = vld [vmem:[#allocation63_spill] sm:$0xff] }
 0x369   : > { %v9001_v33 = vpop.f32.mrf.mxu0  ;;  %v4264_v38 = vld [vmem:[#allocation2 + $0x10a] sm:$0xff]  ;;  %v4265_v30 = vld [vmem:[#allocation2 + $0x112] sm:$0xff] }
 0x36a   : > { %v4157_v56 = vld [vmem:[#allocation2 + $0x110] sm:$0xff]  ;;  %4125 = vst [vmem:[#allocation2 + $0x129] sm:$0xff] %v4038_v43  ;;  %v4007_v54 = vadd.f32 %v11650_v9, %v3968_v37  ;;  %v3917_v62 = vadd.f32 %v9000_v22, %v3756_v6  ;;  %v11997_v28 = vpack.c.bf16 %v4265_v30, %v4264_v38  ;;  %v12004_v19 = vpack.c.bf16 %v4038_v43, %v4037_v18  ;;  %v8901_v6 = vpop.f32.mrf.mxu1 }
 0x36b   : > { %v11999_v8 = vpack.c.bf16 %v4157_v56, %v4156_v0  ;;  %v9002_v20 = vpop.f32.mrf.mxu0  ;;  %v8897_v43 = vadd.f32 %v8896_v32, %v11969_v14  ;;  %v3764_v51 = vadd.f32 %v8894_v42, %v8782_v21  ;;  %v14180_v38 = vld [vmem:[#allocation93_spill] sm:$0xff]  ;;  %v14181_v14 = vld [vmem:[#allocation62_spill] sm:$0xff]  ;;  %v14183_v42 = vld [vmem:[#allocation36_spill] sm:$0xff] }
 0x36c   : > { %14178 = vst [vmem:[#allocation96_spill] sm:$0xff] %v12004_v19  ;;  %v4039_v58 = vmax.f32 %v4007_v54, 0.0  ;;  %v3969_v57 = vadd.f32 %v3917_v62, %v14179_v5  ;;  %v9003_v37 = vadd.f32 %v9002_v20, %v9001_v33  ;;  %9507 = vmatprep.mubr.bf16.mxu0 %v11997_v28  ;;  %v8902_v54 = vpop.f32.mrf.mxu1  ;;  %v14182_v21 = vld [vmem:[#allocation66_spill] sm:$0xff] }
 0x36d   : > { %14174 = vst [vmem:[#allocation8_spill] sm:$0xff] %v11999_v8  ;;  %4650 = vmatmul.mubr.bf16.gmra.mxu1 %v11999_v8  ;;  %v9004_v22 = vpop.f32.mrf.mxu0  ;;  %v4158_v56 = vld [vmem:[#allocation2 + $0x120] sm:$0xff]  ;;  %v3769_v32 = vadd.f32 %v8897_v43, %v14181_v14 }
 0x36e   : > { %4657 = vmatprep.mubr.bf16.mxu1 %v12004_v19  ;;  %4126 = vst [vmem:[#allocation2 + $0x139] sm:$0xff] %v4039_v58  ;;  %v4008_v7 = vadd.f32 %v11650_v9, %v3969_v57  ;;  %v3922_v18 = vadd.f32 %v9003_v37, %v3761_v35  ;;  %v8788_v37 = vadd.f32 %v14183_v42, %v14182_v21 }
 0x36f   : > { %v9005_v0 = vpop.f32.mrf.mxu0 }
 0x370   : > { %v4040_v39 = vmax.f32 %v4008_v7, 0.0  ;;  %v3970_v30 = vadd.f32 %v3922_v18, %v14180_v38  ;;  %v9006_v33 = vadd.f32 %v9005_v0, %v9004_v22  ;;  %v8900_v18 = vadd.f32 %v8899_v63, %v8898_v53  ;;  %v14185_v38 = vld [vmem:[#allocation11_spill] sm:$0xff]  ;;  %v14186_v63 = vld [vmem:[#allocation10_spill] sm:$0xff] }
 0x371   : > { %v9007_v62 = vpop.f32.mrf.mxu0  ;;  %v4266_v3 = vld [vmem:[#allocation2 + $0x122] sm:$0xff]  ;;  %v4267_v12 = vld [vmem:[#allocation2 + $0x12a] sm:$0xff] }
 0x372   : > { %v4159_v34 = vld [vmem:[#allocation2 + $0x128] sm:$0xff]  ;;  %4127 = vst [vmem:[#allocation2 + $0x141] sm:$0xff] %v4040_v39  ;;  %v4009_v20 = vadd.f32 %v11650_v9, %v3970_v30  ;;  %v3925_v5 = vadd.f32 %v9006_v33, %v3764_v51  ;;  %v12016_v57 = vpack.c.bf16 %v4267_v12, %v4266_v3  ;;  %v12023_v7 = vpack.c.bf16 %v4040_v39, %v4039_v58  ;;  %v8904_v51 = vpop.f32.mrf.mxu1 }
 0x373   : > { %v12018_v35 = vpack.c.bf16 %v4159_v34, %v4158_v56  ;;  %v9008_v22 = vpop.f32.mrf.mxu0  ;;  %v8903_v56 = vadd.f32 %v8902_v54, %v8901_v6  ;;  %v3772_v39 = vadd.f32 %v8900_v18, %v8788_v37  ;;  %v14188_v54 = vld [vmem:[#allocation69_spill] sm:$0xff] }
 0x374   : > { %14184 = vst [vmem:[#allocation59_spill] sm:$0xff] %v12023_v7  ;;  %v4041_v0 = vmax.f32 %v4009_v20, 0.0  ;;  %v3971_v19 = vadd.f32 %v3925_v5, %v14185_v38  ;;  %v9009_v8 = vadd.f32 %v9008_v22, %v9007_v62  ;;  %9508 = vmatmul.mubr.bf16.gmra.mxu0 %v12016_v57  ;;  %v8905_v34 = vpop.f32.mrf.mxu1 }
 0x375   : > { %4658 = vmatmul.mubr.bf16.gmra.mxu1 %v12018_v35  ;;  %v9010_v30 = vpop.f32.mrf.mxu0  ;;  %v4160_v62 = vld [vmem:[#allocation2 + $0x138] sm:$0xff] }
 0x376   : > { %4665 = vmatprep.mubr.bf16.mxu1 %v12023_v7  ;;  %4128 = vst [vmem:[#allocation2 + $0x151] sm:$0xff] %v4041_v0  ;;  %v4010_v43 = vadd.f32 %v11650_v9, %v3971_v19  ;;  %v3930_v33 = vadd.f32 %v9009_v8, %v3769_v32  ;;  %v14187_v19 = vld [vmem:[#allocation67_spill] sm:$0xff]  ;;  %v14189_v32 = vld [vmem:[#allocation92_spill] sm:$0xff] }
 0x377   : > { %v9011_v58 = vpop.f32.mrf.mxu0  ;;  %v3777_v6 = vadd.f32 %v8903_v56, %v14187_v19  ;;  %v8794_v37 = vadd.f32 %v14189_v32, %v14188_v54  ;;  %v10058_v56 = vld [vmem:[%s13606_s2] ss:$0 sm:$0xff] }
 0x378   : > { %v4042_v53 = vmax.f32 %v4010_v43, 0.0  ;;  %v3972_v3 = vadd.f32 %v3930_v33, %v14186_v63  ;;  %v9012_v12 = vadd.f32 %v9011_v58, %v9010_v30  ;;  %v8906_v43 = vadd.f32 %v8905_v34, %v8904_v51  ;;  %v14190_v58 = vld [vmem:[#allocation13_spill] sm:$0xff] }
 0x379   : > { %v9013_v20 = vpop.f32.mrf.mxu0  ;;  %v4268_v5 = vld [vmem:[#allocation2 + $0x13a] sm:$0xff]  ;;  %v4269_v14 = vld [vmem:[#allocation2 + $0x142] sm:$0xff] }
 0x37a   : > { %v4161_v21 = vld [vmem:[#allocation2 + $0x140] sm:$0xff]  ;;  %4129 = vst [vmem:[#allocation2 + $0x159] sm:$0xff] %v4042_v53  ;;  %v4011_v42 = vadd.f32 %v11650_v9, %v3972_v3  ;;  %v3933_v22 = vadd.f32 %v9012_v12, %v3772_v39  ;;  %v12032_v38 = vpack.c.bf16 %v4269_v14, %v4268_v5  ;;  %v12039_v30 = vpack.c.bf16 %v4042_v53, %v4041_v0 }
 0x37b   : > { %v12034_v8 = vpack.c.bf16 %v4161_v21, %v4160_v62  ;;  %v9014_v18 = vpop.f32.mrf.mxu0  ;;  %v3780_v51 = vadd.f32 %v8906_v43, %v8794_v37  ;;  %v14191_v12 = vld [vmem:[#allocation15_spill] sm:$0xff] }
 0x37c   : > { %v4043_v33 = vmax.f32 %v4011_v42, 0.0  ;;  %v3973_v63 = vadd.f32 %v3933_v22, %v14190_v58  ;;  %v9015_v7 = vadd.f32 %v9014_v18, %v9013_v20  ;;  %9511 = vmatprep.mubr.bf16.mxu0 %v12032_v38 }
 0x37d   : > { %4666 = vmatmul.mubr.bf16.gmra.mxu1 %v12034_v8  ;;  %v9016_v9 = vpop.f32.mrf.mxu0  ;;  %v4162_v20 = vld [vmem:[#allocation2 + $0x150] sm:$0xff] }
 0x37e   : > { %4673 = vmatprep.mubr.bf16.mxu1 %v12039_v30  ;;  %4130 = vst [vmem:[#allocation2 + $0x169] sm:$0xff] %v4043_v33  ;;  %v4012_v39 = vadd.f32 %v10058_v56, %v3973_v63  ;;  %v3938_v0 = vadd.f32 %v9015_v7, %v3777_v6  ;;  %v14192_v6 = vld [vmem:[#allocation20_spill] sm:$0xff] }
 0x37f   : > { %v9017_v53 = vpop.f32.mrf.mxu0 }
 0x380   : > { %v4044_v3 = vmax.f32 %v4012_v39, 0.0  ;;  %v3974_v62 = vadd.f32 %v3938_v0, %v14191_v12  ;;  %v9018_v34 = vadd.f32 %v9017_v53, %v9016_v9  ;;  %v4189_v12 = vld [vmem:[#allocation2 + $0x9] sm:$0xff] }
 0x381   : > { %v4270_v5 = vld [vmem:[#allocation2 + $0x152] sm:$0xff]  ;;  %v4271_v14 = vld [vmem:[#allocation2 + $0x15a] sm:$0xff] }
 0x382   : > { %v4163_v21 = vld [vmem:[#allocation2 + $0x158] sm:$0xff]  ;;  %4131 = vst [vmem:[#allocation2 + $0x171] sm:$0xff] %v4044_v3  ;;  %v4013_v42 = vadd.f32 %v10058_v56, %v3974_v62  ;;  %v3941_v22 = vadd.f32 %v9018_v34, %v3780_v51  ;;  %v12049_v19 = vpack.c.bf16 %v4271_v14, %v4270_v5  ;;  %v12053_v32 = vpack.c.bf16 %v4044_v3, %v4043_v33  ;;  %v4242_v51 = vld [vmem:[#allocation2 + $0x2] sm:$0xff] }
 0x383   : > { %v12051_v54 = vpack.c.bf16 %v4163_v21, %v4162_v20  ;;  %v4188_v3 = vld [vmem:[#allocation2 + $0x1] sm:$0xff] }
 0x384   : > { %v4045_v7 = vmax.f32 %v4013_v42, 0.0  ;;  %v3975_v37 = vadd.f32 %v3941_v22, %v14192_v6  ;;  %9512 = vmatmul.mubr.bf16.gmra.mxu0 %v12049_v19  ;;  %v4224_v21 = vpack.c.bf16 %v4189_v12, %v4188_v3  ;;  %v10002_v3 = vld [vmem:[%s13607_s3 + $0x1d0] sm:$0xff]  }
 0x385   : > { %4674 = vmatmul.mubr.bf16.gmra.mxu1 %v12051_v54  ;;  %v4164_v58 = vld [vmem:[#allocation2 + $0x168] sm:$0xff]  ;;  %v10013_v12 = vld [vmem:[%s13607_s3 + $0x210] sm:$0xff]  }
 0x386   : > { %4681 = vmatprep.mubr.bf16.mxu1 %v12053_v32  ;;  %4132 = vst [vmem:[#allocation2 + $0x181] sm:$0xff] %v4045_v7  ;;  %v4014_v18 = vadd.f32 %v10058_v56, %v3975_v37  ;;  %v4243_v56 = vld [vmem:[#allocation2 + $0xa] sm:$0xff]  ;;  %v9993_v37 = vld [vmem:[%s13607_s3 + $0x1b8] sm:$0xff]  }
 0x387   : > { %v4278_v14 = vpack.c.bf16 %v4243_v56, %v4242_v51  ;;  %v10000_v51 = vld [vmem:[%s13607_s3 + $0x1d8] sm:$0xff]  }
 0x388   : > { %v4046_v43 = vmax.f32 %v4014_v18, 0.0  ;;  %v9994_v18 = vld [vmem:[%s13607_s3 + $0x1f0] sm:$0xff]   ;;  %v10001_v56 = vld [vmem:[%s13607_s3 + $0x198] sm:$0xff]  }
 0x389   : > { %v4272_v63 = vld [vmem:[#allocation2 + $0x16a] sm:$0xff]  ;;  %v4273_v9 = vld [vmem:[#allocation2 + $0x172] sm:$0xff] }
 0x38a   : > { %v4165_v39 = vld [vmem:[#allocation2 + $0x170] sm:$0xff]  ;;  %4133 = vst [vmem:[#allocation2 + $0x189] sm:$0xff] %v4046_v43  ;;  %v12059_v0 = vpack.c.bf16 %v4273_v9, %v4272_v63  ;;  %v12063_v53 = vpack.c.bf16 %v4046_v43, %v4045_v7  ;;  %v12074_v7 = vld [vmem:[#allocation2] sm:$0xff]  ;;  %v9996_v63 = vld [vmem:[%s13607_s3 + $0x1e8] sm:$0xff]  }
 0x38b   : > { %v12061_v33 = vpack.c.bf16 %v4165_v39, %v4164_v58  ;;  %v12078_v6 = vpack.c.bf16 %v12074_v7, %v12074_v7  ;;  %v10009_v43 = vld [vmem:[%s13607_s3 + $0x230] sm:$0xff]   ;;  %v10011_v9 = vld [vmem:[%s13607_s3 + $0x220] sm:$0xff]   ;;  %5951 = vst.msk [vmem:[#allocation3 + $0x30] sm:$0xff] %vm5943_vm2, %v12074_v7  ;;  %5952 = vst.msk [vmem:[#allocation3 + $0x38] sm:$0xff] %vm5943_vm2, %v12074_v7 }
 0x38c   : > { %9515 = vmatprep.mubr.bf16.mxu0 %v12059_v0  ;;  %v9995_v58 = vld [vmem:[%s13607_s3 + $0x1b0] sm:$0xff]   ;;  %v9999_v39 = vld [vmem:[%s13607_s3 + $0x1a0] sm:$0xff]   ;;  %5944 = vst.msk [vmem:[#allocation3] sm:$0xff] %vm5943_vm2, %v12074_v7  ;;  %5945 = vst.msk [vmem:[#allocation3 + $0x8] sm:$0xff] %vm5943_vm2, %v12074_v7 }
 0x38d   : > { %4682 = vmatmul.mubr.bf16.gmra.mxu1 %v12061_v33  ;;  %v4166_v62 = vld [vmem:[#allocation2 + $0x180] sm:$0xff]  ;;  %5948 = vst.msk [vmem:[#allocation3 + $0x18] sm:$0xff] %vm5943_vm2, %v12074_v7  ;;  %5949 = vst.msk [vmem:[#allocation3 + $0x20] sm:$0xff] %vm5943_vm2, %v12074_v7 }
 0x38e   : > { %4689 = vmatprep.mubr.bf16.mxu1 %v12063_v53  ;;  %5954 = vst.msk [vmem:[#allocation3 + $0x48] sm:$0xff] %vm5943_vm2, %v12074_v7  ;;  %5955 = vst.msk [vmem:[#allocation3 + $0x50] sm:$0xff] %vm5943_vm2, %v12074_v7 }
 0x38f   : > { %5957 = vst.msk [vmem:[#allocation3 + $0x60] sm:$0xff] %vm5943_vm2, %v12074_v7  ;;  %5958 = vst.msk [vmem:[#allocation3 + $0x68] sm:$0xff] %vm5943_vm2, %v12074_v7 }
 0x390   : > { %5960 = vst.msk [vmem:[#allocation3 + $0x78] sm:$0xff] %vm5943_vm2, %v12074_v7  ;;  %5961 = vst.msk [vmem:[#allocation3 + $0x80] sm:$0xff] %vm5943_vm2, %v12074_v7 }
 0x391   : > { %v4274_v34 = vld [vmem:[#allocation2 + $0x182] sm:$0xff]  ;;  %v4275_v20 = vld [vmem:[#allocation2 + $0x18a] sm:$0xff]  ;;  %5963 = vst.msk [vmem:[#allocation3 + $0x90] sm:$0xff] %vm5943_vm2, %v12074_v7  ;;  %5964 = vst.msk [vmem:[#allocation3 + $0x98] sm:$0xff] %vm5943_vm2, %v12074_v7 }
 0x392   : > { %v4167_v5 = vld [vmem:[#allocation2 + $0x188] sm:$0xff]  ;;  %v12068_v42 = vpack.c.bf16 %v4275_v20, %v4274_v34  ;;  %5966 = vst.msk [vmem:[#allocation3 + $0xa8] sm:$0xff] %vm5943_vm2, %v12074_v7  ;;  %5967 = vst.msk [vmem:[#allocation3 + $0xb0] sm:$0xff] %vm5943_vm2, %v12074_v7 }
 0x393   : > { %v12070_v22 = vpack.c.bf16 %v4167_v5, %v4166_v62  ;;  %v10003_v62 = vld [vmem:[%s13607_s3 + $0x190] sm:$0xff]   ;;  %v10004_v34 = vld [vmem:[%s13607_s3 + $0x1c8] sm:$0xff]   ;;  %5969 = vst.msk [vmem:[#allocation3 + $0xc0] sm:$0xff] %vm5943_vm2, %v12074_v7  ;;  %5970 = vst.msk [vmem:[#allocation3 + $0xc8] sm:$0xff] %vm5943_vm2, %v12074_v7 }
 0x394   : > { %9516 = vmatmul.mubr.bf16.gmra.mxu0 %v12068_v42  ;;  %v10014_v20 = vld [vmem:[%s13607_s3 + $0x208] sm:$0xff]   ;;  %5972 = vst.msk [vmem:[#allocation3 + $0xd8] sm:$0xff] %vm5943_vm2, %v12074_v7  ;;  %5973 = vst.msk [vmem:[#allocation3 + $0xe0] sm:$0xff] %vm5943_vm2, %v12074_v7 }
 0x395   : > { %4690 = vmatmul.mubr.bf16.gmra.mxu1 %v12070_v22  ;;  %9535 = vmatprep.mubr.bf16.mxu0 %v4278_v14  ;;  %v10005_v5 = vld [vmem:[%s13607_s3 + $0x188] sm:$0xff]   ;;  %v10007_v14 = vld [vmem:[%s13607_s3 + $0x1c0] sm:$0xff]   ;;  %5975 = vst.msk [vmem:[#allocation3 + $0xf0] sm:$0xff] %vm5943_vm2, %v12074_v7  ;;  %5976 = vst.msk [vmem:[#allocation3 + $0xf8] sm:$0xff] %vm5943_vm2, %v12074_v7 }
 0x396   : > { %5035 = vmatprep.mubr.bf16.mxu1 %v4224_v21  ;;  %v10015_v21 = vld [vmem:[%s13607_s3 + $0x200] sm:$0xff]   ;;  %5978 = vst.msk [vmem:[#allocation3 + $0x108] sm:$0xff] %vm5943_vm2, %v12074_v7  ;;  %5979 = vst.msk [vmem:[#allocation3 + $0x110] sm:$0xff] %vm5943_vm2, %v12074_v7 }
 0x397   : > { %5981 = vst.msk [vmem:[#allocation3 + $0x120] sm:$0xff] %vm5943_vm2, %v12074_v7  ;;  %5982 = vst.msk [vmem:[#allocation3 + $0x128] sm:$0xff] %vm5943_vm2, %v12074_v7 }
 0x398   : > { %5984 = vst.msk [vmem:[#allocation3 + $0x138] sm:$0xff] %vm5943_vm2, %v12074_v7  ;;  %5985 = vst.msk [vmem:[#allocation3 + $0x140] sm:$0xff] %vm5943_vm2, %v12074_v7 }
 0x399   : > { %5987 = vst.msk [vmem:[#allocation3 + $0x150] sm:$0xff] %vm5943_vm2, %v12074_v7  ;;  %5988 = vst.msk [vmem:[#allocation3 + $0x158] sm:$0xff] %vm5943_vm2, %v12074_v7 }
 0x39a   : > { %5990 = vst.msk [vmem:[#allocation3 + $0x168] sm:$0xff] %vm5943_vm2, %v12074_v7  ;;  %5991 = vst.msk [vmem:[#allocation3 + $0x170] sm:$0xff] %vm5943_vm2, %v12074_v7 }
 0x39b   : > { %5993 = vst.msk [vmem:[#allocation3 + $0x180] sm:$0xff] %vm5943_vm2, %v12074_v7  ;;  %5994 = vst.msk [vmem:[#allocation3 + $0x188] sm:$0xff] %vm5943_vm2, %v12074_v7 }
 0x39c   : > { %9536 = vmatmul.mubr.bf16.vlgmr.msra.gmra.mxu0 %v11691_v40  ;;  %v10010_v40 = vld [vmem:[%s13607_s3 + $0x228] sm:$0xff]   ;;  %5996 = vst.msk [vmem:[#allocation3 + $0x198] sm:$0xff] %vm5943_vm2, %v12074_v7  ;;  %5997 = vst.msk [vmem:[#allocation3 + $0x1a0] sm:$0xff] %vm5943_vm2, %v12074_v7 }
 0x39d   : > { %5036 = vmatmul.mubr.bf16.vlgmr.msra.gmra.mxu1 %v12078_v6  ;;  %9539 = vmatprep.mubr.bf16.mxu0 %v11726_v29  ;;  %5953 = vst.msk [vmem:[#allocation3 + $0x40] sm:$0x3] %vm5946_vm3, %v12074_v7  ;;  %5947 = vst.msk [vmem:[#allocation3 + $0x10] sm:$0x3] %vm5946_vm3, %v12074_v7 }
 0x39e   : > { %5043 = vmatprep.mubr.bf16.mxu1 %v11671_v48  ;;  %9292 = vmatpush3.bf16.msra.mxu0 %v9993_v37  ;;  %v9997_v48 = vld [vmem:[%s13607_s3 + $0x1a8] sm:$0xff]   ;;  %v10008_v37 = vld [vmem:[%s13607_s3 + $0x180] sm:$0xff]   ;;  %5950 = vst.msk [vmem:[#allocation3 + $0x28] sm:$0x3] %vm5946_vm3, %v12074_v7  ;;  %5956 = vst.msk [vmem:[#allocation3 + $0x58] sm:$0x3] %vm5946_vm3, %v12074_v7 }
 0x39f   : > { %9568 = vmatpush3.bf16.msra.mxu1 %v11945_v16  ;;  %9293 = vmatprep.subr.bf16.mxu0 %v9994_v18  ;;  %v9998_v16 = vld [vmem:[%s13607_s3 + $0x1e0] sm:$0xff]   ;;  %5959 = vst.msk [vmem:[#allocation3 + $0x70] sm:$0x3] %vm5946_vm3, %v12074_v7  ;;  %5962 = vst.msk [vmem:[#allocation3 + $0x88] sm:$0x3] %vm5946_vm3, %v12074_v7 }
 0x3a0   : > { %9569 = vmatprep.subr.bf16.mxu1 %v10009_v43  ;;  %5965 = vst.msk [vmem:[#allocation3 + $0xa0] sm:$0x3] %vm5946_vm3, %v12074_v7  ;;  %5968 = vst.msk [vmem:[#allocation3 + $0xb8] sm:$0x3] %vm5946_vm3, %v12074_v7 }
 0x3a1   : > { %5971 = vst.msk [vmem:[#allocation3 + $0xd0] sm:$0x3] %vm5946_vm3, %v12074_v7  ;;  %5974 = vst.msk [vmem:[#allocation3 + $0xe8] sm:$0x3] %vm5946_vm3, %v12074_v7 }
 0x3a2   : > { %9294 = vmatpush3.bf16.msra.mxu0 %v9995_v58  ;;  %5977 = vst.msk [vmem:[#allocation3 + $0x100] sm:$0x3] %vm5946_vm3, %v12074_v7  ;;  %5980 = vst.msk [vmem:[#allocation3 + $0x118] sm:$0x3] %vm5946_vm3, %v12074_v7 }
 0x3a3   : > { %9570 = vmatpush3.bf16.msra.mxu1 %v10009_v43  ;;  %9295 = vmatprep.subr.bf16.mxu0 %v9996_v63  ;;  %5983 = vst.msk [vmem:[#allocation3 + $0x130] sm:$0x3] %vm5946_vm3, %v12074_v7  ;;  %5986 = vst.msk [vmem:[#allocation3 + $0x148] sm:$0x3] %vm5946_vm3, %v12074_v7 }
 0x3a4   : > { %9571 = vmatprep.subr.bf16.mxu1 %v10010_v40  ;;  %9540 = vmatmul.mubr.bf16.gmra.mxu0 %v11769_v1  ;;  %5989 = vst.msk [vmem:[#allocation3 + $0x160] sm:$0x3] %vm5946_vm3, %v12074_v7  ;;  %5992 = vst.msk [vmem:[#allocation3 + $0x178] sm:$0x3] %vm5946_vm3, %v12074_v7 }
 0x3a5   : > { %5044 = vmatmul.mubr.bf16.gmra.mxu1 %v11693_v45  ;;  %9543 = vmatprep.mubr.bf16.mxu0 %v11811_v52  ;;  %v10012_v45 = vld [vmem:[%s13607_s3 + $0x218] sm:$0xff]   ;;  %5995 = vst.msk [vmem:[#allocation3 + $0x190] sm:$0x3] %vm5946_vm3, %v12074_v7  ;;  %5998 = vst.msk [vmem:[#allocation3 + $0x1a8] sm:$0x3] %vm5946_vm3, %v12074_v7 }
 0x3a6   : > { %5051 = vmatprep.mubr.bf16.mxu1 %v11699_v44  ;;  %9296 = vmatpush3.bf16.msra.mxu0 %v9997_v48 }
 0x3a7   : > { %9572 = vmatpush3.bf16.msra.mxu1 %v10010_v40  ;;  %9297 = vmatprep.subr.bf16.mxu0 %v9998_v16 }
 0x3a8   : > { %9573 = vmatprep.subr.bf16.mxu1 %v10011_v9 }
 0x3aa   : > { %9298 = vmatpush3.bf16.msra.mxu0 %v9999_v39 }
 0x3ab   : > { %9574 = vmatpush3.bf16.msra.mxu1 %v10011_v9  ;;  %9299 = vmatprep.subr.bf16.mxu0 %v10000_v51 }
 0x3ac   : > { %9575 = vmatprep.subr.bf16.mxu1 %v10012_v45  ;;  %9544 = vmatmul.mubr.bf16.gmra.mxu0 %v11847_v60 }
 0x3ad   : > { %5052 = vmatmul.mubr.bf16.gmra.mxu1 %v11728_v10  ;;  %9547 = vmatprep.mubr.bf16.mxu0 %v11877_v50 }
 0x3ae   : > { %5059 = vmatprep.mubr.bf16.mxu1 %v11736_v4  ;;  %9300 = vmatpush3.bf16.msra.mxu0 %v10001_v56 }
 0x3af   : > { %9576 = vmatpush3.bf16.msra.mxu1 %v10012_v45  ;;  %9301 = vmatprep.subr.bf16.mxu0 %v10002_v3 }
 0x3b0   : > { %9577 = vmatprep.subr.bf16.mxu1 %v10013_v12 }
 0x3b2   : > { %9302 = vmatpush3.bf16.msra.mxu0 %v10003_v62 }
 0x3b3   : > { %9578 = vmatpush3.bf16.msra.mxu1 %v10013_v12  ;;  %9303 = vmatprep.subr.bf16.mxu0 %v10004_v34 }
 0x3b4   : > { %9579 = vmatprep.subr.bf16.mxu1 %v10014_v20  ;;  %9548 = vmatmul.mubr.bf16.gmra.mxu0 %v11901_v61 }
 0x3b5   : > { %5060 = vmatmul.mubr.bf16.gmra.mxu1 %v11771_v55  ;;  %9551 = vmatprep.mubr.bf16.mxu0 %v11925_v36 }
 0x3b6   : > { %5067 = vmatprep.mubr.bf16.mxu1 %v11779_v23  ;;  %9304 = vmatpush3.bf16.msra.mxu0 %v10005_v5 }
 0x3b7   : > { %9580 = vmatpush3.bf16.msra.mxu1 %v10014_v20  ;;  %9305 = vmatprep.subr.bf16.mxu0 %v10007_v14 }
 0x3b8   : > { %9581 = vmatprep.subr.bf16.mxu1 %v10015_v21 }
 0x3ba   : > { %9306 = vmatpush3.bf16.msra.mxu0 %v10008_v37 }
 0x3bb   : > { %9582 = vmatpush3.bf16.msra.mxu1 %v10015_v21 }
 0x3bc   : > { %9552 = vmatmul.mubr.bf16.gmra.mxu0 %v11955_v2 }
 0x3bd   : > { %5068 = vmatmul.mubr.bf16.gmra.mxu1 %v11813_v26  ;;  %9555 = vmatprep.mubr.bf16.mxu0 %v11977_v13 }
 0x3be   : > { %5075 = vmatprep.mubr.bf16.mxu1 %v11821_v46 }
 0x3c4   : > { %9556 = vmatmul.mubr.bf16.gmra.mxu0 %v11997_v28 }
 0x3c5   : > { %5076 = vmatmul.mubr.bf16.gmra.mxu1 %v11849_v11  ;;  %9559 = vmatprep.mubr.bf16.mxu0 %v12016_v57 }
 0x3c6   : > { %5083 = vmatprep.mubr.bf16.mxu1 %v11854_v27 }
 0x3cc   : > { %9560 = vmatmul.mubr.bf16.gmra.mxu0 %v12032_v38 }
 0x3cd   : > { %5084 = vmatmul.mubr.bf16.gmra.mxu1 %v11879_v17  ;;  %9563 = vmatprep.mubr.bf16.mxu0 %v12049_v19 }
 0x3ce   : > { %5091 = vmatprep.mubr.bf16.mxu1 %v11884_v47 }
 0x3d4   : > { %9564 = vmatmul.mubr.bf16.gmra.mxu0 %v12059_v0 }
 0x3d5   : > { %5092 = vmatmul.mubr.bf16.gmra.mxu1 %v11903_v49  ;;  %5550 = vmatprep.mubr.bf16.mxu0 %v11699_v44 }
 0x3d6   : > { %5099 = vmatprep.mubr.bf16.mxu1 %v11908_v31 }
 0x3dc   : > { %5551 = vmatmul.mubr.bf16.vlgmr.msra.gmra.mxu0 %v11728_v10 }
 0x3dd   : > { %v9035_v18 = vpop.f32.mrf.mxu1  ;;  %5100 = vmatmul.mubr.bf16.gmra.mxu1 %v11927_v25  ;;  %5558 = vmatprep.mubr.bf16.mxu0 %v11736_v4 }
 0x3de   : > { %5107 = vmatprep.mubr.bf16.mxu1 %v11932_v24 }
 0x3df   : > { %v9036_v43 = vpop.f32.mrf.mxu1 }
 0x3e0   : > { %v9037_v58 = vadd.f32 %v9036_v43, %v9035_v18  ;;  %v14194_v43 = vld [vmem:[#allocation8_spill] sm:$0xff] }
 0x3e1   : > { %v9038_v63 = vpop.f32.mrf.mxu1 }
 0x3e3   : > { %v9039_v40 = vpop.f32.mrf.mxu1 }
 0x3e4   : > { %v12183_v48 = vadd.f32 %v9039_v40, %v9038_v63  ;;  %v9489_v16 = vpop.f32.mrf.mxu0  ;;  %5559 = vmatmul.mubr.bf16.gmra.mxu0 %v11771_v55 }
 0x3e5   : > { %v9041_v44 = vpop.f32.mrf.mxu1  ;;  %5108 = vmatmul.mubr.bf16.gmra.mxu1 %v11957_v41  ;;  %5566 = vmatprep.mubr.bf16.mxu0 %v11779_v23  ;;  %v14193_v23 = vld [vmem:[#allocation65_spill] sm:$0xff] }
 0x3e6   : > { %5115 = vmatprep.mubr.bf16.mxu1 %v11962_v59  ;;  %v4732_v10 = vpop.f32.mrf.mxu0 }
 0x3e7   : > { %v9042_v4 = vpop.f32.mrf.mxu1  ;;  %v12189_v9 = vadd.f32 %v9037_v58, %v4732_v10  ;;  %v14195_v58 = vld [vmem:[#allocation96_spill] sm:$0xff] }
 0x3e8   : > { %v9043_v39 = vadd.f32 %v9042_v4, %v9041_v44  ;;  %v9490_v12 = vpop.f32.mrf.mxu0 }
 0x3e9   : > { %v9044_v51 = vpop.f32.mrf.mxu1 }
 0x3ea   : > { %v12191_v45 = vadd.f32 %v9489_v16, %v9043_v39  ;;  %v12199_v14 = vpop.f32.mrf.mxu0 }
 0x3eb   : > { %v9045_v56 = vpop.f32.mrf.mxu1 }
 0x3ec   : > { %v9046_v3 = vadd.f32 %v9045_v56, %v9044_v51  ;;  %5567 = vmatmul.mubr.bf16.gmra.mxu0 %v11813_v26 }
 0x3ed   : > { %v9047_v55 = vpop.f32.mrf.mxu1  ;;  %5116 = vmatmul.mubr.bf16.gmra.mxu1 %v11979_v15  ;;  %5574 = vmatprep.mubr.bf16.mxu0 %v11821_v46 }
 0x3ee   : > { %v12195_v62 = vadd.f32 %v9490_v12, %v9046_v3  ;;  %5123 = vmatprep.mubr.bf16.mxu1 %v14193_v23 }
 0x3ef   : > { %v9048_v34 = vpop.f32.mrf.mxu1 }
 0x3f0   : > { %v9049_v20 = vadd.f32 %v9048_v34, %v9047_v55 }
 0x3f1   : > { %v9050_v5 = vpop.f32.mrf.mxu1 }
 0x3f3   : > { %v9051_v21 = vpop.f32.mrf.mxu1 }
 0x3f4   : > { %v12201_v37 = vadd.f32 %v9051_v21, %v9050_v5  ;;  %v9493_v18 = vpop.f32.mrf.mxu0  ;;  %5575 = vmatmul.mubr.bf16.gmra.mxu0 %v11849_v11 }
 0x3f5   : > { %v9053_v26 = vpop.f32.mrf.mxu1  ;;  %5124 = vmatmul.mubr.bf16.gmra.mxu1 %v14194_v43  ;;  %5582 = vmatprep.mubr.bf16.mxu0 %v11854_v27  ;;  %v14196_v27 = vld [vmem:[#allocation59_spill] sm:$0xff] }
 0x3f6   : > { %5131 = vmatprep.mubr.bf16.mxu1 %v14195_v58  ;;  %v4748_v46 = vpop.f32.mrf.mxu0 }
 0x3f7   : > { %v9054_v63 = vpop.f32.mrf.mxu1  ;;  %v12207_v40 = vadd.f32 %v9049_v20, %v4748_v46 }
 0x3f8   : > { %v9055_v16 = vadd.f32 %v9054_v63, %v9053_v26  ;;  %v9494_v51 = vpop.f32.mrf.mxu0 }
 0x3f9   : > { %v9056_v44 = vpop.f32.mrf.mxu1 }
 0x3fa   : > { %v12209_v10 = vadd.f32 %v9493_v18, %v9055_v16  ;;  %v12217_v34 = vpop.f32.mrf.mxu0 }
 0x3fb   : > { %v9057_v4 = vpop.f32.mrf.mxu1 }
 0x3fc   : > { %v9058_v39 = vadd.f32 %v9057_v4, %v9056_v44  ;;  %5583 = vmatmul.mubr.bf16.gmra.mxu0 %v11879_v17 }
 0x3fd   : > { %v9059_v11 = vpop.f32.mrf.mxu1  ;;  %5132 = vmatmul.mubr.bf16.gmra.mxu1 %v12018_v35  ;;  %5590 = vmatprep.mubr.bf16.mxu0 %v11884_v47 }
 0x3fe   : > { %v12213_v56 = vadd.f32 %v9494_v51, %v9058_v39  ;;  %5139 = vmatprep.mubr.bf16.mxu1 %v14196_v27 }
 0x3ff   : > { %v9060_v3 = vpop.f32.mrf.mxu1 }
 0x400   : > { %v9061_v12 = vadd.f32 %v9060_v3, %v9059_v11 }
 0x401   : > { %v9062_v55 = vpop.f32.mrf.mxu1 }
 0x403   : > { %v9063_v20 = vpop.f32.mrf.mxu1 }
 0x404   : > { %v12219_v5 = vadd.f32 %v9063_v20, %v9062_v55  ;;  %v9497_v21 = vpop.f32.mrf.mxu0  ;;  %5591 = vmatmul.mubr.bf16.gmra.mxu0 %v11903_v49 }
 0x405   : > { %v9065_v17 = vpop.f32.mrf.mxu1  ;;  %5140 = vmatmul.mubr.bf16.gmra.mxu1 %v12034_v8  ;;  %5598 = vmatprep.mubr.bf16.mxu0 %v11908_v31 }
 0x406   : > { %5147 = vmatprep.mubr.bf16.mxu1 %v12039_v30  ;;  %v4764_v47 = vpop.f32.mrf.mxu0 }
 0x407   : > { %v9066_v18 = vpop.f32.mrf.mxu1  ;;  %v12225_v26 = vadd.f32 %v9061_v12, %v4764_v47 }
 0x408   : > { %v9067_v46 = vadd.f32 %v9066_v18, %v9065_v17  ;;  %v9498_v39 = vpop.f32.mrf.mxu0 }
 0x409   : > { %v9068_v63 = vpop.f32.mrf.mxu1 }
 0x40a   : > { %v12227_v16 = vadd.f32 %v9497_v21, %v9067_v46  ;;  %v12235_v12 = vpop.f32.mrf.mxu0 }
 0x40b   : > { %v9069_v44 = vpop.f32.mrf.mxu1 }
 0x40c   : > { %v9070_v4 = vadd.f32 %v9069_v44, %v9068_v63  ;;  %5599 = vmatmul.mubr.bf16.gmra.mxu0 %v11927_v25 }
 0x40d   : > { %v9071_v49 = vpop.f32.mrf.mxu1  ;;  %5148 = vmatmul.mubr.bf16.gmra.mxu1 %v12051_v54  ;;  %5606 = vmatprep.mubr.bf16.mxu0 %v11932_v24 }
 0x40e   : > { %v12231_v51 = vadd.f32 %v9498_v39, %v9070_v4  ;;  %5155 = vmatprep.mubr.bf16.mxu1 %v12053_v32 }
 0x40f   : > { %v9072_v31 = vpop.f32.mrf.mxu1 }
 0x410   : > { %v9073_v11 = vadd.f32 %v9072_v31, %v9071_v49 }
 0x411   : > { %v9074_v3 = vpop.f32.mrf.mxu1 }
 0x413   : > { %v9075_v55 = vpop.f32.mrf.mxu1 }
 0x414   : > { %v9076_v20 = vadd.f32 %v9075_v55, %v9074_v3  ;;  %v9501_v21 = vpop.f32.mrf.mxu0  ;;  %5607 = vmatmul.mubr.bf16.gmra.mxu0 %v11957_v41 }
 0x415   : > { %v9077_v25 = vpop.f32.mrf.mxu1  ;;  %5156 = vmatmul.mubr.bf16.gmra.mxu1 %v12061_v33  ;;  %5614 = vmatprep.mubr.bf16.mxu0 %v11962_v59 }
 0x416   : > { %9583 = vmatprep.mubr.bf16.mxu1 %v11726_v29  ;;  %v4780_v24 = vpop.f32.mrf.mxu0 }
 0x417   : > { %v9078_v17 = vpop.f32.mrf.mxu1  ;;  %v12241_v47 = vadd.f32 %v9073_v11, %v4780_v24 }
 0x418   : > { %v9079_v18 = vadd.f32 %v9078_v17, %v9077_v25  ;;  %v9502_v46 = vpop.f32.mrf.mxu0 }
 0x419   : > { %v9080_v63 = vpop.f32.mrf.mxu1 }
 0x41a   : > { %v12243_v44 = vadd.f32 %v9501_v21, %v9079_v18  ;;  %v4783_v4 = vpop.f32.mrf.mxu0 }
 0x41b   : > { %v9081_v39 = vpop.f32.mrf.mxu1  ;;  %v12245_v49 = vadd.f32 %v9076_v20, %v4783_v4 }
 0x41c   : > { %v9082_v41 = vadd.f32 %v9081_v39, %v9080_v63  ;;  %5615 = vmatmul.mubr.bf16.gmra.mxu0 %v11979_v15 }
 0x41d   : > { %v9083_v31 = vpop.f32.mrf.mxu1  ;;  %9584 = vmatmul.mubr.bf16.vlgmr.msra.gmra.mxu1 %v11769_v1  ;;  %5622 = vmatprep.mubr.bf16.mxu0 %v14193_v23 }
 0x41e   : > { %v12249_v29 = vadd.f32 %v9502_v46, %v9082_v41  ;;  %9587 = vmatprep.mubr.bf16.mxu1 %v11811_v52 }
 0x41f   : > { %v9084_v59 = vpop.f32.mrf.mxu1 }
 0x420   : > { %v9085_v11 = vadd.f32 %v9084_v59, %v9083_v31 }
 0x421   : > { %v9086_v3 = vpop.f32.mrf.mxu1 }
 0x423   : > { %v9087_v55 = vpop.f32.mrf.mxu1 }
 0x424   : > { %v12253_v21 = vadd.f32 %v9087_v55, %v9086_v3  ;;  %v9505_v20 = vpop.f32.mrf.mxu0  ;;  %5623 = vmatmul.mubr.bf16.gmra.mxu0 %v14194_v43 }
 0x425   : > { %v9089_v25 = vpop.f32.mrf.mxu1  ;;  %9588 = vmatmul.mubr.bf16.gmra.mxu1 %v11847_v60  ;;  %5630 = vmatprep.mubr.bf16.mxu0 %v14195_v58 }
 0x426   : > { %9591 = vmatprep.mubr.bf16.mxu1 %v11877_v50  ;;  %v4796_v1 = vpop.f32.mrf.mxu0 }
 0x427   : > { %v9090_v15 = vpop.f32.mrf.mxu1  ;;  %v12259_v23 = vadd.f32 %v9085_v11, %v4796_v1 }
 0x428   : > { %v9091_v52 = vadd.f32 %v9090_v15, %v9089_v25  ;;  %v9506_v63 = vpop.f32.mrf.mxu0 }
 0x429   : > { %v9092_v24 = vpop.f32.mrf.mxu1 }
 0x42a   : > { %v12261_v17 = vadd.f32 %v9505_v20, %v9091_v52  ;;  %v12269_v39 = vpop.f32.mrf.mxu0 }
 0x42b   : > { %v9093_v18 = vpop.f32.mrf.mxu1 }
 0x42c   : > { %v9094_v46 = vadd.f32 %v9093_v18, %v9092_v24  ;;  %5631 = vmatmul.mubr.bf16.gmra.mxu0 %v12018_v35 }
 0x42d   : > { %v9095_v43 = vpop.f32.mrf.mxu1  ;;  %9592 = vmatmul.mubr.bf16.gmra.mxu1 %v11901_v61  ;;  %5638 = vmatprep.mubr.bf16.mxu0 %v14196_v27 }
 0x42e   : > { %v12265_v60 = vadd.f32 %v9506_v63, %v9094_v46  ;;  %9595 = vmatprep.mubr.bf16.mxu1 %v11925_v36  ;;  %v4223_v46 = vld [vmem:[#allocation2 + $0x1a1] sm:$0xff] }
 0x42f   : > { %v9096_v50 = vpop.f32.mrf.mxu1 }
 0x430   : > { %v9097_v58 = vadd.f32 %v9096_v50, %v9095_v43 }
 0x431   : > { %v9098_v4 = vpop.f32.mrf.mxu1 }
 0x433   : > { %v9099_v41 = vpop.f32.mrf.mxu1 }
 0x434   : > { %v12271_v31 = vadd.f32 %v9099_v41, %v9098_v4  ;;  %v9509_v59 = vpop.f32.mrf.mxu0  ;;  %5639 = vmatmul.mubr.bf16.gmra.mxu0 %v12034_v8 }
 0x435   : > { %v9101_v35 = vpop.f32.mrf.mxu1  ;;  %9596 = vmatmul.mubr.bf16.gmra.mxu1 %v11955_v2  ;;  %5646 = vmatprep.mubr.bf16.mxu0 %v12039_v30 }
 0x436   : > { %9599 = vmatprep.mubr.bf16.mxu1 %v11977_v13  ;;  %v4812_v61 = vpop.f32.mrf.mxu0 }
 0x437   : > { %v9102_v36 = vpop.f32.mrf.mxu1  ;;  %v12277_v27 = vadd.f32 %v9097_v58, %v4812_v61 }
 0x438   : > { %v9103_v11 = vadd.f32 %v9102_v36, %v9101_v35  ;;  %v9510_v1 = vpop.f32.mrf.mxu0  ;;  %v4277_v35 = vld [vmem:[#allocation2 + $0x1a2] sm:$0xff] }
 0x439   : > { %v9104_v3 = vpop.f32.mrf.mxu1 }
 0x43a   : > { %v12279_v55 = vadd.f32 %v9509_v59, %v9103_v11  ;;  %v12289_v52 = vpop.f32.mrf.mxu0 }
 0x43b   : > { %v9105_v20 = vpop.f32.mrf.mxu1 }
 0x43c   : > { %v9106_v25 = vadd.f32 %v9105_v20, %v9104_v3  ;;  %5647 = vmatmul.mubr.bf16.gmra.mxu0 %v12051_v54 }
 0x43d   : > { %v9107_v8 = vpop.f32.mrf.mxu1  ;;  %9600 = vmatmul.mubr.bf16.gmra.mxu1 %v11997_v28  ;;  %5654 = vmatprep.mubr.bf16.mxu0 %v12053_v32  ;;  %v4222_v32 = vld [vmem:[#allocation2 + $0x199] sm:$0xff] }
 0x43e   : > { %v12283_v2 = vadd.f32 %v9510_v1, %v9106_v25  ;;  %9603 = vmatprep.mubr.bf16.mxu1 %v12016_v57  ;;  %v4241_v4 = vpack.c.bf16 %v4223_v46, %v4222_v32 }
 0x43f   : > { %v9108_v13 = vpop.f32.mrf.mxu1 }
 0x440   : > { %v9109_v30 = vadd.f32 %v9108_v13, %v9107_v8 }
 0x441   : > { %v12287_v15 = vpop.f32.mrf.mxu1 }
 0x443   : > { %v12291_v24 = vpop.f32.mrf.mxu1 }
 0x444   : > { %v9513_v18 = vpop.f32.mrf.mxu0  ;;  %5655 = vmatmul.mubr.bf16.gmra.mxu0 %v12061_v33 }
 0x445   : > { %v9113_v54 = vpop.f32.mrf.mxu1  ;;  %9604 = vmatmul.mubr.bf16.gmra.mxu1 %v12032_v38  ;;  %5662 = vmatprep.mubr.bf16.mxu0 %v12063_v53  ;;  %v4276_v53 = vld [vmem:[#allocation2 + $0x19a] sm:$0xff] }
 0x446   : > { %9607 = vmatprep.mubr.bf16.mxu1 %v12049_v19  ;;  %v4828_v28 = vpop.f32.mrf.mxu0  ;;  %v4295_v3 = vpack.c.bf16 %v4277_v35, %v4276_v53 }
 0x447   : > { %v9114_v57 = vpop.f32.mrf.mxu1  ;;  %v12297_v63 = vadd.f32 %v9109_v30, %v4828_v28 }
 0x448   : > { %v9115_v43 = vadd.f32 %v9114_v57, %v9113_v54  ;;  %v9514_v59 = vpop.f32.mrf.mxu0 }
 0x449   : > { %v9116_v50 = vpop.f32.mrf.mxu1 }
 0x44a   : > { %v12299_v58 = vadd.f32 %v9513_v18, %v9115_v43  ;;  %v12308_v20 = vpop.f32.mrf.mxu0 }
 0x44b   : > { %v9117_v41 = vpop.f32.mrf.mxu1 }
 0x44c   : > { %v9118_v33 = vadd.f32 %v9117_v41, %v9116_v50  ;;  %5663 = vmatmul.mubr.bf16.gmra.mxu0 %v12070_v22 }
 0x44d   : > { %v9119_v38 = vpop.f32.mrf.mxu1  ;;  %9608 = vmatmul.mubr.bf16.gmra.mxu1 %v12059_v0  ;;  %5670 = vmatprep.mubr.bf16.mxu0 %v4241_v4 }
 0x44e   : > { %v12303_v19 = vadd.f32 %v9514_v59, %v9118_v33  ;;  %9611 = vmatprep.mubr.bf16.mxu1 %v12068_v42 }
 0x44f   : > { %v9120_v61 = vpop.f32.mrf.mxu1 }
 0x450   : > { %v9121_v36 = vadd.f32 %v9120_v61, %v9119_v38  ;;  %v4736_v61 = vadd.f32 %v12183_v48, %v12199_v14 }
 0x451   : > { %v12306_v11 = vpop.f32.mrf.mxu1 }
 0x453   : > { %v12310_v25 = vpop.f32.mrf.mxu1 }
 0x454   : > { %v9517_v22 = vpop.f32.mrf.mxu0  ;;  %5671 = vmatmul.mubr.bf16.gmra.mxu0 %v12078_v6 }
 0x455   : > { %v9125_v0 = vpop.f32.mrf.mxu1  ;;  %9612 = vmatmul.mubr.bf16.gmra.mxu1 %v4295_v3 }
 0x456   : > { %v4844_v1 = vpop.f32.mrf.mxu0 }
 0x457   : > { %v9126_v8 = vpop.f32.mrf.mxu1  ;;  %v12313_v42 = vadd.f32 %v9121_v36, %v4844_v1 }
 0x458   : > { %v9127_v13 = vadd.f32 %v9126_v8, %v9125_v0  ;;  %v9518_v30 = vpop.f32.mrf.mxu0 }
 0x459   : > { %v9128_v18 = vpop.f32.mrf.mxu1 }
 0x45a   : > { %v12315_v54 = vadd.f32 %v9517_v22, %v9127_v13  ;;  %v12317_v28 = vpop.f32.mrf.mxu0 }
 0x45b   : > { %v9129_v57 = vpop.f32.mrf.mxu1 }
 0x45c   : > { %v9130_v32 = vadd.f32 %v9129_v57, %v9128_v18  ;;  %v12319_v46 = vpop.f32.mrf.mxu0 }
 0x45d   : > { %v9171_v43 = vpop.f32.mrf.mxu1 }
 0x45e   : > { %v12321_v50 = vadd.f32 %v9518_v30, %v9130_v32  ;;  %v5198_v6 = vpop.f32.mrf.mxu0 }
 0x45f   : > { %v9172_v4 = vpop.f32.mrf.mxu1 }
 0x460   : > { %v9173_v41 = vadd.f32 %v9172_v4, %v9171_v43  ;;  %v12323_v33 = vpop.f32.mrf.mxu0 }
 0x461   : > { %v9174_v59 = vpop.f32.mrf.mxu1 }
 0x462   : > { %v5038_v38 = vadd.f32 %v9173_v41, %v12189_v9  ;;  %v12326_v53 = vpop.f32.mrf.mxu0 }
 0x463   : > { %v9175_v35 = vpop.f32.mrf.mxu1 }
 0x464   : > { %v9176_v36 = vadd.f32 %v9175_v35, %v9174_v59  ;;  %v12330_v3 = vadd.f32 %v5198_v6, %v5038_v38  ;;  %v12332_v22 = vpop.f32.mrf.mxu0 }
 0x465   : > { %v9177_v0 = vpop.f32.mrf.mxu1 }
 0x466   : > { %v12406_v48 = vadd.f32 %v9176_v36, %v4736_v61  ;;  %v5214_v9 = vpop.f32.mrf.mxu0 }
 0x467   : > { %v9178_v14 = vpop.f32.mrf.mxu1 }
 0x468   : > { %v9179_v1 = vadd.f32 %v9178_v14, %v9177_v0  ;;  %v9542_v8 = vpop.f32.mrf.mxu0 }
 0x469   : > { %v9180_v13 = vpop.f32.mrf.mxu1 }
 0x46a   : > { %v5046_v30 = vadd.f32 %v9179_v1, %v12191_v45  ;;  %v12445_v18 = vpop.f32.mrf.mxu0 }
 0x46b   : > { %14197 = vst [vmem:[#allocation41_spill] sm:$0xff] %v12445_v18  ;;  %v9181_v57 = vpop.f32.mrf.mxu1 }
 0x46c   : > { %v9182_v32 = vadd.f32 %v9181_v57, %v9180_v13  ;;  %v12448_v43 = vadd.f32 %v12319_v46, %v5046_v30  ;;  %v9545_v6 = vpop.f32.mrf.mxu0  ;;  %v4752_v46 = vadd.f32 %v12201_v37, %v12217_v34 }
 0x46d   : > { %v9183_v4 = vpop.f32.mrf.mxu1 }
 0x46e   : > { %v5049_v41 = vadd.f32 %v9182_v32, %v12195_v62  ;;  %v5230_v59 = vpop.f32.mrf.mxu0 }
 0x46f   : > { %v9184_v38 = vpop.f32.mrf.mxu1 }
 0x470   : > { %v9185_v35 = vadd.f32 %v9184_v38, %v9183_v4  ;;  %v12452_v61 = vadd.f32 %v12323_v33, %v5049_v41  ;;  %v9546_v7 = vpop.f32.mrf.mxu0 }
 0x471   : > { %v9186_v36 = vpop.f32.mrf.mxu1 }
 0x472   : > { %v5054_v45 = vadd.f32 %v9185_v35, %v12207_v40  ;;  %v12455_v0 = vpop.f32.mrf.mxu0 }
 0x473   : > { %14198 = vst [vmem:[#allocation12_spill] sm:$0xff] %v12455_v0  ;;  %v9187_v14 = vpop.f32.mrf.mxu1 }
 0x474   : > { %v9188_v1 = vadd.f32 %v9187_v14, %v9186_v36  ;;  %v12459_v13 = vadd.f32 %v5214_v9, %v5054_v45  ;;  %v12461_v62 = vpop.f32.mrf.mxu0 }
 0x475   : > { %v9189_v30 = vpop.f32.mrf.mxu1 }
 0x476   : > { %v12463_v57 = vadd.f32 %v9188_v1, %v4752_v46  ;;  %v5246_v33 = vpop.f32.mrf.mxu0 }
 0x477   : > { %v9190_v32 = vpop.f32.mrf.mxu1 }
 0x478   : > { %v9191_v4 = vadd.f32 %v9190_v32, %v9189_v30  ;;  %v12465_v41 = vpop.f32.mrf.mxu0 }
 0x479   : > { %v9192_v40 = vpop.f32.mrf.mxu1 }
 0x47a   : > { %v5062_v38 = vadd.f32 %v9191_v4, %v12209_v10  ;;  %v12468_v35 = vpop.f32.mrf.mxu0 }
 0x47b   : > { %14199 = vst [vmem:[#allocation100_spill] sm:$0xff] %v12468_v35  ;;  %v9193_v0 = vpop.f32.mrf.mxu1 }
 0x47c   : > { %v9194_v37 = vadd.f32 %v9193_v0, %v9192_v40  ;;  %v12471_v34 = vadd.f32 %v12332_v22, %v5062_v38  ;;  %v12473_v9 = vpop.f32.mrf.mxu0  ;;  %v4768_v40 = vadd.f32 %v12219_v5, %v12235_v12 }
 0x47d   : > { %v9195_v36 = vpop.f32.mrf.mxu1 }
 0x47e   : > { %v5065_v45 = vadd.f32 %v9194_v37, %v12213_v56  ;;  %v12476_v14 = vpop.f32.mrf.mxu0 }
 0x47f   : > { %v9196_v46 = vpop.f32.mrf.mxu1 }
 0x480   : > { %v9197_v1 = vadd.f32 %v9196_v46, %v9195_v36  ;;  %v12478_v30 = vadd.f32 %v9542_v8, %v5065_v45  ;;  %v12480_v32 = vpop.f32.mrf.mxu0 }
 0x481   : > { %v9198_v10 = vpop.f32.mrf.mxu1 }
 0x482   : > { %v5070_v4 = vadd.f32 %v9197_v1, %v12225_v26  ;;  %v12483_v0 = vpop.f32.mrf.mxu0 }
 0x483   : > { %14200 = vst [vmem:[#allocation14_spill] sm:$0xff] %v12483_v0  ;;  %v9199_v22 = vpop.f32.mrf.mxu1 }
 0x484   : > { %v9200_v38 = vadd.f32 %v9199_v22, %v9198_v10  ;;  %v12487_v35 = vadd.f32 %v5230_v59, %v5070_v4  ;;  %v12489_v56 = vpop.f32.mrf.mxu0 }
 0x485   : > { %v9201_v37 = vpop.f32.mrf.mxu1 }
 0x486   : > { %v12491_v36 = vadd.f32 %v9200_v38, %v4768_v40  ;;  %v12493_v8 = vpop.f32.mrf.mxu0 }
 0x487   : > { %v9202_v45 = vpop.f32.mrf.mxu1 }
 0x488   : > { %14201 = vst [vmem:[#allocation16_spill] sm:$0xff] %v12491_v36  ;;  %v9203_v46 = vadd.f32 %v9202_v45, %v9201_v37  ;;  %v12495_v18 = vpop.f32.mrf.mxu0 }
 0x489   : > { %v9204_v26 = vpop.f32.mrf.mxu1 }
 0x48a   : > { %v5078_v1 = vadd.f32 %v9203_v46, %v12227_v16  ;;  %v12498_v0 = vpop.f32.mrf.mxu0 }
 0x48b   : > { %14202 = vst [vmem:[#allocation22_spill] sm:$0xff] %v12498_v0  ;;  %v9205_v5 = vpop.f32.mrf.mxu1 }
 0x48c   : > { %v9206_v12 = vadd.f32 %v9205_v5, %v9204_v26  ;;  %v12500_v59 = vadd.f32 %v9545_v6, %v5078_v1  ;;  %v12502_v10 = vpop.f32.mrf.mxu0 }
 0x48d   : > { %v9207_v4 = vpop.f32.mrf.mxu1 }
 0x48e   : > { %v5081_v22 = vadd.f32 %v9206_v12, %v12231_v51  ;;  %v12505_v40 = vpop.f32.mrf.mxu0 }
 0x48f   : > { %v9208_v38 = vpop.f32.mrf.mxu1 }
 0x490   : > { %v9209_v37 = vadd.f32 %v9208_v38, %v9207_v4  ;;  %v12507_v45 = vadd.f32 %v9546_v7, %v5081_v22  ;;  %v12509_v36 = vpop.f32.mrf.mxu0 }
 0x491   : > { %v9210_v16 = vpop.f32.mrf.mxu1 }
 0x492   : > { %14203 = vst [vmem:[#allocation23_spill] sm:$0xff] %v12507_v45  ;;  %v5086_v46 = vadd.f32 %v9209_v37, %v12241_v47  ;;  %v12512_v0 = vpop.f32.mrf.mxu0 }
 0x493   : > { %14204 = vst [vmem:[#allocation28_spill] sm:$0xff] %v12512_v0  ;;  %v9211_v6 = vpop.f32.mrf.mxu1 }
 0x494   : > { %v9212_v26 = vadd.f32 %v9211_v6, %v9210_v16  ;;  %v12514_v1 = vadd.f32 %v5246_v33, %v5086_v46  ;;  %v12516_v5 = vpop.f32.mrf.mxu0 }
 0x495   : > { %14205 = vst [vmem:[#allocation29_spill] sm:$0xff] %v12516_v5  ;;  %v9213_v51 = vpop.f32.mrf.mxu1 }
 0x496   : > { %v12519_v12 = vadd.f32 %v9212_v26, %v12245_v49  ;;  %v12521_v4 = vpop.f32.mrf.mxu0 }
 0x497   : > { %v9214_v7 = vpop.f32.mrf.mxu1 }
 0x498   : > { %14206 = vst [vmem:[#allocation34_spill] sm:$0xff] %v12519_v12  ;;  %v9215_v22 = vadd.f32 %v9214_v7, %v9213_v51  ;;  %v12523_v38 = vpop.f32.mrf.mxu0 }
 0x499   : > { %14207 = vst [vmem:[#allocation74_spill] sm:$0xff] %v12523_v38  ;;  %v9216_v45 = vpop.f32.mrf.mxu1 }
 0x49a   : > { %v5094_v47 = vadd.f32 %v9215_v22, %v12243_v44  ;;  %v12526_v37 = vpop.f32.mrf.mxu0 }
 0x49b   : > { %14208 = vst [vmem:[#allocation75_spill] sm:$0xff] %v12526_v37  ;;  %v9217_v16 = vpop.f32.mrf.mxu1 }
 0x49c   : > { %v9218_v33 = vadd.f32 %v9217_v16, %v9216_v45  ;;  %v12529_v46 = vadd.f32 %v12461_v62, %v5094_v47  ;;  %v12531_v6 = vpop.f32.mrf.mxu0  ;;  %v4800_v47 = vadd.f32 %v12253_v21, %v12269_v39 }
 0x49d   : > { %v9219_v49 = vpop.f32.mrf.mxu1 }
 0x49e   : > { %v5097_v26 = vadd.f32 %v9218_v33, %v12249_v29  ;;  %v12534_v5 = vpop.f32.mrf.mxu0 }
 0x49f   : > { %v9220_v51 = vpop.f32.mrf.mxu1 }
 0x4a0   : > { %v9221_v7 = vadd.f32 %v9220_v51, %v9219_v49  ;;  %v12537_v38 = vadd.f32 %v12465_v41, %v5097_v26  ;;  %v12539_v44 = vpop.f32.mrf.mxu0 }
 0x4a1   : > { %v9222_v22 = vpop.f32.mrf.mxu1 }
 0x4a2   : > { %14209 = vst [vmem:[#allocation76_spill] sm:$0xff] %v12537_v38  ;;  %v5102_v45 = vadd.f32 %v9221_v7, %v12259_v23  ;;  %v12542_v16 = vpop.f32.mrf.mxu0 }
 0x4a3   : > { %v9223_v62 = vpop.f32.mrf.mxu1 }
 0x4a4   : > { %v9224_v37 = vadd.f32 %v9223_v62, %v9222_v22  ;;  %v12547_v29 = vadd.f32 %v12476_v14, %v5102_v45  ;;  %v12549_v33 = vpop.f32.mrf.mxu0 }
 0x4a5   : > { %v9225_v49 = vpop.f32.mrf.mxu1 }
 0x4a6   : > { %v12551_v41 = vadd.f32 %v9224_v37, %v4800_v47  ;;  %v12553_v26 = vpop.f32.mrf.mxu0 }
 0x4a7   : > { %v9226_v51 = vpop.f32.mrf.mxu1 }
 0x4a8   : > { %14210 = vst [vmem:[#allocation77_spill] sm:$0xff] %v12551_v41  ;;  %v9227_v0 = vadd.f32 %v9226_v51, %v9225_v49  ;;  %v12555_v23 = vpop.f32.mrf.mxu0 }
 0x4a9   : > { %v9228_v7 = vpop.f32.mrf.mxu1 }
 0x4aa   : > { %v5110_v12 = vadd.f32 %v9227_v0, %v12261_v17  ;;  %v12558_v38 = vpop.f32.mrf.mxu0 }
 0x4ab   : > { %v9229_v21 = vpop.f32.mrf.mxu1 }
 0x4ac   : > { %v9230_v39 = vadd.f32 %v9229_v21, %v9228_v7  ;;  %v12561_v14 = vadd.f32 %v12473_v9, %v5110_v12  ;;  %v12563_v22 = vpop.f32.mrf.mxu0  ;;  %v10016_v9 = vld [vmem:[%s13609_s5 + $0x98] sm:$0xff]  }
 0x4ad   : > { %v9231_v37 = vpop.f32.mrf.mxu1 }
 0x4ae   : > { %v5113_v45 = vadd.f32 %v9230_v39, %v12265_v60  ;;  %v12566_v62 = vpop.f32.mrf.mxu0  ;;  %v13786_v60 = vmov 0  }
 0x4af   : > { %v9232_v47 = vpop.f32.mrf.mxu1  ;;  %6489 = vmatprep.subr.bf16.mxu1 %v13786_v60  ;;  %6725 = vmatprep.subr.bf16.mxu0 %v13786_v60 }
 0x4b0   : > { %v9233_v49 = vadd.f32 %v9232_v47, %v9231_v37  ;;  %v12569_v51 = vadd.f32 %v12480_v32, %v5113_v45  ;;  %v12571_v17 = vpop.f32.mrf.mxu0  ;;  %v4816_v32 = vadd.f32 %v12271_v31, %v12289_v52  ;;  %6490 = vmatpush1.bf16.msra.mxu1 %v10016_v9  ;;  %v10018_v52 = vld [vmem:[%s13609_s5 + $0x88] sm:$0xff]  }
 0x4b1   : > { %v9234_v0 = vpop.f32.mrf.mxu1  ;;  %6491 = vmatprep.subr.bf16.mxu1 %v13786_v60 }
 0x4b2   : > { %14211 = vst [vmem:[#allocation78_spill] sm:$0xff] %v12569_v51  ;;  %v5118_v7 = vadd.f32 %v9233_v49, %v12277_v27  ;;  %v12577_v12 = vpop.f32.mrf.mxu0  ;;  %v10017_v27 = vld [vmem:[%s13609_s5 + $0x90] sm:$0xff]  }
 0x4b3   : > { %v9235_v21 = vpop.f32.mrf.mxu1 }
 0x4b4   : > { %v9236_v39 = vadd.f32 %v9235_v21, %v9234_v0  ;;  %v12584_v37 = vadd.f32 %v12493_v8, %v5118_v7  ;;  %v12589_v45 = vpop.f32.mrf.mxu0  ;;  %6492 = vmatpush1.bf16.msra.mxu1 %v10017_v27 }
 0x4b5   : > { %v9237_v47 = vpop.f32.mrf.mxu1  ;;  %6493 = vmatprep.subr.bf16.mxu1 %v13786_v60 }
 0x4b6   : > { %14212 = vst [vmem:[#allocation79_spill] sm:$0xff] %v12584_v37  ;;  %v12592_v49 = vadd.f32 %v9236_v39, %v4816_v32  ;;  %v12594_v41 = vpop.f32.mrf.mxu0 }
 0x4b7   : > { %v9238_v51 = vpop.f32.mrf.mxu1 }
 0x4b8   : > { %14213 = vst [vmem:[#allocation80_spill] sm:$0xff] %v12592_v49  ;;  %v9239_v31 = vadd.f32 %v9238_v51, %v9237_v47  ;;  %v12599_v8 = vpop.f32.mrf.mxu0  ;;  %6494 = vmatpush1.bf16.msra.mxu1 %v10018_v52  ;;  %v10019_v51 = vld [vmem:[%s13609_s5 + $0x80] sm:$0xff]  }
 0x4b9   : > { %v9240_v0 = vpop.f32.mrf.mxu1  ;;  %6495 = vmatprep.subr.bf16.mxu1 %v13786_v60 }
 0x4ba   : > { %v5126_v7 = vadd.f32 %v9239_v31, %v12279_v55  ;;  %v12603_v9 = vpop.f32.mrf.mxu0 }
 0x4bb   : > { %v9241_v21 = vpop.f32.mrf.mxu1 }
 0x4bc   : > { %v9242_v32 = vadd.f32 %v9241_v21, %v9240_v0  ;;  %v12606_v39 = vadd.f32 %v12489_v56, %v5126_v7  ;;  %v12611_v27 = vpop.f32.mrf.mxu0  ;;  %6496 = vmatpush1.bf16.msra.mxu1 %v10019_v51  ;;  %v10020_v56 = vld [vmem:[%s13609_s5 + $0x78] sm:$0xff]  }
 0x4bd   : > { %v9243_v47 = vpop.f32.mrf.mxu1  ;;  %6497 = vmatprep.subr.bf16.mxu1 %v13786_v60 }
 0x4be   : > { %v5129_v49 = vadd.f32 %v9242_v32, %v12283_v2  ;;  %v12615_v55 = vpop.f32.mrf.mxu0  ;;  %v9112_v2 = vadd.f32 %v12291_v24, %v12287_v15  ;;  %v14216_v15 = vmov 0  }
 0x4bf   : > { %v9244_v31 = vpop.f32.mrf.mxu1 }
 0x4c0   : > { %v9245_v37 = vadd.f32 %v9244_v31, %v9243_v47  ;;  %v12618_v0 = vadd.f32 %v12495_v18, %v5129_v49  ;;  %v12623_v52 = vpop.f32.mrf.mxu0  ;;  %v4832_v18 = vadd.f32 %v9112_v2, %v12308_v20  ;;  %6498 = vmatpush1.bf16.msra.mxu1 %v10020_v56  ;;  %v10021_v31 = vld [vmem:[%s13609_s5 + $0x70] sm:$0xff]  }
 0x4c1   : > { %v9246_v7 = vpop.f32.mrf.mxu1  ;;  %6499 = vmatprep.subr.bf16.mxu1 %v14216_v15 }
 0x4c2   : > { %14214 = vst [vmem:[#allocation81_spill] sm:$0xff] %v12618_v0  ;;  %v5134_v21 = vadd.f32 %v9245_v37, %v12297_v63  ;;  %v12629_v32 = vpop.f32.mrf.mxu0 }
 0x4c3   : > { %v9247_v47 = vpop.f32.mrf.mxu1 }
 0x4c4   : > { %v9248_v49 = vadd.f32 %v9247_v47, %v9246_v7  ;;  %v12633_v51 = vadd.f32 %v12505_v40, %v5134_v21  ;;  %v12638_v60 = vpop.f32.mrf.mxu0  ;;  %6500 = vmatpush1.bf16.msra.mxu1 %v10021_v31  ;;  %v10022_v40 = vld [vmem:[%s13609_s5 + $0x68] sm:$0xff]  }
 0x4c5   : > { %v9249_v0 = vpop.f32.mrf.mxu1  ;;  %6501 = vmatprep.subr.bf16.mxu1 %v14216_v15 }
 0x4c6   : > { %14215 = vst [vmem:[#allocation82_spill] sm:$0xff] %v12633_v51  ;;  %v12641_v24 = vadd.f32 %v9248_v49, %v4832_v18  ;;  %v12643_v63 = vpop.f32.mrf.mxu0 }
 0x4c7   : > { %v9250_v37 = vpop.f32.mrf.mxu1 }
 0x4c8   : > { %14217 = vst [vmem:[#allocation83_spill] sm:$0xff] %v12641_v24  ;;  %v9251_v20 = vadd.f32 %v9250_v37, %v9249_v0  ;;  %v12648_v56 = vpop.f32.mrf.mxu0  ;;  %6502 = vmatpush1.bf16.msra.mxu1 %v10022_v40  ;;  %v10023_v0 = vld [vmem:[%s13609_s5 + $0x60] sm:$0xff]  }
 0x4c9   : > { %v9252_v7 = vpop.f32.mrf.mxu1  ;;  %6503 = vmatprep.subr.bf16.mxu1 %v14216_v15 }
 0x4ca   : > { %v5142_v2 = vadd.f32 %v9251_v20, %v12299_v58  ;;  %v12652_v21 = vpop.f32.mrf.mxu0 }
 0x4cb   : > { %v9253_v47 = vpop.f32.mrf.mxu1 }
 0x4cc   : > { %v9254_v18 = vadd.f32 %v9253_v47, %v9252_v7  ;;  %v12655_v49 = vadd.f32 %v12502_v10, %v5142_v2  ;;  %v12660_v31 = vpop.f32.mrf.mxu0  ;;  %6504 = vmatpush1.bf16.msra.mxu1 %v10023_v0  ;;  %v10024_v10 = vld [vmem:[%s13609_s5 + $0xb8] sm:$0xff]  }
 0x4cd   : > { %v9255_v37 = vpop.f32.mrf.mxu1  ;;  %6513 = vmatprep.subr.bf16.mxu1 %v14216_v15 }
 0x4ce   : > { %14218 = vst [vmem:[#allocation85_spill] sm:$0xff] %v12655_v49  ;;  %v5145_v24 = vadd.f32 %v9254_v18, %v12303_v19  ;;  %v12664_v58 = vpop.f32.mrf.mxu0  ;;  %v9124_v19 = vadd.f32 %v12310_v25, %v12306_v11 }
 0x4cf   : > { %v9256_v20 = vpop.f32.mrf.mxu1 }
 0x4d0   : > { %v9257_v51 = vadd.f32 %v9256_v20, %v9255_v37  ;;  %v12667_v7 = vadd.f32 %v12509_v36, %v5145_v24  ;;  %v12672_v40 = vpop.f32.mrf.mxu0  ;;  %v4848_v36 = vadd.f32 %v9124_v19, %v12317_v28  ;;  %6514 = vmatpush2.bf16.msra.mxu1 %v10024_v10  ;;  %v10025_v20 = vld [vmem:[%s13609_s5 + $0xb0] sm:$0xff]  }
 0x4d1   : > { %v9258_v2 = vpop.f32.mrf.mxu1  ;;  %6515 = vmatprep.subr.bf16.mxu1 %v14216_v15 }
 0x4d2   : > { %14219 = vst [vmem:[#allocation86_spill] sm:$0xff] %v12667_v7  ;;  %v5150_v47 = vadd.f32 %v9257_v51, %v12313_v42  ;;  %v12678_v18 = vpop.f32.mrf.mxu0 }
 0x4d3   : > { %v9259_v37 = vpop.f32.mrf.mxu1 }
 0x4d4   : > { %v9260_v24 = vadd.f32 %v9259_v37, %v9258_v2  ;;  %v12682_v0 = vadd.f32 %v12521_v4, %v5150_v47  ;;  %v12687_v7 = vpop.f32.mrf.mxu0  ;;  %6516 = vmatpush2.bf16.msra.mxu1 %v10025_v20  ;;  %v10026_v4 = vld [vmem:[%s13609_s5 + $0xa8] sm:$0xff]   ;;  %v9315_v37 = vadd.f32 %v12553_v26, %v12549_v33  ;;  %v12721_v33 = vld [vmem:[%s13608_s4] ss:$0 sm:$0xff] }
 0x4d5   : > { %v9261_v49 = vpop.f32.mrf.mxu1  ;;  %6517 = vmatprep.subr.bf16.mxu1 %v14216_v15 }
 0x4d6   : > { %v12690_v11 = vadd.f32 %v9260_v24, %v4848_v36  ;;  %v12692_v25 = vpop.f32.mrf.mxu0  ;;  %v10027_v36 = vld [vmem:[%s13609_s5 + $0xa0] sm:$0xff]  }
 0x4d7   : > { %v9262_v42 = vpop.f32.mrf.mxu1 }
 0x4d8   : > { %14220 = vst [vmem:[#allocation87_spill] sm:$0xff] %v12690_v11  ;;  %v9263_v28 = vadd.f32 %v9262_v42, %v9261_v49  ;;  %v12697_v51 = vpop.f32.mrf.mxu0  ;;  %6518 = vmatpush2.bf16.msra.mxu1 %v10026_v4 }
 0x4d9   : > { %v9264_v10 = vpop.f32.mrf.mxu1  ;;  %6519 = vmatprep.subr.bf16.mxu1 %v14216_v15 }
 0x4da   : > { %v12701_v2 = vadd.f32 %v9263_v28, %v12315_v54  ;;  %v12703_v19 = vpop.f32.mrf.mxu0  ;;  %v9309_v54 = vadd.f32 %v12534_v5, %v12531_v6 }
 0x4db   : > { %v9265_v47 = vpop.f32.mrf.mxu1 }
 0x4dc   : > { %v9266_v49 = vadd.f32 %v9265_v47, %v9264_v10  ;;  %v12710_v24 = vpop.f32.mrf.mxu0  ;;  %v9318_v10 = vadd.f32 %v12558_v38, %v12555_v23  ;;  %6520 = vmatpush2.bf16.msra.mxu1 %v10027_v36 }
 0x4dd   : > { %v9585_v20 = vpop.f32.mrf.mxu1  ;;  %6986 = vmatprep.subr.bf16.mxu1 %v14216_v15 }
 0x4de   : > { %v12716_v42 = vadd.f32 %v9266_v49, %v12321_v50  ;;  %v5722_v28 = vadd.f32 %v9585_v20, %v9315_v37  ;;  %v12723_v26 = vpop.f32.mrf.mxu0  ;;  %v9312_v20 = vadd.f32 %v12542_v16, %v12539_v44  ;;  %v9321_v44 = vadd.f32 %v12566_v62, %v12563_v22 }
 0x4df   : > { %v5713_v4 = vpop.f32.mrf.mxu1 }
 0x4e0   : > { %14221 = vst [vmem:[#allocation88_spill] sm:$0xff] %v12716_v42  ;;  %v5842_v47 = vadd.f32 %v5722_v28, %v12448_v43  ;;  %v5714_v11 = vadd.f32 %v9309_v54, %v5713_v4  ;;  %v12728_v5 = vpop.f32.mrf.mxu0  ;;  %v9327_v43 = vadd.f32 %v12594_v41, %v12589_v45  ;;  %v5202_v28 = vadd.f32 %v12326_v53, %v12406_v48 }
 0x4e1   : > { %v9586_v50 = vpop.f32.mrf.mxu1  ;;  %v9330_v53 = vadd.f32 %v12603_v9, %v12599_v8  ;;  %v9324_v8 = vadd.f32 %v12577_v12, %v12571_v17  ;;  %v9333_v12 = vadd.f32 %v12615_v55, %v12611_v27 }
 0x4e2   : > { %v5881_v6 = vadd.f32 %v12721_v33, %v5842_v47  ;;  %v5840_v37 = vadd.f32 %v5714_v11, %v12330_v3  ;;  %v5725_v49 = vadd.f32 %v9586_v50, %v9318_v10  ;;  %v12735_v42 = vpop.f32.mrf.mxu0 }
 0x4e3   : > { %v5716_v38 = vpop.f32.mrf.mxu1 }
 0x4e4   : > { %v5913_v23 = vmax.f32 %v5881_v6, 0.0  ;;  %v5879_v36 = vadd.f32 %v12721_v33, %v5840_v37  ;;  %v5843_v54 = vadd.f32 %v5725_v49, %v12452_v61  ;;  %v5717_v4 = vadd.f32 %v9312_v20, %v5716_v38  ;;  %v12743_v3 = vpop.f32.mrf.mxu0 }
 0x4e5   : > { %v9589_v11 = vpop.f32.mrf.mxu1 }
 0x4e6   : > { %6002 = vst.msk [vmem:[#allocation3 + $0x31] sm:$0xff] %vm5943_vm2, %v5913_v23  ;;  %v5911_v16 = vmax.f32 %v5879_v36, 0.0  ;;  %v5882_v41 = vadd.f32 %v12721_v33, %v5843_v54  ;;  %v5738_v45 = vadd.f32 %v9589_v11, %v9327_v43  ;;  %v5841_v10 = vadd.f32 %v5717_v4, %v5202_v28  ;;  %v12749_v47 = vpop.f32.mrf.mxu0 }
 0x4e7   : > { %v5729_v61 = vpop.f32.mrf.mxu1  ;;  %v9339_v23 = vadd.f32 %v12643_v63, %v12638_v60 }
 0x4e8   : > { %6000 = vst.msk [vmem:[#allocation3 + $0x19] sm:$0xff] %vm5943_vm2, %v5911_v16  ;;  %v5914_v48 = vmax.f32 %v5882_v41, 0.0  ;;  %v5846_v50 = vadd.f32 %v5738_v45, %v12471_v34  ;;  %v5730_v6 = vadd.f32 %v9321_v44, %v5729_v61  ;;  %v5880_v22 = vadd.f32 %v12721_v33, %v5841_v10  ;;  %v12756_v62 = vpop.f32.mrf.mxu0 }
 0x4e9   : > { %v9590_v37 = vpop.f32.mrf.mxu1 }
 0x4ea   : > { %6003 = vst.msk [vmem:[#allocation3 + $0x39] sm:$0xff] %vm5943_vm2, %v5914_v48  ;;  %v5885_v49 = vadd.f32 %v12721_v33, %v5846_v50  ;;  %v5844_v20 = vadd.f32 %v5730_v6, %v12459_v13  ;;  %v5741_v38 = vadd.f32 %v9590_v37, %v9330_v53  ;;  %v5912_v9 = vmax.f32 %v5880_v22, 0.0  ;;  %v12763_v43 = vpop.f32.mrf.mxu0  ;;  %v14222_v13 = vld [vmem:[#allocation41_spill] sm:$0xff] }
 0x4eb   : > { %v5732_v34 = vpop.f32.mrf.mxu1  ;;  %v5218_v4 = vadd.f32 %v14222_v13, %v12463_v57  ;;  %v9342_v57 = vadd.f32 %v12652_v21, %v12648_v56  ;;  %v9336_v56 = vadd.f32 %v12629_v32, %v12623_v52  ;;  %v14225_v52 = vld [vmem:[#allocation12_spill] sm:$0xff] }
 0x4ec   : > { %v5917_v36 = vmax.f32 %v5885_v49, 0.0  ;;  %v5883_v54 = vadd.f32 %v12721_v33, %v5844_v20  ;;  %v5847_v28 = vadd.f32 %v5741_v38, %v12478_v30  ;;  %6001 = vst.msk [vmem:[#allocation3 + $0x21] sm:$0xff] %vm5943_vm2, %v5912_v9  ;;  %v5733_v11 = vadd.f32 %v9324_v8, %v5732_v34  ;;  %v12772_v44 = vpop.f32.mrf.mxu0  ;;  %v14223_v9 = vld [vmem:[#allocation23_spill] sm:$0xff] }
 0x4ed   : > { %v9593_v17 = vpop.f32.mrf.mxu1  ;;  %v9351_v20 = vadd.f32 %v12692_v25, %v12687_v7  ;;  %v9345_v25 = vadd.f32 %v12664_v58, %v12660_v31  ;;  %v9354_v58 = vadd.f32 %v12703_v19, %v12697_v51 }
 0x4ee   : > { %6006 = vst.msk [vmem:[#allocation3 + $0x61] sm:$0xff] %vm5943_vm2, %v5917_v36  ;;  %v5915_v60 = vmax.f32 %v5883_v54, 0.0  ;;  %v5886_v63 = vadd.f32 %v12721_v33, %v5847_v28  ;;  %v5754_v16 = vadd.f32 %v9593_v17, %v9339_v23  ;;  %v5845_v41 = vadd.f32 %v5733_v11, %v5218_v4  ;;  %v12778_v30 = vpop.f32.mrf.mxu0  ;;  %v14224_v54 = vld [vmem:[#allocation16_spill] sm:$0xff] }
 0x4ef   : > { %v5745_v45 = vpop.f32.mrf.mxu1  ;;  %v6088_v49 = vld [vmem:[#allocation3 + $0x19] sm:$0xff]  ;;  %v5234_v32 = vadd.f32 %v14225_v52, %v14224_v54 }
 0x4f0   : > { %6004 = vst.msk [vmem:[#allocation3 + $0x49] sm:$0xff] %vm5943_vm2, %v5915_v60  ;;  %v5918_v10 = vmax.f32 %v5886_v63, 0.0  ;;  %v5850_v61 = vadd.f32 %v5754_v16, %v12500_v59  ;;  %v5746_v53 = vadd.f32 %v9333_v12, %v5745_v45  ;;  %v5884_v27 = vadd.f32 %v12721_v33, %v5845_v41  ;;  %v12785_v55 = vpop.f32.mrf.mxu0  ;;  %v10028_v16 = vld [vmem:[%s13609_s5 + $0x38] sm:$0xff]  }
 0x4f1   : > { %v9594_v48 = vpop.f32.mrf.mxu1  ;;  %v6091_v63 = vld [vmem:[#allocation3 + $0x39] sm:$0xff]  ;;  %6726 = vmatpush1.bf16.msra.mxu0 %v10028_v16 }
 0x4f2   : > { %6007 = vst.msk [vmem:[#allocation3 + $0x69] sm:$0xff] %vm5943_vm2, %v5918_v10  ;;  %v5889_v50 = vadd.f32 %v12721_v33, %v5850_v61  ;;  %v5848_v6 = vadd.f32 %v5746_v53, %v12487_v35  ;;  %v5757_v22 = vadd.f32 %v9594_v48, %v9342_v57  ;;  %v5916_v21 = vmax.f32 %v5884_v27, 0.0  ;;  %v12792_v37 = vpop.f32.mrf.mxu0  ;;  %v6090_v53 = vld [vmem:[#allocation3 + $0x31] sm:$0xff]  ;;  %6727 = vmatprep.subr.bf16.mxu0 %v14216_v15 }
 0x4f3   : > { %v5748_v59 = vpop.f32.mrf.mxu1  ;;  %v6142_v23 = vld [vmem:[#allocation3 + $0x1a] sm:$0xff]  ;;  %v6143_v36 = vld [vmem:[#allocation3 + $0x22] sm:$0xff] }
 0x4f4   : > { %v5921_v38 = vmax.f32 %v5889_v50, 0.0  ;;  %v5887_v8 = vadd.f32 %v12721_v33, %v5848_v6  ;;  %v5851_v34 = vadd.f32 %v5757_v22, %v14223_v9  ;;  %v6089_v35 = vld [vmem:[#allocation3 + $0x21] sm:$0xff]  ;;  %6005 = vst.msk [vmem:[#allocation3 + $0x51] sm:$0xff] %vm5943_vm2, %v5916_v21  ;;  %v5749_v28 = vadd.f32 %v9336_v56, %v5748_v59  ;;  %v12801_v13 = vpop.f32.mrf.mxu0 }
 0x4f5   : > { %v9597_v4 = vpop.f32.mrf.mxu1  ;;  %v12803_v11 = vpack.c.bf16 %v6143_v36, %v6142_v23  ;;  %v6123_v7 = vpack.c.bf16 %v6089_v35, %v6088_v49  ;;  %v6124_v6 = vpack.c.bf16 %v6091_v63, %v6090_v53  ;;  %v9363_v49 = vadd.f32 %v12749_v47, %v12743_v3  ;;  %v14227_v23 = vld [vmem:[#allocation34_spill] sm:$0xff] }
 0x4f6   : > { %6010 = vst.msk [vmem:[#allocation3 + $0x91] sm:$0xff] %vm5943_vm2, %v5921_v38  ;;  %v5919_v17 = vmax.f32 %v5887_v8, 0.0  ;;  %v5890_v12 = vadd.f32 %v12721_v33, %v5851_v34  ;;  %v5770_v60 = vadd.f32 %v9597_v4, %v9351_v20  ;;  %v5849_v41 = vadd.f32 %v5749_v28, %v5234_v32  ;;  %v12812_v45 = vpop.f32.mrf.mxu0  ;;  %v14226_v8 = vld [vmem:[#allocation76_spill] sm:$0xff]  ;;  %v6094_v16 = vld [vmem:[#allocation3 + $0x61] sm:$0xff] }
 0x4f7   : > { %7911 = vmatprep.mubr.msk.bf16.mxu1 %vm5943_vm2, %v12803_v11  ;;  %6214 = vrot.lane.b32.xlu0 %v6123_v7, %s10103_s26  ;;  %v5761_v31 = vpop.f32.mrf.mxu1  ;;  %v6092_v34 = vld [vmem:[#allocation3 + $0x49] sm:$0xff]  ;;  %v9357_v3 = vadd.f32 %v12723_v26, %v12710_v24  ;;  %v10029_v7 = vld [vmem:[%s13609_s5 + $0x30] sm:$0xff]   ;;  %v9366_v24 = vadd.f32 %v12763_v43, %v12756_v62  ;;  %v9360_v53 = vadd.f32 %v12735_v42, %v12728_v5 }
 0x4f8   : > { %6008 = vst.msk [vmem:[#allocation3 + $0x79] sm:$0xff] %vm5943_vm2, %v5919_v17  ;;  %v5922_v57 = vmax.f32 %v5890_v12, 0.0  ;;  %v5854_v10 = vadd.f32 %v5770_v60, %v12529_v46  ;;  %v5762_v61 = vadd.f32 %v9345_v25, %v5761_v31  ;;  %v5888_v27 = vadd.f32 %v12721_v33, %v5849_v41  ;;  %v12822_v48 = vpop.f32.mrf.mxu0  ;;  %6728 = vmatpush1.bf16.msra.mxu0 %v10029_v7  ;;  %v10030_v41 = vld [vmem:[%s13609_s5 + $0x28] sm:$0xff]   ;;  %v14230_v42 = vld [vmem:[#allocation77_spill] sm:$0xff]  ;;  %v14231_v5 = vld [vmem:[#allocation14_spill] sm:$0xff] }
 0x4f9   : > { %v9598_v50 = vpop.f32.mrf.mxu1  ;;  %v9348_v46 = vadd.f32 %v12678_v18, %v12672_v40  ;;  %v14228_v40 = vld [vmem:[#allocation100_spill] sm:$0xff]  ;;  %v6095_v4 = vld [vmem:[#allocation3 + $0x69] sm:$0xff]  ;;  %6729 = vmatprep.subr.bf16.mxu0 %v14216_v15 }
 0x4fa   : > { %6011 = vst.msk [vmem:[#allocation3 + $0x99] sm:$0xff] %vm5943_vm2, %v5922_v57  ;;  %v5893_v51 = vadd.f32 %v12721_v33, %v5854_v10  ;;  %v5852_v19 = vadd.f32 %v5762_v61, %v12514_v1  ;;  %v5773_v22 = vadd.f32 %v9598_v50, %v9354_v58  ;;  %v5920_v56 = vmax.f32 %v5888_v27, 0.0  ;;  %v12830_v21 = vpop.f32.mrf.mxu0 }
 0x4fb   : > { %6216 = vrot.lane.b32.xlu0 %v6124_v6, %s10103_s26  ;;  %v5764_v59 = vpop.f32.mrf.mxu1  ;;  %v6093_v1 = vld [vmem:[#allocation3 + $0x51] sm:$0xff]  ;;  %v5250_v18 = vadd.f32 %v14228_v40, %v14227_v23  ;;  %v6126_v10 = vpack.c.bf16 %v6095_v4, %v6094_v16 }
 0x4fc   : > { %v5925_v20 = vmax.f32 %v5893_v51, 0.0  ;;  %v5891_v38 = vadd.f32 %v12721_v33, %v5852_v19  ;;  %v5855_v9 = vadd.f32 %v5773_v22, %v14226_v8  ;;  %6009 = vst.msk [vmem:[#allocation3 + $0x81] sm:$0xff] %vm5943_vm2, %v5920_v56  ;;  %v5765_v36 = vadd.f32 %v9348_v46, %v5764_v59  ;;  %v12840_v35 = vpop.f32.mrf.mxu0  ;;  %v14229_v46 = vld [vmem:[#allocation78_spill] sm:$0xff]  ;;  %6730 = vmatpush1.bf16.msra.mxu0 %v10030_v41 }
 0x4fd   : > { %v9601_v54 = vpop.f32.mrf.mxu1  ;;  %v6125_v52 = vpack.c.bf16 %v6093_v1, %v6092_v34  ;;  %v9375_v51 = vadd.f32 %v12812_v45, %v12801_v13  ;;  %6731 = vmatprep.subr.bf16.mxu0 %v14216_v15  ;;  %v9369_v13 = vadd.f32 %v12778_v30, %v12772_v44  ;;  %v9378_v44 = vadd.f32 %v12830_v21, %v12822_v48  ;;  %v14232_v21 = vld [vmem:[#allocation79_spill] sm:$0xff] }
 0x4fe   : > { %6014 = vst.msk [vmem:[#allocation3 + $0xc1] sm:$0xff] %vm5943_vm2, %v5925_v20  ;;  %v5923_v47 = vmax.f32 %v5891_v38, 0.0  ;;  %v5894_v32 = vadd.f32 %v12721_v33, %v5855_v9  ;;  %v5786_v28 = vadd.f32 %v9601_v54, %v9363_v49  ;;  %v5853_v25 = vadd.f32 %v5765_v36, %v5250_v18  ;;  %v12849_v17 = vpop.f32.mrf.mxu0  ;;  %v10031_v18 = vld [vmem:[%s13609_s5 + $0x20] sm:$0xff]  }
 0x4ff   : > { %6218 = vrot.lane.b32.xlu1 %v6125_v52, %s10103_s26  ;;  %v5777_v12 = vpop.f32.mrf.mxu1  ;;  %v6096_v59 = vld [vmem:[#allocation3 + $0x79] sm:$0xff]  ;;  %v5266_v20 = vadd.f32 %v14231_v5, %v14230_v42 }
 0x500   : > { %6012 = vst.msk [vmem:[#allocation3 + $0xa9] sm:$0xff] %vm5943_vm2, %v5923_v47  ;;  %v5926_v26 = vmax.f32 %v5894_v32, 0.0  ;;  %v5858_v60 = vadd.f32 %v5786_v28, %v12561_v14  ;;  %v5778_v63 = vadd.f32 %v9357_v3, %v5777_v12  ;;  %v5892_v31 = vadd.f32 %v12721_v33, %v5853_v25  ;;  %v12860_v58 = vpop.f32.mrf.mxu0  ;;  %6732 = vmatpush1.bf16.msra.mxu0 %v10031_v18  ;;  %v10032_v32 = vld [vmem:[%s13609_s5 + $0x18] sm:$0xff]  }
 0x501   : > { %v9602_v57 = vpop.f32.mrf.mxu1  ;;  %v6099_v61 = vld [vmem:[#allocation3 + $0x99] sm:$0xff]  ;;  %6733 = vmatprep.subr.bf16.mxu0 %v14216_v15  ;;  %v14237_v18 = vld [vmem:[#allocation82_spill] sm:$0xff] }
 0x502   : > { %6015 = vst.msk [vmem:[#allocation3 + $0xc9] sm:$0xff] %vm5943_vm2, %v5926_v26  ;;  %v5897_v62 = vadd.f32 %v12721_v33, %v5858_v60  ;;  %v5856_v14 = vadd.f32 %v5778_v63, %v12547_v29  ;;  %v5789_v43 = vadd.f32 %v9602_v57, %v9366_v24  ;;  %v5924_v27 = vmax.f32 %v5892_v31, 0.0  ;;  %v12868_v50 = vpop.f32.mrf.mxu0  ;;  %v6098_v29 = vld [vmem:[#allocation3 + $0x91] sm:$0xff] }
 0x503   : > { %6220 = vrot.lane.b32.xlu1 %v6126_v10, %s10103_s26  ;;  %v5780_v6 = vpop.f32.mrf.mxu1  ;;  %v6097_v49 = vld [vmem:[#allocation3 + $0x81] sm:$0xff]  ;;  %v6128_v34 = vpack.c.bf16 %v6099_v61, %v6098_v29  ;;  %v9372_v60 = vadd.f32 %v12792_v37, %v12785_v55  ;;  %v14234_v55 = vld [vmem:[#allocation80_spill] sm:$0xff] }
 0x504   : > { %v5929_v19 = vmax.f32 %v5897_v62, 0.0  ;;  %v5895_v22 = vadd.f32 %v12721_v33, %v5856_v14  ;;  %v5859_v56 = vadd.f32 %v5789_v43, %v14229_v46  ;;  %6013 = vst.msk [vmem:[#allocation3 + $0xb1] sm:$0xff] %vm5943_vm2, %v5924_v27  ;;  %v5781_v38 = vadd.f32 %v9360_v53, %v5780_v6  ;;  %v9385_v8 = vpop.f32.mrf.mxu0  ;;  %v14233_v62 = vld [vmem:[#allocation81_spill] sm:$0xff]  ;;  %6734 = vmatpush1.bf16.msra.mxu0 %v10032_v32  ;;  %v14235_v37 = vld [vmem:[#allocation22_spill] sm:$0xff] }
 0x505   : > { %v9605_v9 = vpop.f32.mrf.mxu1  ;;  %v6127_v1 = vpack.c.bf16 %v6097_v49, %v6096_v59  ;;  %v6102_v25 = vld [vmem:[#allocation3 + $0xc1] sm:$0xff]  ;;  %v5282_v27 = vadd.f32 %v14235_v37, %v14234_v55  ;;  %6735 = vmatprep.subr.bf16.mxu0 %v14216_v15  ;;  %v9381_v46 = vadd.f32 %v12849_v17, %v12840_v35  ;;  %v10034_v35 = vld [vmem:[%s13609_s5 + $0x8] sm:$0xff]  }
 0x506   : > { %6018 = vst.msk [vmem:[#allocation3 + $0xf1] sm:$0xff] %vm5943_vm2, %v5929_v19  ;;  %v5927_v45 = vmax.f32 %v5895_v22, 0.0  ;;  %v5898_v23 = vadd.f32 %v12721_v33, %v5859_v56  ;;  %v5802_v40 = vadd.f32 %v9605_v9, %v9375_v51  ;;  %v5857_v36 = vadd.f32 %v5781_v38, %v5266_v20  ;;  %v9386_v54 = vpop.f32.mrf.mxu0  ;;  %v10033_v53 = vld [vmem:[%s13609_s5 + $0x10] sm:$0xff]  }
 0x507   : > { %6224 = vrot.lane.b32.xlu1 %v6128_v34, %s10103_s26  ;;  %6222 = vrot.lane.b32.xlu0 %v6127_v1, %s10103_s26  ;;  %v5793_v52 = vpop.f32.mrf.mxu1  ;;  %v9387_v57 = vadd.f32 %v9386_v54, %v9385_v8  ;;  %v6100_v43 = vld [vmem:[#allocation3 + $0xa9] sm:$0xff]  ;;  %v14236_v8 = vld [vmem:[#allocation85_spill] sm:$0xff] }
 0x508   : > { %6016 = vst.msk [vmem:[#allocation3 + $0xd9] sm:$0xff] %vm5943_vm2, %v5927_v45  ;;  %v5930_v30 = vmax.f32 %v5898_v23, 0.0  ;;  %v5862_v3 = vadd.f32 %v5802_v40, %v12606_v39  ;;  %v5794_v47 = vadd.f32 %v9369_v13, %v5793_v52  ;;  %v5896_v28 = vadd.f32 %v12721_v33, %v5857_v36  ;;  %v9388_v4 = vpop.f32.mrf.mxu0  ;;  %6736 = vmatpush1.bf16.msra.mxu0 %v10033_v53 }
 0x509   : > { %v9606_v7 = vpop.f32.mrf.mxu1  ;;  %v6103_v12 = vld [vmem:[#allocation3 + $0xc9] sm:$0xff]  ;;  %6737 = vmatprep.subr.bf16.mxu0 %v14216_v15 }
 0x50a   : > { %6019 = vst.msk [vmem:[#allocation3 + $0xf9] sm:$0xff] %vm5943_vm2, %v5930_v30  ;;  %v5901_v48 = vadd.f32 %v12721_v33, %v5862_v3  ;;  %v5860_v39 = vadd.f32 %v5794_v47, %v14232_v21  ;;  %v5805_v24 = vadd.f32 %v9606_v7, %v9378_v44  ;;  %v6130_v26 = vpack.c.bf16 %v6103_v12, %v6102_v25  ;;  %v9389_v16 = vpop.f32.mrf.mxu0 }
 0x50b   : > { %v5928_v63 = vmax.f32 %v5896_v28, 0.0  ;;  %v5796_v41 = vpop.f32.mrf.mxu1  ;;  %v6101_v61 = vld [vmem:[#allocation3 + $0xb1] sm:$0xff]  ;;  %v9390_v38 = vadd.f32 %v9389_v16, %v9388_v4  ;;  %v9384_v44 = vadd.f32 %v12868_v50, %v12860_v58  ;;  %v14238_v4 = vld [vmem:[#allocation86_spill] sm:$0xff] }
 0x50c   : > { %v5933_v31 = vmax.f32 %v5901_v48, 0.0  ;;  %v5899_v10 = vadd.f32 %v12721_v33, %v5860_v39  ;;  %v5863_v14 = vadd.f32 %v5805_v24, %v14233_v62  ;;  %6228 = vrot.lane.b32.xlu1 %v6130_v26, %s10103_s26  ;;  %v5797_v6 = vadd.f32 %v9372_v60, %v5796_v41  ;;  %v9391_v51 = vpop.f32.mrf.mxu0  ;;  %6738 = vmatpush1.bf16.msra.mxu0 %v10034_v35  ;;  %v10035_v48 = vld [vmem:[%s13609_s5] sm:$0xff]   ;;  %v14240_v50 = vld [vmem:[#allocation28_spill] sm:$0xff] }
 0x50d   : > { %6017 = vst.msk [vmem:[#allocation3 + $0xe1] sm:$0xff] %vm5943_vm2, %v5928_v63  ;;  %v9609_v19 = vpop.f32.mrf.mxu1  ;;  %v6129_v22 = vpack.c.bf16 %v6101_v61, %v6100_v43  ;;  %v6106_v45 = vld [vmem:[#allocation3 + $0xf1] sm:$0xff]  ;;  %6739 = vmatprep.subr.bf16.mxu0 %v14216_v15  ;;  %v14241_v61 = vld [vmem:[#allocation29_spill] sm:$0xff] }
 0x50e   : > { %6022 = vst.msk [vmem:[#allocation3 + $0x121] sm:$0xff] %vm5943_vm2, %v5933_v31  ;;  %v5931_v56 = vmax.f32 %v5899_v10, 0.0  ;;  %v5902_v29 = vadd.f32 %v12721_v33, %v5863_v14  ;;  %v5818_v59 = vadd.f32 %v9609_v19, %v9387_v57  ;;  %v5861_v49 = vadd.f32 %v5797_v6, %v5282_v27  ;;  %v9392_v42 = vpop.f32.mrf.mxu0  ;;  %v14239_v58 = vld [vmem:[#allocation83_spill] sm:$0xff]  ;;  %v10036_v19 = vld [vmem:[%s13609_s5 + $0x58] sm:$0xff]  }
 0x50f   : > { %6226 = vrot.lane.b32.xlu0 %v6129_v22, %s10103_s26  ;;  %v5809_v5 = vpop.f32.mrf.mxu1  ;;  %v6104_v25 = vld [vmem:[#allocation3 + $0xd9] sm:$0xff]  ;;  %v5298_v21 = vadd.f32 %v14240_v50, %v14239_v58  ;;  %v9393_v63 = vadd.f32 %v9392_v42, %v9391_v51  ;;  %v5319_v53 = vadd.f32 %v14241_v61, %v12701_v2  ;;  %v14243_v42 = vld [vmem:[#allocation75_spill] sm:$0xff] }
 0x510   : > { %6020 = vst.msk [vmem:[#allocation3 + $0x109] sm:$0xff] %vm5943_vm2, %v5931_v56  ;;  %v5934_v20 = vmax.f32 %v5902_v29, 0.0  ;;  %v5866_v9 = vadd.f32 %v5818_v59, %v14236_v8  ;;  %v5810_v34 = vadd.f32 %v9381_v46, %v5809_v5  ;;  %v5900_v17 = vadd.f32 %v12721_v33, %v5861_v49  ;;  %v9394_v1 = vpop.f32.mrf.mxu0  ;;  %6740 = vmatpush1.bf16.msra.mxu0 %v10035_v48  ;;  %v14242_v49 = vld [vmem:[#allocation87_spill] sm:$0xff]  ;;  %v6145_v61 = vld [vmem:[#allocation3 + $0x3a] sm:$0xff] }
 0x511   : > { %v9610_v13 = vpop.f32.mrf.mxu1  ;;  %v6107_v23 = vld [vmem:[#allocation3 + $0xf9] sm:$0xff]  ;;  %6749 = vmatprep.subr.bf16.mxu0 %v14216_v15  ;;  %v5314_v5 = vadd.f32 %v14243_v42, %v14242_v49  ;;  %v10039_v50 = vld [vmem:[%s13609_s5 + $0x40] sm:$0xff]  }
 0x512   : > { %6023 = vst.msk [vmem:[#allocation3 + $0x129] sm:$0xff] %vm5943_vm2, %v5934_v20  ;;  %v5905_v40 = vadd.f32 %v12721_v33, %v5866_v9  ;;  %v5864_v36 = vadd.f32 %v5810_v34, %v14237_v18  ;;  %v5821_v54 = vadd.f32 %v9610_v13, %v9390_v38  ;;  %v6132_v52 = vpack.c.bf16 %v6107_v23, %v6106_v45  ;;  %v9395_v3 = vpop.f32.mrf.mxu0  ;;  %v14245_v13 = vld [vmem:[#allocation74_spill] sm:$0xff]  ;;  %v10037_v23 = vld [vmem:[%s13609_s5 + $0x50] sm:$0xff]   ;;  %v6147_v49 = vld [vmem:[#allocation3 + $0x52] sm:$0xff] }
 0x513   : > { %v5932_v30 = vmax.f32 %v5900_v17, 0.0  ;;  %v5812_v47 = vpop.f32.mrf.mxu1  ;;  %v9396_v22 = vadd.f32 %v9395_v3, %v9394_v1  ;;  %v14244_v1 = vld [vmem:[#allocation88_spill] sm:$0xff] }
 0x514   : > { %v5937_v32 = vmax.f32 %v5905_v40, 0.0  ;;  %v5903_v28 = vadd.f32 %v12721_v33, %v5864_v36  ;;  %v5867_v7 = vadd.f32 %v5821_v54, %v14238_v4  ;;  %6232 = vrot.lane.b32.xlu1 %v6132_v52, %s10103_s26  ;;  %v6105_v12 = vld [vmem:[#allocation3 + $0xe1] sm:$0xff]  ;;  %v5813_v39 = vadd.f32 %v9384_v44, %v5812_v47  ;;  %v9397_v24 = vpop.f32.mrf.mxu0  ;;  %6750 = vmatpush2.bf16.msra.mxu0 %v10036_v19  ;;  %v6120_v19 = vld [vmem:[#allocation3 + $0x199] sm:$0xff] }
 0x515   : > { %6021 = vst.msk [vmem:[#allocation3 + $0x111] sm:$0xff] %vm5943_vm2, %v5932_v30  ;;  %v9613_v26 = vpop.f32.mrf.mxu1  ;;  %v6131_v60 = vpack.c.bf16 %v6105_v12, %v6104_v25  ;;  %v6110_v6 = vld [vmem:[#allocation3 + $0x121] sm:$0xff]  ;;  %v5322_v45 = vadd.f32 %v14245_v13, %v14244_v1  ;;  %6751 = vmatprep.subr.bf16.mxu0 %v14216_v15  ;;  %v6149_v1 = vld [vmem:[#allocation3 + $0x6a] sm:$0xff] }
 0x516   : > { %6026 = vst.msk [vmem:[#allocation3 + $0x151] sm:$0xff] %vm5943_vm2, %v5937_v32  ;;  %v5935_v16 = vmax.f32 %v5903_v28, 0.0  ;;  %v5906_v41 = vadd.f32 %v12721_v33, %v5867_v7  ;;  %v5865_v31 = vadd.f32 %v5813_v39, %v5298_v21  ;;  %v9398_v57 = vpop.f32.mrf.mxu0  ;;  %v10038_v32 = vld [vmem:[%s13609_s5 + $0x48] sm:$0xff]   ;;  %v6140_v21 = vld [vmem:[#allocation3 + $0x2] sm:$0xff] }
 0x517   : > { %6230 = vrot.lane.b32.xlu0 %v6131_v60, %s10103_s26  ;;  %v5825_v10 = vpop.f32.mrf.mxu1  ;;  %v9399_v14 = vadd.f32 %v9398_v57, %v9397_v24  ;;  %v6108_v35 = vld [vmem:[#allocation3 + $0x109] sm:$0xff]  ;;  %v6086_v24 = vld [vmem:[#allocation3 + $0x1] sm:$0xff] }
 0x518   : > { %6024 = vst.msk [vmem:[#allocation3 + $0x139] sm:$0xff] %vm5943_vm2, %v5935_v16  ;;  %v5938_v62 = vmax.f32 %v5906_v41, 0.0  ;;  %v5826_v43 = vadd.f32 %v9393_v63, %v5825_v10  ;;  %v5904_v55 = vadd.f32 %v12721_v33, %v5865_v31  ;;  %v9400_v37 = vpop.f32.mrf.mxu0  ;;  %6752 = vmatpush2.bf16.msra.mxu0 %v10037_v23  ;;  %v6087_v63 = vld [vmem:[#allocation3 + $0x9] sm:$0xff] }
 0x519   : > { %v9614_v27 = vpop.f32.mrf.mxu1  ;;  %v6111_v51 = vld [vmem:[#allocation3 + $0x129] sm:$0xff]  ;;  %v5834_v46 = vadd.f32 %v9613_v26, %v9399_v14  ;;  %6753 = vmatprep.subr.bf16.mxu0 %v14216_v15  ;;  %v6122_v10 = vpack.c.bf16 %v6087_v63, %v6086_v24  ;;  %v6034_v14 = vld [vmem:[#allocation3 + $0x18] sm:$0xff] }
 0x51a   : > { %6027 = vst.msk [vmem:[#allocation3 + $0x159] sm:$0xff] %vm5943_vm2, %v5938_v62  ;;  %v5868_v56 = vadd.f32 %v5826_v43, %v12682_v0  ;;  %v6134_v29 = vpack.c.bf16 %v6111_v51, %v6110_v6  ;;  %v5936_v2 = vmax.f32 %v5904_v55, 0.0  ;;  %v9401_v59 = vpop.f32.mrf.mxu0  ;;  %v6035_v62 = vld [vmem:[#allocation3 + $0x20] sm:$0xff]  ;;  %v6144_v43 = vld [vmem:[#allocation3 + $0x32] sm:$0xff]  ;;  %v10040_v55 = vld [vmem:[%s13609_s5 + $0xf8] sm:$0xff]  }
 0x51b   : > { %v5828_v20 = vpop.f32.mrf.mxu1  ;;  %v5870_v38 = vadd.f32 %v5834_v46, %v5319_v53  ;;  %v9402_v9 = vadd.f32 %v9401_v59, %v9400_v37  ;;  %v6069_v53 = vpack.c.bf16 %v6035_v62, %v6034_v14  ;;  %v12991_v6 = vpack.c.bf16 %v6145_v61, %v6144_v43  ;;  %v10041_v51 = vld [vmem:[%s13609_s5 + $0xf0] sm:$0xff]   ;;  %v6037_v46 = vld [vmem:[#allocation3 + $0x38] sm:$0xff]  ;;  %v6146_v59 = vld [vmem:[#allocation3 + $0x4a] sm:$0xff] }
 0x51c   : > { %v5907_v8 = vadd.f32 %v12721_v33, %v5868_v56  ;;  %v5829_v34 = vadd.f32 %v9396_v22, %v5828_v20  ;;  %6236 = vrot.lane.b32.xlu1 %v6134_v29, %s10103_s26  ;;  %v6109_v17 = vld [vmem:[#allocation3 + $0x111] sm:$0xff]  ;;  %6025 = vst.msk [vmem:[#allocation3 + $0x141] sm:$0xff] %vm5943_vm2, %v5936_v2  ;;  %6754 = vmatpush2.bf16.msra.mxu0 %v10038_v32  ;;  %v6121_v22 = vld [vmem:[#allocation3 + $0x1a1] sm:$0xff] }
 0x51d   : > { %v6133_v0 = vpack.c.bf16 %v6109_v17, %v6108_v35  ;;  %v5909_v40 = vadd.f32 %v12721_v33, %v5870_v38  ;;  %v5837_v36 = vadd.f32 %v9614_v27, %v9402_v9  ;;  %v6114_v3 = vld [vmem:[#allocation3 + $0x151] sm:$0xff]  ;;  %6755 = vmatprep.subr.bf16.mxu0 %v14216_v15  ;;  %v6139_v56 = vpack.c.bf16 %v6121_v22, %v6120_v19  ;;  %v6038_v35 = vld [vmem:[#allocation3 + $0x48] sm:$0xff] }
 0x51e   : > { %v5939_v18 = vmax.f32 %v5907_v8, 0.0  ;;  %v5869_v54 = vadd.f32 %v5829_v34, %v5314_v5  ;;  %v6036_v29 = vld [vmem:[#allocation3 + $0x30] sm:$0xff]  ;;  %v10042_v5 = vld [vmem:[%s13609_s5 + $0xe8] sm:$0xff]   ;;  %v13008_v38 = vpack.c.bf16 %v6147_v49, %v6146_v59  ;;  %v6148_v17 = vld [vmem:[#allocation3 + $0x62] sm:$0xff] }
 0x51f   : > { %6234 = vrot.lane.b32.xlu0 %v6133_v0, %s10103_s26  ;;  %v5941_v52 = vmax.f32 %v5909_v40, 0.0  ;;  %v5871_v44 = vadd.f32 %v5837_v36, %v5322_v45  ;;  %v6112_v12 = vld [vmem:[#allocation3 + $0x139] sm:$0xff]  ;;  %v6070_v42 = vpack.c.bf16 %v6037_v46, %v6036_v29  ;;  %v10043_v8 = vld [vmem:[%s13609_s5 + $0xe0] sm:$0xff]   ;;  %v10044_v45 = vld [vmem:[%s13609_s5 + $0xd8] sm:$0xff]   ;;  %v13024_v23 = vpack.c.bf16 %v6149_v1, %v6148_v17 }
 0x520   : > { %6028 = vst.msk [vmem:[#allocation3 + $0x169] sm:$0xff] %vm5943_vm2, %v5939_v18  ;;  %v5908_v30 = vadd.f32 %v12721_v33, %v5869_v54  ;;  %6756 = vmatpush2.bf16.msra.mxu0 %v10039_v50  ;;  %v6039_v9 = vld [vmem:[#allocation3 + $0x50] sm:$0xff]  ;;  %v10045_v40 = vld [vmem:[%s13609_s5 + $0xd0] sm:$0xff]   ;;  %v6041_v18 = vld [vmem:[#allocation3 + $0x68] sm:$0xff] }
 0x521   : > { %v6115_v47 = vld [vmem:[#allocation3 + $0x159] sm:$0xff]  ;;  %6030 = vst.msk [vmem:[#allocation3 + $0x181] sm:$0xff] %vm5943_vm2, %v5941_v52  ;;  %v5910_v28 = vadd.f32 %v12721_v33, %v5871_v44  ;;  %v6141_v33 = vld [vmem:[#allocation3 + $0xa] sm:$0xff]  ;;  %v6071_v13 = vpack.c.bf16 %v6039_v9, %v6038_v35  ;;  %v6151_v44 = vld [vmem:[#allocation3 + $0x82] sm:$0xff] }
 0x522   : > { %v5940_v4 = vmax.f32 %v5908_v30, 0.0  ;;  %v6136_v7 = vpack.c.bf16 %v6115_v47, %v6114_v3  ;;  %v6176_v39 = vpack.c.bf16 %v6141_v33, %v6140_v21  ;;  %v6040_v36 = vld [vmem:[#allocation3 + $0x60] sm:$0xff]  ;;  %v10046_v3 = vld [vmem:[%s13609_s5 + $0xc8] sm:$0xff]   ;;  %v10048_v50 = vld [vmem:[%s13609_s5 + $0x118] sm:$0xff]  }
 0x523   : > { %v5942_v25 = vmax.f32 %v5910_v28, 0.0  ;;  %v6113_v48 = vld [vmem:[#allocation3 + $0x141] sm:$0xff]  ;;  %v6072_v30 = vpack.c.bf16 %v6041_v18, %v6040_v36  ;;  %v10047_v28 = vld [vmem:[%s13609_s5 + $0xc0] sm:$0xff]   ;;  %v6045_v24 = vld [vmem:[#allocation3 + $0x98] sm:$0xff] }
 0x524   : > { %6029 = vst.msk [vmem:[#allocation3 + $0x171] sm:$0xff] %vm5943_vm2, %v5940_v4  ;;  %6240 = vrot.lane.b32.xlu1 %v6136_v7, %s10103_s26  ;;  %v6135_v58 = vpack.c.bf16 %v6113_v48, %v6112_v12  ;;  %7939 = vmatprep.mubr.msk.bf16.mxu0 %vm5943_vm2, %v6176_v39  ;;  %v6150_v52 = vld [vmem:[#allocation3 + $0x7a] sm:$0xff]  ;;  %v6152_v12 = vld [vmem:[#allocation3 + $0x92] sm:$0xff]  ;;  %v6154_v63 = vld [vmem:[#allocation3 + $0xaa] sm:$0xff] }
 0x525   : > { %6031 = vst.msk [vmem:[#allocation3 + $0x189] sm:$0xff] %vm5943_vm2, %v5942_v25  ;;  %v13040_v32 = vpack.c.bf16 %v6151_v44, %v6150_v52  ;;  %v6043_v4 = vld [vmem:[#allocation3 + $0x80] sm:$0xff]  ;;  %v6042_v7 = vld [vmem:[#allocation3 + $0x78] sm:$0xff]  ;;  %v10051_v43 = vld [vmem:[%s13609_s5 + $0x100] sm:$0xff]  }
 0x526   : > { %6238 = vrot.lane.b32.xlu0 %v6135_v58, %s10103_s26  ;;  %v6153_v48 = vld [vmem:[#allocation3 + $0x9a] sm:$0xff]  ;;  %v6073_v58 = vpack.c.bf16 %v6043_v4, %v6042_v7  ;;  %v6047_v61 = vld [vmem:[#allocation3 + $0xb0] sm:$0xff]  ;;  %v6049_v29 = vld [vmem:[#allocation3 + $0xc8] sm:$0xff] }
 0x527   : > { %v6116_v26 = vld [vmem:[#allocation3 + $0x169] sm:$0xff]  ;;  %v13056_v33 = vpack.c.bf16 %v6153_v48, %v6152_v12  ;;  %v10049_v39 = vld [vmem:[%s13609_s5 + $0x110] sm:$0xff]   ;;  %v6160_v18 = vld [vmem:[#allocation3 + $0xf2] sm:$0xff] }
 0x528   : > { %v6118_v41 = vld [vmem:[#allocation3 + $0x181] sm:$0xff]  ;;  %v6163_v4 = vld [vmem:[#allocation3 + $0x112] sm:$0xff] }
 0x529   : > { %v6048_v59 = vld [vmem:[#allocation3 + $0xc0] sm:$0xff]  ;;  %v6055_v48 = vld [vmem:[#allocation3 + $0x110] sm:$0xff] }
 0x52a   : > { %v6161_v36 = vld [vmem:[#allocation3 + $0xfa] sm:$0xff] }
 0x52b   : > { %v6117_v60 = vld [vmem:[#allocation3 + $0x171] sm:$0xff]  ;;  %v13107_v44 = vpack.c.bf16 %v6161_v36, %v6160_v18 }
 0x52c   : > { %v6137_v16 = vpack.c.bf16 %v6117_v60, %v6116_v26  ;;  %v6119_v31 = vld [vmem:[#allocation3 + $0x189] sm:$0xff] }
 0x52d   : > { %v6138_v57 = vpack.c.bf16 %v6119_v31, %v6118_v41  ;;  %v6044_v26 = vld [vmem:[#allocation3 + $0x90] sm:$0xff] }
 0x52e   : > { %6242 = vrot.lane.b32.xlu0 %v6137_v16, %s10103_s26  ;;  %v6155_v16 = vld [vmem:[#allocation3 + $0xb2] sm:$0xff]  ;;  %v6074_v41 = vpack.c.bf16 %v6045_v24, %v6044_v26 }
 0x52f   : > { %6244 = vrot.lane.b32.xlu1 %v6138_v57, %s10103_s26  ;;  %v10050_v57 = vld [vmem:[%s13609_s5 + $0x108] sm:$0xff]   ;;  %v13072_v62 = vpack.c.bf16 %v6155_v16, %v6154_v63  ;;  %v6056_v63 = vld [vmem:[#allocation3 + $0x120] sm:$0xff] }
 0x532   : > { %6212 = vrot.lane.b32.xlu0 %v6122_v10, %s10103_s26 }
 0x533   : > { %6246 = vrot.lane.b32.xlu1 %v6139_v56, %s10103_s26 }
 0x569   : > { %v6215_v37 = vpop.permute.xlu0 %6214 }
 0x56a   : > { %v12989_v27 = vsel %vm5943_vm2, %v6069_v53, %v6215_v37  ;;  %v6046_v53 = vld [vmem:[#allocation3 + $0xa8] sm:$0xff] }
 0x56b   : > { %6522 = vmatmul.mubr.bf16.vlgmr.msra.gmra.mxu1 %v12989_v27  ;;  %v6157_v37 = vld [vmem:[#allocation3 + $0xca] sm:$0xff] }
 0x56c   : > { %7912 = vmatprep.mubr.msk.bf16.mxu1 %vm5943_vm2, %v12991_v6  ;;  %6987 = vmatpush1.bf16.msra.mxu1 %v10040_v55  ;;  %v6156_v55 = vld [vmem:[#allocation3 + $0xc2] sm:$0xff] }
 0x56d   : > { %6988 = vmatprep.subr.bf16.mxu1 %v14216_v15  ;;  %v6217_v2 = vpop.permute.xlu0 %6216  ;;  %v13084_v46 = vpack.c.bf16 %v6157_v37, %v6156_v55  ;;  %v6168_v55 = vld [vmem:[#allocation3 + $0x152] sm:$0xff]  ;;  %v6169_v37 = vld [vmem:[#allocation3 + $0x15a] sm:$0xff] }
 0x56e   : > { %v13006_v20 = vsel %vm5943_vm2, %v6070_v42, %v6217_v2  ;;  %v6033_v2 = vld [vmem:[#allocation3 + $0x8] sm:$0xff]  ;;  %v6158_v42 = vld [vmem:[#allocation3 + $0xda] sm:$0xff] }
 0x570   : > { %6989 = vmatpush1.bf16.msra.mxu1 %v10041_v51  ;;  %v6075_v51 = vpack.c.bf16 %v6047_v61, %v6046_v53  ;;  %v6059_v61 = vld [vmem:[#allocation3 + $0x140] sm:$0xff]  ;;  %v6058_v53 = vld [vmem:[#allocation3 + $0x138] sm:$0xff] }
 0x571   : > { %6990 = vmatprep.subr.bf16.mxu1 %v14216_v15  ;;  %v6219_v34 = vpop.permute.xlu1 %6218 }
 0x572   : > { %v13022_v0 = vsel %vm5943_vm2, %v6071_v13, %v6219_v34  ;;  %v6051_v13 = vld [vmem:[#allocation3 + $0xe0] sm:$0xff] }
 0x573   : > { %6530 = vmatmul.mubr.bf16.gmra.mxu1 %v13006_v20 }
 0x574   : > { %7913 = vmatprep.mubr.msk.bf16.mxu1 %vm5943_vm2, %v13008_v38  ;;  %6991 = vmatpush1.bf16.msra.mxu1 %v10042_v5  ;;  %v6159_v5 = vld [vmem:[#allocation3 + $0xe2] sm:$0xff] }
 0x575   : > { %6992 = vmatprep.subr.bf16.mxu1 %v14216_v15  ;;  %v6221_v54 = vpop.permute.xlu1 %6220  ;;  %v13096_v17 = vpack.c.bf16 %v6159_v5, %v6158_v42  ;;  %v6171_v42 = vld [vmem:[#allocation3 + $0x172] sm:$0xff] }
 0x576   : > { %v13038_v47 = vsel %vm5943_vm2, %v6072_v30, %v6221_v54  ;;  %v6053_v30 = vld [vmem:[#allocation3 + $0xf8] sm:$0xff] }
 0x578   : > { %6993 = vmatpush1.bf16.msra.mxu1 %v10043_v8  ;;  %v6076_v8 = vpack.c.bf16 %v6049_v29, %v6048_v59  ;;  %v13152_v29 = vpack.c.bf16 %v6169_v37, %v6168_v55 }
 0x579   : > { %6994 = vmatprep.subr.bf16.mxu1 %v14216_v15  ;;  %v6223_v25 = vpop.permute.xlu0 %6222  ;;  %v6225_v60 = vpop.permute.xlu1 %6224 }
 0x57a   : > { %v13054_v21 = vsel %vm5943_vm2, %v6073_v58, %v6223_v25  ;;  %v13070_v10 = vsel %vm5943_vm2, %v6074_v41, %v6225_v60  ;;  %v6164_v58 = vld [vmem:[#allocation3 + $0x122] sm:$0xff]  ;;  %v6166_v41 = vld [vmem:[#allocation3 + $0x13a] sm:$0xff] }
 0x57b   : > { %6538 = vmatmul.mubr.bf16.gmra.mxu1 %v13022_v0  ;;  %v6057_v60 = vld [vmem:[#allocation3 + $0x128] sm:$0xff] }
 0x57c   : > { %7914 = vmatprep.mubr.msk.bf16.mxu1 %vm5943_vm2, %v13024_v23  ;;  %6995 = vmatpush1.bf16.msra.mxu1 %v10044_v45 }
 0x57d   : > { %6996 = vmatprep.subr.bf16.mxu1 %v14216_v15 }
 0x57e   : > { %v6229_v49 = vpop.permute.xlu1 %6228 }
 0x57f   : > { %v13094_v35 = vsel %vm5943_vm2, %v6076_v8, %v6229_v49  ;;  %v6170_v49 = vld [vmem:[#allocation3 + $0x16a] sm:$0xff] }
 0x580   : > { %6997 = vmatpush1.bf16.msra.mxu1 %v10045_v40  ;;  %v6050_v40 = vld [vmem:[#allocation3 + $0xd8] sm:$0xff]  ;;  %v13163_v8 = vpack.c.bf16 %v6171_v42, %v6170_v49 }
 0x581   : > { %6998 = vmatprep.subr.bf16.mxu1 %v14216_v15  ;;  %v6227_v31 = vpop.permute.xlu0 %6226  ;;  %v6077_v54 = vpack.c.bf16 %v6051_v13, %v6050_v40  ;;  %v6172_v13 = vld [vmem:[#allocation3 + $0x182] sm:$0xff] }
 0x582   : > { %v13082_v22 = vsel %vm5943_vm2, %v6075_v51, %v6227_v31  ;;  %v6167_v31 = vld [vmem:[#allocation3 + $0x142] sm:$0xff]  ;;  %v6081_v51 = vpack.c.bf16 %v6059_v61, %v6058_v53 }
 0x583   : > { %6546 = vmatmul.mubr.bf16.gmra.mxu1 %v13038_v47 }
 0x584   : > { %7915 = vmatprep.mubr.msk.bf16.mxu1 %vm5943_vm2, %v13040_v32  ;;  %6999 = vmatpush1.bf16.msra.mxu1 %v10046_v3  ;;  %v6052_v3 = vld [vmem:[#allocation3 + $0xf0] sm:$0xff] }
 0x585   : > { %7000 = vmatprep.subr.bf16.mxu1 %v14216_v15  ;;  %v6078_v7 = vpack.c.bf16 %v6053_v30, %v6052_v3  ;;  %v6064_v30 = vld [vmem:[#allocation3 + $0x180] sm:$0xff] }
 0x588   : > { %7001 = vmatpush1.bf16.msra.mxu1 %v10047_v28  ;;  %v6233_v28 = vpop.permute.xlu1 %6232 }
 0x589   : > { %7010 = vmatprep.subr.bf16.mxu1 %v14216_v15  ;;  %v6231_v14 = vpop.permute.xlu0 %6230  ;;  %v13116_v25 = vsel %vm5943_vm2, %v6078_v7, %v6233_v28 }
 0x58a   : > { %v13105_v52 = vsel %vm5943_vm2, %v6077_v54, %v6231_v14  ;;  %v6065_v54 = vld [vmem:[#allocation3 + $0x188] sm:$0xff] }
 0x58b   : > { %6554 = vmatmul.mubr.bf16.gmra.mxu1 %v13054_v21  ;;  %v6084_v28 = vpack.c.bf16 %v6065_v54, %v6064_v30 }
 0x58c   : > { %7916 = vmatprep.mubr.msk.bf16.mxu1 %vm5943_vm2, %v13056_v33  ;;  %7011 = vmatpush2.bf16.msra.mxu1 %v10048_v50  ;;  %v6165_v50 = vld [vmem:[#allocation3 + $0x12a] sm:$0xff] }
 0x58d   : > { %7012 = vmatprep.subr.bf16.mxu1 %v14216_v15  ;;  %v13129_v26 = vpack.c.bf16 %v6165_v50, %v6164_v58 }
 0x58e   : > { %v6237_v16 = vpop.permute.xlu1 %6236 }
 0x590   : > { %7013 = vmatpush2.bf16.msra.mxu1 %v10049_v39 }
 0x591   : > { %7014 = vmatprep.subr.bf16.mxu1 %v14216_v15  ;;  %v6235_v19 = vpop.permute.xlu0 %6234 }
 0x593   : > { %6562 = vmatmul.mubr.bf16.gmra.mxu1 %v13070_v10 }
 0x594   : > { %7917 = vmatprep.mubr.msk.bf16.mxu1 %vm5943_vm2, %v13072_v62  ;;  %7015 = vmatpush2.bf16.msra.mxu1 %v10050_v57  ;;  %v6080_v57 = vpack.c.bf16 %v6057_v60, %v6056_v63 }
 0x595   : > { %7016 = vmatprep.subr.bf16.mxu1 %v14216_v15  ;;  %v6032_v15 = vld [vmem:[#allocation3] sm:$0xff] }
 0x596   : > { %v6068_v34 = vpack.c.bf16 %v6033_v2, %v6032_v15  ;;  %v13138_v14 = vsel %vm5943_vm2, %v6080_v57, %v6237_v16  ;;  %v6061_v15 = vld [vmem:[#allocation3 + $0x158] sm:$0xff]  ;;  %v6060_v2 = vld [vmem:[#allocation3 + $0x150] sm:$0xff]  ;;  %v6241_v59 = vpop.permute.xlu1 %6240 }
 0x597   : > { %v6082_v5 = vpack.c.bf16 %v6061_v15, %v6060_v2 }
 0x598   : > { %7017 = vmatpush2.bf16.msra.mxu1 %v10051_v43  ;;  %v13087_v56 = vpop.permute.xlu0 %6238  ;;  %v13140_v43 = vpack.c.bf16 %v6167_v31, %v6166_v41 }
 0x59b   : > { %6570 = vmatmul.mubr.bf16.gmra.mxu1 %v13082_v22 }
 0x59c   : > { %7918 = vmatprep.mubr.msk.bf16.mxu1 %vm5943_vm2, %v13084_v46 }
 0x5a0   : > { %v13091_v9 = vpop.permute.xlu0 %6242 }
 0x5a1   : > { %v6245_v3 = vpop.permute.xlu1 %6244 }
 0x5a3   : > { %6578 = vmatmul.mubr.bf16.gmra.mxu1 %v13094_v35 }
 0x5a4   : > { %7919 = vmatprep.mubr.msk.bf16.mxu1 %vm5943_vm2, %v13096_v17  ;;  %v6213_v1 = vpop.permute.xlu0 %6212 }
 0x5a5   : > { %v6250_v45 = vsel %vm5943_vm2, %v6068_v34, %v6213_v1  ;;  %v6063_v34 = vld [vmem:[#allocation3 + $0x170] sm:$0xff]  ;;  %v6062_v1 = vld [vmem:[#allocation3 + $0x168] sm:$0xff]  ;;  %v6247_v41 = vpop.permute.xlu1 %6246 }
 0x5a6   : > { %6758 = vmatmul.mubr.bf16.vlgmr.msra.gmra.mxu0 %v6250_v45  ;;  %v6173_v45 = vld [vmem:[#allocation3 + $0x18a] sm:$0xff]  ;;  %v6083_v40 = vpack.c.bf16 %v6063_v34, %v6062_v1 }
 0x5a7   : > { %7940 = vmatprep.mubr.msk.bf16.mxu0 %vm5943_vm2, %v12803_v11  ;;  %v6162_v11 = vld [vmem:[#allocation3 + $0x10a] sm:$0xff]  ;;  %v13175_v36 = vpack.c.bf16 %v6173_v45, %v6172_v13 }
 0x5a8   : > { %v13118_v12 = vpack.c.bf16 %v6163_v4, %v6162_v11  ;;  %v13173_v18 = vsel %vm5943_vm2, %v6083_v40, %v13091_v9  ;;  %v13184_v11 = vsel %vm5943_vm2, %v6084_v28, %v6245_v3 }
 0x5ab   : > { %6586 = vmatmul.mubr.bf16.gmra.mxu1 %v13105_v52 }
 0x5ac   : > { %7920 = vmatprep.mubr.msk.bf16.mxu1 %vm5943_vm2, %v13107_v44 }
 0x5ae   : > { %6766 = vmatmul.mubr.bf16.gmra.mxu0 %v12989_v27  ;;  %v6054_v27 = vld [vmem:[#allocation3 + $0x108] sm:$0xff] }
 0x5af   : > { %7941 = vmatprep.mubr.msk.bf16.mxu0 %vm5943_vm2, %v12991_v6  ;;  %v6079_v39 = vpack.c.bf16 %v6055_v48, %v6054_v27  ;;  %v6174_v48 = vld [vmem:[#allocation3 + $0x19a] sm:$0xff]  ;;  %v6175_v27 = vld [vmem:[#allocation3 + $0x1a2] sm:$0xff] }
 0x5b0   : > { %v6193_v50 = vpack.c.bf16 %v6175_v27, %v6174_v48 }
 0x5b1   : > { %v13127_v24 = vsel %vm5943_vm2, %v6079_v39, %v6235_v19  ;;  %v13150_v19 = vsel %vm5943_vm2, %v6081_v51, %v13087_v56  ;;  %v13161_v56 = vsel %vm5943_vm2, %v6082_v5, %v6241_v59 }
 0x5b3   : > { %6594 = vmatmul.mubr.bf16.gmra.mxu1 %v13116_v25 }
 0x5b4   : > { %7921 = vmatprep.mubr.msk.bf16.mxu1 %vm5943_vm2, %v13118_v12 }
 0x5b6   : > { %6774 = vmatmul.mubr.bf16.gmra.mxu0 %v13006_v20 }
 0x5b7   : > { %7942 = vmatprep.mubr.msk.bf16.mxu0 %vm5943_vm2, %v13008_v38 }
 0x5bb   : > { %6602 = vmatmul.mubr.bf16.gmra.mxu1 %v13127_v24 }
 0x5bc   : > { %7922 = vmatprep.mubr.msk.bf16.mxu1 %vm5943_vm2, %v13129_v26 }
 0x5be   : > { %6782 = vmatmul.mubr.bf16.gmra.mxu0 %v13022_v0 }
 0x5bf   : > { %7943 = vmatprep.mubr.msk.bf16.mxu0 %vm5943_vm2, %v13024_v23 }
 0x5c3   : > { %6610 = vmatmul.mubr.bf16.gmra.mxu1 %v13138_v14 }
 0x5c4   : > { %7923 = vmatprep.mubr.msk.bf16.mxu1 %vm5943_vm2, %v13140_v43 }
 0x5c6   : > { %6790 = vmatmul.mubr.bf16.gmra.mxu0 %v13038_v47 }
 0x5c7   : > { %7944 = vmatprep.mubr.msk.bf16.mxu0 %vm5943_vm2, %v13040_v32 }
 0x5cb   : > { %6618 = vmatmul.mubr.bf16.gmra.mxu1 %v13150_v19 }
 0x5cc   : > { %7924 = vmatprep.mubr.msk.bf16.mxu1 %vm5943_vm2, %v13152_v29 }
 0x5ce   : > { %6798 = vmatmul.mubr.bf16.gmra.mxu0 %v13054_v21 }
 0x5cf   : > { %7945 = vmatprep.mubr.msk.bf16.mxu0 %vm5943_vm2, %v13056_v33 }
 0x5d3   : > { %6626 = vmatmul.mubr.bf16.gmra.mxu1 %v13161_v56 }
 0x5d4   : > { %7925 = vmatprep.mubr.msk.bf16.mxu1 %vm5943_vm2, %v13163_v8 }
 0x5d6   : > { %6806 = vmatmul.mubr.bf16.gmra.mxu0 %v13070_v10 }
 0x5d7   : > { %7946 = vmatprep.mubr.msk.bf16.mxu0 %vm5943_vm2, %v13072_v62 }
 0x5db   : > { %6634 = vmatmul.mubr.bf16.gmra.mxu1 %v13173_v18 }
 0x5dc   : > { %7926 = vmatprep.mubr.msk.bf16.mxu1 %vm5943_vm2, %v13175_v36 }
 0x5de   : > { %6814 = vmatmul.mubr.bf16.gmra.mxu0 %v13082_v22 }
 0x5df   : > { %7947 = vmatprep.mubr.msk.bf16.mxu0 %vm5943_vm2, %v13084_v46 }
 0x5e3   : > { %6642 = vmatmul.mubr.bf16.gmra.mxu1 %v13184_v11 }
 0x5e4   : > { %7991 = vmatprep.mubr.msk.bf16.mxu1 %vm5943_vm2, %v12991_v6 }
 0x5e6   : > { %6822 = vmatmul.mubr.bf16.gmra.mxu0 %v13094_v35 }
 0x5e7   : > { %7948 = vmatprep.mubr.msk.bf16.mxu0 %vm5943_vm2, %v13096_v17 }
 0x5eb   : > { %7019 = vmatmul.mubr.bf16.vlgmr.msra.gmra.mxu1 %v13006_v20 }
 0x5ec   : > { %7992 = vmatprep.mubr.msk.bf16.mxu1 %vm5943_vm2, %v13008_v38 }
 0x5ee   : > { %6830 = vmatmul.mubr.bf16.gmra.mxu0 %v13105_v52 }
 0x5ef   : > { %7949 = vmatprep.mubr.msk.bf16.mxu0 %vm5943_vm2, %v13107_v44 }
 0x5f3   : > { %7027 = vmatmul.mubr.bf16.gmra.mxu1 %v13022_v0 }
 0x5f4   : > { %7993 = vmatprep.mubr.msk.bf16.mxu1 %vm5943_vm2, %v13024_v23 }
 0x5f6   : > { %6838 = vmatmul.mubr.bf16.gmra.mxu0 %v13116_v25 }
 0x5f7   : > { %7950 = vmatprep.mubr.msk.bf16.mxu0 %vm5943_vm2, %v13118_v12 }
 0x5fb   : > { %7035 = vmatmul.mubr.bf16.gmra.mxu1 %v13038_v47 }
 0x5fc   : > { %7994 = vmatprep.mubr.msk.bf16.mxu1 %vm5943_vm2, %v13040_v32 }
 0x5fe   : > { %6846 = vmatmul.mubr.bf16.gmra.mxu0 %v13127_v24 }
 0x5ff   : > { %7951 = vmatprep.mubr.msk.bf16.mxu0 %vm5943_vm2, %v13129_v26 }
 0x603   : > { %7043 = vmatmul.mubr.bf16.gmra.mxu1 %v13054_v21 }
 0x604   : > { %7995 = vmatprep.mubr.msk.bf16.mxu1 %vm5943_vm2, %v13056_v33 }
 0x606   : > { %6854 = vmatmul.mubr.bf16.gmra.mxu0 %v13138_v14 }
 0x607   : > { %7952 = vmatprep.mubr.msk.bf16.mxu0 %vm5943_vm2, %v13140_v43 }
 0x60b   : > { %7051 = vmatmul.mubr.bf16.gmra.mxu1 %v13070_v10 }
 0x60c   : > { %7996 = vmatprep.mubr.msk.bf16.mxu1 %vm5943_vm2, %v13072_v62 }
 0x60e   : > { %6862 = vmatmul.mubr.bf16.gmra.mxu0 %v13150_v19 }
 0x60f   : > { %7953 = vmatprep.mubr.msk.bf16.mxu0 %vm5943_vm2, %v13152_v29 }
 0x613   : > { %7059 = vmatmul.mubr.bf16.gmra.mxu1 %v13082_v22 }
 0x614   : > { %7997 = vmatprep.mubr.msk.bf16.mxu1 %vm5943_vm2, %v13084_v46 }
 0x616   : > { %6870 = vmatmul.mubr.bf16.gmra.mxu0 %v13161_v56 }
 0x617   : > { %7954 = vmatprep.mubr.msk.bf16.mxu0 %vm5943_vm2, %v13163_v8 }
 0x61b   : > { %7067 = vmatmul.mubr.bf16.gmra.mxu1 %v13094_v35 }
 0x61c   : > { %7998 = vmatprep.mubr.msk.bf16.mxu1 %vm5943_vm2, %v13096_v17 }
 0x61e   : > { %6878 = vmatmul.mubr.bf16.gmra.mxu0 %v13173_v18 }
 0x623   : > { %7075 = vmatmul.mubr.bf16.gmra.mxu1 %v13105_v52 }
 0x624   : > { %7999 = vmatprep.mubr.msk.bf16.mxu1 %vm5943_vm2, %v13107_v44 }
 0x62b   : > { %v6523_v6 = vpop.f32.mrf.mxu1  ;;  %7083 = vmatmul.mubr.bf16.gmra.mxu1 %v13116_v25 }
 0x62c   : > { %8000 = vmatprep.mubr.msk.bf16.mxu1 %vm5943_vm2, %v13118_v12 }
 0x62d   : > { %v6525_v20 = vpop.f32.mrf.mxu1 }
 0x62f   : > { %v6526_v38 = vpop.f32.mrf.mxu1 }
 0x631   : > { %v6528_v0 = vpop.f32.mrf.mxu1 }
 0x633   : > { %v6531_v23 = vpop.f32.mrf.mxu1  ;;  %7091 = vmatmul.mubr.bf16.gmra.mxu1 %v13127_v24  ;;  %v6066_v24 = vld [vmem:[#allocation3 + $0x198] sm:$0xff] }
 0x634   : > { %8001 = vmatprep.mubr.msk.bf16.mxu1 %vm5943_vm2, %v13129_v26  ;;  %v6067_v26 = vld [vmem:[#allocation3 + $0x1a0] sm:$0xff] }
 0x635   : > { %v6533_v47 = vpop.f32.mrf.mxu1  ;;  %v6085_v63 = vpack.c.bf16 %v6067_v26, %v6066_v24 }
 0x637   : > { %v6534_v32 = vpop.f32.mrf.mxu1  ;;  %v6318_v57 = vsel %vm5943_vm2, %v6085_v63, %v6247_v41 }
 0x639   : > { %v6536_v21 = vpop.f32.mrf.mxu1 }
 0x63b   : > { %v13241_v33 = vpop.f32.mrf.mxu1  ;;  %7099 = vmatmul.mubr.bf16.gmra.mxu1 %v13138_v14 }
 0x63c   : > { %8002 = vmatprep.mubr.msk.bf16.mxu1 %vm5943_vm2, %v13140_v43 }
 0x63d   : > { %v6541_v10 = vpop.f32.mrf.mxu1 }
 0x63f   : > { %v13246_v62 = vpop.f32.mrf.mxu1 }
 0x641   : > { %v6544_v22 = vpop.f32.mrf.mxu1 }
 0x643   : > { %v13248_v46 = vpop.f32.mrf.mxu1  ;;  %7107 = vmatmul.mubr.bf16.gmra.mxu1 %v13150_v19 }
 0x644   : > { %8003 = vmatprep.mubr.msk.bf16.mxu1 %vm5943_vm2, %v13152_v29 }
 0x645   : > { %v6549_v9 = vpop.f32.mrf.mxu1 }
 0x647   : > { %v13253_v35 = vpop.f32.mrf.mxu1 }
 0x649   : > { %v6552_v17 = vpop.f32.mrf.mxu1 }
 0x64b   : > { %v13255_v52 = vpop.f32.mrf.mxu1  ;;  %7115 = vmatmul.mubr.bf16.gmra.mxu1 %v13161_v56 }
 0x64c   : > { %8004 = vmatprep.mubr.msk.bf16.mxu1 %vm5943_vm2, %v13163_v8 }
 0x64d   : > { %v6557_v44 = vpop.f32.mrf.mxu1 }
 0x64f   : > { %v13260_v4 = vpop.f32.mrf.mxu1 }
 0x651   : > { %v6560_v7 = vpop.f32.mrf.mxu1 }
 0x653   : > { %v13262_v25 = vpop.f32.mrf.mxu1  ;;  %7123 = vmatmul.mubr.bf16.gmra.mxu1 %v13173_v18 }
 0x654   : > { %8005 = vmatprep.mubr.msk.bf16.mxu1 %vm5943_vm2, %v13175_v36 }
 0x655   : > { %v6565_v12 = vpop.f32.mrf.mxu1 }
 0x657   : > { %v13267_v58 = vpop.f32.mrf.mxu1 }
 0x659   : > { %v6568_v39 = vpop.f32.mrf.mxu1 }
 0x65b   : > { %v13269_v60 = vpop.f32.mrf.mxu1  ;;  %7131 = vmatmul.mubr.bf16.gmra.mxu1 %v13184_v11 }
 0x65c   : > { %8006 = vmatprep.mubr.msk.bf16.mxu1 %vm5943_vm2, %v6193_v50 }
 0x65d   : > { %v6573_v16 = vpop.f32.mrf.mxu1 }
 0x65f   : > { %v13273_v31 = vpop.f32.mrf.mxu1 }
 0x661   : > { %v6576_v14 = vpop.f32.mrf.mxu1 }
 0x663   : > { %v13276_v43 = vpop.f32.mrf.mxu1  ;;  %7139 = vmatmul.mubr.bf16.gmra.mxu1 %v6318_v57 }
 0x665   : > { %v6581_v61 = vpop.f32.mrf.mxu1 }
 0x666   : > { %v6759_v53 = vpop.f32.mrf.mxu0 }
 0x667   : > { %v13278_v55 = vpop.f32.mrf.mxu1  ;;  %v13280_v37 = vadd.f32 %v6759_v53, %v6523_v6 }
 0x668   : > { %v6761_v51 = vpop.f32.mrf.mxu0 }
 0x669   : > { %v6584_v19 = vpop.f32.mrf.mxu1 }
 0x66a   : > { %v6762_v29 = vpop.f32.mrf.mxu0 }
 0x66b   : > { %v13282_v15 = vpop.f32.mrf.mxu1  ;;  %v13284_v2 = vadd.f32 %v6762_v29, %v6526_v38 }
 0x66c   : > { %v6764_v59 = vpop.f32.mrf.mxu0 }
 0x66d   : > { %v6589_v49 = vpop.f32.mrf.mxu1 }
 0x66e   : > { %v6767_v42 = vpop.f32.mrf.mxu0 }
 0x66f   : > { %v13286_v5 = vpop.f32.mrf.mxu1  ;;  %v13288_v56 = vadd.f32 %v6767_v42, %v6531_v23 }
 0x670   : > { %v6769_v8 = vpop.f32.mrf.mxu0 }
 0x671   : > { %v6592_v34 = vpop.f32.mrf.mxu1 }
 0x672   : > { %v6770_v1 = vpop.f32.mrf.mxu0 }
 0x673   : > { %v13290_v13 = vpop.f32.mrf.mxu1  ;;  %v13292_v45 = vadd.f32 %v6770_v1, %v6534_v32 }
 0x674   : > { %v6772_v40 = vpop.f32.mrf.mxu0 }
 0x675   : > { %v6597_v18 = vpop.f32.mrf.mxu1 }
 0x676   : > { %v6775_v36 = vpop.f32.mrf.mxu0 }
 0x677   : > { %v13294_v54 = vpop.f32.mrf.mxu1  ;;  %v13297_v30 = vadd.f32 %v6775_v36, %v13241_v33 }
 0x678   : > { %v6777_v3 = vpop.f32.mrf.mxu0 }
 0x679   : > { %v6600_v28 = vpop.f32.mrf.mxu1 }
 0x67a   : > { %v6778_v11 = vpop.f32.mrf.mxu0 }
 0x67b   : > { %v13299_v6 = vpop.f32.mrf.mxu1  ;;  %v13302_v20 = vadd.f32 %v6778_v11, %v13246_v62 }
 0x67c   : > { %v6780_v38 = vpop.f32.mrf.mxu0 }
 0x67d   : > { %v6605_v0 = vpop.f32.mrf.mxu1 }
 0x67e   : > { %v6783_v23 = vpop.f32.mrf.mxu0 }
 0x67f   : > { %v13304_v47 = vpop.f32.mrf.mxu1  ;;  %v13307_v32 = vadd.f32 %v6783_v23, %v13248_v46 }
 0x680   : > { %v6785_v21 = vpop.f32.mrf.mxu0 }
 0x681   : > { %v6608_v10 = vpop.f32.mrf.mxu1 }
 0x682   : > { %v6786_v33 = vpop.f32.mrf.mxu0 }
 0x683   : > { %v13309_v22 = vpop.f32.mrf.mxu1  ;;  %v13312_v9 = vadd.f32 %v6786_v33, %v13253_v35 }
 0x684   : > { %v6788_v17 = vpop.f32.mrf.mxu0 }
 0x685   : > { %v6613_v44 = vpop.f32.mrf.mxu1 }
 0x686   : > { %v6791_v62 = vpop.f32.mrf.mxu0 }
 0x687   : > { %v13314_v7 = vpop.f32.mrf.mxu1  ;;  %v13317_v12 = vadd.f32 %v6791_v62, %v13255_v52 }
 0x688   : > { %v6793_v48 = vpop.f32.mrf.mxu0 }
 0x689   : > { %v6616_v27 = vpop.f32.mrf.mxu1 }
 0x68a   : > { %v6794_v46 = vpop.f32.mrf.mxu0 }
 0x68b   : > { %v13319_v50 = vpop.f32.mrf.mxu1  ;;  %v13322_v39 = vadd.f32 %v6794_v46, %v13260_v4 }
 0x68c   : > { %v6796_v24 = vpop.f32.mrf.mxu0 }
 0x68d   : > { %v6621_v26 = vpop.f32.mrf.mxu1 }
 0x68e   : > { %v6799_v35 = vpop.f32.mrf.mxu0 }
 0x68f   : > { %v13324_v63 = vpop.f32.mrf.mxu1  ;;  %v13327_v16 = vadd.f32 %v6799_v35, %v13262_v25 }
 0x690   : > { %v6801_v41 = vpop.f32.mrf.mxu0 }
 0x691   : > { %v6624_v57 = vpop.f32.mrf.mxu1 }
 0x692   : > { %v6802_v52 = vpop.f32.mrf.mxu0 }
 0x693   : > { %v13329_v14 = vpop.f32.mrf.mxu1  ;;  %v13332_v61 = vadd.f32 %v6802_v52, %v13267_v58 }
 0x694   : > { %v6804_v53 = vpop.f32.mrf.mxu0 }
 0x695   : > { %v6629_v51 = vpop.f32.mrf.mxu1 }
 0x696   : > { %v6807_v4 = vpop.f32.mrf.mxu0 }
 0x697   : > { %v13334_v19 = vpop.f32.mrf.mxu1  ;;  %v13337_v29 = vadd.f32 %v6807_v4, %v13269_v60 }
 0x698   : > { %v6809_v59 = vpop.f32.mrf.mxu0 }
 0x699   : > { %v6632_v49 = vpop.f32.mrf.mxu1 }
 0x69a   : > { %v6810_v25 = vpop.f32.mrf.mxu0 }
 0x69b   : > { %v13339_v42 = vpop.f32.mrf.mxu1  ;;  %v13342_v8 = vadd.f32 %v6810_v25, %v13273_v31 }
 0x69c   : > { %v6812_v34 = vpop.f32.mrf.mxu0 }
 0x69d   : > { %v6637_v1 = vpop.f32.mrf.mxu1 }
 0x69e   : > { %v6815_v58 = vpop.f32.mrf.mxu0 }
 0x69f   : > { %v13344_v40 = vpop.f32.mrf.mxu1  ;;  %v13347_v18 = vadd.f32 %v6815_v58, %v13276_v43 }
 0x6a0   : > { %v6817_v36 = vpop.f32.mrf.mxu0 }
 0x6a1   : > { %v6640_v3 = vpop.f32.mrf.mxu1 }
 0x6a2   : > { %v6818_v60 = vpop.f32.mrf.mxu0 }
 0x6a3   : > { %v13349_v28 = vpop.f32.mrf.mxu1  ;;  %v13352_v11 = vadd.f32 %v6818_v60, %v13278_v55 }
 0x6a4   : > { %v6820_v38 = vpop.f32.mrf.mxu0 }
 0x6a5   : > { %v6645_v0 = vpop.f32.mrf.mxu1 }
 0x6a6   : > { %v6823_v31 = vpop.f32.mrf.mxu0 }
 0x6a7   : > { %v13354_v23 = vpop.f32.mrf.mxu1  ;;  %v13357_v21 = vadd.f32 %v6823_v31, %v13282_v15 }
 0x6a8   : > { %v6825_v10 = vpop.f32.mrf.mxu0 }
 0x6a9   : > { %v6648_v33 = vpop.f32.mrf.mxu1 }
 0x6aa   : > { %v6826_v43 = vpop.f32.mrf.mxu0 }
 0x6ab   : > { %v13360_v17 = vadd.f32 %v6826_v43, %v13286_v5  ;;  %v7020_v44 = vpop.f32.mrf.mxu1 }
 0x6ac   : > { %v13363_v62 = vadd.f32 %v7020_v44, %v13280_v37  ;;  %v6828_v55 = vpop.f32.mrf.mxu0 }
 0x6ad   : > { %v7022_v48 = vpop.f32.mrf.mxu1 }
 0x6ae   : > { %v6831_v27 = vpop.f32.mrf.mxu0 }
 0x6af   : > { %v13366_v46 = vadd.f32 %v6831_v27, %v13290_v13  ;;  %v7023_v24 = vpop.f32.mrf.mxu1 }
 0x6b0   : > { %v13369_v15 = vadd.f32 %v7023_v24, %v13284_v2  ;;  %v6833_v26 = vpop.f32.mrf.mxu0 }
 0x6b1   : > { %v7025_v35 = vpop.f32.mrf.mxu1 }
 0x6b2   : > { %v6834_v41 = vpop.f32.mrf.mxu0 }
 0x6b3   : > { %v13372_v5 = vadd.f32 %v6834_v41, %v13294_v54  ;;  %v7028_v57 = vpop.f32.mrf.mxu1 }
 0x6b4   : > { %v13375_v37 = vadd.f32 %v7028_v57, %v13288_v56  ;;  %v6836_v52 = vpop.f32.mrf.mxu0 }
 0x6b5   : > { %v7030_v53 = vpop.f32.mrf.mxu1 }
 0x6b6   : > { %v6839_v51 = vpop.f32.mrf.mxu0 }
 0x6b7   : > { %v13378_v13 = vadd.f32 %v6839_v51, %v13299_v6  ;;  %v7031_v4 = vpop.f32.mrf.mxu1 }
 0x6b8   : > { %v13381_v2 = vadd.f32 %v7031_v4, %v13292_v45  ;;  %v6841_v59 = vpop.f32.mrf.mxu0 }
 0x6b9   : > { %v7033_v49 = vpop.f32.mrf.mxu1 }
 0x6ba   : > { %v6842_v25 = vpop.f32.mrf.mxu0 }
 0x6bb   : > { %v13384_v54 = vadd.f32 %v6842_v25, %v13304_v47  ;;  %v7036_v34 = vpop.f32.mrf.mxu1 }
 0x6bc   : > { %v13387_v56 = vadd.f32 %v7036_v34, %v13297_v30  ;;  %v6844_v1 = vpop.f32.mrf.mxu0 }
 0x6bd   : > { %v7038_v58 = vpop.f32.mrf.mxu1 }
 0x6be   : > { %v6847_v36 = vpop.f32.mrf.mxu0 }
 0x6bf   : > { %v13390_v6 = vadd.f32 %v6847_v36, %v13309_v22  ;;  %v7039_v3 = vpop.f32.mrf.mxu1 }
 0x6c0   : > { %v13393_v45 = vadd.f32 %v7039_v3, %v13302_v20  ;;  %v6849_v60 = vpop.f32.mrf.mxu0 }
 0x6c1   : > { %v7041_v38 = vpop.f32.mrf.mxu1 }
 0x6c2   : > { %v6850_v0 = vpop.f32.mrf.mxu0 }
 0x6c3   : > { %v13396_v47 = vadd.f32 %v6850_v0, %v13314_v7  ;;  %v7044_v31 = vpop.f32.mrf.mxu1 }
 0x6c4   : > { %v13399_v30 = vadd.f32 %v7044_v31, %v13307_v32  ;;  %v6852_v10 = vpop.f32.mrf.mxu0 }
 0x6c5   : > { %v7046_v33 = vpop.f32.mrf.mxu1 }
 0x6c6   : > { %v6855_v43 = vpop.f32.mrf.mxu0 }
 0x6c7   : > { %v13402_v22 = vadd.f32 %v6855_v43, %v13319_v50  ;;  %v7047_v44 = vpop.f32.mrf.mxu1 }
 0x6c8   : > { %v13405_v20 = vadd.f32 %v7047_v44, %v13312_v9  ;;  %v6857_v55 = vpop.f32.mrf.mxu0 }
 0x6c9   : > { %v7049_v48 = vpop.f32.mrf.mxu1 }
 0x6ca   : > { %v6858_v27 = vpop.f32.mrf.mxu0 }
 0x6cb   : > { %v13408_v7 = vadd.f32 %v6858_v27, %v13324_v63  ;;  %v7052_v24 = vpop.f32.mrf.mxu1 }
 0x6cc   : > { %v13411_v32 = vadd.f32 %v7052_v24, %v13317_v12  ;;  %v6860_v26 = vpop.f32.mrf.mxu0 }
 0x6cd   : > { %v7054_v35 = vpop.f32.mrf.mxu1 }
 0x6ce   : > { %v6863_v41 = vpop.f32.mrf.mxu0 }
 0x6cf   : > { %v13414_v50 = vadd.f32 %v6863_v41, %v13329_v14  ;;  %v7055_v57 = vpop.f32.mrf.mxu1 }
 0x6d0   : > { %v13417_v9 = vadd.f32 %v7055_v57, %v13322_v39  ;;  %v6865_v52 = vpop.f32.mrf.mxu0 }
 0x6d1   : > { %v7057_v53 = vpop.f32.mrf.mxu1 }
 0x6d2   : > { %v6866_v51 = vpop.f32.mrf.mxu0 }
 0x6d3   : > { %v13420_v63 = vadd.f32 %v6866_v51, %v13334_v19  ;;  %v7060_v4 = vpop.f32.mrf.mxu1 }
 0x6d4   : > { %v13423_v12 = vadd.f32 %v7060_v4, %v13327_v16  ;;  %v6868_v59 = vpop.f32.mrf.mxu0 }
 0x6d5   : > { %v7062_v49 = vpop.f32.mrf.mxu1 }
 0x6d6   : > { %v6871_v25 = vpop.f32.mrf.mxu0 }
 0x6d7   : > { %v13426_v14 = vadd.f32 %v6871_v25, %v13339_v42  ;;  %v7063_v34 = vpop.f32.mrf.mxu1 }
 0x6d8   : > { %v13429_v39 = vadd.f32 %v7063_v34, %v13332_v61  ;;  %v6873_v1 = vpop.f32.mrf.mxu0 }
 0x6d9   : > { %v7065_v58 = vpop.f32.mrf.mxu1 }
 0x6da   : > { %v6874_v36 = vpop.f32.mrf.mxu0 }
 0x6db   : > { %v13432_v19 = vadd.f32 %v6874_v36, %v13344_v40  ;;  %v7068_v3 = vpop.f32.mrf.mxu1 }
 0x6dc   : > { %v13435_v16 = vadd.f32 %v7068_v3, %v13337_v29  ;;  %v6876_v60 = vpop.f32.mrf.mxu0 }
 0x6dd   : > { %v7070_v38 = vpop.f32.mrf.mxu1 }
 0x6de   : > { %v6879_v0 = vpop.f32.mrf.mxu0 }
 0x6df   : > { %v13438_v42 = vadd.f32 %v6879_v0, %v13349_v28  ;;  %v7071_v31 = vpop.f32.mrf.mxu1 }
 0x6e0   : > { %v13441_v61 = vadd.f32 %v7071_v31, %v13342_v8  ;;  %v6881_v10 = vpop.f32.mrf.mxu0  ;;  %v13455_v8 = vld [vmem:[%s13610_s6] ss:$0 sm:$0xff] }
 0x6e1   : > { %v7073_v33 = vpop.f32.mrf.mxu1  ;;  %v13470_v51 = vadd.f32 %v13455_v8, %v13369_v15 }
 0x6e2   : > { %v6882_v43 = vpop.f32.mrf.mxu0 }
 0x6e3   : > { %v13444_v40 = vadd.f32 %v6882_v43, %v13354_v23  ;;  %v7076_v44 = vpop.f32.mrf.mxu1 }
 0x6e4   : > { %v13447_v29 = vadd.f32 %v7076_v44, %v13347_v18  ;;  %v6884_v55 = vpop.f32.mrf.mxu0  ;;  %v13460_v18 = vadd.f32 %v13455_v8, %v13363_v62 }
 0x6e5   : > { %v7078_v48 = vpop.f32.mrf.mxu1 }
 0x6e7   : > { %v7079_v27 = vpop.f32.mrf.mxu1 }
 0x6e8   : > { %v13450_v28 = vadd.f32 %v7079_v27, %v13352_v11 }
 0x6e9   : > { %v7081_v24 = vpop.f32.mrf.mxu1 }
 0x6eb   : > { %v7084_v26 = vpop.f32.mrf.mxu1 }
 0x6ec   : > { %v7163_v23 = vadd.f32 %v7084_v26, %v13357_v21 }
 0x6ed   : > { %v7086_v35 = vpop.f32.mrf.mxu1 }
 0x6ee   : > { %v13463_v41 = vadd.f32 %v13455_v8, %v7163_v23 }
 0x6ef   : > { %v7087_v57 = vpop.f32.mrf.mxu1 }
 0x6f0   : > { %v7164_v11 = vadd.f32 %v7087_v57, %v13360_v17  ;;  %v9640_v52 = vpack.i.bf16 %v13460_v18, %v13463_v41  ;;  %v13480_v17 = vadd.f32 %v13455_v8, %v13375_v37 }
 0x6f1   : > { %v7089_v53 = vpop.f32.mrf.mxu1 }
 0x6f2   : > { %v13473_v21 = vadd.f32 %v13455_v8, %v7164_v11  ;;  %9641 = vxpose.xlu0.b32.start [1/16] (narrow) %v9640_v52, 32 }
 0x6f3   : > { %v7092_v62 = vpop.f32.mrf.mxu1 }
 0x6f4   : > { %v7165_v4 = vadd.f32 %v7092_v62, %v13366_v46  ;;  %v9642_v59 = vpack.i.bf16 %v13470_v51, %v13473_v21  ;;  %v13490_v46 = vadd.f32 %v13455_v8, %v13381_v2 }
 0x6f5   : > { %v7094_v49 = vpop.f32.mrf.mxu1 }
 0x6f6   : > { %v13483_v25 = vadd.f32 %v13455_v8, %v7165_v4  ;;  %9643 = vxpose.xlu0.b32.cont [2/16] (narrow) %v9642_v59, 32 }
 0x6f7   : > { %v7095_v15 = vpop.f32.mrf.mxu1 }
 0x6f8   : > { %v7166_v34 = vadd.f32 %v7095_v15, %v13372_v5  ;;  %v9644_v1 = vpack.i.bf16 %v13480_v17, %v13483_v25  ;;  %v13500_v5 = vadd.f32 %v13455_v8, %v13387_v56 }
 0x6f9   : > { %v7097_v58 = vpop.f32.mrf.mxu1 }
 0x6fa   : > { %v13493_v36 = vadd.f32 %v13455_v8, %v7166_v34  ;;  %9645 = vxpose.xlu0.b32.cont [3/16] (narrow) %v9644_v1, 32  ;;  %v7196_v58 = vadd.f32 %v13455_v8, %v13423_v12  ;;  %v7198_v12 = vadd.f32 %v13455_v8, %v13435_v16  ;;  %v7200_v16 = vadd.f32 %v13455_v8, %v13447_v29 }
 0x6fb   : > { %v7100_v37 = vpop.f32.mrf.mxu1 }
 0x6fc   : > { %v7167_v3 = vadd.f32 %v7100_v37, %v13378_v13  ;;  %v9646_v60 = vpack.i.bf16 %v13490_v46, %v13493_v36  ;;  %v13510_v13 = vadd.f32 %v13455_v8, %v13393_v45 }
 0x6fd   : > { %v7102_v38 = vpop.f32.mrf.mxu1 }
 0x6fe   : > { %v13503_v0 = vadd.f32 %v13455_v8, %v7167_v3  ;;  %9647 = vxpose.xlu0.b32.cont [4/16] (narrow) %v9646_v60, 32 }
 0x6ff   : > { %v7103_v2 = vpop.f32.mrf.mxu1 }
 0x700   : > { %v7168_v31 = vadd.f32 %v7103_v2, %v13384_v54  ;;  %v9648_v10 = vpack.i.bf16 %v13500_v5, %v13503_v0  ;;  %v13520_v54 = vadd.f32 %v13455_v8, %v13399_v30 }
 0x701   : > { %v7105_v33 = vpop.f32.mrf.mxu1 }
 0x702   : > { %v13513_v43 = vadd.f32 %v13455_v8, %v7168_v31  ;;  %9649 = vxpose.xlu0.b32.cont [5/16] (narrow) %v9648_v10, 32 }
 0x703   : > { %v7108_v56 = vpop.f32.mrf.mxu1 }
 0x704   : > { %v7169_v44 = vadd.f32 %v7108_v56, %v13390_v6  ;;  %v9650_v55 = vpack.i.bf16 %v13510_v13, %v13513_v43  ;;  %v13530_v6 = vadd.f32 %v13455_v8, %v13405_v20 }
 0x705   : > { %v7110_v48 = vpop.f32.mrf.mxu1 }
 0x706   : > { %v13523_v27 = vadd.f32 %v13455_v8, %v7169_v44  ;;  %9651 = vxpose.xlu0.b32.cont [6/16] (narrow) %v9650_v55, 32 }
 0x707   : > { %v7111_v45 = vpop.f32.mrf.mxu1 }
 0x708   : > { %v7170_v24 = vadd.f32 %v7111_v45, %v13396_v47  ;;  %v9652_v26 = vpack.i.bf16 %v13520_v54, %v13523_v27  ;;  %v13540_v47 = vadd.f32 %v13455_v8, %v13411_v32 }
 0x709   : > { %v7113_v23 = vpop.f32.mrf.mxu1 }
 0x70a   : > { %v13533_v35 = vadd.f32 %v13455_v8, %v7170_v24  ;;  %9653 = vxpose.xlu0.b32.cont [7/16] (narrow) %v9652_v26, 32 }
 0x70b   : > { %v7116_v30 = vpop.f32.mrf.mxu1 }
 0x70c   : > { %v7171_v57 = vadd.f32 %v7116_v30, %v13402_v22  ;;  %v9654_v11 = vpack.i.bf16 %v13530_v6, %v13533_v35  ;;  %v7195_v22 = vadd.f32 %v13455_v8, %v13417_v9  ;;  %v7197_v9 = vadd.f32 %v13455_v8, %v13429_v39 }
 0x70d   : > { %v7118_v52 = vpop.f32.mrf.mxu1  ;;  %v7199_v39 = vadd.f32 %v13455_v8, %v13441_v61  ;;  %v7201_v61 = vadd.f32 %v13455_v8, %v13450_v28 }
 0x70e   : > { %v13543_v53 = vadd.f32 %v13455_v8, %v7171_v57  ;;  %9655 = vxpose.xlu0.b32.cont [8/16] (narrow) %v9654_v11, 32 }
 0x70f   : > { %v7119_v20 = vpop.f32.mrf.mxu1 }
 0x710   : > { %v7172_v62 = vadd.f32 %v7119_v20, %v13408_v7  ;;  %v9656_v4 = vpack.i.bf16 %v13540_v47, %v13543_v53 }
 0x711   : > { %v7121_v59 = vpop.f32.mrf.mxu1 }
 0x712   : > { %v7211_v49 = vadd.f32 %v13455_v8, %v7172_v62  ;;  %9657 = vxpose.xlu0.b32.cont [9/16] (narrow) %v9656_v4, 32 }
 0x713   : > { %v7124_v15 = vpop.f32.mrf.mxu1 }
 0x714   : > { %v7173_v32 = vadd.f32 %v7124_v15, %v13414_v50  ;;  %v9658_v34 = vpack.i.bf16 %v7195_v22, %v7211_v49 }
 0x715   : > { %v7126_v1 = vpop.f32.mrf.mxu1 }
 0x716   : > { %v7212_v7 = vadd.f32 %v13455_v8, %v7173_v32  ;;  %9659 = vxpose.xlu0.b32.cont [10/16] (narrow) %v9658_v34, 32 }
 0x717   : > { %v7127_v37 = vpop.f32.mrf.mxu1 }
 0x718   : > { %v7174_v3 = vadd.f32 %v7127_v37, %v13420_v63  ;;  %v9660_v60 = vpack.i.bf16 %v7196_v58, %v7212_v7 }
 0x719   : > { %v7129_v38 = vpop.f32.mrf.mxu1 }
 0x71a   : > { %v7213_v2 = vadd.f32 %v13455_v8, %v7174_v3  ;;  %9661 = vxpose.xlu0.b32.cont [11/16] (narrow) %v9660_v60, 32 }
 0x71b   : > { %v7132_v50 = vpop.f32.mrf.mxu1 }
 0x71c   : > { %v7175_v31 = vadd.f32 %v7132_v50, %v13426_v14  ;;  %v9662_v10 = vpack.i.bf16 %v7197_v9, %v7213_v2 }
 0x71d   : > { %v7134_v33 = vpop.f32.mrf.mxu1 }
 0x71e   : > { %v7214_v56 = vadd.f32 %v13455_v8, %v7175_v31  ;;  %9663 = vxpose.xlu0.b32.cont [12/16] (narrow) %v9662_v10, 32 }
 0x71f   : > { %v7135_v63 = vpop.f32.mrf.mxu1 }
 0x720   : > { %v7176_v44 = vadd.f32 %v7135_v63, %v13432_v19  ;;  %v9664_v55 = vpack.i.bf16 %v7198_v12, %v7214_v56 }
 0x721   : > { %v7137_v48 = vpop.f32.mrf.mxu1 }
 0x722   : > { %v7215_v45 = vadd.f32 %v13455_v8, %v7176_v44  ;;  %9665 = vxpose.xlu0.b32.cont [13/16] (narrow) %v9664_v55, 32 }
 0x723   : > { %v7140_v14 = vpop.f32.mrf.mxu1 }
 0x724   : > { %v7177_v24 = vadd.f32 %v7140_v14, %v13438_v42  ;;  %v9666_v26 = vpack.i.bf16 %v7199_v39, %v7215_v45 }
 0x725   : > { %v7142_v23 = vpop.f32.mrf.mxu1 }
 0x726   : > { %v7216_v30 = vadd.f32 %v13455_v8, %v7177_v24  ;;  %9667 = vxpose.xlu0.b32.cont [14/16] (narrow) %v9666_v26, 32 }
 0x727   : > { %v7143_v19 = vpop.f32.mrf.mxu1 }
 0x728   : > { %v7178_v57 = vadd.f32 %v7143_v19, %v13444_v40  ;;  %v9668_v11 = vpack.i.bf16 %v7200_v16, %v7216_v30 }
 0x729   : > { %v7145_v52 = vpop.f32.mrf.mxu1 }
 0x72a   : > { %v7217_v20 = vadd.f32 %v13455_v8, %v7178_v57  ;;  %9669 = vxpose.xlu0.b32.cont [15/16] (narrow) %v9668_v11, 32 }
 0x72c   : > { %9427 = vmatprep.subr.mxu0 %v7217_v20  ;;  %v9670_v42 = vpack.i.bf16 %v7201_v61, %v7217_v20 }
 0x72d   : > { %9428 = vmatpush3.msra.mxu0 %v7201_v61 }
 0x72e   : > { %9671 = vxpose.xlu0.b32.end [16/16] (narrow) %v9670_v42, 32  ;;  %9429 = vmatprep.subr.mxu0 %v7216_v30 }
 0x72f   : > { %9430 = vmatpush3.msra.mxu0 %v7200_v16 }
 0x730   : > { %9431 = vmatprep.subr.mxu0 %v7215_v45 }
 0x731   : > { %9432 = vmatpush3.msra.mxu0 %v7199_v39 }
 0x732   : > { %9433 = vmatprep.subr.mxu0 %v7214_v56 }
 0x733   : > { %9434 = vmatpush3.msra.mxu0 %v7198_v12 }
 0x734   : > { %9435 = vmatprep.subr.mxu0 %v7213_v2 }
 0x735   : > { %9436 = vmatpush3.msra.mxu0 %v7197_v9 }
 0x736   : > { %9437 = vmatprep.subr.mxu0 %v7212_v7 }
 0x737   : > { %9438 = vmatpush3.msra.mxu0 %v7196_v58 }
 0x738   : > { %9439 = vmatprep.subr.mxu0 %v7211_v49 }
 0x739   : > { %9440 = vmatpush3.msra.mxu0 %v7195_v22 }
 0x73a   : > { %9441 = vmatprep.subr.mxu0 %v13543_v53 }
 0x73b   : > { %9442 = vmatpush3.msra.mxu0 %v13540_v47 }
 0x73c   : > { %9443 = vmatprep.subr.mxu0 %v13533_v35 }
 0x73d   : > { %9444 = vmatpush3.msra.mxu0 %v13530_v6 }
 0x73e   : > { %9445 = vmatprep.subr.mxu0 %v13523_v27 }
 0x73f   : > { %9446 = vmatpush3.msra.mxu0 %v13520_v54 }
 0x740   : > { %9447 = vmatprep.subr.mxu0 %v13513_v43 }
 0x741   : > { %9448 = vmatpush3.msra.mxu0 %v13510_v13 }
 0x742   : > { %9449 = vmatprep.subr.mxu0 %v13503_v0 }
 0x743   : > { %9450 = vmatpush3.msra.mxu0 %v13500_v5 }
 0x744   : > { %9451 = vmatprep.subr.mxu0 %v13493_v36 }
 0x745   : > { %9452 = vmatpush3.msra.mxu0 %v13490_v46 }
 0x746   : > { %9453 = vmatprep.subr.mxu0 %v13483_v25 }
 0x747   : > { %9454 = vmatpush3.msra.mxu0 %v13480_v17 }
 0x748   : > { %9455 = vmatprep.subr.mxu0 %v13473_v21 }
 0x749   : > { %9456 = vmatpush3.msra.mxu0 %v13470_v51 }
 0x74a   : > { %9457 = vmatprep.subr.mxu0 %v13463_v41 }
 0x74b   : > { %9458 = vmatpush3.msra.mxu0 %v13460_v18 }
 0x76e   : > { %v9672_v40 = vpop.trf.xlu0 }
 0x76f   : > { %v9676_v29 = vunpack.i.h.bf16 %v9672_v40  ;;  %v9673_v28 = vunpack.i.l.bf16 %v9672_v40 }
 0x771   : > { %7346 = vmatprep.mubr.f32.mxu0 %v9673_v28 }
 0x772   : > { %v9677_v8 = vpop.trf.xlu0  ;;  %7347 = vmatmul.mubr.f32.vlgmr.msra.gmra.mxu0 %v9676_v29 }
 0x773   : > { %v9681_v46 = vunpack.i.h.bf16 %v9677_v8  ;;  %v9678_v36 = vunpack.i.l.bf16 %v9677_v8 }
 0x775   : > { %7351 = vmatprep.mubr.f32.mxu0 %v9678_v36 }
 0x776   : > { %v9682_v25 = vpop.trf.xlu0  ;;  %7352 = vmatmul.mubr.f32.gmra.mxu0 %v9681_v46 }
 0x777   : > { %v9686_v17 = vunpack.i.h.bf16 %v9682_v25  ;;  %v9683_v21 = vunpack.i.l.bf16 %v9682_v25 }
 0x779   : > { %7356 = vmatprep.mubr.f32.mxu0 %v9683_v21 }
 0x77a   : > { %v9687_v51 = vpop.trf.xlu0  ;;  %7357 = vmatmul.mubr.f32.gmra.mxu0 %v9686_v17 }
 0x77b   : > { %v9691_v41 = vunpack.i.h.bf16 %v9687_v51  ;;  %v9688_v5 = vunpack.i.l.bf16 %v9687_v51 }
 0x77d   : > { %7361 = vmatprep.mubr.f32.mxu0 %v9688_v5 }
 0x77e   : > { %7362 = vmatmul.mubr.f32.gmra.mxu0 %v9691_v41 }
 0x832   : > { %v9459_v18 = vpop.f32.mrf.mxu0 }
 0x834   : > { %v9460_v0 = vpop.f32.mrf.mxu0 }
 0x835   : > { %v9461_v13 = vadd.f32 %v9460_v0, %v9459_v18 }
 0x836   : > { %v9462_v43 = vpop.f32.mrf.mxu0 }
 0x837   : > { %v7367_v54 = vmul.f32 0.00390625, %v9461_v13 }
 0x838   : > { %v9463_v27 = vpop.f32.mrf.mxu0 }
 0x839   : > { %7372 = vst.msk [vmem:[%s293_s13] sm:$0xff] %vm7371_vm4, %v7367_v54  ;;  %v9464_v6 = vadd.f32 %v9463_v27, %v9462_v43 }
 0x83a   : > { %v9465_v35 = vpop.f32.mrf.mxu0 }
 0x83b   : > { %v7368_v47 = vmul.f32 0.00390625, %v9464_v6 }
 0x83c   : > { %v9466_v53 = vpop.f32.mrf.mxu0 }
 0x83d   : > { %7373 = vst.msk [vmem:[%s293_s13 + $0x8] sm:$0xff] %vm7371_vm4, %v7368_v47  ;;  %v9467_v62 = vadd.f32 %v9466_v53, %v9465_v35 }
 0x83e   : > { %v9468_v4 = vpop.f32.mrf.mxu0 }
 0x83f   : > { %v7369_v59 = vmul.f32 0.00390625, %v9467_v62 }
 0x840   : > { %v9469_v22 = vpop.f32.mrf.mxu0 }
 0x841   : > { %7374 = vst.msk [vmem:[%s293_s13 + $0x10] sm:$0xff] %vm7371_vm4, %v7369_v59  ;;  %v9470_v49 = vadd.f32 %v9469_v22, %v9468_v4 }
 0x843   : > { %v7370_v15 = vmul.f32 0.00390625, %v9470_v49 }
 0x845   : > { %7375 = vst.msk [vmem:[%s293_s13 + $0x18] sm:$0xff] %vm7371_vm4, %v7370_v15 }
 0x846 PF: > { %s18_s24 = sadd.s32 1, %s10096_s24  }
 0x847   : > { %p15_p1 = scmp.ge.s32.totalorder %s18_s24, 4  }
 0x849   :  { %17 = sbr.rel (!%p15_p1) target bundleno = 1 (0x1), region = 91 }
 0x84e   :  { %7397 = vsyncpa [#allocation5], 1 }
 0x84f   :  { %7399 = vsyncpa [#allocation5 + $0x1], 1 }

</bundles_post_ra>
